<compile_context>
chip_gen: v7x
topology: tpu7x:2x2x1
jax: 0.10.0
libtpu: 0.0.40
codegen_flags: <defaults>
</compile_context>

<pallas_src>
import functools

import numpy as np
import jax
import jax.numpy as jnp
from jax import lax
from jax.experimental import pallas as pl
from jax.experimental.pallas import tpu as pltpu

PAD = 0              # Constants.PAD
NEG_INF = -1e30      # finite masking sentinel (keeps fully-masked rows finite)
Q_TILE = 256         # max query-tile rows (<=256 is v7x-safe; could raise to 512 on v6e)
TK_CHUNK = 256       # key-axis chunk for the in-kernel online softmax

_SINGLE_BUFFER_WEIGHTS = [True]   # flipped to False if pl.Buffered(1) is unsupported


# ----------------------------------------------------------------------------- #
# In-kernel helpers
# ----------------------------------------------------------------------------- #
def _layer_norm(x, a, b):
    """Old-style LayerNormalization: (x - mu) / (std_unbiased + eps) * a + b, eps=1e-3."""
    D = x.shape[-1]
    mu = jnp.mean(x, axis=-1, keepdims=True)
    var = jnp.sum((x - mu) ** 2, axis=-1, keepdims=True) / jnp.float32(D - 1)
    sigma = jnp.sqrt(var)
    return (x - mu) / (sigma + 1e-3) * a + b


def _project_kv(kv_bf, wk_ref, wv_ref, k_scr, v_scr):
    """Project a full (Tk, D) bf16 sequence into K/V scratch (hoisted, once per batch)."""
    k_scr[...] = jnp.dot(kv_bf, wk_ref[...],
                         preferred_element_type=jnp.float32).astype(k_scr.dtype)
    v_scr[...] = jnp.dot(kv_bf, wv_ref[...],
                         preferred_element_type=jnp.float32).astype(v_scr.dtype)


def _attention_block(x, k_scr, v_scr, wq_ref, pw_ref, pb_ref, la_ref, lb_ref,
                     bias_row, acc_ref, *, n_head, d_k, d_v, inv_temper,
                     causal, q_offset, tk_chunk):
    """Multi-head attention over precomputed K/V scratch + out-proj + residual + LN.

    x        : (tq, D) f32 (block input == residual)
    k_scr    : (Tk, H*d_k) bf16 VMEM scratch      v_scr : (Tk, H*d_v) bf16 VMEM scratch
    bias_row : (1, Tk) f32 additive pad bias      acc_ref: (tq, D) f32 VMEM accumulator
    """
    tq = x.shape[0]
    Tk = k_scr.shape[0]

    # Fused Q projection: one wide MXU matmul; 1/sqrt(d_model) folded into Q.
    q = jnp.dot(x.astype(jnp.bfloat16), wq_ref[...],
                preferred_element_type=jnp.float32) * inv_temper
    q = q.astype(jnp.bfloat16)                                    # (tq, H*d_k)

    acc_ref[...] = jnp.zeros_like(acc_ref)

    # Static key-axis chunks (online softmax keeps (tq, Tk) pressure bounded).
    chunks = [(s0, min(tk_chunk, Tk - s0)) for s0 in range(0, Tk, tk_chunk)]

    for h in range(n_head):
        qh = q[:, h * d_k:(h + 1) * d_k]                          # (tq, d_k) bf16
        m = jnp.full((tq, 1), -jnp.inf, jnp.float32)
        lsum = jnp.zeros((tq, 1), jnp.float32)
        ctx = jnp.zeros((tq, d_v), jnp.float32)

        for s0, sz in chunks:
            kh = k_scr[s0:s0 + sz, h * d_k:(h + 1) * d_k]         # (sz, d_k) bf16
            vh = v_scr[s0:s0 + sz, h * d_v:(h + 1) * d_v]         # (sz, d_v) bf16
            # scores: contract the d_k (minor) dims; Mosaic lowers this NT dot on the MXU.
            s = lax.dot_general(qh, kh, (((1,), (1,)), ((), ())),
                                preferred_element_type=jnp.float32)   # (tq, sz)
            s = s + bias_row[:, s0:s0 + sz]                       # per-key pad bias
            if causal:
                row = lax.broadcasted_iota(jnp.int32, (tq, sz), 0) + q_offset
                col = lax.broadcasted_iota(jnp.int32, (tq, sz), 1) + s0
                s = s + jnp.where(col > row, jnp.float32(NEG_INF), jnp.float32(0.0))
            m_new = jnp.maximum(m, jnp.max(s, axis=-1, keepdims=True))
            alpha = jnp.exp(m - m_new)
            p = jnp.exp(s - m_new)
            lsum = alpha * lsum + jnp.sum(p, axis=-1, keepdims=True)
            ctx = alpha * ctx + jnp.dot(p.astype(jnp.bfloat16), vh,
                                        preferred_element_type=jnp.float32)
            m = m_new

        ctx = ctx * pl.reciprocal(lsum, approx=True)              # (tq, d_v)
        # Per-head output projection accumulated directly into a lane-dense (tq, D)
        # accumulator (equivalent to concat-of-heads @ proj, without sub-lane stores).
        acc_ref[...] += jnp.dot(ctx.astype(jnp.bfloat16),
                                pw_ref[h * d_v:(h + 1) * d_v, :],
                                preferred_element_type=jnp.float32)

    out = acc_ref[...] + pb_ref[...]                              # proj bias
    return _layer_norm(out + x, la_ref[...], lb_ref[...])         # residual + LN (f32)


# ----------------------------------------------------------------------------- #
# Fused decoder-layer kernel
# ----------------------------------------------------------------------------- #
def _decoder_layer_kernel(dq_ref, dkv_ref, ekv_ref, sbias_ref, ebias_ref,
                          s_wq, s_wk, s_wv, s_pw, s_pb, s_la, s_lb,
                          c_wq, c_wk, c_wv, c_pw, c_pb, c_la, c_lb,
                          f_w1, f_b1, f_w2, f_b2, f_la, f_lb,
                          o_ref,
                          dk_scr, dv_scr, ek_scr, ev_scr, acc_scr,
                          *, n_head, d_k, d_v, d_model, tk_chunk):
    """One grid step = one (batch element, query tile): self-attn + cross-attn + FFN."""
    qi = pl.program_id(1)

    # Hoisted K/V projections: compute once per batch element, reuse for every q tile.
    @pl.when(qi == 0)
    def _():
        _project_kv(dkv_ref[0], s_wk, s_wv, dk_scr, dv_scr)       # decoder (self-attn) K/V
        _project_kv(ekv_ref[0], c_wk, c_wv, ek_scr, ev_scr)       # encoder (cross-attn) K/V

    x0 = dq_ref[0].astype(jnp.float32)                            # (tq, D)
    tq = x0.shape[0]
    inv_temper = 1.0 / (float(d_model) ** 0.5)   # old ScaledDotProductAttention scaling

    # Masked (causal + pad) self-attention + residual + LN.
    x1 = _attention_block(x0, dk_scr, dv_scr, s_wq, s_pw, s_pb, s_la, s_lb,
                          sbias_ref[0], acc_scr,
                          n_head=n_head, d_k=d_k, d_v=d_v, inv_temper=inv_temper,
                          causal=True, q_offset=qi * tq, tk_chunk=tk_chunk)

    # Cross-attention over encoder output (pad mask only) + residual + LN.
    x2 = _attention_block(x1, ek_scr, ev_scr, c_wq, c_pw, c_pb, c_la, c_lb,
                          ebias_ref[0], acc_scr,
                          n_head=n_head, d_k=d_k, d_v=d_v, inv_temper=inv_temper,
                          causal=False, q_offset=0, tk_chunk=tk_chunk)

    # Position-wise FFN (Conv1d k=1 == matmul) + residual + LN.
    h = jnp.dot(x2.astype(jnp.bfloat16), f_w1[...],
                preferred_element_type=jnp.float32) + f_b1[...]
    h = jnp.maximum(h, 0.0)
    y = jnp.dot(h.astype(jnp.bfloat16), f_w2[...],
                preferred_element_type=jnp.float32) + f_b2[...]
    o_ref[0] = _layer_norm(y + x2, f_la[...], f_lb[...]).astype(o_ref.dtype)


# ----------------------------------------------------------------------------- #
# pallas_call wrapper
# ----------------------------------------------------------------------------- #
def _nbytes(shape, dtype):
    return int(np.prod(shape)) * jnp.dtype(dtype).itemsize


def _fused_decoder_layer(dec, enc, slf_bias, enc_bias, slf_w, enc_w, ffn_w, *,
                         n_head, d_k, d_v, d_model, single_buffer):
    B, Tq, D = dec.shape
    Ts = enc.shape[1]
    Hdk, Hdv = n_head * d_k, n_head * d_v
    dh = ffn_w["w1"].shape[1]

    tq = Tq if Tq <= Q_TILE else Q_TILE
    n_q = pl.cdiv(Tq, tq)

    weights = ([slf_w[k] for k in ("wq", "wk", "wv", "pw", "pb", "la", "lb")]
               + [enc_w[k] for k in ("wq", "wk", "wv", "pw", "pb", "la", "lb")]
               + [ffn_w[k] for k in ("w1", "b1", "w2", "b2", "la", "lb")])

    def const_spec(arr):
        idx = lambda b, qi, _nd=arr.ndim: (0,) * _nd
        if single_buffer:
            # invariant block index -> a second buffer is pure VMEM waste
            return pl.BlockSpec(arr.shape, idx, pipeline_mode=pl.Buffered(1))
        return pl.BlockSpec(arr.shape, idx)

    in_specs = [
        pl.BlockSpec((1, tq, D), lambda b, qi: (b, qi, 0)),       # q tile (bf16)
        pl.BlockSpec((1, Tq, D), lambda b, qi: (b, 0, 0)),        # full dec seq (bf16)
        pl.BlockSpec((1, Ts, D), lambda b, qi: (b, 0, 0)),        # full enc seq (bf16)
        pl.BlockSpec((1, 1, Tq), lambda b, qi: (b, 0, 0)),        # self-attn pad bias
        pl.BlockSpec((1, 1, Ts), lambda b, qi: (b, 0, 0)),        # cross-attn pad bias
    ] + [const_spec(w) for w in weights]

    scratch = [
        pltpu.VMEM((Tq, Hdk), jnp.bfloat16),                      # dec K (hoisted)
        pltpu.VMEM((Tq, Hdv), jnp.bfloat16),                      # dec V (hoisted)
        pltpu.VMEM((Ts, Hdk), jnp.bfloat16),                      # enc K (hoisted)
        pltpu.VMEM((Ts, Hdv), jnp.bfloat16),                      # enc V (hoisted)
        pltpu.VMEM((tq, D), jnp.float32),                         # out-proj accumulator
    ]

    # Explicit VMEM budget (blocks * buffer counts + scratch), capped for v7x (64 MiB).
    wbuf = 1 if single_buffer else 2
    est = 0
    est += 2 * 2 * _nbytes((tq, D), jnp.bfloat16)                 # q tile in + out
    est += 2 * _nbytes((Tq, D), jnp.bfloat16) + 2 * _nbytes((Ts, D), jnp.bfloat16)
    est += 2 * (_nbytes((1, Tq), jnp.float32) + _nbytes((1, Ts), jnp.float32))
    est += wbuf * sum(_nbytes(w.shape, w.dtype) for w in weights)
    est += (_nbytes((Tq, Hdk), jnp.bfloat16) + _nbytes((Tq, Hdv), jnp.bfloat16)
            + _nbytes((Ts, Hdk), jnp.bfloat16) + _nbytes((Ts, Hdv), jnp.bfloat16)
            + _nbytes((tq, D), jnp.float32))
    vmem_limit = int(min(64 * 1024 * 1024, max(32 * 1024 * 1024, 2 * est)))

    kernel = functools.partial(_decoder_layer_kernel, n_head=n_head, d_k=d_k,
                               d_v=d_v, d_model=d_model, tk_chunk=TK_CHUNK)
    return pl.pallas_call(
        kernel,
        out_shape=jax.ShapeDtypeStruct((B, Tq, D), jnp.bfloat16),
        grid=(B, n_q),
        in_specs=in_specs,
        out_specs=pl.BlockSpec((1, tq, D), lambda b, qi: (b, qi, 0)),
        scratch_shapes=scratch,
        compiler_params=pltpu.CompilerParams(
            # batch is parallel (megacore); query tiles are arbitrary because the
            # hoisted K/V scratch is reused across the qi axis.
            dimension_semantics=("parallel", "arbitrary"),
            vmem_limit_bytes=vmem_limit),
    )(dec, dec, enc, slf_bias, enc_bias, *weights)


def fused_decoder_layer(*args, **kw):
    """Prefer single-buffered weights; fall back if pl.Buffered(1) is unsupported."""
    if _SINGLE_BUFFER_WEIGHTS[0]:
        try:
            return _fused_decoder_layer(*args, single_buffer=True, **kw)
        except Exception:
            _SINGLE_BUFFER_WEIGHTS[0] = False
    return _fused_decoder_layer(*args, single_buffer=False, **kw)


# ----------------------------------------------------------------------------- #
# Parameter init (deterministic, synthetic) & forward glue
# ----------------------------------------------------------------------------- #
def position_encoding_init(n_position, d_pos_vec):
    pe = np.array(
        [[pos / np.power(10000, 2 * (j // 2) / d_pos_vec) for j in range(d_pos_vec)]
         if pos != 0 else np.zeros(d_pos_vec) for pos in range(n_position)])
    pe[1:, 0::2] = np.sin(pe[1:, 0::2])
    pe[1:, 1::2] = np.cos(pe[1:, 1::2])
    return jnp.asarray(pe, dtype=jnp.float32)


def init_params(key, *, n_tgt_vocab, n_max_seq, n_layers, n_head, d_k, d_v,
                d_word_vec, d_model, d_inner_hid):
    keys = iter(jax.random.split(key, 4 + n_layers * 16))

    def nrm(shape, scale=0.1):
        return jax.random.normal(next(keys), shape, jnp.float32) * scale

    word_emb = nrm((n_tgt_vocab, d_word_vec))
    word_emb = word_emb.at[PAD].set(0.0)                   # padding_idx row is zero
    pos_enc = position_encoding_init(n_max_seq + 1, d_word_vec)

    def attn_params():
        return dict(
            w_q=nrm((n_head, d_model, d_k)),
            w_k=nrm((n_head, d_model, d_k)),
            w_v=nrm((n_head, d_model, d_v)),
            proj_w=nrm((n_head * d_v, d_model)),           # Linear weight, transposed
            proj_b=nrm((1, d_model), 0.01),
            ln_a=jnp.ones((1, d_model), jnp.float32),
            ln_b=jnp.zeros((1, d_model), jnp.float32),
        )

    layers = []
    for _ in range(n_layers):
        layers.append(dict(
            slf=attn_params(),
            enc=attn_params(),
            ffn=dict(
                w1=nrm((d_model, d_inner_hid)),            # Conv1d(d_model,d_inner,1) weight^T
                b1=nrm((1, d_inner_hid), 0.01),
                w2=nrm((d_inner_hid, d_model)),            # Conv1d(d_inner,d_model,1) weight^T
                b2=nrm((1, d_model), 0.01),
                ln_a=jnp.ones((1, d_model), jnp.float32),
                ln_b=jnp.zeros((1, d_model), jnp.float32),
            ),
        ))
    return dict(word_emb=word_emb, pos_enc=pos_enc, layers=layers)


def _prep_attn(p):
    """Fold per-head projection mats into wide bf16 matmuls (head-major columns)."""
    H, D, dk = p["w_q"].shape
    dv = p["w_v"].shape[2]
    return dict(
        wq=p["w_q"].transpose(1, 0, 2).reshape(D, H * dk).astype(jnp.bfloat16),
        wk=p["w_k"].transpose(1, 0, 2).reshape(D, H * dk).astype(jnp.bfloat16),
        wv=p["w_v"].transpose(1, 0, 2).reshape(D, H * dv).astype(jnp.bfloat16),
        pw=p["proj_w"].astype(jnp.bfloat16),
        pb=p["proj_b"], la=p["ln_a"], lb=p["ln_b"])


def _prep_ffn(p):
    return dict(w1=p["w1"].astype(jnp.bfloat16), b1=p["b1"],
                w2=p["w2"].astype(jnp.bfloat16), b2=p["b2"],
                la=p["ln_a"], lb=p["ln_b"])


def decoder_forward(params, tgt_seq, tgt_pos, src_seq, enc_output, *, n_head, d_k,
                    d_v, d_model):
    # Embedding lookup (glue, gather in plain JAX); activations cross HBM as bf16.
    dec = (params["word_emb"][tgt_seq] + params["pos_enc"][tgt_pos]).astype(jnp.bfloat16)
    enc = enc_output.astype(jnp.bfloat16)

    # Only per-key pad biases go over HBM (B, 1, Tk); the causal part is built in-kernel.
    slf_bias = jnp.where(tgt_seq == PAD, NEG_INF, 0.0).astype(jnp.float32)[:, None, :]
    enc_bias = jnp.where(src_seq == PAD, NEG_INF, 0.0).astype(jnp.float32)[:, None, :]

    # TODO(synk): dropout layers are identity (eval mode); return_attns path not implemented.
    for lp in params["layers"]:
        dec = fused_decoder_layer(dec, enc, slf_bias, enc_bias,
                                  _prep_attn(lp["slf"]), _prep_attn(lp["enc"]),
                                  _prep_ffn(lp["ffn"]),
                                  n_head=n_head, d_k=d_k, d_v=d_v, d_model=d_model)
    return dec   # bf16 (B, T, d_model)


# ----------------------------------------------------------------------------- #
# Main
# ----------------------------------------------------------------------------- #
if __name__ == "__main__":
    # Small config consistent with the module's __init__ signature.
    cfg = dict(n_tgt_vocab=50, n_max_seq=16, n_layers=2, n_head=4, d_k=8, d_v=8,
               d_word_vec=32, d_model=32, d_inner_hid=64)
    B, T, S = 2, 8, 12

    key = jax.random.PRNGKey(0)
    k_par, k_tgt, k_src, k_enc = jax.random.split(key, 4)

    params = init_params(k_par, **cfg)

    tgt_seq = jax.random.randint(k_tgt, (B, T), 1, cfg["n_tgt_vocab"])
    tgt_seq = tgt_seq.at[0, -1].set(PAD)                              # a padded target token
    tgt_pos = jnp.where(tgt_seq != PAD, jnp.arange(1, T + 1)[None, :], 0)

    src_seq = jax.random.randint(k_src, (B, S), 1, cfg["n_tgt_vocab"])
    src_seq = src_seq.at[1, -2:].set(PAD)                             # padded source tokens
    enc_output = jax.random.normal(k_enc, (B, S, cfg["d_model"]), jnp.float32)

    out = decoder_forward(params, tgt_seq, tgt_pos, src_seq, enc_output,
                          n_head=cfg["n_head"], d_k=cfg["d_k"], d_v=cfg["d_v"],
                          d_model=cfg["d_model"])
    out = jax.block_until_ready(out)

    assert out.shape == (B, T, cfg["d_model"])
    assert bool(jnp.all(jnp.isfinite(out.astype(jnp.float32))))
    print("KERNEL_OK")
</pallas_src>

<mosaic_0001>
module attributes {stable_mosaic.version = 11 : i64} {
  func.func @_decoder_layer_kernel(%arg0: i32, %arg1: i32, %arg2: memref<1x8x32xbf16, #tpu.memory_space<vmem>>, %arg3: memref<1x8x32xbf16, #tpu.memory_space<vmem>>, %arg4: memref<1x12x32xbf16, #tpu.memory_space<vmem>>, %arg5: memref<1x1x8xf32, #tpu.memory_space<vmem>>, %arg6: memref<1x1x12xf32, #tpu.memory_space<vmem>>, %arg7: memref<32x32xbf16, #tpu.memory_space<vmem>>, %arg8: memref<32x32xbf16, #tpu.memory_space<vmem>>, %arg9: memref<32x32xbf16, #tpu.memory_space<vmem>>, %arg10: memref<32x32xbf16, #tpu.memory_space<vmem>>, %arg11: memref<1x32xf32, #tpu.memory_space<vmem>>, %arg12: memref<1x32xf32, #tpu.memory_space<vmem>>, %arg13: memref<1x32xf32, #tpu.memory_space<vmem>>, %arg14: memref<32x32xbf16, #tpu.memory_space<vmem>>, %arg15: memref<32x32xbf16, #tpu.memory_space<vmem>>, %arg16: memref<32x32xbf16, #tpu.memory_space<vmem>>, %arg17: memref<32x32xbf16, #tpu.memory_space<vmem>>, %arg18: memref<1x32xf32, #tpu.memory_space<vmem>>, %arg19: memref<1x32xf32, #tpu.memory_space<vmem>>, %arg20: memref<1x32xf32, #tpu.memory_space<vmem>>, %arg21: memref<32x64xbf16, #tpu.memory_space<vmem>>, %arg22: memref<1x64xf32, #tpu.memory_space<vmem>>, %arg23: memref<64x32xbf16, #tpu.memory_space<vmem>>, %arg24: memref<1x32xf32, #tpu.memory_space<vmem>>, %arg25: memref<1x32xf32, #tpu.memory_space<vmem>>, %arg26: memref<1x32xf32, #tpu.memory_space<vmem>>, %arg27: memref<1x8x32xbf16, #tpu.memory_space<vmem>>, %arg28: memref<8x32xbf16, #tpu.memory_space<vmem>>, %arg29: memref<8x32xbf16, #tpu.memory_space<vmem>>, %arg30: memref<12x32xbf16, #tpu.memory_space<vmem>>, %arg31: memref<12x32xbf16, #tpu.memory_space<vmem>>, %arg32: memref<8x32xf32, #tpu.memory_space<vmem>>) attributes {dimension_semantics = [#tpu.dimension_semantics<parallel>, #tpu.dimension_semantics<arbitrary>], iteration_bounds = array<i64: 2, 1>, scalar_prefetch = 0 : i64, scratch_operands = 5 : i64, tpu.core_type = #tpu.core_type<tc>, window_params = [{transform_indices = @transform_0, window_bounds = array<i64: 1, 8, 32>}, {transform_indices = @transform_1, window_bounds = array<i64: 1, 8, 32>}, {transform_indices = @transform_2, window_bounds = array<i64: 1, 12, 32>}, {transform_indices = @transform_3, window_bounds = array<i64: 1, 1, 8>}, {transform_indices = @transform_4, window_bounds = array<i64: 1, 1, 12>}, {pipeline_mode = #tpu.pipeline_mode<synchronous>, transform_indices = @transform_5, window_bounds = array<i64: 32, 32>}, {pipeline_mode = #tpu.pipeline_mode<synchronous>, transform_indices = @transform_6, window_bounds = array<i64: 32, 32>}, {pipeline_mode = #tpu.pipeline_mode<synchronous>, transform_indices = @transform_7, window_bounds = array<i64: 32, 32>}, {pipeline_mode = #tpu.pipeline_mode<synchronous>, transform_indices = @transform_8, window_bounds = array<i64: 32, 32>}, {pipeline_mode = #tpu.pipeline_mode<synchronous>, transform_indices = @transform_9, window_bounds = array<i64: 1, 32>}, {pipeline_mode = #tpu.pipeline_mode<synchronous>, transform_indices = @transform_10, window_bounds = array<i64: 1, 32>}, {pipeline_mode = #tpu.pipeline_mode<synchronous>, transform_indices = @transform_11, window_bounds = array<i64: 1, 32>}, {pipeline_mode = #tpu.pipeline_mode<synchronous>, transform_indices = @transform_12, window_bounds = array<i64: 32, 32>}, {pipeline_mode = #tpu.pipeline_mode<synchronous>, transform_indices = @transform_13, window_bounds = array<i64: 32, 32>}, {pipeline_mode = #tpu.pipeline_mode<synchronous>, transform_indices = @transform_14, window_bounds = array<i64: 32, 32>}, {pipeline_mode = #tpu.pipeline_mode<synchronous>, transform_indices = @transform_15, window_bounds = array<i64: 32, 32>}, {pipeline_mode = #tpu.pipeline_mode<synchronous>, transform_indices = @transform_16, window_bounds = array<i64: 1, 32>}, {pipeline_mode = #tpu.pipeline_mode<synchronous>, transform_indices = @transform_17, window_bounds = array<i64: 1, 32>}, {pipeline_mode = #tpu.pipeline_mode<synchronous>, transform_indices = @transform_18, window_bounds = array<i64: 1, 32>}, {pipeline_mode = #tpu.pipeline_mode<synchronous>, transform_indices = @transform_19, window_bounds = array<i64: 32, 64>}, {pipeline_mode = #tpu.pipeline_mode<synchronous>, transform_indices = @transform_20, window_bounds = array<i64: 1, 64>}, {pipeline_mode = #tpu.pipeline_mode<synchronous>, transform_indices = @transform_21, window_bounds = array<i64: 64, 32>}, {pipeline_mode = #tpu.pipeline_mode<synchronous>, transform_indices = @transform_22, window_bounds = array<i64: 1, 32>}, {pipeline_mode = #tpu.pipeline_mode<synchronous>, transform_indices = @transform_23, window_bounds = array<i64: 1, 32>}, {pipeline_mode = #tpu.pipeline_mode<synchronous>, transform_indices = @transform_24, window_bounds = array<i64: 1, 32>}, {transform_indices = @transform_25, window_bounds = array<i64: 1, 8, 32>}]} {
    %c0_i32 = arith.constant 0 : i32
    %0 = arith.cmpi eq, %arg1, %c0_i32 : i32
    %1 = arith.extui %0 : i1 to i32
    %c0_i32_0 = arith.constant 0 : i32
    %2 = arith.cmpi ne, %1, %c0_i32_0 : i32
    scf.if %2 {
      %c0_224 = arith.constant 0 : index
      %c0_225 = arith.constant 0 : index
      %c0_226 = arith.constant 0 : index
      %452 = vector.load %arg3[%c0_224, %c0_225, %c0_226] : memref<1x8x32xbf16, #tpu.memory_space<vmem>>, vector<1x8x32xbf16>
      %453 = vector.shape_cast %452 : vector<1x8x32xbf16> to vector<8x32xbf16>
      %c0_227 = arith.constant 0 : index
      %c0_228 = arith.constant 0 : index
      %454 = vector.load %arg8[%c0_227, %c0_228] : memref<32x32xbf16, #tpu.memory_space<vmem>>, vector<32x32xbf16>
      %cst_229 = arith.constant dense<0.000000e+00> : vector<8x32xf32>
      %455 = tpu.matmul %453, %454, %cst_229 {dimension_numbers = #tpu.dot_dimension_numbers<[1], [0], [0], [1], [0, 0, 1, 1], [], []>} : vector<8x32xbf16>, vector<32x32xbf16>, vector<8x32xf32> -> vector<8x32xf32>
      %456 = arith.truncf %455 : vector<8x32xf32> to vector<8x32xbf16>
      %c0_230 = arith.constant 0 : index
      %c0_231 = arith.constant 0 : index
      %457 = vector.load %arg28[%c0_230, %c0_231] : memref<8x32xbf16, #tpu.memory_space<vmem>>, vector<8x32xbf16>
      tpu.vector_store %arg28[%c0_230, %c0_231], %456 {strides = array<i32>} : memref<8x32xbf16, #tpu.memory_space<vmem>>, vector<8x32xbf16>,
      %c0_232 = arith.constant 0 : index
      %c0_233 = arith.constant 0 : index
      %458 = vector.load %arg9[%c0_232, %c0_233] : memref<32x32xbf16, #tpu.memory_space<vmem>>, vector<32x32xbf16>
      %cst_234 = arith.constant dense<0.000000e+00> : vector<8x32xf32>
      %459 = tpu.matmul %453, %458, %cst_234 {dimension_numbers = #tpu.dot_dimension_numbers<[1], [0], [0], [1], [0, 0, 1, 1], [], []>} : vector<8x32xbf16>, vector<32x32xbf16>, vector<8x32xf32> -> vector<8x32xf32>
      %460 = arith.truncf %459 : vector<8x32xf32> to vector<8x32xbf16>
      %c0_235 = arith.constant 0 : index
      %c0_236 = arith.constant 0 : index
      %461 = vector.load %arg29[%c0_235, %c0_236] : memref<8x32xbf16, #tpu.memory_space<vmem>>, vector<8x32xbf16>
      tpu.vector_store %arg29[%c0_235, %c0_236], %460 {strides = array<i32>} : memref<8x32xbf16, #tpu.memory_space<vmem>>, vector<8x32xbf16>,
      %c0_237 = arith.constant 0 : index
      %c0_238 = arith.constant 0 : index
      %c0_239 = arith.constant 0 : index
      %462 = vector.load %arg4[%c0_237, %c0_238, %c0_239] : memref<1x12x32xbf16, #tpu.memory_space<vmem>>, vector<1x12x32xbf16>
      %463 = vector.shape_cast %462 : vector<1x12x32xbf16> to vector<12x32xbf16>
      %c0_240 = arith.constant 0 : index
      %c0_241 = arith.constant 0 : index
      %464 = vector.load %arg15[%c0_240, %c0_241] : memref<32x32xbf16, #tpu.memory_space<vmem>>, vector<32x32xbf16>
      %cst_242 = arith.constant dense<0.000000e+00> : vector<12x32xf32>
      %465 = tpu.matmul %463, %464, %cst_242 {dimension_numbers = #tpu.dot_dimension_numbers<[1], [0], [0], [1], [0, 0, 1, 1], [], []>} : vector<12x32xbf16>, vector<32x32xbf16>, vector<12x32xf32> -> vector<12x32xf32>
      %466 = arith.truncf %465 : vector<12x32xf32> to vector<12x32xbf16>
      %c0_243 = arith.constant 0 : index
      %c0_244 = arith.constant 0 : index
      %467 = vector.load %arg30[%c0_243, %c0_244] : memref<12x32xbf16, #tpu.memory_space<vmem>>, vector<12x32xbf16>
      tpu.vector_store %arg30[%c0_243, %c0_244], %466 {strides = array<i32>} : memref<12x32xbf16, #tpu.memory_space<vmem>>, vector<12x32xbf16>,
      %c0_245 = arith.constant 0 : index
      %c0_246 = arith.constant 0 : index
      %468 = vector.load %arg16[%c0_245, %c0_246] : memref<32x32xbf16, #tpu.memory_space<vmem>>, vector<32x32xbf16>
      %cst_247 = arith.constant dense<0.000000e+00> : vector<12x32xf32>
      %469 = tpu.matmul %463, %468, %cst_247 {dimension_numbers = #tpu.dot_dimension_numbers<[1], [0], [0], [1], [0, 0, 1, 1], [], []>} : vector<12x32xbf16>, vector<32x32xbf16>, vector<12x32xf32> -> vector<12x32xf32>
      %470 = arith.truncf %469 : vector<12x32xf32> to vector<12x32xbf16>
      %c0_248 = arith.constant 0 : index
      %c0_249 = arith.constant 0 : index
      %471 = vector.load %arg31[%c0_248, %c0_249] : memref<12x32xbf16, #tpu.memory_space<vmem>>, vector<12x32xbf16>
      tpu.vector_store %arg31[%c0_248, %c0_249], %470 {strides = array<i32>} : memref<12x32xbf16, #tpu.memory_space<vmem>>, vector<12x32xbf16>,
    } else {
    }
    %c0 = arith.constant 0 : index
    %c0_1 = arith.constant 0 : index
    %c0_2 = arith.constant 0 : index
    %3 = vector.load %arg2[%c0, %c0_1, %c0_2] : memref<1x8x32xbf16, #tpu.memory_space<vmem>>, vector<1x8x32xbf16>
    %4 = vector.shape_cast %3 : vector<1x8x32xbf16> to vector<8x32xbf16>
    %5 = arith.extf %4 : vector<8x32xbf16> to vector<8x32xf32>
    %c0_3 = arith.constant 0 : index
    %c0_4 = arith.constant 0 : index
    %c0_5 = arith.constant 0 : index
    %6 = vector.load %arg5[%c0_3, %c0_4, %c0_5] : memref<1x1x8xf32, #tpu.memory_space<vmem>>, vector<1x1x8xf32>
    %7 = vector.shape_cast %6 : vector<1x1x8xf32> to vector<1x8xf32>
    %c8_i32 = arith.constant 8 : i32
    %8 = arith.muli %arg1, %c8_i32 : i32
    %9 = arith.truncf %5 : vector<8x32xf32> to vector<8x32xbf16>
    %c0_6 = arith.constant 0 : index
    %c0_7 = arith.constant 0 : index
    %10 = vector.load %arg7[%c0_6, %c0_7] : memref<32x32xbf16, #tpu.memory_space<vmem>>, vector<32x32xbf16>
    %cst = arith.constant dense<0.000000e+00> : vector<8x32xf32>
    %11 = tpu.matmul %9, %10, %cst {dimension_numbers = #tpu.dot_dimension_numbers<[1], [0], [0], [1], [0, 0, 1, 1], [], []>} : vector<8x32xbf16>, vector<32x32xbf16>, vector<8x32xf32> -> vector<8x32xf32>
    %cst_8 = arith.constant 0.176776692 : f32
    %12 = vector.broadcast %cst_8 : f32 to vector<8x32xf32>
    %13 = arith.mulf %11, %12 : vector<8x32xf32>
    %14 = arith.truncf %13 : vector<8x32xf32> to vector<8x32xbf16>
    %cst_9 = arith.constant 0.000000e+00 : f32
    %15 = vector.broadcast %cst_9 : f32 to vector<8x32xf32>
    %c0_10 = arith.constant 0 : index
    %c0_11 = arith.constant 0 : index
    %16 = vector.load %arg32[%c0_10, %c0_11] : memref<8x32xf32, #tpu.memory_space<vmem>>, vector<8x32xf32>
    tpu.vector_store %arg32[%c0_10, %c0_11], %15 {strides = array<i32>} : memref<8x32xf32, #tpu.memory_space<vmem>>, vector<8x32xf32>,
    %17 = vector.extract_strided_slice %14 {offsets = [0, 0], sizes = [8, 8], strides = [1, 1]} : vector<8x32xbf16> to vector<8x8xbf16>
    %cst_12 = arith.constant 0xFF800000 : f32
    %18 = vector.broadcast %cst_12 : f32 to vector<8x1xf32>
    %cst_13 = arith.constant 0.000000e+00 : f32
    %19 = vector.broadcast %cst_13 : f32 to vector<8x1xf32>
    %cst_14 = arith.constant 0.000000e+00 : f32
    %20 = vector.broadcast %cst_14 : f32 to vector<8x8xf32>
    %c0_15 = arith.constant 0 : index
    %c0_16 = arith.constant 0 : index
    %21 = vector.load %arg28[%c0_15, %c0_16] : memref<8x32xbf16, #tpu.memory_space<vmem>>, vector<8x8xbf16>
    %c0_17 = arith.constant 0 : index
    %c0_18 = arith.constant 0 : index
    %22 = vector.load %arg29[%c0_17, %c0_18] : memref<8x32xbf16, #tpu.memory_space<vmem>>, vector<8x8xbf16>
    %cst_19 = arith.constant dense<0.000000e+00> : vector<8x8xf32>
    %23 = tpu.matmul %17, %21, %cst_19 {dimension_numbers = #tpu.dot_dimension_numbers<[1], [1], [0], [0], [0, 0, 1, 0], [], []>} : vector<8x8xbf16>, vector<8x8xbf16>, vector<8x8xf32> -> vector<8x8xf32>
    %24 = vector.broadcast %7 : vector<1x8xf32> to vector<8x8xf32>
    %25 = arith.addf %23, %24 : vector<8x8xf32>
    %26 = tpu.iota {dimensions = array<i32: 0>} : vector<8x8xi32>
    %27 = vector.broadcast %8 : i32 to vector<8x8xi32>
    %28 = arith.addi %26, %27 : vector<8x8xi32>
    %29 = tpu.iota {dimensions = array<i32: 1>} : vector<8x8xi32>
    %c0_i32_20 = arith.constant 0 : i32
    %30 = vector.broadcast %c0_i32_20 : i32 to vector<8x8xi32>
    %31 = arith.addi %29, %30 : vector<8x8xi32>
    %32 = arith.cmpi sgt, %31, %28 : vector<8x8xi32>
    %cst_21 = arith.constant -1.000000e+30 : f32
    %cst_22 = arith.constant 0.000000e+00 : f32
    %33 = vector.broadcast %cst_21 : f32 to vector<8x8xf32>
    %34 = vector.broadcast %cst_22 : f32 to vector<8x8xf32>
    %35 = arith.select %32, %33, %34 : vector<8x8xi1>, vector<8x8xf32>
    %36 = arith.addf %25, %35 : vector<8x8xf32>
    %cst_23 = arith.constant dense<0xFF800000> : vector<8xf32>
    %37 = vector.multi_reduction <maximumf>, %36, %cst_23 [1] : vector<8x8xf32> to vector<8xf32>
    %38 = vector.shape_cast %37 : vector<8xf32> to vector<8x1xf32>
    %39 = arith.maximumf %18, %38 : vector<8x1xf32>
    %40 = arith.subf %18, %39 : vector<8x1xf32>
    %41 = math.exp %40 : vector<8x1xf32>
    %42 = vector.broadcast %39 : vector<8x1xf32> to vector<8x8xf32>
    %43 = arith.subf %36, %42 : vector<8x8xf32>
    %44 = math.exp %43 : vector<8x8xf32>
    %45 = arith.mulf %41, %19 : vector<8x1xf32>
    %cst_24 = arith.constant dense<0.000000e+00> : vector<8xf32>
    %46 = vector.multi_reduction <add>, %44, %cst_24 [1] : vector<8x8xf32> to vector<8xf32>
    %47 = vector.shape_cast %46 : vector<8xf32> to vector<8x1xf32>
    %48 = arith.addf %45, %47 : vector<8x1xf32>
    %49 = vector.broadcast %41 : vector<8x1xf32> to vector<8x8xf32>
    %50 = arith.mulf %49, %20 : vector<8x8xf32>
    %51 = arith.truncf %44 : vector<8x8xf32> to vector<8x8xbf16>
    %cst_25 = arith.constant dense<0.000000e+00> : vector<8x8xf32>
    %52 = tpu.matmul %51, %22, %cst_25 {dimension_numbers = #tpu.dot_dimension_numbers<[1], [0], [0], [1], [0, 0, 1, 1], [], []>} : vector<8x8xbf16>, vector<8x8xbf16>, vector<8x8xf32> -> vector<8x8xf32>
    %53 = arith.addf %50, %52 : vector<8x8xf32>
    %54 = tpu.reciprocal %48 {approx = true} : vector<8x1xf32> -> vector<8x1xf32>
    %55 = vector.broadcast %54 : vector<8x1xf32> to vector<8x8xf32>
    %56 = arith.mulf %53, %55 : vector<8x8xf32>
    %c0_26 = arith.constant 0 : index
    %c0_27 = arith.constant 0 : index
    %57 = vector.load %arg32[%c0_26, %c0_27] : memref<8x32xf32, #tpu.memory_space<vmem>>, vector<8x32xf32>
    %58 = arith.truncf %56 : vector<8x8xf32> to vector<8x8xbf16>
    %c0_28 = arith.constant 0 : index
    %c0_29 = arith.constant 0 : index
    %59 = vector.load %arg10[%c0_28, %c0_29] : memref<32x32xbf16, #tpu.memory_space<vmem>>, vector<8x32xbf16>
    %cst_30 = arith.constant dense<0.000000e+00> : vector<8x32xf32>
    %60 = tpu.matmul %58, %59, %cst_30 {dimension_numbers = #tpu.dot_dimension_numbers<[1], [0], [0], [1], [0, 0, 1, 1], [], []>} : vector<8x8xbf16>, vector<8x32xbf16>, vector<8x32xf32> -> vector<8x32xf32>
    %61 = arith.addf %57, %60 : vector<8x32xf32>
    %c0_31 = arith.constant 0 : index
    %c0_32 = arith.constant 0 : index
    %62 = vector.load %arg32[%c0_31, %c0_32] : memref<8x32xf32, #tpu.memory_space<vmem>>, vector<8x32xf32>
    tpu.vector_store %arg32[%c0_31, %c0_32], %61 {strides = array<i32>} : memref<8x32xf32, #tpu.memory_space<vmem>>, vector<8x32xf32>,
    %63 = vector.extract_strided_slice %14 {offsets = [0, 8], sizes = [8, 8], strides = [1, 1]} : vector<8x32xbf16> to vector<8x8xbf16>
    %cst_33 = arith.constant 0xFF800000 : f32
    %64 = vector.broadcast %cst_33 : f32 to vector<8x1xf32>
    %cst_34 = arith.constant 0.000000e+00 : f32
    %65 = vector.broadcast %cst_34 : f32 to vector<8x1xf32>
    %cst_35 = arith.constant 0.000000e+00 : f32
    %66 = vector.broadcast %cst_35 : f32 to vector<8x8xf32>
    %c0_36 = arith.constant 0 : index
    %c8 = arith.constant 8 : index
    %67 = vector.load %arg28[%c0_36, %c8] : memref<8x32xbf16, #tpu.memory_space<vmem>>, vector<8x8xbf16>
    %c0_37 = arith.constant 0 : index
    %c8_38 = arith.constant 8 : index
    %68 = vector.load %arg29[%c0_37, %c8_38] : memref<8x32xbf16, #tpu.memory_space<vmem>>, vector<8x8xbf16>
    %cst_39 = arith.constant dense<0.000000e+00> : vector<8x8xf32>
    %69 = tpu.matmul %63, %67, %cst_39 {dimension_numbers = #tpu.dot_dimension_numbers<[1], [1], [0], [0], [0, 0, 1, 0], [], []>} : vector<8x8xbf16>, vector<8x8xbf16>, vector<8x8xf32> -> vector<8x8xf32>
    %70 = vector.broadcast %7 : vector<1x8xf32> to vector<8x8xf32>
    %71 = arith.addf %69, %70 : vector<8x8xf32>
    %72 = tpu.iota {dimensions = array<i32: 0>} : vector<8x8xi32>
    %73 = vector.broadcast %8 : i32 to vector<8x8xi32>
    %74 = arith.addi %72, %73 : vector<8x8xi32>
    %75 = tpu.iota {dimensions = array<i32: 1>} : vector<8x8xi32>
    %c0_i32_40 = arith.constant 0 : i32
    %76 = vector.broadcast %c0_i32_40 : i32 to vector<8x8xi32>
    %77 = arith.addi %75, %76 : vector<8x8xi32>
    %78 = arith.cmpi sgt, %77, %74 : vector<8x8xi32>
    %cst_41 = arith.constant -1.000000e+30 : f32
    %cst_42 = arith.constant 0.000000e+00 : f32
    %79 = vector.broadcast %cst_41 : f32 to vector<8x8xf32>
    %80 = vector.broadcast %cst_42 : f32 to vector<8x8xf32>
    %81 = arith.select %78, %79, %80 : vector<8x8xi1>, vector<8x8xf32>
    %82 = arith.addf %71, %81 : vector<8x8xf32>
    %cst_43 = arith.constant dense<0xFF800000> : vector<8xf32>
    %83 = vector.multi_reduction <maximumf>, %82, %cst_43 [1] : vector<8x8xf32> to vector<8xf32>
    %84 = vector.shape_cast %83 : vector<8xf32> to vector<8x1xf32>
    %85 = arith.maximumf %64, %84 : vector<8x1xf32>
    %86 = arith.subf %64, %85 : vector<8x1xf32>
    %87 = math.exp %86 : vector<8x1xf32>
    %88 = vector.broadcast %85 : vector<8x1xf32> to vector<8x8xf32>
    %89 = arith.subf %82, %88 : vector<8x8xf32>
    %90 = math.exp %89 : vector<8x8xf32>
    %91 = arith.mulf %87, %65 : vector<8x1xf32>
    %cst_44 = arith.constant dense<0.000000e+00> : vector<8xf32>
    %92 = vector.multi_reduction <add>, %90, %cst_44 [1] : vector<8x8xf32> to vector<8xf32>
    %93 = vector.shape_cast %92 : vector<8xf32> to vector<8x1xf32>
    %94 = arith.addf %91, %93 : vector<8x1xf32>
    %95 = vector.broadcast %87 : vector<8x1xf32> to vector<8x8xf32>
    %96 = arith.mulf %95, %66 : vector<8x8xf32>
    %97 = arith.truncf %90 : vector<8x8xf32> to vector<8x8xbf16>
    %cst_45 = arith.constant dense<0.000000e+00> : vector<8x8xf32>
    %98 = tpu.matmul %97, %68, %cst_45 {dimension_numbers = #tpu.dot_dimension_numbers<[1], [0], [0], [1], [0, 0, 1, 1], [], []>} : vector<8x8xbf16>, vector<8x8xbf16>, vector<8x8xf32> -> vector<8x8xf32>
    %99 = arith.addf %96, %98 : vector<8x8xf32>
    %100 = tpu.reciprocal %94 {approx = true} : vector<8x1xf32> -> vector<8x1xf32>
    %101 = vector.broadcast %100 : vector<8x1xf32> to vector<8x8xf32>
    %102 = arith.mulf %99, %101 : vector<8x8xf32>
    %c0_46 = arith.constant 0 : index
    %c0_47 = arith.constant 0 : index
    %103 = vector.load %arg32[%c0_46, %c0_47] : memref<8x32xf32, #tpu.memory_space<vmem>>, vector<8x32xf32>
    %104 = arith.truncf %102 : vector<8x8xf32> to vector<8x8xbf16>
    %c8_48 = arith.constant 8 : index
    %c0_49 = arith.constant 0 : index
    %105 = vector.load %arg10[%c8_48, %c0_49] : memref<32x32xbf16, #tpu.memory_space<vmem>>, vector<8x32xbf16>
    %cst_50 = arith.constant dense<0.000000e+00> : vector<8x32xf32>
    %106 = tpu.matmul %104, %105, %cst_50 {dimension_numbers = #tpu.dot_dimension_numbers<[1], [0], [0], [1], [0, 0, 1, 1], [], []>} : vector<8x8xbf16>, vector<8x32xbf16>, vector<8x32xf32> -> vector<8x32xf32>
    %107 = arith.addf %103, %106 : vector<8x32xf32>
    %c0_51 = arith.constant 0 : index
    %c0_52 = arith.constant 0 : index
    %108 = vector.load %arg32[%c0_51, %c0_52] : memref<8x32xf32, #tpu.memory_space<vmem>>, vector<8x32xf32>
    tpu.vector_store %arg32[%c0_51, %c0_52], %107 {strides = array<i32>} : memref<8x32xf32, #tpu.memory_space<vmem>>, vector<8x32xf32>,
    %109 = vector.extract_strided_slice %14 {offsets = [0, 16], sizes = [8, 8], strides = [1, 1]} : vector<8x32xbf16> to vector<8x8xbf16>
    %cst_53 = arith.constant 0xFF800000 : f32
    %110 = vector.broadcast %cst_53 : f32 to vector<8x1xf32>
    %cst_54 = arith.constant 0.000000e+00 : f32
    %111 = vector.broadcast %cst_54 : f32 to vector<8x1xf32>
    %cst_55 = arith.constant 0.000000e+00 : f32
    %112 = vector.broadcast %cst_55 : f32 to vector<8x8xf32>
    %c0_56 = arith.constant 0 : index
    %c16 = arith.constant 16 : index
    %113 = vector.load %arg28[%c0_56, %c16] : memref<8x32xbf16, #tpu.memory_space<vmem>>, vector<8x8xbf16>
    %c0_57 = arith.constant 0 : index
    %c16_58 = arith.constant 16 : index
    %114 = vector.load %arg29[%c0_57, %c16_58] : memref<8x32xbf16, #tpu.memory_space<vmem>>, vector<8x8xbf16>
    %cst_59 = arith.constant dense<0.000000e+00> : vector<8x8xf32>
    %115 = tpu.matmul %109, %113, %cst_59 {dimension_numbers = #tpu.dot_dimension_numbers<[1], [1], [0], [0], [0, 0, 1, 0], [], []>} : vector<8x8xbf16>, vector<8x8xbf16>, vector<8x8xf32> -> vector<8x8xf32>
    %116 = vector.broadcast %7 : vector<1x8xf32> to vector<8x8xf32>
    %117 = arith.addf %115, %116 : vector<8x8xf32>
    %118 = tpu.iota {dimensions = array<i32: 0>} : vector<8x8xi32>
    %119 = vector.broadcast %8 : i32 to vector<8x8xi32>
    %120 = arith.addi %118, %119 : vector<8x8xi32>
    %121 = tpu.iota {dimensions = array<i32: 1>} : vector<8x8xi32>
    %c0_i32_60 = arith.constant 0 : i32
    %122 = vector.broadcast %c0_i32_60 : i32 to vector<8x8xi32>
    %123 = arith.addi %121, %122 : vector<8x8xi32>
    %124 = arith.cmpi sgt, %123, %120 : vector<8x8xi32>
    %cst_61 = arith.constant -1.000000e+30 : f32
    %cst_62 = arith.constant 0.000000e+00 : f32
    %125 = vector.broadcast %cst_61 : f32 to vector<8x8xf32>
    %126 = vector.broadcast %cst_62 : f32 to vector<8x8xf32>
    %127 = arith.select %124, %125, %126 : vector<8x8xi1>, vector<8x8xf32>
    %128 = arith.addf %117, %127 : vector<8x8xf32>
    %cst_63 = arith.constant dense<0xFF800000> : vector<8xf32>
    %129 = vector.multi_reduction <maximumf>, %128, %cst_63 [1] : vector<8x8xf32> to vector<8xf32>
    %130 = vector.shape_cast %129 : vector<8xf32> to vector<8x1xf32>
    %131 = arith.maximumf %110, %130 : vector<8x1xf32>
    %132 = arith.subf %110, %131 : vector<8x1xf32>
    %133 = math.exp %132 : vector<8x1xf32>
    %134 = vector.broadcast %131 : vector<8x1xf32> to vector<8x8xf32>
    %135 = arith.subf %128, %134 : vector<8x8xf32>
    %136 = math.exp %135 : vector<8x8xf32>
    %137 = arith.mulf %133, %111 : vector<8x1xf32>
    %cst_64 = arith.constant dense<0.000000e+00> : vector<8xf32>
    %138 = vector.multi_reduction <add>, %136, %cst_64 [1] : vector<8x8xf32> to vector<8xf32>
    %139 = vector.shape_cast %138 : vector<8xf32> to vector<8x1xf32>
    %140 = arith.addf %137, %139 : vector<8x1xf32>
    %141 = vector.broadcast %133 : vector<8x1xf32> to vector<8x8xf32>
    %142 = arith.mulf %141, %112 : vector<8x8xf32>
    %143 = arith.truncf %136 : vector<8x8xf32> to vector<8x8xbf16>
    %cst_65 = arith.constant dense<0.000000e+00> : vector<8x8xf32>
    %144 = tpu.matmul %143, %114, %cst_65 {dimension_numbers = #tpu.dot_dimension_numbers<[1], [0], [0], [1], [0, 0, 1, 1], [], []>} : vector<8x8xbf16>, vector<8x8xbf16>, vector<8x8xf32> -> vector<8x8xf32>
    %145 = arith.addf %142, %144 : vector<8x8xf32>
    %146 = tpu.reciprocal %140 {approx = true} : vector<8x1xf32> -> vector<8x1xf32>
    %147 = vector.broadcast %146 : vector<8x1xf32> to vector<8x8xf32>
    %148 = arith.mulf %145, %147 : vector<8x8xf32>
    %c0_66 = arith.constant 0 : index
    %c0_67 = arith.constant 0 : index
    %149 = vector.load %arg32[%c0_66, %c0_67] : memref<8x32xf32, #tpu.memory_space<vmem>>, vector<8x32xf32>
    %150 = arith.truncf %148 : vector<8x8xf32> to vector<8x8xbf16>
    %c16_68 = arith.constant 16 : index
    %c0_69 = arith.constant 0 : index
    %151 = vector.load %arg10[%c16_68, %c0_69] : memref<32x32xbf16, #tpu.memory_space<vmem>>, vector<8x32xbf16>
    %cst_70 = arith.constant dense<0.000000e+00> : vector<8x32xf32>
    %152 = tpu.matmul %150, %151, %cst_70 {dimension_numbers = #tpu.dot_dimension_numbers<[1], [0], [0], [1], [0, 0, 1, 1], [], []>} : vector<8x8xbf16>, vector<8x32xbf16>, vector<8x32xf32> -> vector<8x32xf32>
    %153 = arith.addf %149, %152 : vector<8x32xf32>
    %c0_71 = arith.constant 0 : index
    %c0_72 = arith.constant 0 : index
    %154 = vector.load %arg32[%c0_71, %c0_72] : memref<8x32xf32, #tpu.memory_space<vmem>>, vector<8x32xf32>
    tpu.vector_store %arg32[%c0_71, %c0_72], %153 {strides = array<i32>} : memref<8x32xf32, #tpu.memory_space<vmem>>, vector<8x32xf32>,
    %155 = vector.extract_strided_slice %14 {offsets = [0, 24], sizes = [8, 8], strides = [1, 1]} : vector<8x32xbf16> to vector<8x8xbf16>
    %cst_73 = arith.constant 0xFF800000 : f32
    %156 = vector.broadcast %cst_73 : f32 to vector<8x1xf32>
    %cst_74 = arith.constant 0.000000e+00 : f32
    %157 = vector.broadcast %cst_74 : f32 to vector<8x1xf32>
    %cst_75 = arith.constant 0.000000e+00 : f32
    %158 = vector.broadcast %cst_75 : f32 to vector<8x8xf32>
    %c0_76 = arith.constant 0 : index
    %c24 = arith.constant 24 : index
    %159 = vector.load %arg28[%c0_76, %c24] : memref<8x32xbf16, #tpu.memory_space<vmem>>, vector<8x8xbf16>
    %c0_77 = arith.constant 0 : index
    %c24_78 = arith.constant 24 : index
    %160 = vector.load %arg29[%c0_77, %c24_78] : memref<8x32xbf16, #tpu.memory_space<vmem>>, vector<8x8xbf16>
    %cst_79 = arith.constant dense<0.000000e+00> : vector<8x8xf32>
    %161 = tpu.matmul %155, %159, %cst_79 {dimension_numbers = #tpu.dot_dimension_numbers<[1], [1], [0], [0], [0, 0, 1, 0], [], []>} : vector<8x8xbf16>, vector<8x8xbf16>, vector<8x8xf32> -> vector<8x8xf32>
    %162 = vector.broadcast %7 : vector<1x8xf32> to vector<8x8xf32>
    %163 = arith.addf %161, %162 : vector<8x8xf32>
    %164 = tpu.iota {dimensions = array<i32: 0>} : vector<8x8xi32>
    %165 = vector.broadcast %8 : i32 to vector<8x8xi32>
    %166 = arith.addi %164, %165 : vector<8x8xi32>
    %167 = tpu.iota {dimensions = array<i32: 1>} : vector<8x8xi32>
    %c0_i32_80 = arith.constant 0 : i32
    %168 = vector.broadcast %c0_i32_80 : i32 to vector<8x8xi32>
    %169 = arith.addi %167, %168 : vector<8x8xi32>
    %170 = arith.cmpi sgt, %169, %166 : vector<8x8xi32>
    %cst_81 = arith.constant -1.000000e+30 : f32
    %cst_82 = arith.constant 0.000000e+00 : f32
    %171 = vector.broadcast %cst_81 : f32 to vector<8x8xf32>
    %172 = vector.broadcast %cst_82 : f32 to vector<8x8xf32>
    %173 = arith.select %170, %171, %172 : vector<8x8xi1>, vector<8x8xf32>
    %174 = arith.addf %163, %173 : vector<8x8xf32>
    %cst_83 = arith.constant dense<0xFF800000> : vector<8xf32>
    %175 = vector.multi_reduction <maximumf>, %174, %cst_83 [1] : vector<8x8xf32> to vector<8xf32>
    %176 = vector.shape_cast %175 : vector<8xf32> to vector<8x1xf32>
    %177 = arith.maximumf %156, %176 : vector<8x1xf32>
    %178 = arith.subf %156, %177 : vector<8x1xf32>
    %179 = math.exp %178 : vector<8x1xf32>
    %180 = vector.broadcast %177 : vector<8x1xf32> to vector<8x8xf32>
    %181 = arith.subf %174, %180 : vector<8x8xf32>
    %182 = math.exp %181 : vector<8x8xf32>
    %183 = arith.mulf %179, %157 : vector<8x1xf32>
    %cst_84 = arith.constant dense<0.000000e+00> : vector<8xf32>
    %184 = vector.multi_reduction <add>, %182, %cst_84 [1] : vector<8x8xf32> to vector<8xf32>
    %185 = vector.shape_cast %184 : vector<8xf32> to vector<8x1xf32>
    %186 = arith.addf %183, %185 : vector<8x1xf32>
    %187 = vector.broadcast %179 : vector<8x1xf32> to vector<8x8xf32>
    %188 = arith.mulf %187, %158 : vector<8x8xf32>
    %189 = arith.truncf %182 : vector<8x8xf32> to vector<8x8xbf16>
    %cst_85 = arith.constant dense<0.000000e+00> : vector<8x8xf32>
    %190 = tpu.matmul %189, %160, %cst_85 {dimension_numbers = #tpu.dot_dimension_numbers<[1], [0], [0], [1], [0, 0, 1, 1], [], []>} : vector<8x8xbf16>, vector<8x8xbf16>, vector<8x8xf32> -> vector<8x8xf32>
    %191 = arith.addf %188, %190 : vector<8x8xf32>
    %192 = tpu.reciprocal %186 {approx = true} : vector<8x1xf32> -> vector<8x1xf32>
    %193 = vector.broadcast %192 : vector<8x1xf32> to vector<8x8xf32>
    %194 = arith.mulf %191, %193 : vector<8x8xf32>
    %c0_86 = arith.constant 0 : index
    %c0_87 = arith.constant 0 : index
    %195 = vector.load %arg32[%c0_86, %c0_87] : memref<8x32xf32, #tpu.memory_space<vmem>>, vector<8x32xf32>
    %196 = arith.truncf %194 : vector<8x8xf32> to vector<8x8xbf16>
    %c24_88 = arith.constant 24 : index
    %c0_89 = arith.constant 0 : index
    %197 = vector.load %arg10[%c24_88, %c0_89] : memref<32x32xbf16, #tpu.memory_space<vmem>>, vector<8x32xbf16>
    %cst_90 = arith.constant dense<0.000000e+00> : vector<8x32xf32>
    %198 = tpu.matmul %196, %197, %cst_90 {dimension_numbers = #tpu.dot_dimension_numbers<[1], [0], [0], [1], [0, 0, 1, 1], [], []>} : vector<8x8xbf16>, vector<8x32xbf16>, vector<8x32xf32> -> vector<8x32xf32>
    %199 = arith.addf %195, %198 : vector<8x32xf32>
    %c0_91 = arith.constant 0 : index
    %c0_92 = arith.constant 0 : index
    %200 = vector.load %arg32[%c0_91, %c0_92] : memref<8x32xf32, #tpu.memory_space<vmem>>, vector<8x32xf32>
    tpu.vector_store %arg32[%c0_91, %c0_92], %199 {strides = array<i32>} : memref<8x32xf32, #tpu.memory_space<vmem>>, vector<8x32xf32>,
    %c0_93 = arith.constant 0 : index
    %c0_94 = arith.constant 0 : index
    %201 = vector.load %arg32[%c0_93, %c0_94] : memref<8x32xf32, #tpu.memory_space<vmem>>, vector<8x32xf32>
    %c0_95 = arith.constant 0 : index
    %c0_96 = arith.constant 0 : index
    %202 = vector.load %arg11[%c0_95, %c0_96] : memref<1x32xf32, #tpu.memory_space<vmem>>, vector<1x32xf32>
    %203 = vector.broadcast %202 : vector<1x32xf32> to vector<8x32xf32>
    %204 = arith.addf %201, %203 : vector<8x32xf32>
    %205 = arith.addf %204, %5 : vector<8x32xf32>
    %c0_97 = arith.constant 0 : index
    %c0_98 = arith.constant 0 : index
    %206 = vector.load %arg12[%c0_97, %c0_98] : memref<1x32xf32, #tpu.memory_space<vmem>>, vector<1x32xf32>
    %c0_99 = arith.constant 0 : index
    %c0_100 = arith.constant 0 : index
    %207 = vector.load %arg13[%c0_99, %c0_100] : memref<1x32xf32, #tpu.memory_space<vmem>>, vector<1x32xf32>
    %cst_101 = arith.constant dense<0.000000e+00> : vector<8xf32>
    %208 = vector.multi_reduction <add>, %205, %cst_101 [1] : vector<8x32xf32> to vector<8xf32>
    %209 = vector.shape_cast %208 : vector<8xf32> to vector<8x1xf32>
    %cst_102 = arith.constant 3.200000e+01 : f32
    %210 = vector.broadcast %cst_102 : f32 to vector<8x1xf32>
    %211 = arith.divf %209, %210 : vector<8x1xf32>
    %212 = vector.broadcast %211 : vector<8x1xf32> to vector<8x32xf32>
    %213 = arith.subf %205, %212 : vector<8x32xf32>
    %214 = arith.mulf %213, %213 : vector<8x32xf32>
    %cst_103 = arith.constant dense<0.000000e+00> : vector<8xf32>
    %215 = vector.multi_reduction <add>, %214, %cst_103 [1] : vector<8x32xf32> to vector<8xf32>
    %216 = vector.shape_cast %215 : vector<8xf32> to vector<8x1xf32>
    %cst_104 = arith.constant 3.100000e+01 : f32
    %217 = vector.broadcast %cst_104 : f32 to vector<8x1xf32>
    %218 = arith.divf %216, %217 : vector<8x1xf32>
    %219 = math.sqrt %218 : vector<8x1xf32>
    %220 = vector.broadcast %211 : vector<8x1xf32> to vector<8x32xf32>
    %221 = arith.subf %205, %220 : vector<8x32xf32>
    %cst_105 = arith.constant 1.000000e-03 : f32
    %222 = vector.broadcast %cst_105 : f32 to vector<8x1xf32>
    %223 = arith.addf %219, %222 : vector<8x1xf32>
    %224 = vector.broadcast %223 : vector<8x1xf32> to vector<8x32xf32>
    %225 = arith.divf %221, %224 : vector<8x32xf32>
    %226 = vector.broadcast %206 : vector<1x32xf32> to vector<8x32xf32>
    %227 = arith.mulf %225, %226 : vector<8x32xf32>
    %228 = vector.broadcast %207 : vector<1x32xf32> to vector<8x32xf32>
    %229 = arith.addf %227, %228 : vector<8x32xf32>
    %c0_106 = arith.constant 0 : index
    %c0_107 = arith.constant 0 : index
    %c0_108 = arith.constant 0 : index
    %230 = vector.load %arg6[%c0_106, %c0_107, %c0_108] : memref<1x1x12xf32, #tpu.memory_space<vmem>>, vector<1x1x12xf32>
    %231 = vector.shape_cast %230 : vector<1x1x12xf32> to vector<1x12xf32>
    %232 = arith.truncf %229 : vector<8x32xf32> to vector<8x32xbf16>
    %c0_109 = arith.constant 0 : index
    %c0_110 = arith.constant 0 : index
    %233 = vector.load %arg14[%c0_109, %c0_110] : memref<32x32xbf16, #tpu.memory_space<vmem>>, vector<32x32xbf16>
    %cst_111 = arith.constant dense<0.000000e+00> : vector<8x32xf32>
    %234 = tpu.matmul %232, %233, %cst_111 {dimension_numbers = #tpu.dot_dimension_numbers<[1], [0], [0], [1], [0, 0, 1, 1], [], []>} : vector<8x32xbf16>, vector<32x32xbf16>, vector<8x32xf32> -> vector<8x32xf32>
    %cst_112 = arith.constant 0.176776692 : f32
    %235 = vector.broadcast %cst_112 : f32 to vector<8x32xf32>
    %236 = arith.mulf %234, %235 : vector<8x32xf32>
    %237 = arith.truncf %236 : vector<8x32xf32> to vector<8x32xbf16>
    %cst_113 = arith.constant 0.000000e+00 : f32
    %238 = vector.broadcast %cst_113 : f32 to vector<8x32xf32>
    %c0_114 = arith.constant 0 : index
    %c0_115 = arith.constant 0 : index
    %239 = vector.load %arg32[%c0_114, %c0_115] : memref<8x32xf32, #tpu.memory_space<vmem>>, vector<8x32xf32>
    tpu.vector_store %arg32[%c0_114, %c0_115], %238 {strides = array<i32>} : memref<8x32xf32, #tpu.memory_space<vmem>>, vector<8x32xf32>,
    %240 = vector.extract_strided_slice %237 {offsets = [0, 0], sizes = [8, 8], strides = [1, 1]} : vector<8x32xbf16> to vector<8x8xbf16>
    %cst_116 = arith.constant 0xFF800000 : f32
    %241 = vector.broadcast %cst_116 : f32 to vector<8x1xf32>
    %cst_117 = arith.constant 0.000000e+00 : f32
    %242 = vector.broadcast %cst_117 : f32 to vector<8x1xf32>
    %cst_118 = arith.constant 0.000000e+00 : f32
    %243 = vector.broadcast %cst_118 : f32 to vector<8x8xf32>
    %c0_119 = arith.constant 0 : index
    %c0_120 = arith.constant 0 : index
    %244 = vector.load %arg30[%c0_119, %c0_120] : memref<12x32xbf16, #tpu.memory_space<vmem>>, vector<12x8xbf16>
    %c0_121 = arith.constant 0 : index
    %c0_122 = arith.constant 0 : index
    %245 = vector.load %arg31[%c0_121, %c0_122] : memref<12x32xbf16, #tpu.memory_space<vmem>>, vector<12x8xbf16>
    %cst_123 = arith.constant dense<0.000000e+00> : vector<8x12xf32>
    %246 = tpu.matmul %240, %244, %cst_123 {dimension_numbers = #tpu.dot_dimension_numbers<[1], [1], [0], [0], [0, 0, 1, 0], [], []>} : vector<8x8xbf16>, vector<12x8xbf16>, vector<8x12xf32> -> vector<8x12xf32>
    %247 = vector.broadcast %231 : vector<1x12xf32> to vector<8x12xf32>
    %248 = arith.addf %246, %247 : vector<8x12xf32>
    %cst_124 = arith.constant dense<0xFF800000> : vector<8xf32>
    %249 = vector.multi_reduction <maximumf>, %248, %cst_124 [1] : vector<8x12xf32> to vector<8xf32>
    %250 = vector.shape_cast %249 : vector<8xf32> to vector<8x1xf32>
    %251 = arith.maximumf %241, %250 : vector<8x1xf32>
    %252 = arith.subf %241, %251 : vector<8x1xf32>
    %253 = math.exp %252 : vector<8x1xf32>
    %254 = vector.broadcast %251 : vector<8x1xf32> to vector<8x12xf32>
    %255 = arith.subf %248, %254 : vector<8x12xf32>
    %256 = math.exp %255 : vector<8x12xf32>
    %257 = arith.mulf %253, %242 : vector<8x1xf32>
    %cst_125 = arith.constant dense<0.000000e+00> : vector<8xf32>
    %258 = vector.multi_reduction <add>, %256, %cst_125 [1] : vector<8x12xf32> to vector<8xf32>
    %259 = vector.shape_cast %258 : vector<8xf32> to vector<8x1xf32>
    %260 = arith.addf %257, %259 : vector<8x1xf32>
    %261 = vector.broadcast %253 : vector<8x1xf32> to vector<8x8xf32>
    %262 = arith.mulf %261, %243 : vector<8x8xf32>
    %263 = arith.truncf %256 : vector<8x12xf32> to vector<8x12xbf16>
    %cst_126 = arith.constant dense<0.000000e+00> : vector<8x8xf32>
    %264 = tpu.matmul %263, %245, %cst_126 {dimension_numbers = #tpu.dot_dimension_numbers<[1], [0], [0], [1], [0, 0, 1, 1], [], []>} : vector<8x12xbf16>, vector<12x8xbf16>, vector<8x8xf32> -> vector<8x8xf32>
    %265 = arith.addf %262, %264 : vector<8x8xf32>
    %266 = tpu.reciprocal %260 {approx = true} : vector<8x1xf32> -> vector<8x1xf32>
    %267 = vector.broadcast %266 : vector<8x1xf32> to vector<8x8xf32>
    %268 = arith.mulf %265, %267 : vector<8x8xf32>
    %c0_127 = arith.constant 0 : index
    %c0_128 = arith.constant 0 : index
    %269 = vector.load %arg32[%c0_127, %c0_128] : memref<8x32xf32, #tpu.memory_space<vmem>>, vector<8x32xf32>
    %270 = arith.truncf %268 : vector<8x8xf32> to vector<8x8xbf16>
    %c0_129 = arith.constant 0 : index
    %c0_130 = arith.constant 0 : index
    %271 = vector.load %arg17[%c0_129, %c0_130] : memref<32x32xbf16, #tpu.memory_space<vmem>>, vector<8x32xbf16>
    %cst_131 = arith.constant dense<0.000000e+00> : vector<8x32xf32>
    %272 = tpu.matmul %270, %271, %cst_131 {dimension_numbers = #tpu.dot_dimension_numbers<[1], [0], [0], [1], [0, 0, 1, 1], [], []>} : vector<8x8xbf16>, vector<8x32xbf16>, vector<8x32xf32> -> vector<8x32xf32>
    %273 = arith.addf %269, %272 : vector<8x32xf32>
    %c0_132 = arith.constant 0 : index
    %c0_133 = arith.constant 0 : index
    %274 = vector.load %arg32[%c0_132, %c0_133] : memref<8x32xf32, #tpu.memory_space<vmem>>, vector<8x32xf32>
    tpu.vector_store %arg32[%c0_132, %c0_133], %273 {strides = array<i32>} : memref<8x32xf32, #tpu.memory_space<vmem>>, vector<8x32xf32>,
    %275 = vector.extract_strided_slice %237 {offsets = [0, 8], sizes = [8, 8], strides = [1, 1]} : vector<8x32xbf16> to vector<8x8xbf16>
    %cst_134 = arith.constant 0xFF800000 : f32
    %276 = vector.broadcast %cst_134 : f32 to vector<8x1xf32>
    %cst_135 = arith.constant 0.000000e+00 : f32
    %277 = vector.broadcast %cst_135 : f32 to vector<8x1xf32>
    %cst_136 = arith.constant 0.000000e+00 : f32
    %278 = vector.broadcast %cst_136 : f32 to vector<8x8xf32>
    %c0_137 = arith.constant 0 : index
    %c8_138 = arith.constant 8 : index
    %279 = vector.load %arg30[%c0_137, %c8_138] : memref<12x32xbf16, #tpu.memory_space<vmem>>, vector<12x8xbf16>
    %c0_139 = arith.constant 0 : index
    %c8_140 = arith.constant 8 : index
    %280 = vector.load %arg31[%c0_139, %c8_140] : memref<12x32xbf16, #tpu.memory_space<vmem>>, vector<12x8xbf16>
    %cst_141 = arith.constant dense<0.000000e+00> : vector<8x12xf32>
    %281 = tpu.matmul %275, %279, %cst_141 {dimension_numbers = #tpu.dot_dimension_numbers<[1], [1], [0], [0], [0, 0, 1, 0], [], []>} : vector<8x8xbf16>, vector<12x8xbf16>, vector<8x12xf32> -> vector<8x12xf32>
    %282 = vector.broadcast %231 : vector<1x12xf32> to vector<8x12xf32>
    %283 = arith.addf %281, %282 : vector<8x12xf32>
    %cst_142 = arith.constant dense<0xFF800000> : vector<8xf32>
    %284 = vector.multi_reduction <maximumf>, %283, %cst_142 [1] : vector<8x12xf32> to vector<8xf32>
    %285 = vector.shape_cast %284 : vector<8xf32> to vector<8x1xf32>
    %286 = arith.maximumf %276, %285 : vector<8x1xf32>
    %287 = arith.subf %276, %286 : vector<8x1xf32>
    %288 = math.exp %287 : vector<8x1xf32>
    %289 = vector.broadcast %286 : vector<8x1xf32> to vector<8x12xf32>
    %290 = arith.subf %283, %289 : vector<8x12xf32>
    %291 = math.exp %290 : vector<8x12xf32>
    %292 = arith.mulf %288, %277 : vector<8x1xf32>
    %cst_143 = arith.constant dense<0.000000e+00> : vector<8xf32>
    %293 = vector.multi_reduction <add>, %291, %cst_143 [1] : vector<8x12xf32> to vector<8xf32>
    %294 = vector.shape_cast %293 : vector<8xf32> to vector<8x1xf32>
    %295 = arith.addf %292, %294 : vector<8x1xf32>
    %296 = vector.broadcast %288 : vector<8x1xf32> to vector<8x8xf32>
    %297 = arith.mulf %296, %278 : vector<8x8xf32>
    %298 = arith.truncf %291 : vector<8x12xf32> to vector<8x12xbf16>
    %cst_144 = arith.constant dense<0.000000e+00> : vector<8x8xf32>
    %299 = tpu.matmul %298, %280, %cst_144 {dimension_numbers = #tpu.dot_dimension_numbers<[1], [0], [0], [1], [0, 0, 1, 1], [], []>} : vector<8x12xbf16>, vector<12x8xbf16>, vector<8x8xf32> -> vector<8x8xf32>
    %300 = arith.addf %297, %299 : vector<8x8xf32>
    %301 = tpu.reciprocal %295 {approx = true} : vector<8x1xf32> -> vector<8x1xf32>
    %302 = vector.broadcast %301 : vector<8x1xf32> to vector<8x8xf32>
    %303 = arith.mulf %300, %302 : vector<8x8xf32>
    %c0_145 = arith.constant 0 : index
    %c0_146 = arith.constant 0 : index
    %304 = vector.load %arg32[%c0_145, %c0_146] : memref<8x32xf32, #tpu.memory_space<vmem>>, vector<8x32xf32>
    %305 = arith.truncf %303 : vector<8x8xf32> to vector<8x8xbf16>
    %c8_147 = arith.constant 8 : index
    %c0_148 = arith.constant 0 : index
    %306 = vector.load %arg17[%c8_147, %c0_148] : memref<32x32xbf16, #tpu.memory_space<vmem>>, vector<8x32xbf16>
    %cst_149 = arith.constant dense<0.000000e+00> : vector<8x32xf32>
    %307 = tpu.matmul %305, %306, %cst_149 {dimension_numbers = #tpu.dot_dimension_numbers<[1], [0], [0], [1], [0, 0, 1, 1], [], []>} : vector<8x8xbf16>, vector<8x32xbf16>, vector<8x32xf32> -> vector<8x32xf32>
    %308 = arith.addf %304, %307 : vector<8x32xf32>
    %c0_150 = arith.constant 0 : index
    %c0_151 = arith.constant 0 : index
    %309 = vector.load %arg32[%c0_150, %c0_151] : memref<8x32xf32, #tpu.memory_space<vmem>>, vector<8x32xf32>
    tpu.vector_store %arg32[%c0_150, %c0_151], %308 {strides = array<i32>} : memref<8x32xf32, #tpu.memory_space<vmem>>, vector<8x32xf32>,
    %310 = vector.extract_strided_slice %237 {offsets = [0, 16], sizes = [8, 8], strides = [1, 1]} : vector<8x32xbf16> to vector<8x8xbf16>
    %cst_152 = arith.constant 0xFF800000 : f32
    %311 = vector.broadcast %cst_152 : f32 to vector<8x1xf32>
    %cst_153 = arith.constant 0.000000e+00 : f32
    %312 = vector.broadcast %cst_153 : f32 to vector<8x1xf32>
    %cst_154 = arith.constant 0.000000e+00 : f32
    %313 = vector.broadcast %cst_154 : f32 to vector<8x8xf32>
    %c0_155 = arith.constant 0 : index
    %c16_156 = arith.constant 16 : index
    %314 = vector.load %arg30[%c0_155, %c16_156] : memref<12x32xbf16, #tpu.memory_space<vmem>>, vector<12x8xbf16>
    %c0_157 = arith.constant 0 : index
    %c16_158 = arith.constant 16 : index
    %315 = vector.load %arg31[%c0_157, %c16_158] : memref<12x32xbf16, #tpu.memory_space<vmem>>, vector<12x8xbf16>
    %cst_159 = arith.constant dense<0.000000e+00> : vector<8x12xf32>
    %316 = tpu.matmul %310, %314, %cst_159 {dimension_numbers = #tpu.dot_dimension_numbers<[1], [1], [0], [0], [0, 0, 1, 0], [], []>} : vector<8x8xbf16>, vector<12x8xbf16>, vector<8x12xf32> -> vector<8x12xf32>
    %317 = vector.broadcast %231 : vector<1x12xf32> to vector<8x12xf32>
    %318 = arith.addf %316, %317 : vector<8x12xf32>
    %cst_160 = arith.constant dense<0xFF800000> : vector<8xf32>
    %319 = vector.multi_reduction <maximumf>, %318, %cst_160 [1] : vector<8x12xf32> to vector<8xf32>
    %320 = vector.shape_cast %319 : vector<8xf32> to vector<8x1xf32>
    %321 = arith.maximumf %311, %320 : vector<8x1xf32>
    %322 = arith.subf %311, %321 : vector<8x1xf32>
    %323 = math.exp %322 : vector<8x1xf32>
    %324 = vector.broadcast %321 : vector<8x1xf32> to vector<8x12xf32>
    %325 = arith.subf %318, %324 : vector<8x12xf32>
    %326 = math.exp %325 : vector<8x12xf32>
    %327 = arith.mulf %323, %312 : vector<8x1xf32>
    %cst_161 = arith.constant dense<0.000000e+00> : vector<8xf32>
    %328 = vector.multi_reduction <add>, %326, %cst_161 [1] : vector<8x12xf32> to vector<8xf32>
    %329 = vector.shape_cast %328 : vector<8xf32> to vector<8x1xf32>
    %330 = arith.addf %327, %329 : vector<8x1xf32>
    %331 = vector.broadcast %323 : vector<8x1xf32> to vector<8x8xf32>
    %332 = arith.mulf %331, %313 : vector<8x8xf32>
    %333 = arith.truncf %326 : vector<8x12xf32> to vector<8x12xbf16>
    %cst_162 = arith.constant dense<0.000000e+00> : vector<8x8xf32>
    %334 = tpu.matmul %333, %315, %cst_162 {dimension_numbers = #tpu.dot_dimension_numbers<[1], [0], [0], [1], [0, 0, 1, 1], [], []>} : vector<8x12xbf16>, vector<12x8xbf16>, vector<8x8xf32> -> vector<8x8xf32>
    %335 = arith.addf %332, %334 : vector<8x8xf32>
    %336 = tpu.reciprocal %330 {approx = true} : vector<8x1xf32> -> vector<8x1xf32>
    %337 = vector.broadcast %336 : vector<8x1xf32> to vector<8x8xf32>
    %338 = arith.mulf %335, %337 : vector<8x8xf32>
    %c0_163 = arith.constant 0 : index
    %c0_164 = arith.constant 0 : index
    %339 = vector.load %arg32[%c0_163, %c0_164] : memref<8x32xf32, #tpu.memory_space<vmem>>, vector<8x32xf32>
    %340 = arith.truncf %338 : vector<8x8xf32> to vector<8x8xbf16>
    %c16_165 = arith.constant 16 : index
    %c0_166 = arith.constant 0 : index
    %341 = vector.load %arg17[%c16_165, %c0_166] : memref<32x32xbf16, #tpu.memory_space<vmem>>, vector<8x32xbf16>
    %cst_167 = arith.constant dense<0.000000e+00> : vector<8x32xf32>
    %342 = tpu.matmul %340, %341, %cst_167 {dimension_numbers = #tpu.dot_dimension_numbers<[1], [0], [0], [1], [0, 0, 1, 1], [], []>} : vector<8x8xbf16>, vector<8x32xbf16>, vector<8x32xf32> -> vector<8x32xf32>
    %343 = arith.addf %339, %342 : vector<8x32xf32>
    %c0_168 = arith.constant 0 : index
    %c0_169 = arith.constant 0 : index
    %344 = vector.load %arg32[%c0_168, %c0_169] : memref<8x32xf32, #tpu.memory_space<vmem>>, vector<8x32xf32>
    tpu.vector_store %arg32[%c0_168, %c0_169], %343 {strides = array<i32>} : memref<8x32xf32, #tpu.memory_space<vmem>>, vector<8x32xf32>,
    %345 = vector.extract_strided_slice %237 {offsets = [0, 24], sizes = [8, 8], strides = [1, 1]} : vector<8x32xbf16> to vector<8x8xbf16>
    %cst_170 = arith.constant 0xFF800000 : f32
    %346 = vector.broadcast %cst_170 : f32 to vector<8x1xf32>
    %cst_171 = arith.constant 0.000000e+00 : f32
    %347 = vector.broadcast %cst_171 : f32 to vector<8x1xf32>
    %cst_172 = arith.constant 0.000000e+00 : f32
    %348 = vector.broadcast %cst_172 : f32 to vector<8x8xf32>
    %c0_173 = arith.constant 0 : index
    %c24_174 = arith.constant 24 : index
    %349 = vector.load %arg30[%c0_173, %c24_174] : memref<12x32xbf16, #tpu.memory_space<vmem>>, vector<12x8xbf16>
    %c0_175 = arith.constant 0 : index
    %c24_176 = arith.constant 24 : index
    %350 = vector.load %arg31[%c0_175, %c24_176] : memref<12x32xbf16, #tpu.memory_space<vmem>>, vector<12x8xbf16>
    %cst_177 = arith.constant dense<0.000000e+00> : vector<8x12xf32>
    %351 = tpu.matmul %345, %349, %cst_177 {dimension_numbers = #tpu.dot_dimension_numbers<[1], [1], [0], [0], [0, 0, 1, 0], [], []>} : vector<8x8xbf16>, vector<12x8xbf16>, vector<8x12xf32> -> vector<8x12xf32>
    %352 = vector.broadcast %231 : vector<1x12xf32> to vector<8x12xf32>
    %353 = arith.addf %351, %352 : vector<8x12xf32>
    %cst_178 = arith.constant dense<0xFF800000> : vector<8xf32>
    %354 = vector.multi_reduction <maximumf>, %353, %cst_178 [1] : vector<8x12xf32> to vector<8xf32>
    %355 = vector.shape_cast %354 : vector<8xf32> to vector<8x1xf32>
    %356 = arith.maximumf %346, %355 : vector<8x1xf32>
    %357 = arith.subf %346, %356 : vector<8x1xf32>
    %358 = math.exp %357 : vector<8x1xf32>
    %359 = vector.broadcast %356 : vector<8x1xf32> to vector<8x12xf32>
    %360 = arith.subf %353, %359 : vector<8x12xf32>
    %361 = math.exp %360 : vector<8x12xf32>
    %362 = arith.mulf %358, %347 : vector<8x1xf32>
    %cst_179 = arith.constant dense<0.000000e+00> : vector<8xf32>
    %363 = vector.multi_reduction <add>, %361, %cst_179 [1] : vector<8x12xf32> to vector<8xf32>
    %364 = vector.shape_cast %363 : vector<8xf32> to vector<8x1xf32>
    %365 = arith.addf %362, %364 : vector<8x1xf32>
    %366 = vector.broadcast %358 : vector<8x1xf32> to vector<8x8xf32>
    %367 = arith.mulf %366, %348 : vector<8x8xf32>
    %368 = arith.truncf %361 : vector<8x12xf32> to vector<8x12xbf16>
    %cst_180 = arith.constant dense<0.000000e+00> : vector<8x8xf32>
    %369 = tpu.matmul %368, %350, %cst_180 {dimension_numbers = #tpu.dot_dimension_numbers<[1], [0], [0], [1], [0, 0, 1, 1], [], []>} : vector<8x12xbf16>, vector<12x8xbf16>, vector<8x8xf32> -> vector<8x8xf32>
    %370 = arith.addf %367, %369 : vector<8x8xf32>
    %371 = tpu.reciprocal %365 {approx = true} : vector<8x1xf32> -> vector<8x1xf32>
    %372 = vector.broadcast %371 : vector<8x1xf32> to vector<8x8xf32>
    %373 = arith.mulf %370, %372 : vector<8x8xf32>
    %c0_181 = arith.constant 0 : index
    %c0_182 = arith.constant 0 : index
    %374 = vector.load %arg32[%c0_181, %c0_182] : memref<8x32xf32, #tpu.memory_space<vmem>>, vector<8x32xf32>
    %375 = arith.truncf %373 : vector<8x8xf32> to vector<8x8xbf16>
    %c24_183 = arith.constant 24 : index
    %c0_184 = arith.constant 0 : index
    %376 = vector.load %arg17[%c24_183, %c0_184] : memref<32x32xbf16, #tpu.memory_space<vmem>>, vector<8x32xbf16>
    %cst_185 = arith.constant dense<0.000000e+00> : vector<8x32xf32>
    %377 = tpu.matmul %375, %376, %cst_185 {dimension_numbers = #tpu.dot_dimension_numbers<[1], [0], [0], [1], [0, 0, 1, 1], [], []>} : vector<8x8xbf16>, vector<8x32xbf16>, vector<8x32xf32> -> vector<8x32xf32>
    %378 = arith.addf %374, %377 : vector<8x32xf32>
    %c0_186 = arith.constant 0 : index
    %c0_187 = arith.constant 0 : index
    %379 = vector.load %arg32[%c0_186, %c0_187] : memref<8x32xf32, #tpu.memory_space<vmem>>, vector<8x32xf32>
    tpu.vector_store %arg32[%c0_186, %c0_187], %378 {strides = array<i32>} : memref<8x32xf32, #tpu.memory_space<vmem>>, vector<8x32xf32>,
    %c0_188 = arith.constant 0 : index
    %c0_189 = arith.constant 0 : index
    %380 = vector.load %arg32[%c0_188, %c0_189] : memref<8x32xf32, #tpu.memory_space<vmem>>, vector<8x32xf32>
    %c0_190 = arith.constant 0 : index
    %c0_191 = arith.constant 0 : index
    %381 = vector.load %arg18[%c0_190, %c0_191] : memref<1x32xf32, #tpu.memory_space<vmem>>, vector<1x32xf32>
    %382 = vector.broadcast %381 : vector<1x32xf32> to vector<8x32xf32>
    %383 = arith.addf %380, %382 : vector<8x32xf32>
    %384 = arith.addf %383, %229 : vector<8x32xf32>
    %c0_192 = arith.constant 0 : index
    %c0_193 = arith.constant 0 : index
    %385 = vector.load %arg19[%c0_192, %c0_193] : memref<1x32xf32, #tpu.memory_space<vmem>>, vector<1x32xf32>
    %c0_194 = arith.constant 0 : index
    %c0_195 = arith.constant 0 : index
    %386 = vector.load %arg20[%c0_194, %c0_195] : memref<1x32xf32, #tpu.memory_space<vmem>>, vector<1x32xf32>
    %cst_196 = arith.constant dense<0.000000e+00> : vector<8xf32>
    %387 = vector.multi_reduction <add>, %384, %cst_196 [1] : vector<8x32xf32> to vector<8xf32>
    %388 = vector.shape_cast %387 : vector<8xf32> to vector<8x1xf32>
    %cst_197 = arith.constant 3.200000e+01 : f32
    %389 = vector.broadcast %cst_197 : f32 to vector<8x1xf32>
    %390 = arith.divf %388, %389 : vector<8x1xf32>
    %391 = vector.broadcast %390 : vector<8x1xf32> to vector<8x32xf32>
    %392 = arith.subf %384, %391 : vector<8x32xf32>
    %393 = arith.mulf %392, %392 : vector<8x32xf32>
    %cst_198 = arith.constant dense<0.000000e+00> : vector<8xf32>
    %394 = vector.multi_reduction <add>, %393, %cst_198 [1] : vector<8x32xf32> to vector<8xf32>
    %395 = vector.shape_cast %394 : vector<8xf32> to vector<8x1xf32>
    %cst_199 = arith.constant 3.100000e+01 : f32
    %396 = vector.broadcast %cst_199 : f32 to vector<8x1xf32>
    %397 = arith.divf %395, %396 : vector<8x1xf32>
    %398 = math.sqrt %397 : vector<8x1xf32>
    %399 = vector.broadcast %390 : vector<8x1xf32> to vector<8x32xf32>
    %400 = arith.subf %384, %399 : vector<8x32xf32>
    %cst_200 = arith.constant 1.000000e-03 : f32
    %401 = vector.broadcast %cst_200 : f32 to vector<8x1xf32>
    %402 = arith.addf %398, %401 : vector<8x1xf32>
    %403 = vector.broadcast %402 : vector<8x1xf32> to vector<8x32xf32>
    %404 = arith.divf %400, %403 : vector<8x32xf32>
    %405 = vector.broadcast %385 : vector<1x32xf32> to vector<8x32xf32>
    %406 = arith.mulf %404, %405 : vector<8x32xf32>
    %407 = vector.broadcast %386 : vector<1x32xf32> to vector<8x32xf32>
    %408 = arith.addf %406, %407 : vector<8x32xf32>
    %409 = arith.truncf %408 : vector<8x32xf32> to vector<8x32xbf16>
    %c0_201 = arith.constant 0 : index
    %c0_202 = arith.constant 0 : index
    %410 = vector.load %arg21[%c0_201, %c0_202] : memref<32x64xbf16, #tpu.memory_space<vmem>>, vector<32x64xbf16>
    %cst_203 = arith.constant dense<0.000000e+00> : vector<8x64xf32>
    %411 = tpu.matmul %409, %410, %cst_203 {dimension_numbers = #tpu.dot_dimension_numbers<[1], [0], [0], [1], [0, 0, 1, 1], [], []>} : vector<8x32xbf16>, vector<32x64xbf16>, vector<8x64xf32> -> vector<8x64xf32>
    %c0_204 = arith.constant 0 : index
    %c0_205 = arith.constant 0 : index
    %412 = vector.load %arg22[%c0_204, %c0_205] : memref<1x64xf32, #tpu.memory_space<vmem>>, vector<1x64xf32>
    %413 = vector.broadcast %412 : vector<1x64xf32> to vector<8x64xf32>
    %414 = arith.addf %411, %413 : vector<8x64xf32>
    %cst_206 = arith.constant 0.000000e+00 : f32
    %415 = vector.broadcast %cst_206 : f32 to vector<8x64xf32>
    %416 = arith.maximumf %414, %415 : vector<8x64xf32>
    %417 = arith.truncf %416 : vector<8x64xf32> to vector<8x64xbf16>
    %c0_207 = arith.constant 0 : index
    %c0_208 = arith.constant 0 : index
    %418 = vector.load %arg23[%c0_207, %c0_208] : memref<64x32xbf16, #tpu.memory_space<vmem>>, vector<64x32xbf16>
    %cst_209 = arith.constant dense<0.000000e+00> : vector<8x32xf32>
    %419 = tpu.matmul %417, %418, %cst_209 {dimension_numbers = #tpu.dot_dimension_numbers<[1], [0], [0], [1], [0, 0, 1, 1], [], []>} : vector<8x64xbf16>, vector<64x32xbf16>, vector<8x32xf32> -> vector<8x32xf32>
    %c0_210 = arith.constant 0 : index
    %c0_211 = arith.constant 0 : index
    %420 = vector.load %arg24[%c0_210, %c0_211] : memref<1x32xf32, #tpu.memory_space<vmem>>, vector<1x32xf32>
    %421 = vector.broadcast %420 : vector<1x32xf32> to vector<8x32xf32>
    %422 = arith.addf %419, %421 : vector<8x32xf32>
    %423 = arith.addf %422, %408 : vector<8x32xf32>
    %c0_212 = arith.constant 0 : index
    %c0_213 = arith.constant 0 : index
    %424 = vector.load %arg25[%c0_212, %c0_213] : memref<1x32xf32, #tpu.memory_space<vmem>>, vector<1x32xf32>
    %c0_214 = arith.constant 0 : index
    %c0_215 = arith.constant 0 : index
    %425 = vector.load %arg26[%c0_214, %c0_215] : memref<1x32xf32, #tpu.memory_space<vmem>>, vector<1x32xf32>
    %cst_216 = arith.constant dense<0.000000e+00> : vector<8xf32>
    %426 = vector.multi_reduction <add>, %423, %cst_216 [1] : vector<8x32xf32> to vector<8xf32>
    %427 = vector.shape_cast %426 : vector<8xf32> to vector<8x1xf32>
    %cst_217 = arith.constant 3.200000e+01 : f32
    %428 = vector.broadcast %cst_217 : f32 to vector<8x1xf32>
    %429 = arith.divf %427, %428 : vector<8x1xf32>
    %430 = vector.broadcast %429 : vector<8x1xf32> to vector<8x32xf32>
    %431 = arith.subf %423, %430 : vector<8x32xf32>
    %432 = arith.mulf %431, %431 : vector<8x32xf32>
    %cst_218 = arith.constant dense<0.000000e+00> : vector<8xf32>
    %433 = vector.multi_reduction <add>, %432, %cst_218 [1] : vector<8x32xf32> to vector<8xf32>
    %434 = vector.shape_cast %433 : vector<8xf32> to vector<8x1xf32>
    %cst_219 = arith.constant 3.100000e+01 : f32
    %435 = vector.broadcast %cst_219 : f32 to vector<8x1xf32>
    %436 = arith.divf %434, %435 : vector<8x1xf32>
    %437 = math.sqrt %436 : vector<8x1xf32>
    %438 = vector.broadcast %429 : vector<8x1xf32> to vector<8x32xf32>
    %439 = arith.subf %423, %438 : vector<8x32xf32>
    %cst_220 = arith.constant 1.000000e-03 : f32
    %440 = vector.broadcast %cst_220 : f32 to vector<8x1xf32>
    %441 = arith.addf %437, %440 : vector<8x1xf32>
    %442 = vector.broadcast %441 : vector<8x1xf32> to vector<8x32xf32>
    %443 = arith.divf %439, %442 : vector<8x32xf32>
    %444 = vector.broadcast %424 : vector<1x32xf32> to vector<8x32xf32>
    %445 = arith.mulf %443, %444 : vector<8x32xf32>
    %446 = vector.broadcast %425 : vector<1x32xf32> to vector<8x32xf32>
    %447 = arith.addf %445, %446 : vector<8x32xf32>
    %448 = arith.truncf %447 : vector<8x32xf32> to vector<8x32xbf16>
    %c0_221 = arith.constant 0 : index
    %c0_222 = arith.constant 0 : index
    %c0_223 = arith.constant 0 : index
    %449 = vector.load %arg27[%c0_221, %c0_222, %c0_223] : memref<1x8x32xbf16, #tpu.memory_space<vmem>>, vector<1x8x32xbf16>
    %450 = vector.shape_cast %449 : vector<1x8x32xbf16> to vector<8x32xbf16>
    %451 = vector.shape_cast %448 : vector<8x32xbf16> to vector<1x8x32xbf16>
    tpu.vector_store %arg27[%c0_221, %c0_222, %c0_223], %451 {strides = array<i32>} : memref<1x8x32xbf16, #tpu.memory_space<vmem>>, vector<1x8x32xbf16>,
    return
  }
  func.func @transform_0(%arg0: i32, %arg1: i32) -> (i32, i32, i32) {
    %c0_i32 = arith.constant 0 : i32
    %c0_i32_0 = arith.constant 0 : i32
    return %arg0, %arg1, %c0_i32 : i32, i32, i32
  }
  func.func @transform_1(%arg0: i32, %arg1: i32) -> (i32, i32, i32) {
    %c0_i32 = arith.constant 0 : i32
    %c0_i32_0 = arith.constant 0 : i32
    %c0_i32_1 = arith.constant 0 : i32
    return %arg0, %c0_i32, %c0_i32_0 : i32, i32, i32
  }
  func.func @transform_2(%arg0: i32, %arg1: i32) -> (i32, i32, i32) {
    %c0_i32 = arith.constant 0 : i32
    %c0_i32_0 = arith.constant 0 : i32
    %c0_i32_1 = arith.constant 0 : i32
    return %arg0, %c0_i32, %c0_i32_0 : i32, i32, i32
  }
  func.func @transform_3(%arg0: i32, %arg1: i32) -> (i32, i32, i32) {
    %c0_i32 = arith.constant 0 : i32
    %c0_i32_0 = arith.constant 0 : i32
    %c0_i32_1 = arith.constant 0 : i32
    return %arg0, %c0_i32, %c0_i32_0 : i32, i32, i32
  }
  func.func @transform_4(%arg0: i32, %arg1: i32) -> (i32, i32, i32) {
    %c0_i32 = arith.constant 0 : i32
    %c0_i32_0 = arith.constant 0 : i32
    %c0_i32_1 = arith.constant 0 : i32
    return %arg0, %c0_i32, %c0_i32_0 : i32, i32, i32
  }
  func.func @transform_5(%arg0: i32, %arg1: i32) -> (i32, i32) {
    %c0_i32 = arith.constant 0 : i32
    %c0_i32_0 = arith.constant 0 : i32
    %c0_i32_1 = arith.constant 0 : i32
    return %c0_i32, %c0_i32_0 : i32, i32
  }
  func.func @transform_6(%arg0: i32, %arg1: i32) -> (i32, i32) {
    %c0_i32 = arith.constant 0 : i32
    %c0_i32_0 = arith.constant 0 : i32
    %c0_i32_1 = arith.constant 0 : i32
    return %c0_i32, %c0_i32_0 : i32, i32
  }
  func.func @transform_7(%arg0: i32, %arg1: i32) -> (i32, i32) {
    %c0_i32 = arith.constant 0 : i32
    %c0_i32_0 = arith.constant 0 : i32
    %c0_i32_1 = arith.constant 0 : i32
    return %c0_i32, %c0_i32_0 : i32, i32
  }
  func.func @transform_8(%arg0: i32, %arg1: i32) -> (i32, i32) {
    %c0_i32 = arith.constant 0 : i32
    %c0_i32_0 = arith.constant 0 : i32
    %c0_i32_1 = arith.constant 0 : i32
    return %c0_i32, %c0_i32_0 : i32, i32
  }
  func.func @transform_9(%arg0: i32, %arg1: i32) -> (i32, i32) {
    %c0_i32 = arith.constant 0 : i32
    %c0_i32_0 = arith.constant 0 : i32
    %c0_i32_1 = arith.constant 0 : i32
    return %c0_i32, %c0_i32_0 : i32, i32
  }
  func.func @transform_10(%arg0: i32, %arg1: i32) -> (i32, i32) {
    %c0_i32 = arith.constant 0 : i32
    %c0_i32_0 = arith.constant 0 : i32
    %c0_i32_1 = arith.constant 0 : i32
    return %c0_i32, %c0_i32_0 : i32, i32
  }
  func.func @transform_11(%arg0: i32, %arg1: i32) -> (i32, i32) {
    %c0_i32 = arith.constant 0 : i32
    %c0_i32_0 = arith.constant 0 : i32
    %c0_i32_1 = arith.constant 0 : i32
    return %c0_i32, %c0_i32_0 : i32, i32
  }
  func.func @transform_12(%arg0: i32, %arg1: i32) -> (i32, i32) {
    %c0_i32 = arith.constant 0 : i32
    %c0_i32_0 = arith.constant 0 : i32
    %c0_i32_1 = arith.constant 0 : i32
    return %c0_i32, %c0_i32_0 : i32, i32
  }
  func.func @transform_13(%arg0: i32, %arg1: i32) -> (i32, i32) {
    %c0_i32 = arith.constant 0 : i32
    %c0_i32_0 = arith.constant 0 : i32
    %c0_i32_1 = arith.constant 0 : i32
    return %c0_i32, %c0_i32_0 : i32, i32
  }
  func.func @transform_14(%arg0: i32, %arg1: i32) -> (i32, i32) {
    %c0_i32 = arith.constant 0 : i32
    %c0_i32_0 = arith.constant 0 : i32
    %c0_i32_1 = arith.constant 0 : i32
    return %c0_i32, %c0_i32_0 : i32, i32
  }
  func.func @transform_15(%arg0: i32, %arg1: i32) -> (i32, i32) {
    %c0_i32 = arith.constant 0 : i32
    %c0_i32_0 = arith.constant 0 : i32
    %c0_i32_1 = arith.constant 0 : i32
    return %c0_i32, %c0_i32_0 : i32, i32
  }
  func.func @transform_16(%arg0: i32, %arg1: i32) -> (i32, i32) {
    %c0_i32 = arith.constant 0 : i32
    %c0_i32_0 = arith.constant 0 : i32
    %c0_i32_1 = arith.constant 0 : i32
    return %c0_i32, %c0_i32_0 : i32, i32
  }
  func.func @transform_17(%arg0: i32, %arg1: i32) -> (i32, i32) {
    %c0_i32 = arith.constant 0 : i32
    %c0_i32_0 = arith.constant 0 : i32
    %c0_i32_1 = arith.constant 0 : i32
    return %c0_i32, %c0_i32_0 : i32, i32
  }
  func.func @transform_18(%arg0: i32, %arg1: i32) -> (i32, i32) {
    %c0_i32 = arith.constant 0 : i32
    %c0_i32_0 = arith.constant 0 : i32
    %c0_i32_1 = arith.constant 0 : i32
    return %c0_i32, %c0_i32_0 : i32, i32
  }
  func.func @transform_19(%arg0: i32, %arg1: i32) -> (i32, i32) {
    %c0_i32 = arith.constant 0 : i32
    %c0_i32_0 = arith.constant 0 : i32
    %c0_i32_1 = arith.constant 0 : i32
    return %c0_i32, %c0_i32_0 : i32, i32
  }
  func.func @transform_20(%arg0: i32, %arg1: i32) -> (i32, i32) {
    %c0_i32 = arith.constant 0 : i32
    %c0_i32_0 = arith.constant 0 : i32
    %c0_i32_1 = arith.constant 0 : i32
    return %c0_i32, %c0_i32_0 : i32, i32
  }
  func.func @transform_21(%arg0: i32, %arg1: i32) -> (i32, i32) {
    %c0_i32 = arith.constant 0 : i32
    %c0_i32_0 = arith.constant 0 : i32
    %c0_i32_1 = arith.constant 0 : i32
    return %c0_i32, %c0_i32_0 : i32, i32
  }
  func.func @transform_22(%arg0: i32, %arg1: i32) -> (i32, i32) {
    %c0_i32 = arith.constant 0 : i32
    %c0_i32_0 = arith.constant 0 : i32
    %c0_i32_1 = arith.constant 0 : i32
    return %c0_i32, %c0_i32_0 : i32, i32
  }
  func.func @transform_23(%arg0: i32, %arg1: i32) -> (i32, i32) {
    %c0_i32 = arith.constant 0 : i32
    %c0_i32_0 = arith.constant 0 : i32
    %c0_i32_1 = arith.constant 0 : i32
    return %c0_i32, %c0_i32_0 : i32, i32
  }
  func.func @transform_24(%arg0: i32, %arg1: i32) -> (i32, i32) {
    %c0_i32 = arith.constant 0 : i32
    %c0_i32_0 = arith.constant 0 : i32
    %c0_i32_1 = arith.constant 0 : i32
    return %c0_i32, %c0_i32_0 : i32, i32
  }
  func.func @transform_25(%arg0: i32, %arg1: i32) -> (i32, i32, i32) {
    %c0_i32 = arith.constant 0 : i32
    %c0_i32_0 = arith.constant 0 : i32
    return %arg0, %arg1, %c0_i32 : i32, i32, i32
  }
}

module attributes {stable_mosaic.version = 11 : i64} {
  func.func @_decoder_layer_kernel(%arg0: i32, %arg1: i32, %arg2: memref<1x8x32xbf16, #tpu.memory_space<vmem>>, %arg3: memref<1x8x32xbf16, #tpu.memory_space<vmem>>, %arg4: memref<1x12x32xbf16, #tpu.memory_space<vmem>>, %arg5: memref<1x1x8xf32, #tpu.memory_space<vmem>>, %arg6: memref<1x1x12xf32, #tpu.memory_space<vmem>>, %arg7: memref<32x32xbf16, #tpu.memory_space<vmem>>, %arg8: memref<32x32xbf16, #tpu.memory_space<vmem>>, %arg9: memref<32x32xbf16, #tpu.memory_space<vmem>>, %arg10: memref<32x32xbf16, #tpu.memory_space<vmem>>, %arg11: memref<1x32xf32, #tpu.memory_space<vmem>>, %arg12: memref<1x32xf32, #tpu.memory_space<vmem>>, %arg13: memref<1x32xf32, #tpu.memory_space<vmem>>, %arg14: memref<32x32xbf16, #tpu.memory_space<vmem>>, %arg15: memref<32x32xbf16, #tpu.memory_space<vmem>>, %arg16: memref<32x32xbf16, #tpu.memory_space<vmem>>, %arg17: memref<32x32xbf16, #tpu.memory_space<vmem>>, %arg18: memref<1x32xf32, #tpu.memory_space<vmem>>, %arg19: memref<1x32xf32, #tpu.memory_space<vmem>>, %arg20: memref<1x32xf32, #tpu.memory_space<vmem>>, %arg21: memref<32x64xbf16, #tpu.memory_space<vmem>>, %arg22: memref<1x64xf32, #tpu.memory_space<vmem>>, %arg23: memref<64x32xbf16, #tpu.memory_space<vmem>>, %arg24: memref<1x32xf32, #tpu.memory_space<vmem>>, %arg25: memref<1x32xf32, #tpu.memory_space<vmem>>, %arg26: memref<1x32xf32, #tpu.memory_space<vmem>>, %arg27: memref<1x8x32xbf16, #tpu.memory_space<vmem>>, %arg28: memref<8x32xbf16, #tpu.memory_space<vmem>>, %arg29: memref<8x32xbf16, #tpu.memory_space<vmem>>, %arg30: memref<12x32xbf16, #tpu.memory_space<vmem>>, %arg31: memref<12x32xbf16, #tpu.memory_space<vmem>>, %arg32: memref<8x32xf32, #tpu.memory_space<vmem>>) attributes {dimension_semantics = [#tpu.dimension_semantics<parallel>, #tpu.dimension_semantics<arbitrary>], iteration_bounds = array<i64: 2, 1>, scalar_prefetch = 0 : i64, scratch_operands = 5 : i64, tpu.core_type = #tpu.core_type<tc>, window_params = [{transform_indices = @transform_0, window_bounds = array<i64: 1, 8, 32>}, {transform_indices = @transform_1, window_bounds = array<i64: 1, 8, 32>}, {transform_indices = @transform_2, window_bounds = array<i64: 1, 12, 32>}, {transform_indices = @transform_3, window_bounds = array<i64: 1, 1, 8>}, {transform_indices = @transform_4, window_bounds = array<i64: 1, 1, 12>}, {pipeline_mode = #tpu.pipeline_mode<synchronous>, transform_indices = @transform_5, window_bounds = array<i64: 32, 32>}, {pipeline_mode = #tpu.pipeline_mode<synchronous>, transform_indices = @transform_6, window_bounds = array<i64: 32, 32>}, {pipeline_mode = #tpu.pipeline_mode<synchronous>, transform_indices = @transform_7, window_bounds = array<i64: 32, 32>}, {pipeline_mode = #tpu.pipeline_mode<synchronous>, transform_indices = @transform_8, window_bounds = array<i64: 32, 32>}, {pipeline_mode = #tpu.pipeline_mode<synchronous>, transform_indices = @transform_9, window_bounds = array<i64: 1, 32>}, {pipeline_mode = #tpu.pipeline_mode<synchronous>, transform_indices = @transform_10, window_bounds = array<i64: 1, 32>}, {pipeline_mode = #tpu.pipeline_mode<synchronous>, transform_indices = @transform_11, window_bounds = array<i64: 1, 32>}, {pipeline_mode = #tpu.pipeline_mode<synchronous>, transform_indices = @transform_12, window_bounds = array<i64: 32, 32>}, {pipeline_mode = #tpu.pipeline_mode<synchronous>, transform_indices = @transform_13, window_bounds = array<i64: 32, 32>}, {pipeline_mode = #tpu.pipeline_mode<synchronous>, transform_indices = @transform_14, window_bounds = array<i64: 32, 32>}, {pipeline_mode = #tpu.pipeline_mode<synchronous>, transform_indices = @transform_15, window_bounds = array<i64: 32, 32>}, {pipeline_mode = #tpu.pipeline_mode<synchronous>, transform_indices = @transform_16, window_bounds = array<i64: 1, 32>}, {pipeline_mode = #tpu.pipeline_mode<synchronous>, transform_indices = @transform_17, window_bounds = array<i64: 1, 32>}, {pipeline_mode = #tpu.pipeline_mode<synchronous>, transform_indices = @transform_18, window_bounds = array<i64: 1, 32>}, {pipeline_mode = #tpu.pipeline_mode<synchronous>, transform_indices = @transform_19, window_bounds = array<i64: 32, 64>}, {pipeline_mode = #tpu.pipeline_mode<synchronous>, transform_indices = @transform_20, window_bounds = array<i64: 1, 64>}, {pipeline_mode = #tpu.pipeline_mode<synchronous>, transform_indices = @transform_21, window_bounds = array<i64: 64, 32>}, {pipeline_mode = #tpu.pipeline_mode<synchronous>, transform_indices = @transform_22, window_bounds = array<i64: 1, 32>}, {pipeline_mode = #tpu.pipeline_mode<synchronous>, transform_indices = @transform_23, window_bounds = array<i64: 1, 32>}, {pipeline_mode = #tpu.pipeline_mode<synchronous>, transform_indices = @transform_24, window_bounds = array<i64: 1, 32>}, {transform_indices = @transform_25, window_bounds = array<i64: 1, 8, 32>}]} {
    %c0_i32 = arith.constant 0 : i32
    %0 = arith.cmpi eq, %arg1, %c0_i32 : i32
    %1 = arith.extui %0 : i1 to i32
    %c0_i32_0 = arith.constant 0 : i32
    %2 = arith.cmpi ne, %1, %c0_i32_0 : i32
    scf.if %2 {
      %c0_224 = arith.constant 0 : index
      %c0_225 = arith.constant 0 : index
      %c0_226 = arith.constant 0 : index
      %452 = vector.load %arg3[%c0_224, %c0_225, %c0_226] : memref<1x8x32xbf16, #tpu.memory_space<vmem>>, vector<1x8x32xbf16>
      %453 = vector.shape_cast %452 : vector<1x8x32xbf16> to vector<8x32xbf16>
      %c0_227 = arith.constant 0 : index
      %c0_228 = arith.constant 0 : index
      %454 = vector.load %arg8[%c0_227, %c0_228] : memref<32x32xbf16, #tpu.memory_space<vmem>>, vector<32x32xbf16>
      %cst_229 = arith.constant dense<0.000000e+00> : vector<8x32xf32>
      %455 = tpu.matmul %453, %454, %cst_229 {dimension_numbers = #tpu.dot_dimension_numbers<[1], [0], [0], [1], [0, 0, 1, 1], [], []>} : vector<8x32xbf16>, vector<32x32xbf16>, vector<8x32xf32> -> vector<8x32xf32>
      %456 = arith.truncf %455 : vector<8x32xf32> to vector<8x32xbf16>
      %c0_230 = arith.constant 0 : index
      %c0_231 = arith.constant 0 : index
      %457 = vector.load %arg28[%c0_230, %c0_231] : memref<8x32xbf16, #tpu.memory_space<vmem>>, vector<8x32xbf16>
      tpu.vector_store %arg28[%c0_230, %c0_231], %456 {strides = array<i32>} : memref<8x32xbf16, #tpu.memory_space<vmem>>, vector<8x32xbf16>,
      %c0_232 = arith.constant 0 : index
      %c0_233 = arith.constant 0 : index
      %458 = vector.load %arg9[%c0_232, %c0_233] : memref<32x32xbf16, #tpu.memory_space<vmem>>, vector<32x32xbf16>
      %cst_234 = arith.constant dense<0.000000e+00> : vector<8x32xf32>
      %459 = tpu.matmul %453, %458, %cst_234 {dimension_numbers = #tpu.dot_dimension_numbers<[1], [0], [0], [1], [0, 0, 1, 1], [], []>} : vector<8x32xbf16>, vector<32x32xbf16>, vector<8x32xf32> -> vector<8x32xf32>
      %460 = arith.truncf %459 : vector<8x32xf32> to vector<8x32xbf16>
      %c0_235 = arith.constant 0 : index
      %c0_236 = arith.constant 0 : index
      %461 = vector.load %arg29[%c0_235, %c0_236] : memref<8x32xbf16, #tpu.memory_space<vmem>>, vector<8x32xbf16>
      tpu.vector_store %arg29[%c0_235, %c0_236], %460 {strides = array<i32>} : memref<8x32xbf16, #tpu.memory_space<vmem>>, vector<8x32xbf16>,
      %c0_237 = arith.constant 0 : index
      %c0_238 = arith.constant 0 : index
      %c0_239 = arith.constant 0 : index
      %462 = vector.load %arg4[%c0_237, %c0_238, %c0_239] : memref<1x12x32xbf16, #tpu.memory_space<vmem>>, vector<1x12x32xbf16>
      %463 = vector.shape_cast %462 : vector<1x12x32xbf16> to vector<12x32xbf16>
      %c0_240 = arith.constant 0 : index
      %c0_241 = arith.constant 0 : index
      %464 = vector.load %arg15[%c0_240, %c0_241] : memref<32x32xbf16, #tpu.memory_space<vmem>>, vector<32x32xbf16>
      %cst_242 = arith.constant dense<0.000000e+00> : vector<12x32xf32>
      %465 = tpu.matmul %463, %464, %cst_242 {dimension_numbers = #tpu.dot_dimension_numbers<[1], [0], [0], [1], [0, 0, 1, 1], [], []>} : vector<12x32xbf16>, vector<32x32xbf16>, vector<12x32xf32> -> vector<12x32xf32>
      %466 = arith.truncf %465 : vector<12x32xf32> to vector<12x32xbf16>
      %c0_243 = arith.constant 0 : index
      %c0_244 = arith.constant 0 : index
      %467 = vector.load %arg30[%c0_243, %c0_244] : memref<12x32xbf16, #tpu.memory_space<vmem>>, vector<12x32xbf16>
      tpu.vector_store %arg30[%c0_243, %c0_244], %466 {strides = array<i32>} : memref<12x32xbf16, #tpu.memory_space<vmem>>, vector<12x32xbf16>,
      %c0_245 = arith.constant 0 : index
      %c0_246 = arith.constant 0 : index
      %468 = vector.load %arg16[%c0_245, %c0_246] : memref<32x32xbf16, #tpu.memory_space<vmem>>, vector<32x32xbf16>
      %cst_247 = arith.constant dense<0.000000e+00> : vector<12x32xf32>
      %469 = tpu.matmul %463, %468, %cst_247 {dimension_numbers = #tpu.dot_dimension_numbers<[1], [0], [0], [1], [0, 0, 1, 1], [], []>} : vector<12x32xbf16>, vector<32x32xbf16>, vector<12x32xf32> -> vector<12x32xf32>
      %470 = arith.truncf %469 : vector<12x32xf32> to vector<12x32xbf16>
      %c0_248 = arith.constant 0 : index
      %c0_249 = arith.constant 0 : index
      %471 = vector.load %arg31[%c0_248, %c0_249] : memref<12x32xbf16, #tpu.memory_space<vmem>>, vector<12x32xbf16>
      tpu.vector_store %arg31[%c0_248, %c0_249], %470 {strides = array<i32>} : memref<12x32xbf16, #tpu.memory_space<vmem>>, vector<12x32xbf16>,
    } else {
    }
    %c0 = arith.constant 0 : index
    %c0_1 = arith.constant 0 : index
    %c0_2 = arith.constant 0 : index
    %3 = vector.load %arg2[%c0, %c0_1, %c0_2] : memref<1x8x32xbf16, #tpu.memory_space<vmem>>, vector<1x8x32xbf16>
    %4 = vector.shape_cast %3 : vector<1x8x32xbf16> to vector<8x32xbf16>
    %5 = arith.extf %4 : vector<8x32xbf16> to vector<8x32xf32>
    %c0_3 = arith.constant 0 : index
    %c0_4 = arith.constant 0 : index
    %c0_5 = arith.constant 0 : index
    %6 = vector.load %arg5[%c0_3, %c0_4, %c0_5] : memref<1x1x8xf32, #tpu.memory_space<vmem>>, vector<1x1x8xf32>
    %7 = vector.shape_cast %6 : vector<1x1x8xf32> to vector<1x8xf32>
    %c8_i32 = arith.constant 8 : i32
    %8 = arith.muli %arg1, %c8_i32 : i32
    %9 = arith.truncf %5 : vector<8x32xf32> to vector<8x32xbf16>
    %c0_6 = arith.constant 0 : index
    %c0_7 = arith.constant 0 : index
    %10 = vector.load %arg7[%c0_6, %c0_7] : memref<32x32xbf16, #tpu.memory_space<vmem>>, vector<32x32xbf16>
    %cst = arith.constant dense<0.000000e+00> : vector<8x32xf32>
    %11 = tpu.matmul %9, %10, %cst {dimension_numbers = #tpu.dot_dimension_numbers<[1], [0], [0], [1], [0, 0, 1, 1], [], []>} : vector<8x32xbf16>, vector<32x32xbf16>, vector<8x32xf32> -> vector<8x32xf32>
    %cst_8 = arith.constant 0.176776692 : f32
    %12 = vector.broadcast %cst_8 : f32 to vector<8x32xf32>
    %13 = arith.mulf %11, %12 : vector<8x32xf32>
    %14 = arith.truncf %13 : vector<8x32xf32> to vector<8x32xbf16>
    %cst_9 = arith.constant 0.000000e+00 : f32
    %15 = vector.broadcast %cst_9 : f32 to vector<8x32xf32>
    %c0_10 = arith.constant 0 : index
    %c0_11 = arith.constant 0 : index
    %16 = vector.load %arg32[%c0_10, %c0_11] : memref<8x32xf32, #tpu.memory_space<vmem>>, vector<8x32xf32>
    tpu.vector_store %arg32[%c0_10, %c0_11], %15 {strides = array<i32>} : memref<8x32xf32, #tpu.memory_space<vmem>>, vector<8x32xf32>,
    %17 = vector.extract_strided_slice %14 {offsets = [0, 0], sizes = [8, 8], strides = [1, 1]} : vector<8x32xbf16> to vector<8x8xbf16>
    %cst_12 = arith.constant 0xFF800000 : f32
    %18 = vector.broadcast %cst_12 : f32 to vector<8x1xf32>
    %cst_13 = arith.constant 0.000000e+00 : f32
    %19 = vector.broadcast %cst_13 : f32 to vector<8x1xf32>
    %cst_14 = arith.constant 0.000000e+00 : f32
    %20 = vector.broadcast %cst_14 : f32 to vector<8x8xf32>
    %c0_15 = arith.constant 0 : index
    %c0_16 = arith.constant 0 : index
    %21 = vector.load %arg28[%c0_15, %c0_16] : memref<8x32xbf16, #tpu.memory_space<vmem>>, vector<8x8xbf16>
    %c0_17 = arith.constant 0 : index
    %c0_18 = arith.constant 0 : index
    %22 = vector.load %arg29[%c0_17, %c0_18] : memref<8x32xbf16, #tpu.memory_space<vmem>>, vector<8x8xbf16>
    %cst_19 = arith.constant dense<0.000000e+00> : vector<8x8xf32>
    %23 = tpu.matmul %17, %21, %cst_19 {dimension_numbers = #tpu.dot_dimension_numbers<[1], [1], [0], [0], [0, 0, 1, 0], [], []>} : vector<8x8xbf16>, vector<8x8xbf16>, vector<8x8xf32> -> vector<8x8xf32>
    %24 = vector.broadcast %7 : vector<1x8xf32> to vector<8x8xf32>
    %25 = arith.addf %23, %24 : vector<8x8xf32>
    %26 = tpu.iota {dimensions = array<i32: 0>} : vector<8x8xi32>
    %27 = vector.broadcast %8 : i32 to vector<8x8xi32>
    %28 = arith.addi %26, %27 : vector<8x8xi32>
    %29 = tpu.iota {dimensions = array<i32: 1>} : vector<8x8xi32>
    %c0_i32_20 = arith.constant 0 : i32
    %30 = vector.broadcast %c0_i32_20 : i32 to vector<8x8xi32>
    %31 = arith.addi %29, %30 : vector<8x8xi32>
    %32 = arith.cmpi sgt, %31, %28 : vector<8x8xi32>
    %cst_21 = arith.constant -1.000000e+30 : f32
    %cst_22 = arith.constant 0.000000e+00 : f32
    %33 = vector.broadcast %cst_21 : f32 to vector<8x8xf32>
    %34 = vector.broadcast %cst_22 : f32 to vector<8x8xf32>
    %35 = arith.select %32, %33, %34 : vector<8x8xi1>, vector<8x8xf32>
    %36 = arith.addf %25, %35 : vector<8x8xf32>
    %cst_23 = arith.constant dense<0xFF800000> : vector<8xf32>
    %37 = vector.multi_reduction <maximumf>, %36, %cst_23 [1] : vector<8x8xf32> to vector<8xf32>
    %38 = vector.shape_cast %37 : vector<8xf32> to vector<8x1xf32>
    %39 = arith.maximumf %18, %38 : vector<8x1xf32>
    %40 = arith.subf %18, %39 : vector<8x1xf32>
    %41 = math.exp %40 : vector<8x1xf32>
    %42 = vector.broadcast %39 : vector<8x1xf32> to vector<8x8xf32>
    %43 = arith.subf %36, %42 : vector<8x8xf32>
    %44 = math.exp %43 : vector<8x8xf32>
    %45 = arith.mulf %41, %19 : vector<8x1xf32>
    %cst_24 = arith.constant dense<0.000000e+00> : vector<8xf32>
    %46 = vector.multi_reduction <add>, %44, %cst_24 [1] : vector<8x8xf32> to vector<8xf32>
    %47 = vector.shape_cast %46 : vector<8xf32> to vector<8x1xf32>
    %48 = arith.addf %45, %47 : vector<8x1xf32>
    %49 = vector.broadcast %41 : vector<8x1xf32> to vector<8x8xf32>
    %50 = arith.mulf %49, %20 : vector<8x8xf32>
    %51 = arith.truncf %44 : vector<8x8xf32> to vector<8x8xbf16>
    %cst_25 = arith.constant dense<0.000000e+00> : vector<8x8xf32>
    %52 = tpu.matmul %51, %22, %cst_25 {dimension_numbers = #tpu.dot_dimension_numbers<[1], [0], [0], [1], [0, 0, 1, 1], [], []>} : vector<8x8xbf16>, vector<8x8xbf16>, vector<8x8xf32> -> vector<8x8xf32>
    %53 = arith.addf %50, %52 : vector<8x8xf32>
    %54 = tpu.reciprocal %48 {approx = true} : vector<8x1xf32> -> vector<8x1xf32>
    %55 = vector.broadcast %54 : vector<8x1xf32> to vector<8x8xf32>
    %56 = arith.mulf %53, %55 : vector<8x8xf32>
    %c0_26 = arith.constant 0 : index
    %c0_27 = arith.constant 0 : index
    %57 = vector.load %arg32[%c0_26, %c0_27] : memref<8x32xf32, #tpu.memory_space<vmem>>, vector<8x32xf32>
    %58 = arith.truncf %56 : vector<8x8xf32> to vector<8x8xbf16>
    %c0_28 = arith.constant 0 : index
    %c0_29 = arith.constant 0 : index
    %59 = vector.load %arg10[%c0_28, %c0_29] : memref<32x32xbf16, #tpu.memory_space<vmem>>, vector<8x32xbf16>
    %cst_30 = arith.constant dense<0.000000e+00> : vector<8x32xf32>
    %60 = tpu.matmul %58, %59, %cst_30 {dimension_numbers = #tpu.dot_dimension_numbers<[1], [0], [0], [1], [0, 0, 1, 1], [], []>} : vector<8x8xbf16>, vector<8x32xbf16>, vector<8x32xf32> -> vector<8x32xf32>
    %61 = arith.addf %57, %60 : vector<8x32xf32>
    %c0_31 = arith.constant 0 : index
    %c0_32 = arith.constant 0 : index
    %62 = vector.load %arg32[%c0_31, %c0_32] : memref<8x32xf32, #tpu.memory_space<vmem>>, vector<8x32xf32>
    tpu.vector_store %arg32[%c0_31, %c0_32], %61 {strides = array<i32>} : memref<8x32xf32, #tpu.memory_space<vmem>>, vector<8x32xf32>,
    %63 = vector.extract_strided_slice %14 {offsets = [0, 8], sizes = [8, 8], strides = [1, 1]} : vector<8x32xbf16> to vector<8x8xbf16>
    %cst_33 = arith.constant 0xFF800000 : f32
    %64 = vector.broadcast %cst_33 : f32 to vector<8x1xf32>
    %cst_34 = arith.constant 0.000000e+00 : f32
    %65 = vector.broadcast %cst_34 : f32 to vector<8x1xf32>
    %cst_35 = arith.constant 0.000000e+00 : f32
    %66 = vector.broadcast %cst_35 : f32 to vector<8x8xf32>
    %c0_36 = arith.constant 0 : index
    %c8 = arith.constant 8 : index
    %67 = vector.load %arg28[%c0_36, %c8] : memref<8x32xbf16, #tpu.memory_space<vmem>>, vector<8x8xbf16>
    %c0_37 = arith.constant 0 : index
    %c8_38 = arith.constant 8 : index
    %68 = vector.load %arg29[%c0_37, %c8_38] : memref<8x32xbf16, #tpu.memory_space<vmem>>, vector<8x8xbf16>
    %cst_39 = arith.constant dense<0.000000e+00> : vector<8x8xf32>
    %69 = tpu.matmul %63, %67, %cst_39 {dimension_numbers = #tpu.dot_dimension_numbers<[1], [1], [0], [0], [0, 0, 1, 0], [], []>} : vector<8x8xbf16>, vector<8x8xbf16>, vector<8x8xf32> -> vector<8x8xf32>
    %70 = vector.broadcast %7 : vector<1x8xf32> to vector<8x8xf32>
    %71 = arith.addf %69, %70 : vector<8x8xf32>
    %72 = tpu.iota {dimensions = array<i32: 0>} : vector<8x8xi32>
    %73 = vector.broadcast %8 : i32 to vector<8x8xi32>
    %74 = arith.addi %72, %73 : vector<8x8xi32>
    %75 = tpu.iota {dimensions = array<i32: 1>} : vector<8x8xi32>
    %c0_i32_40 = arith.constant 0 : i32
    %76 = vector.broadcast %c0_i32_40 : i32 to vector<8x8xi32>
    %77 = arith.addi %75, %76 : vector<8x8xi32>
    %78 = arith.cmpi sgt, %77, %74 : vector<8x8xi32>
    %cst_41 = arith.constant -1.000000e+30 : f32
    %cst_42 = arith.constant 0.000000e+00 : f32
    %79 = vector.broadcast %cst_41 : f32 to vector<8x8xf32>
    %80 = vector.broadcast %cst_42 : f32 to vector<8x8xf32>
    %81 = arith.select %78, %79, %80 : vector<8x8xi1>, vector<8x8xf32>
    %82 = arith.addf %71, %81 : vector<8x8xf32>
    %cst_43 = arith.constant dense<0xFF800000> : vector<8xf32>
    %83 = vector.multi_reduction <maximumf>, %82, %cst_43 [1] : vector<8x8xf32> to vector<8xf32>
    %84 = vector.shape_cast %83 : vector<8xf32> to vector<8x1xf32>
    %85 = arith.maximumf %64, %84 : vector<8x1xf32>
    %86 = arith.subf %64, %85 : vector<8x1xf32>
    %87 = math.exp %86 : vector<8x1xf32>
    %88 = vector.broadcast %85 : vector<8x1xf32> to vector<8x8xf32>
    %89 = arith.subf %82, %88 : vector<8x8xf32>
    %90 = math.exp %89 : vector<8x8xf32>
    %91 = arith.mulf %87, %65 : vector<8x1xf32>
    %cst_44 = arith.constant dense<0.000000e+00> : vector<8xf32>
    %92 = vector.multi_reduction <add>, %90, %cst_44 [1] : vector<8x8xf32> to vector<8xf32>
    %93 = vector.shape_cast %92 : vector<8xf32> to vector<8x1xf32>
    %94 = arith.addf %91, %93 : vector<8x1xf32>
    %95 = vector.broadcast %87 : vector<8x1xf32> to vector<8x8xf32>
    %96 = arith.mulf %95, %66 : vector<8x8xf32>
    %97 = arith.truncf %90 : vector<8x8xf32> to vector<8x8xbf16>
    %cst_45 = arith.constant dense<0.000000e+00> : vector<8x8xf32>
    %98 = tpu.matmul %97, %68, %cst_45 {dimension_numbers = #tpu.dot_dimension_numbers<[1], [0], [0], [1], [0, 0, 1, 1], [], []>} : vector<8x8xbf16>, vector<8x8xbf16>, vector<8x8xf32> -> vector<8x8xf32>
    %99 = arith.addf %96, %98 : vector<8x8xf32>
    %100 = tpu.reciprocal %94 {approx = true} : vector<8x1xf32> -> vector<8x1xf32>
    %101 = vector.broadcast %100 : vector<8x1xf32> to vector<8x8xf32>
    %102 = arith.mulf %99, %101 : vector<8x8xf32>
    %c0_46 = arith.constant 0 : index
    %c0_47 = arith.constant 0 : index
    %103 = vector.load %arg32[%c0_46, %c0_47] : memref<8x32xf32, #tpu.memory_space<vmem>>, vector<8x32xf32>
    %104 = arith.truncf %102 : vector<8x8xf32> to vector<8x8xbf16>
    %c8_48 = arith.constant 8 : index
    %c0_49 = arith.constant 0 : index
    %105 = vector.load %arg10[%c8_48, %c0_49] : memref<32x32xbf16, #tpu.memory_space<vmem>>, vector<8x32xbf16>
    %cst_50 = arith.constant dense<0.000000e+00> : vector<8x32xf32>
    %106 = tpu.matmul %104, %105, %cst_50 {dimension_numbers = #tpu.dot_dimension_numbers<[1], [0], [0], [1], [0, 0, 1, 1], [], []>} : vector<8x8xbf16>, vector<8x32xbf16>, vector<8x32xf32> -> vector<8x32xf32>
    %107 = arith.addf %103, %106 : vector<8x32xf32>
    %c0_51 = arith.constant 0 : index
    %c0_52 = arith.constant 0 : index
    %108 = vector.load %arg32[%c0_51, %c0_52] : memref<8x32xf32, #tpu.memory_space<vmem>>, vector<8x32xf32>
    tpu.vector_store %arg32[%c0_51, %c0_52], %107 {strides = array<i32>} : memref<8x32xf32, #tpu.memory_space<vmem>>, vector<8x32xf32>,
    %109 = vector.extract_strided_slice %14 {offsets = [0, 16], sizes = [8, 8], strides = [1, 1]} : vector<8x32xbf16> to vector<8x8xbf16>
    %cst_53 = arith.constant 0xFF800000 : f32
    %110 = vector.broadcast %cst_53 : f32 to vector<8x1xf32>
    %cst_54 = arith.constant 0.000000e+00 : f32
    %111 = vector.broadcast %cst_54 : f32 to vector<8x1xf32>
    %cst_55 = arith.constant 0.000000e+00 : f32
    %112 = vector.broadcast %cst_55 : f32 to vector<8x8xf32>
    %c0_56 = arith.constant 0 : index
    %c16 = arith.constant 16 : index
    %113 = vector.load %arg28[%c0_56, %c16] : memref<8x32xbf16, #tpu.memory_space<vmem>>, vector<8x8xbf16>
    %c0_57 = arith.constant 0 : index
    %c16_58 = arith.constant 16 : index
    %114 = vector.load %arg29[%c0_57, %c16_58] : memref<8x32xbf16, #tpu.memory_space<vmem>>, vector<8x8xbf16>
    %cst_59 = arith.constant dense<0.000000e+00> : vector<8x8xf32>
    %115 = tpu.matmul %109, %113, %cst_59 {dimension_numbers = #tpu.dot_dimension_numbers<[1], [1], [0], [0], [0, 0, 1, 0], [], []>} : vector<8x8xbf16>, vector<8x8xbf16>, vector<8x8xf32> -> vector<8x8xf32>
    %116 = vector.broadcast %7 : vector<1x8xf32> to vector<8x8xf32>
    %117 = arith.addf %115, %116 : vector<8x8xf32>
    %118 = tpu.iota {dimensions = array<i32: 0>} : vector<8x8xi32>
    %119 = vector.broadcast %8 : i32 to vector<8x8xi32>
    %120 = arith.addi %118, %119 : vector<8x8xi32>
    %121 = tpu.iota {dimensions = array<i32: 1>} : vector<8x8xi32>
    %c0_i32_60 = arith.constant 0 : i32
    %122 = vector.broadcast %c0_i32_60 : i32 to vector<8x8xi32>
    %123 = arith.addi %121, %122 : vector<8x8xi32>
    %124 = arith.cmpi sgt, %123, %120 : vector<8x8xi32>
    %cst_61 = arith.constant -1.000000e+30 : f32
    %cst_62 = arith.constant 0.000000e+00 : f32
    %125 = vector.broadcast %cst_61 : f32 to vector<8x8xf32>
    %126 = vector.broadcast %cst_62 : f32 to vector<8x8xf32>
    %127 = arith.select %124, %125, %126 : vector<8x8xi1>, vector<8x8xf32>
    %128 = arith.addf %117, %127 : vector<8x8xf32>
    %cst_63 = arith.constant dense<0xFF800000> : vector<8xf32>
    %129 = vector.multi_reduction <maximumf>, %128, %cst_63 [1] : vector<8x8xf32> to vector<8xf32>
    %130 = vector.shape_cast %129 : vector<8xf32> to vector<8x1xf32>
    %131 = arith.maximumf %110, %130 : vector<8x1xf32>
    %132 = arith.subf %110, %131 : vector<8x1xf32>
    %133 = math.exp %132 : vector<8x1xf32>
    %134 = vector.broadcast %131 : vector<8x1xf32> to vector<8x8xf32>
    %135 = arith.subf %128, %134 : vector<8x8xf32>
    %136 = math.exp %135 : vector<8x8xf32>
    %137 = arith.mulf %133, %111 : vector<8x1xf32>
    %cst_64 = arith.constant dense<0.000000e+00> : vector<8xf32>
    %138 = vector.multi_reduction <add>, %136, %cst_64 [1] : vector<8x8xf32> to vector<8xf32>
    %139 = vector.shape_cast %138 : vector<8xf32> to vector<8x1xf32>
    %140 = arith.addf %137, %139 : vector<8x1xf32>
    %141 = vector.broadcast %133 : vector<8x1xf32> to vector<8x8xf32>
    %142 = arith.mulf %141, %112 : vector<8x8xf32>
    %143 = arith.truncf %136 : vector<8x8xf32> to vector<8x8xbf16>
    %cst_65 = arith.constant dense<0.000000e+00> : vector<8x8xf32>
    %144 = tpu.matmul %143, %114, %cst_65 {dimension_numbers = #tpu.dot_dimension_numbers<[1], [0], [0], [1], [0, 0, 1, 1], [], []>} : vector<8x8xbf16>, vector<8x8xbf16>, vector<8x8xf32> -> vector<8x8xf32>
    %145 = arith.addf %142, %144 : vector<8x8xf32>
    %146 = tpu.reciprocal %140 {approx = true} : vector<8x1xf32> -> vector<8x1xf32>
    %147 = vector.broadcast %146 : vector<8x1xf32> to vector<8x8xf32>
    %148 = arith.mulf %145, %147 : vector<8x8xf32>
    %c0_66 = arith.constant 0 : index
    %c0_67 = arith.constant 0 : index
    %149 = vector.load %arg32[%c0_66, %c0_67] : memref<8x32xf32, #tpu.memory_space<vmem>>, vector<8x32xf32>
    %150 = arith.truncf %148 : vector<8x8xf32> to vector<8x8xbf16>
    %c16_68 = arith.constant 16 : index
    %c0_69 = arith.constant 0 : index
    %151 = vector.load %arg10[%c16_68, %c0_69] : memref<32x32xbf16, #tpu.memory_space<vmem>>, vector<8x32xbf16>
    %cst_70 = arith.constant dense<0.000000e+00> : vector<8x32xf32>
    %152 = tpu.matmul %150, %151, %cst_70 {dimension_numbers = #tpu.dot_dimension_numbers<[1], [0], [0], [1], [0, 0, 1, 1], [], []>} : vector<8x8xbf16>, vector<8x32xbf16>, vector<8x32xf32> -> vector<8x32xf32>
    %153 = arith.addf %149, %152 : vector<8x32xf32>
    %c0_71 = arith.constant 0 : index
    %c0_72 = arith.constant 0 : index
    %154 = vector.load %arg32[%c0_71, %c0_72] : memref<8x32xf32, #tpu.memory_space<vmem>>, vector<8x32xf32>
    tpu.vector_store %arg32[%c0_71, %c0_72], %153 {strides = array<i32>} : memref<8x32xf32, #tpu.memory_space<vmem>>, vector<8x32xf32>,
    %155 = vector.extract_strided_slice %14 {offsets = [0, 24], sizes = [8, 8], strides = [1, 1]} : vector<8x32xbf16> to vector<8x8xbf16>
    %cst_73 = arith.constant 0xFF800000 : f32
    %156 = vector.broadcast %cst_73 : f32 to vector<8x1xf32>
    %cst_74 = arith.constant 0.000000e+00 : f32
    %157 = vector.broadcast %cst_74 : f32 to vector<8x1xf32>
    %cst_75 = arith.constant 0.000000e+00 : f32
    %158 = vector.broadcast %cst_75 : f32 to vector<8x8xf32>
    %c0_76 = arith.constant 0 : index
    %c24 = arith.constant 24 : index
    %159 = vector.load %arg28[%c0_76, %c24] : memref<8x32xbf16, #tpu.memory_space<vmem>>, vector<8x8xbf16>
    %c0_77 = arith.constant 0 : index
    %c24_78 = arith.constant 24 : index
    %160 = vector.load %arg29[%c0_77, %c24_78] : memref<8x32xbf16, #tpu.memory_space<vmem>>, vector<8x8xbf16>
    %cst_79 = arith.constant dense<0.000000e+00> : vector<8x8xf32>
    %161 = tpu.matmul %155, %159, %cst_79 {dimension_numbers = #tpu.dot_dimension_numbers<[1], [1], [0], [0], [0, 0, 1, 0], [], []>} : vector<8x8xbf16>, vector<8x8xbf16>, vector<8x8xf32> -> vector<8x8xf32>
    %162 = vector.broadcast %7 : vector<1x8xf32> to vector<8x8xf32>
    %163 = arith.addf %161, %162 : vector<8x8xf32>
    %164 = tpu.iota {dimensions = array<i32: 0>} : vector<8x8xi32>
    %165 = vector.broadcast %8 : i32 to vector<8x8xi32>
    %166 = arith.addi %164, %165 : vector<8x8xi32>
    %167 = tpu.iota {dimensions = array<i32: 1>} : vector<8x8xi32>
    %c0_i32_80 = arith.constant 0 : i32
    %168 = vector.broadcast %c0_i32_80 : i32 to vector<8x8xi32>
    %169 = arith.addi %167, %168 : vector<8x8xi32>
    %170 = arith.cmpi sgt, %169, %166 : vector<8x8xi32>
    %cst_81 = arith.constant -1.000000e+30 : f32
    %cst_82 = arith.constant 0.000000e+00 : f32
    %171 = vector.broadcast %cst_81 : f32 to vector<8x8xf32>
    %172 = vector.broadcast %cst_82 : f32 to vector<8x8xf32>
    %173 = arith.select %170, %171, %172 : vector<8x8xi1>, vector<8x8xf32>
    %174 = arith.addf %163, %173 : vector<8x8xf32>
    %cst_83 = arith.constant dense<0xFF800000> : vector<8xf32>
    %175 = vector.multi_reduction <maximumf>, %174, %cst_83 [1] : vector<8x8xf32> to vector<8xf32>
    %176 = vector.shape_cast %175 : vector<8xf32> to vector<8x1xf32>
    %177 = arith.maximumf %156, %176 : vector<8x1xf32>
    %178 = arith.subf %156, %177 : vector<8x1xf32>
    %179 = math.exp %178 : vector<8x1xf32>
    %180 = vector.broadcast %177 : vector<8x1xf32> to vector<8x8xf32>
    %181 = arith.subf %174, %180 : vector<8x8xf32>
    %182 = math.exp %181 : vector<8x8xf32>
    %183 = arith.mulf %179, %157 : vector<8x1xf32>
    %cst_84 = arith.constant dense<0.000000e+00> : vector<8xf32>
    %184 = vector.multi_reduction <add>, %182, %cst_84 [1] : vector<8x8xf32> to vector<8xf32>
    %185 = vector.shape_cast %184 : vector<8xf32> to vector<8x1xf32>
    %186 = arith.addf %183, %185 : vector<8x1xf32>
    %187 = vector.broadcast %179 : vector<8x1xf32> to vector<8x8xf32>
    %188 = arith.mulf %187, %158 : vector<8x8xf32>
    %189 = arith.truncf %182 : vector<8x8xf32> to vector<8x8xbf16>
    %cst_85 = arith.constant dense<0.000000e+00> : vector<8x8xf32>
    %190 = tpu.matmul %189, %160, %cst_85 {dimension_numbers = #tpu.dot_dimension_numbers<[1], [0], [0], [1], [0, 0, 1, 1], [], []>} : vector<8x8xbf16>, vector<8x8xbf16>, vector<8x8xf32> -> vector<8x8xf32>
    %191 = arith.addf %188, %190 : vector<8x8xf32>
    %192 = tpu.reciprocal %186 {approx = true} : vector<8x1xf32> -> vector<8x1xf32>
    %193 = vector.broadcast %192 : vector<8x1xf32> to vector<8x8xf32>
    %194 = arith.mulf %191, %193 : vector<8x8xf32>
    %c0_86 = arith.constant 0 : index
    %c0_87 = arith.constant 0 : index
    %195 = vector.load %arg32[%c0_86, %c0_87] : memref<8x32xf32, #tpu.memory_space<vmem>>, vector<8x32xf32>
    %196 = arith.truncf %194 : vector<8x8xf32> to vector<8x8xbf16>
    %c24_88 = arith.constant 24 : index
    %c0_89 = arith.constant 0 : index
    %197 = vector.load %arg10[%c24_88, %c0_89] : memref<32x32xbf16, #tpu.memory_space<vmem>>, vector<8x32xbf16>
    %cst_90 = arith.constant dense<0.000000e+00> : vector<8x32xf32>
    %198 = tpu.matmul %196, %197, %cst_90 {dimension_numbers = #tpu.dot_dimension_numbers<[1], [0], [0], [1], [0, 0, 1, 1], [], []>} : vector<8x8xbf16>, vector<8x32xbf16>, vector<8x32xf32> -> vector<8x32xf32>
    %199 = arith.addf %195, %198 : vector<8x32xf32>
    %c0_91 = arith.constant 0 : index
    %c0_92 = arith.constant 0 : index
    %200 = vector.load %arg32[%c0_91, %c0_92] : memref<8x32xf32, #tpu.memory_space<vmem>>, vector<8x32xf32>
    tpu.vector_store %arg32[%c0_91, %c0_92], %199 {strides = array<i32>} : memref<8x32xf32, #tpu.memory_space<vmem>>, vector<8x32xf32>,
    %c0_93 = arith.constant 0 : index
    %c0_94 = arith.constant 0 : index
    %201 = vector.load %arg32[%c0_93, %c0_94] : memref<8x32xf32, #tpu.memory_space<vmem>>, vector<8x32xf32>
    %c0_95 = arith.constant 0 : index
    %c0_96 = arith.constant 0 : index
    %202 = vector.load %arg11[%c0_95, %c0_96] : memref<1x32xf32, #tpu.memory_space<vmem>>, vector<1x32xf32>
    %203 = vector.broadcast %202 : vector<1x32xf32> to vector<8x32xf32>
    %204 = arith.addf %201, %203 : vector<8x32xf32>
    %205 = arith.addf %204, %5 : vector<8x32xf32>
    %c0_97 = arith.constant 0 : index
    %c0_98 = arith.constant 0 : index
    %206 = vector.load %arg12[%c0_97, %c0_98] : memref<1x32xf32, #tpu.memory_space<vmem>>, vector<1x32xf32>
    %c0_99 = arith.constant 0 : index
    %c0_100 = arith.constant 0 : index
    %207 = vector.load %arg13[%c0_99, %c0_100] : memref<1x32xf32, #tpu.memory_space<vmem>>, vector<1x32xf32>
    %cst_101 = arith.constant dense<0.000000e+00> : vector<8xf32>
    %208 = vector.multi_reduction <add>, %205, %cst_101 [1] : vector<8x32xf32> to vector<8xf32>
    %209 = vector.shape_cast %208 : vector<8xf32> to vector<8x1xf32>
    %cst_102 = arith.constant 3.200000e+01 : f32
    %210 = vector.broadcast %cst_102 : f32 to vector<8x1xf32>
    %211 = arith.divf %209, %210 : vector<8x1xf32>
    %212 = vector.broadcast %211 : vector<8x1xf32> to vector<8x32xf32>
    %213 = arith.subf %205, %212 : vector<8x32xf32>
    %214 = arith.mulf %213, %213 : vector<8x32xf32>
    %cst_103 = arith.constant dense<0.000000e+00> : vector<8xf32>
    %215 = vector.multi_reduction <add>, %214, %cst_103 [1] : vector<8x32xf32> to vector<8xf32>
    %216 = vector.shape_cast %215 : vector<8xf32> to vector<8x1xf32>
    %cst_104 = arith.constant 3.100000e+01 : f32
    %217 = vector.broadcast %cst_104 : f32 to vector<8x1xf32>
    %218 = arith.divf %216, %217 : vector<8x1xf32>
    %219 = math.sqrt %218 : vector<8x1xf32>
    %220 = vector.broadcast %211 : vector<8x1xf32> to vector<8x32xf32>
    %221 = arith.subf %205, %220 : vector<8x32xf32>
    %cst_105 = arith.constant 1.000000e-03 : f32
    %222 = vector.broadcast %cst_105 : f32 to vector<8x1xf32>
    %223 = arith.addf %219, %222 : vector<8x1xf32>
    %224 = vector.broadcast %223 : vector<8x1xf32> to vector<8x32xf32>
    %225 = arith.divf %221, %224 : vector<8x32xf32>
    %226 = vector.broadcast %206 : vector<1x32xf32> to vector<8x32xf32>
    %227 = arith.mulf %225, %226 : vector<8x32xf32>
    %228 = vector.broadcast %207 : vector<1x32xf32> to vector<8x32xf32>
    %229 = arith.addf %227, %228 : vector<8x32xf32>
    %c0_106 = arith.constant 0 : index
    %c0_107 = arith.constant 0 : index
    %c0_108 = arith.constant 0 : index
    %230 = vector.load %arg6[%c0_106, %c0_107, %c0_108] : memref<1x1x12xf32, #tpu.memory_space<vmem>>, vector<1x1x12xf32>
    %231 = vector.shape_cast %230 : vector<1x1x12xf32> to vector<1x12xf32>
    %232 = arith.truncf %229 : vector<8x32xf32> to vector<8x32xbf16>
    %c0_109 = arith.constant 0 : index
    %c0_110 = arith.constant 0 : index
    %233 = vector.load %arg14[%c0_109, %c0_110] : memref<32x32xbf16, #tpu.memory_space<vmem>>, vector<32x32xbf16>
    %cst_111 = arith.constant dense<0.000000e+00> : vector<8x32xf32>
    %234 = tpu.matmul %232, %233, %cst_111 {dimension_numbers = #tpu.dot_dimension_numbers<[1], [0], [0], [1], [0, 0, 1, 1], [], []>} : vector<8x32xbf16>, vector<32x32xbf16>, vector<8x32xf32> -> vector<8x32xf32>
    %cst_112 = arith.constant 0.176776692 : f32
    %235 = vector.broadcast %cst_112 : f32 to vector<8x32xf32>
    %236 = arith.mulf %234, %235 : vector<8x32xf32>
    %237 = arith.truncf %236 : vector<8x32xf32> to vector<8x32xbf16>
    %cst_113 = arith.constant 0.000000e+00 : f32
    %238 = vector.broadcast %cst_113 : f32 to vector<8x32xf32>
    %c0_114 = arith.constant 0 : index
    %c0_115 = arith.constant 0 : index
    %239 = vector.load %arg32[%c0_114, %c0_115] : memref<8x32xf32, #tpu.memory_space<vmem>>, vector<8x32xf32>
    tpu.vector_store %arg32[%c0_114, %c0_115], %238 {strides = array<i32>} : memref<8x32xf32, #tpu.memory_space<vmem>>, vector<8x32xf32>,
    %240 = vector.extract_strided_slice %237 {offsets = [0, 0], sizes = [8, 8], strides = [1, 1]} : vector<8x32xbf16> to vector<8x8xbf16>
    %cst_116 = arith.constant 0xFF800000 : f32
    %241 = vector.broadcast %cst_116 : f32 to vector<8x1xf32>
    %cst_117 = arith.constant 0.000000e+00 : f32
    %242 = vector.broadcast %cst_117 : f32 to vector<8x1xf32>
    %cst_118 = arith.constant 0.000000e+00 : f32
    %243 = vector.broadcast %cst_118 : f32 to vector<8x8xf32>
    %c0_119 = arith.constant 0 : index
    %c0_120 = arith.constant 0 : index
    %244 = vector.load %arg30[%c0_119, %c0_120] : memref<12x32xbf16, #tpu.memory_space<vmem>>, vector<12x8xbf16>
    %c0_121 = arith.constant 0 : index
    %c0_122 = arith.constant 0 : index
    %245 = vector.load %arg31[%c0_121, %c0_122] : memref<12x32xbf16, #tpu.memory_space<vmem>>, vector<12x8xbf16>
    %cst_123 = arith.constant dense<0.000000e+00> : vector<8x12xf32>
    %246 = tpu.matmul %240, %244, %cst_123 {dimension_numbers = #tpu.dot_dimension_numbers<[1], [1], [0], [0], [0, 0, 1, 0], [], []>} : vector<8x8xbf16>, vector<12x8xbf16>, vector<8x12xf32> -> vector<8x12xf32>
    %247 = vector.broadcast %231 : vector<1x12xf32> to vector<8x12xf32>
    %248 = arith.addf %246, %247 : vector<8x12xf32>
    %cst_124 = arith.constant dense<0xFF800000> : vector<8xf32>
    %249 = vector.multi_reduction <maximumf>, %248, %cst_124 [1] : vector<8x12xf32> to vector<8xf32>
    %250 = vector.shape_cast %249 : vector<8xf32> to vector<8x1xf32>
    %251 = arith.maximumf %241, %250 : vector<8x1xf32>
    %252 = arith.subf %241, %251 : vector<8x1xf32>
    %253 = math.exp %252 : vector<8x1xf32>
    %254 = vector.broadcast %251 : vector<8x1xf32> to vector<8x12xf32>
    %255 = arith.subf %248, %254 : vector<8x12xf32>
    %256 = math.exp %255 : vector<8x12xf32>
    %257 = arith.mulf %253, %242 : vector<8x1xf32>
    %cst_125 = arith.constant dense<0.000000e+00> : vector<8xf32>
    %258 = vector.multi_reduction <add>, %256, %cst_125 [1] : vector<8x12xf32> to vector<8xf32>
    %259 = vector.shape_cast %258 : vector<8xf32> to vector<8x1xf32>
    %260 = arith.addf %257, %259 : vector<8x1xf32>
    %261 = vector.broadcast %253 : vector<8x1xf32> to vector<8x8xf32>
    %262 = arith.mulf %261, %243 : vector<8x8xf32>
    %263 = arith.truncf %256 : vector<8x12xf32> to vector<8x12xbf16>
    %cst_126 = arith.constant dense<0.000000e+00> : vector<8x8xf32>
    %264 = tpu.matmul %263, %245, %cst_126 {dimension_numbers = #tpu.dot_dimension_numbers<[1], [0], [0], [1], [0, 0, 1, 1], [], []>} : vector<8x12xbf16>, vector<12x8xbf16>, vector<8x8xf32> -> vector<8x8xf32>
    %265 = arith.addf %262, %264 : vector<8x8xf32>
    %266 = tpu.reciprocal %260 {approx = true} : vector<8x1xf32> -> vector<8x1xf32>
    %267 = vector.broadcast %266 : vector<8x1xf32> to vector<8x8xf32>
    %268 = arith.mulf %265, %267 : vector<8x8xf32>
    %c0_127 = arith.constant 0 : index
    %c0_128 = arith.constant 0 : index
    %269 = vector.load %arg32[%c0_127, %c0_128] : memref<8x32xf32, #tpu.memory_space<vmem>>, vector<8x32xf32>
    %270 = arith.truncf %268 : vector<8x8xf32> to vector<8x8xbf16>
    %c0_129 = arith.constant 0 : index
    %c0_130 = arith.constant 0 : index
    %271 = vector.load %arg17[%c0_129, %c0_130] : memref<32x32xbf16, #tpu.memory_space<vmem>>, vector<8x32xbf16>
    %cst_131 = arith.constant dense<0.000000e+00> : vector<8x32xf32>
    %272 = tpu.matmul %270, %271, %cst_131 {dimension_numbers = #tpu.dot_dimension_numbers<[1], [0], [0], [1], [0, 0, 1, 1], [], []>} : vector<8x8xbf16>, vector<8x32xbf16>, vector<8x32xf32> -> vector<8x32xf32>
    %273 = arith.addf %269, %272 : vector<8x32xf32>
    %c0_132 = arith.constant 0 : index
    %c0_133 = arith.constant 0 : index
    %274 = vector.load %arg32[%c0_132, %c0_133] : memref<8x32xf32, #tpu.memory_space<vmem>>, vector<8x32xf32>
    tpu.vector_store %arg32[%c0_132, %c0_133], %273 {strides = array<i32>} : memref<8x32xf32, #tpu.memory_space<vmem>>, vector<8x32xf32>,
    %275 = vector.extract_strided_slice %237 {offsets = [0, 8], sizes = [8, 8], strides = [1, 1]} : vector<8x32xbf16> to vector<8x8xbf16>
    %cst_134 = arith.constant 0xFF800000 : f32
    %276 = vector.broadcast %cst_134 : f32 to vector<8x1xf32>
    %cst_135 = arith.constant 0.000000e+00 : f32
    %277 = vector.broadcast %cst_135 : f32 to vector<8x1xf32>
    %cst_136 = arith.constant 0.000000e+00 : f32
    %278 = vector.broadcast %cst_136 : f32 to vector<8x8xf32>
    %c0_137 = arith.constant 0 : index
    %c8_138 = arith.constant 8 : index
    %279 = vector.load %arg30[%c0_137, %c8_138] : memref<12x32xbf16, #tpu.memory_space<vmem>>, vector<12x8xbf16>
    %c0_139 = arith.constant 0 : index
    %c8_140 = arith.constant 8 : index
    %280 = vector.load %arg31[%c0_139, %c8_140] : memref<12x32xbf16, #tpu.memory_space<vmem>>, vector<12x8xbf16>
    %cst_141 = arith.constant dense<0.000000e+00> : vector<8x12xf32>
    %281 = tpu.matmul %275, %279, %cst_141 {dimension_numbers = #tpu.dot_dimension_numbers<[1], [1], [0], [0], [0, 0, 1, 0], [], []>} : vector<8x8xbf16>, vector<12x8xbf16>, vector<8x12xf32> -> vector<8x12xf32>
    %282 = vector.broadcast %231 : vector<1x12xf32> to vector<8x12xf32>
    %283 = arith.addf %281, %282 : vector<8x12xf32>
    %cst_142 = arith.constant dense<0xFF800000> : vector<8xf32>
    %284 = vector.multi_reduction <maximumf>, %283, %cst_142 [1] : vector<8x12xf32> to vector<8xf32>
    %285 = vector.shape_cast %284 : vector<8xf32> to vector<8x1xf32>
    %286 = arith.maximumf %276, %285 : vector<8x1xf32>
    %287 = arith.subf %276, %286 : vector<8x1xf32>
    %288 = math.exp %287 : vector<8x1xf32>
    %289 = vector.broadcast %286 : vector<8x1xf32> to vector<8x12xf32>
    %290 = arith.subf %283, %289 : vector<8x12xf32>
    %291 = math.exp %290 : vector<8x12xf32>
    %292 = arith.mulf %288, %277 : vector<8x1xf32>
    %cst_143 = arith.constant dense<0.000000e+00> : vector<8xf32>
    %293 = vector.multi_reduction <add>, %291, %cst_143 [1] : vector<8x12xf32> to vector<8xf32>
    %294 = vector.shape_cast %293 : vector<8xf32> to vector<8x1xf32>
    %295 = arith.addf %292, %294 : vector<8x1xf32>
    %296 = vector.broadcast %288 : vector<8x1xf32> to vector<8x8xf32>
    %297 = arith.mulf %296, %278 : vector<8x8xf32>
    %298 = arith.truncf %291 : vector<8x12xf32> to vector<8x12xbf16>
    %cst_144 = arith.constant dense<0.000000e+00> : vector<8x8xf32>
    %299 = tpu.matmul %298, %280, %cst_144 {dimension_numbers = #tpu.dot_dimension_numbers<[1], [0], [0], [1], [0, 0, 1, 1], [], []>} : vector<8x12xbf16>, vector<12x8xbf16>, vector<8x8xf32> -> vector<8x8xf32>
    %300 = arith.addf %297, %299 : vector<8x8xf32>
    %301 = tpu.reciprocal %295 {approx = true} : vector<8x1xf32> -> vector<8x1xf32>
    %302 = vector.broadcast %301 : vector<8x1xf32> to vector<8x8xf32>
    %303 = arith.mulf %300, %302 : vector<8x8xf32>
    %c0_145 = arith.constant 0 : index
    %c0_146 = arith.constant 0 : index
    %304 = vector.load %arg32[%c0_145, %c0_146] : memref<8x32xf32, #tpu.memory_space<vmem>>, vector<8x32xf32>
    %305 = arith.truncf %303 : vector<8x8xf32> to vector<8x8xbf16>
    %c8_147 = arith.constant 8 : index
    %c0_148 = arith.constant 0 : index
    %306 = vector.load %arg17[%c8_147, %c0_148] : memref<32x32xbf16, #tpu.memory_space<vmem>>, vector<8x32xbf16>
    %cst_149 = arith.constant dense<0.000000e+00> : vector<8x32xf32>
    %307 = tpu.matmul %305, %306, %cst_149 {dimension_numbers = #tpu.dot_dimension_numbers<[1], [0], [0], [1], [0, 0, 1, 1], [], []>} : vector<8x8xbf16>, vector<8x32xbf16>, vector<8x32xf32> -> vector<8x32xf32>
    %308 = arith.addf %304, %307 : vector<8x32xf32>
    %c0_150 = arith.constant 0 : index
    %c0_151 = arith.constant 0 : index
    %309 = vector.load %arg32[%c0_150, %c0_151] : memref<8x32xf32, #tpu.memory_space<vmem>>, vector<8x32xf32>
    tpu.vector_store %arg32[%c0_150, %c0_151], %308 {strides = array<i32>} : memref<8x32xf32, #tpu.memory_space<vmem>>, vector<8x32xf32>,
    %310 = vector.extract_strided_slice %237 {offsets = [0, 16], sizes = [8, 8], strides = [1, 1]} : vector<8x32xbf16> to vector<8x8xbf16>
    %cst_152 = arith.constant 0xFF800000 : f32
    %311 = vector.broadcast %cst_152 : f32 to vector<8x1xf32>
    %cst_153 = arith.constant 0.000000e+00 : f32
    %312 = vector.broadcast %cst_153 : f32 to vector<8x1xf32>
    %cst_154 = arith.constant 0.000000e+00 : f32
    %313 = vector.broadcast %cst_154 : f32 to vector<8x8xf32>
    %c0_155 = arith.constant 0 : index
    %c16_156 = arith.constant 16 : index
    %314 = vector.load %arg30[%c0_155, %c16_156] : memref<12x32xbf16, #tpu.memory_space<vmem>>, vector<12x8xbf16>
    %c0_157 = arith.constant 0 : index
    %c16_158 = arith.constant 16 : index
    %315 = vector.load %arg31[%c0_157, %c16_158] : memref<12x32xbf16, #tpu.memory_space<vmem>>, vector<12x8xbf16>
    %cst_159 = arith.constant dense<0.000000e+00> : vector<8x12xf32>
    %316 = tpu.matmul %310, %314, %cst_159 {dimension_numbers = #tpu.dot_dimension_numbers<[1], [1], [0], [0], [0, 0, 1, 0], [], []>} : vector<8x8xbf16>, vector<12x8xbf16>, vector<8x12xf32> -> vector<8x12xf32>
    %317 = vector.broadcast %231 : vector<1x12xf32> to vector<8x12xf32>
    %318 = arith.addf %316, %317 : vector<8x12xf32>
    %cst_160 = arith.constant dense<0xFF800000> : vector<8xf32>
    %319 = vector.multi_reduction <maximumf>, %318, %cst_160 [1] : vector<8x12xf32> to vector<8xf32>
    %320 = vector.shape_cast %319 : vector<8xf32> to vector<8x1xf32>
    %321 = arith.maximumf %311, %320 : vector<8x1xf32>
    %322 = arith.subf %311, %321 : vector<8x1xf32>
    %323 = math.exp %322 : vector<8x1xf32>
    %324 = vector.broadcast %321 : vector<8x1xf32> to vector<8x12xf32>
    %325 = arith.subf %318, %324 : vector<8x12xf32>
    %326 = math.exp %325 : vector<8x12xf32>
    %327 = arith.mulf %323, %312 : vector<8x1xf32>
    %cst_161 = arith.constant dense<0.000000e+00> : vector<8xf32>
    %328 = vector.multi_reduction <add>, %326, %cst_161 [1] : vector<8x12xf32> to vector<8xf32>
    %329 = vector.shape_cast %328 : vector<8xf32> to vector<8x1xf32>
    %330 = arith.addf %327, %329 : vector<8x1xf32>
    %331 = vector.broadcast %323 : vector<8x1xf32> to vector<8x8xf32>
    %332 = arith.mulf %331, %313 : vector<8x8xf32>
    %333 = arith.truncf %326 : vector<8x12xf32> to vector<8x12xbf16>
    %cst_162 = arith.constant dense<0.000000e+00> : vector<8x8xf32>
    %334 = tpu.matmul %333, %315, %cst_162 {dimension_numbers = #tpu.dot_dimension_numbers<[1], [0], [0], [1], [0, 0, 1, 1], [], []>} : vector<8x12xbf16>, vector<12x8xbf16>, vector<8x8xf32> -> vector<8x8xf32>
    %335 = arith.addf %332, %334 : vector<8x8xf32>
    %336 = tpu.reciprocal %330 {approx = true} : vector<8x1xf32> -> vector<8x1xf32>
    %337 = vector.broadcast %336 : vector<8x1xf32> to vector<8x8xf32>
    %338 = arith.mulf %335, %337 : vector<8x8xf32>
    %c0_163 = arith.constant 0 : index
    %c0_164 = arith.constant 0 : index
    %339 = vector.load %arg32[%c0_163, %c0_164] : memref<8x32xf32, #tpu.memory_space<vmem>>, vector<8x32xf32>
    %340 = arith.truncf %338 : vector<8x8xf32> to vector<8x8xbf16>
    %c16_165 = arith.constant 16 : index
    %c0_166 = arith.constant 0 : index
    %341 = vector.load %arg17[%c16_165, %c0_166] : memref<32x32xbf16, #tpu.memory_space<vmem>>, vector<8x32xbf16>
    %cst_167 = arith.constant dense<0.000000e+00> : vector<8x32xf32>
    %342 = tpu.matmul %340, %341, %cst_167 {dimension_numbers = #tpu.dot_dimension_numbers<[1], [0], [0], [1], [0, 0, 1, 1], [], []>} : vector<8x8xbf16>, vector<8x32xbf16>, vector<8x32xf32> -> vector<8x32xf32>
    %343 = arith.addf %339, %342 : vector<8x32xf32>
    %c0_168 = arith.constant 0 : index
    %c0_169 = arith.constant 0 : index
    %344 = vector.load %arg32[%c0_168, %c0_169] : memref<8x32xf32, #tpu.memory_space<vmem>>, vector<8x32xf32>
    tpu.vector_store %arg32[%c0_168, %c0_169], %343 {strides = array<i32>} : memref<8x32xf32, #tpu.memory_space<vmem>>, vector<8x32xf32>,
    %345 = vector.extract_strided_slice %237 {offsets = [0, 24], sizes = [8, 8], strides = [1, 1]} : vector<8x32xbf16> to vector<8x8xbf16>
    %cst_170 = arith.constant 0xFF800000 : f32
    %346 = vector.broadcast %cst_170 : f32 to vector<8x1xf32>
    %cst_171 = arith.constant 0.000000e+00 : f32
    %347 = vector.broadcast %cst_171 : f32 to vector<8x1xf32>
    %cst_172 = arith.constant 0.000000e+00 : f32
    %348 = vector.broadcast %cst_172 : f32 to vector<8x8xf32>
    %c0_173 = arith.constant 0 : index
    %c24_174 = arith.constant 24 : index
    %349 = vector.load %arg30[%c0_173, %c24_174] : memref<12x32xbf16, #tpu.memory_space<vmem>>, vector<12x8xbf16>
    %c0_175 = arith.constant 0 : index
    %c24_176 = arith.constant 24 : index
    %350 = vector.load %arg31[%c0_175, %c24_176] : memref<12x32xbf16, #tpu.memory_space<vmem>>, vector<12x8xbf16>
    %cst_177 = arith.constant dense<0.000000e+00> : vector<8x12xf32>
    %351 = tpu.matmul %345, %349, %cst_177 {dimension_numbers = #tpu.dot_dimension_numbers<[1], [1], [0], [0], [0, 0, 1, 0], [], []>} : vector<8x8xbf16>, vector<12x8xbf16>, vector<8x12xf32> -> vector<8x12xf32>
    %352 = vector.broadcast %231 : vector<1x12xf32> to vector<8x12xf32>
    %353 = arith.addf %351, %352 : vector<8x12xf32>
    %cst_178 = arith.constant dense<0xFF800000> : vector<8xf32>
    %354 = vector.multi_reduction <maximumf>, %353, %cst_178 [1] : vector<8x12xf32> to vector<8xf32>
    %355 = vector.shape_cast %354 : vector<8xf32> to vector<8x1xf32>
    %356 = arith.maximumf %346, %355 : vector<8x1xf32>
    %357 = arith.subf %346, %356 : vector<8x1xf32>
    %358 = math.exp %357 : vector<8x1xf32>
    %359 = vector.broadcast %356 : vector<8x1xf32> to vector<8x12xf32>
    %360 = arith.subf %353, %359 : vector<8x12xf32>
    %361 = math.exp %360 : vector<8x12xf32>
    %362 = arith.mulf %358, %347 : vector<8x1xf32>
    %cst_179 = arith.constant dense<0.000000e+00> : vector<8xf32>
    %363 = vector.multi_reduction <add>, %361, %cst_179 [1] : vector<8x12xf32> to vector<8xf32>
    %364 = vector.shape_cast %363 : vector<8xf32> to vector<8x1xf32>
    %365 = arith.addf %362, %364 : vector<8x1xf32>
    %366 = vector.broadcast %358 : vector<8x1xf32> to vector<8x8xf32>
    %367 = arith.mulf %366, %348 : vector<8x8xf32>
    %368 = arith.truncf %361 : vector<8x12xf32> to vector<8x12xbf16>
    %cst_180 = arith.constant dense<0.000000e+00> : vector<8x8xf32>
    %369 = tpu.matmul %368, %350, %cst_180 {dimension_numbers = #tpu.dot_dimension_numbers<[1], [0], [0], [1], [0, 0, 1, 1], [], []>} : vector<8x12xbf16>, vector<12x8xbf16>, vector<8x8xf32> -> vector<8x8xf32>
    %370 = arith.addf %367, %369 : vector<8x8xf32>
    %371 = tpu.reciprocal %365 {approx = true} : vector<8x1xf32> -> vector<8x1xf32>
    %372 = vector.broadcast %371 : vector<8x1xf32> to vector<8x8xf32>
    %373 = arith.mulf %370, %372 : vector<8x8xf32>
    %c0_181 = arith.constant 0 : index
    %c0_182 = arith.constant 0 : index
    %374 = vector.load %arg32[%c0_181, %c0_182] : memref<8x32xf32, #tpu.memory_space<vmem>>, vector<8x32xf32>
    %375 = arith.truncf %373 : vector<8x8xf32> to vector<8x8xbf16>
    %c24_183 = arith.constant 24 : index
    %c0_184 = arith.constant 0 : index
    %376 = vector.load %arg17[%c24_183, %c0_184] : memref<32x32xbf16, #tpu.memory_space<vmem>>, vector<8x32xbf16>
    %cst_185 = arith.constant dense<0.000000e+00> : vector<8x32xf32>
    %377 = tpu.matmul %375, %376, %cst_185 {dimension_numbers = #tpu.dot_dimension_numbers<[1], [0], [0], [1], [0, 0, 1, 1], [], []>} : vector<8x8xbf16>, vector<8x32xbf16>, vector<8x32xf32> -> vector<8x32xf32>
    %378 = arith.addf %374, %377 : vector<8x32xf32>
    %c0_186 = arith.constant 0 : index
    %c0_187 = arith.constant 0 : index
    %379 = vector.load %arg32[%c0_186, %c0_187] : memref<8x32xf32, #tpu.memory_space<vmem>>, vector<8x32xf32>
    tpu.vector_store %arg32[%c0_186, %c0_187], %378 {strides = array<i32>} : memref<8x32xf32, #tpu.memory_space<vmem>>, vector<8x32xf32>,
    %c0_188 = arith.constant 0 : index
    %c0_189 = arith.constant 0 : index
    %380 = vector.load %arg32[%c0_188, %c0_189] : memref<8x32xf32, #tpu.memory_space<vmem>>, vector<8x32xf32>
    %c0_190 = arith.constant 0 : index
    %c0_191 = arith.constant 0 : index
    %381 = vector.load %arg18[%c0_190, %c0_191] : memref<1x32xf32, #tpu.memory_space<vmem>>, vector<1x32xf32>
    %382 = vector.broadcast %381 : vector<1x32xf32> to vector<8x32xf32>
    %383 = arith.addf %380, %382 : vector<8x32xf32>
    %384 = arith.addf %383, %229 : vector<8x32xf32>
    %c0_192 = arith.constant 0 : index
    %c0_193 = arith.constant 0 : index
    %385 = vector.load %arg19[%c0_192, %c0_193] : memref<1x32xf32, #tpu.memory_space<vmem>>, vector<1x32xf32>
    %c0_194 = arith.constant 0 : index
    %c0_195 = arith.constant 0 : index
    %386 = vector.load %arg20[%c0_194, %c0_195] : memref<1x32xf32, #tpu.memory_space<vmem>>, vector<1x32xf32>
    %cst_196 = arith.constant dense<0.000000e+00> : vector<8xf32>
    %387 = vector.multi_reduction <add>, %384, %cst_196 [1] : vector<8x32xf32> to vector<8xf32>
    %388 = vector.shape_cast %387 : vector<8xf32> to vector<8x1xf32>
    %cst_197 = arith.constant 3.200000e+01 : f32
    %389 = vector.broadcast %cst_197 : f32 to vector<8x1xf32>
    %390 = arith.divf %388, %389 : vector<8x1xf32>
    %391 = vector.broadcast %390 : vector<8x1xf32> to vector<8x32xf32>
    %392 = arith.subf %384, %391 : vector<8x32xf32>
    %393 = arith.mulf %392, %392 : vector<8x32xf32>
    %cst_198 = arith.constant dense<0.000000e+00> : vector<8xf32>
    %394 = vector.multi_reduction <add>, %393, %cst_198 [1] : vector<8x32xf32> to vector<8xf32>
    %395 = vector.shape_cast %394 : vector<8xf32> to vector<8x1xf32>
    %cst_199 = arith.constant 3.100000e+01 : f32
    %396 = vector.broadcast %cst_199 : f32 to vector<8x1xf32>
    %397 = arith.divf %395, %396 : vector<8x1xf32>
    %398 = math.sqrt %397 : vector<8x1xf32>
    %399 = vector.broadcast %390 : vector<8x1xf32> to vector<8x32xf32>
    %400 = arith.subf %384, %399 : vector<8x32xf32>
    %cst_200 = arith.constant 1.000000e-03 : f32
    %401 = vector.broadcast %cst_200 : f32 to vector<8x1xf32>
    %402 = arith.addf %398, %401 : vector<8x1xf32>
    %403 = vector.broadcast %402 : vector<8x1xf32> to vector<8x32xf32>
    %404 = arith.divf %400, %403 : vector<8x32xf32>
    %405 = vector.broadcast %385 : vector<1x32xf32> to vector<8x32xf32>
    %406 = arith.mulf %404, %405 : vector<8x32xf32>
    %407 = vector.broadcast %386 : vector<1x32xf32> to vector<8x32xf32>
    %408 = arith.addf %406, %407 : vector<8x32xf32>
    %409 = arith.truncf %408 : vector<8x32xf32> to vector<8x32xbf16>
    %c0_201 = arith.constant 0 : index
    %c0_202 = arith.constant 0 : index
    %410 = vector.load %arg21[%c0_201, %c0_202] : memref<32x64xbf16, #tpu.memory_space<vmem>>, vector<32x64xbf16>
    %cst_203 = arith.constant dense<0.000000e+00> : vector<8x64xf32>
    %411 = tpu.matmul %409, %410, %cst_203 {dimension_numbers = #tpu.dot_dimension_numbers<[1], [0], [0], [1], [0, 0, 1, 1], [], []>} : vector<8x32xbf16>, vector<32x64xbf16>, vector<8x64xf32> -> vector<8x64xf32>
    %c0_204 = arith.constant 0 : index
    %c0_205 = arith.constant 0 : index
    %412 = vector.load %arg22[%c0_204, %c0_205] : memref<1x64xf32, #tpu.memory_space<vmem>>, vector<1x64xf32>
    %413 = vector.broadcast %412 : vector<1x64xf32> to vector<8x64xf32>
    %414 = arith.addf %411, %413 : vector<8x64xf32>
    %cst_206 = arith.constant 0.000000e+00 : f32
    %415 = vector.broadcast %cst_206 : f32 to vector<8x64xf32>
    %416 = arith.maximumf %414, %415 : vector<8x64xf32>
    %417 = arith.truncf %416 : vector<8x64xf32> to vector<8x64xbf16>
    %c0_207 = arith.constant 0 : index
    %c0_208 = arith.constant 0 : index
    %418 = vector.load %arg23[%c0_207, %c0_208] : memref<64x32xbf16, #tpu.memory_space<vmem>>, vector<64x32xbf16>
    %cst_209 = arith.constant dense<0.000000e+00> : vector<8x32xf32>
    %419 = tpu.matmul %417, %418, %cst_209 {dimension_numbers = #tpu.dot_dimension_numbers<[1], [0], [0], [1], [0, 0, 1, 1], [], []>} : vector<8x64xbf16>, vector<64x32xbf16>, vector<8x32xf32> -> vector<8x32xf32>
    %c0_210 = arith.constant 0 : index
    %c0_211 = arith.constant 0 : index
    %420 = vector.load %arg24[%c0_210, %c0_211] : memref<1x32xf32, #tpu.memory_space<vmem>>, vector<1x32xf32>
    %421 = vector.broadcast %420 : vector<1x32xf32> to vector<8x32xf32>
    %422 = arith.addf %419, %421 : vector<8x32xf32>
    %423 = arith.addf %422, %408 : vector<8x32xf32>
    %c0_212 = arith.constant 0 : index
    %c0_213 = arith.constant 0 : index
    %424 = vector.load %arg25[%c0_212, %c0_213] : memref<1x32xf32, #tpu.memory_space<vmem>>, vector<1x32xf32>
    %c0_214 = arith.constant 0 : index
    %c0_215 = arith.constant 0 : index
    %425 = vector.load %arg26[%c0_214, %c0_215] : memref<1x32xf32, #tpu.memory_space<vmem>>, vector<1x32xf32>
    %cst_216 = arith.constant dense<0.000000e+00> : vector<8xf32>
    %426 = vector.multi_reduction <add>, %423, %cst_216 [1] : vector<8x32xf32> to vector<8xf32>
    %427 = vector.shape_cast %426 : vector<8xf32> to vector<8x1xf32>
    %cst_217 = arith.constant 3.200000e+01 : f32
    %428 = vector.broadcast %cst_217 : f32 to vector<8x1xf32>
    %429 = arith.divf %427, %428 : vector<8x1xf32>
    %430 = vector.broadcast %429 : vector<8x1xf32> to vector<8x32xf32>
    %431 = arith.subf %423, %430 : vector<8x32xf32>
    %432 = arith.mulf %431, %431 : vector<8x32xf32>
    %cst_218 = arith.constant dense<0.000000e+00> : vector<8xf32>
    %433 = vector.multi_reduction <add>, %432, %cst_218 [1] : vector<8x32xf32> to vector<8xf32>
    %434 = vector.shape_cast %433 : vector<8xf32> to vector<8x1xf32>
    %cst_219 = arith.constant 3.100000e+01 : f32
    %435 = vector.broadcast %cst_219 : f32 to vector<8x1xf32>
    %436 = arith.divf %434, %435 : vector<8x1xf32>
    %437 = math.sqrt %436 : vector<8x1xf32>
    %438 = vector.broadcast %429 : vector<8x1xf32> to vector<8x32xf32>
    %439 = arith.subf %423, %438 : vector<8x32xf32>
    %cst_220 = arith.constant 1.000000e-03 : f32
    %440 = vector.broadcast %cst_220 : f32 to vector<8x1xf32>
    %441 = arith.addf %437, %440 : vector<8x1xf32>
    %442 = vector.broadcast %441 : vector<8x1xf32> to vector<8x32xf32>
    %443 = arith.divf %439, %442 : vector<8x32xf32>
    %444 = vector.broadcast %424 : vector<1x32xf32> to vector<8x32xf32>
    %445 = arith.mulf %443, %444 : vector<8x32xf32>
    %446 = vector.broadcast %425 : vector<1x32xf32> to vector<8x32xf32>
    %447 = arith.addf %445, %446 : vector<8x32xf32>
    %448 = arith.truncf %447 : vector<8x32xf32> to vector<8x32xbf16>
    %c0_221 = arith.constant 0 : index
    %c0_222 = arith.constant 0 : index
    %c0_223 = arith.constant 0 : index
    %449 = vector.load %arg27[%c0_221, %c0_222, %c0_223] : memref<1x8x32xbf16, #tpu.memory_space<vmem>>, vector<1x8x32xbf16>
    %450 = vector.shape_cast %449 : vector<1x8x32xbf16> to vector<8x32xbf16>
    %451 = vector.shape_cast %448 : vector<8x32xbf16> to vector<1x8x32xbf16>
    tpu.vector_store %arg27[%c0_221, %c0_222, %c0_223], %451 {strides = array<i32>} : memref<1x8x32xbf16, #tpu.memory_space<vmem>>, vector<1x8x32xbf16>,
    return
  }
  func.func @transform_0(%arg0: i32, %arg1: i32) -> (i32, i32, i32) {
    %c0_i32 = arith.constant 0 : i32
    %c0_i32_0 = arith.constant 0 : i32
    return %arg0, %arg1, %c0_i32 : i32, i32, i32
  }
  func.func @transform_1(%arg0: i32, %arg1: i32) -> (i32, i32, i32) {
    %c0_i32 = arith.constant 0 : i32
    %c0_i32_0 = arith.constant 0 : i32
    %c0_i32_1 = arith.constant 0 : i32
    return %arg0, %c0_i32, %c0_i32_0 : i32, i32, i32
  }
  func.func @transform_2(%arg0: i32, %arg1: i32) -> (i32, i32, i32) {
    %c0_i32 = arith.constant 0 : i32
    %c0_i32_0 = arith.constant 0 : i32
    %c0_i32_1 = arith.constant 0 : i32
    return %arg0, %c0_i32, %c0_i32_0 : i32, i32, i32
  }
  func.func @transform_3(%arg0: i32, %arg1: i32) -> (i32, i32, i32) {
    %c0_i32 = arith.constant 0 : i32
    %c0_i32_0 = arith.constant 0 : i32
    %c0_i32_1 = arith.constant 0 : i32
    return %arg0, %c0_i32, %c0_i32_0 : i32, i32, i32
  }
  func.func @transform_4(%arg0: i32, %arg1: i32) -> (i32, i32, i32) {
    %c0_i32 = arith.constant 0 : i32
    %c0_i32_0 = arith.constant 0 : i32
    %c0_i32_1 = arith.constant 0 : i32
    return %arg0, %c0_i32, %c0_i32_0 : i32, i32, i32
  }
  func.func @transform_5(%arg0: i32, %arg1: i32) -> (i32, i32) {
    %c0_i32 = arith.constant 0 : i32
    %c0_i32_0 = arith.constant 0 : i32
    %c0_i32_1 = arith.constant 0 : i32
    return %c0_i32, %c0_i32_0 : i32, i32
  }
  func.func @transform_6(%arg0: i32, %arg1: i32) -> (i32, i32) {
    %c0_i32 = arith.constant 0 : i32
    %c0_i32_0 = arith.constant 0 : i32
    %c0_i32_1 = arith.constant 0 : i32
    return %c0_i32, %c0_i32_0 : i32, i32
  }
  func.func @transform_7(%arg0: i32, %arg1: i32) -> (i32, i32) {
    %c0_i32 = arith.constant 0 : i32
    %c0_i32_0 = arith.constant 0 : i32
    %c0_i32_1 = arith.constant 0 : i32
    return %c0_i32, %c0_i32_0 : i32, i32
  }
  func.func @transform_8(%arg0: i32, %arg1: i32) -> (i32, i32) {
    %c0_i32 = arith.constant 0 : i32
    %c0_i32_0 = arith.constant 0 : i32
    %c0_i32_1 = arith.constant 0 : i32
    return %c0_i32, %c0_i32_0 : i32, i32
  }
  func.func @transform_9(%arg0: i32, %arg1: i32) -> (i32, i32) {
    %c0_i32 = arith.constant 0 : i32
    %c0_i32_0 = arith.constant 0 : i32
    %c0_i32_1 = arith.constant 0 : i32
    return %c0_i32, %c0_i32_0 : i32, i32
  }
  func.func @transform_10(%arg0: i32, %arg1: i32) -> (i32, i32) {
    %c0_i32 = arith.constant 0 : i32
    %c0_i32_0 = arith.constant 0 : i32
    %c0_i32_1 = arith.constant 0 : i32
    return %c0_i32, %c0_i32_0 : i32, i32
  }
  func.func @transform_11(%arg0: i32, %arg1: i32) -> (i32, i32) {
    %c0_i32 = arith.constant 0 : i32
    %c0_i32_0 = arith.constant 0 : i32
    %c0_i32_1 = arith.constant 0 : i32
    return %c0_i32, %c0_i32_0 : i32, i32
  }
  func.func @transform_12(%arg0: i32, %arg1: i32) -> (i32, i32) {
    %c0_i32 = arith.constant 0 : i32
    %c0_i32_0 = arith.constant 0 : i32
    %c0_i32_1 = arith.constant 0 : i32
    return %c0_i32, %c0_i32_0 : i32, i32
  }
  func.func @transform_13(%arg0: i32, %arg1: i32) -> (i32, i32) {
    %c0_i32 = arith.constant 0 : i32
    %c0_i32_0 = arith.constant 0 : i32
    %c0_i32_1 = arith.constant 0 : i32
    return %c0_i32, %c0_i32_0 : i32, i32
  }
  func.func @transform_14(%arg0: i32, %arg1: i32) -> (i32, i32) {
    %c0_i32 = arith.constant 0 : i32
    %c0_i32_0 = arith.constant 0 : i32
    %c0_i32_1 = arith.constant 0 : i32
    return %c0_i32, %c0_i32_0 : i32, i32
  }
  func.func @transform_15(%arg0: i32, %arg1: i32) -> (i32, i32) {
    %c0_i32 = arith.constant 0 : i32
    %c0_i32_0 = arith.constant 0 : i32
    %c0_i32_1 = arith.constant 0 : i32
    return %c0_i32, %c0_i32_0 : i32, i32
  }
  func.func @transform_16(%arg0: i32, %arg1: i32) -> (i32, i32) {
    %c0_i32 = arith.constant 0 : i32
    %c0_i32_0 = arith.constant 0 : i32
    %c0_i32_1 = arith.constant 0 : i32
    return %c0_i32, %c0_i32_0 : i32, i32
  }
  func.func @transform_17(%arg0: i32, %arg1: i32) -> (i32, i32) {
    %c0_i32 = arith.constant 0 : i32
    %c0_i32_0 = arith.constant 0 : i32
    %c0_i32_1 = arith.constant 0 : i32
    return %c0_i32, %c0_i32_0 : i32, i32
  }
  func.func @transform_18(%arg0: i32, %arg1: i32) -> (i32, i32) {
    %c0_i32 = arith.constant 0 : i32
    %c0_i32_0 = arith.constant 0 : i32
    %c0_i32_1 = arith.constant 0 : i32
    return %c0_i32, %c0_i32_0 : i32, i32
  }
  func.func @transform_19(%arg0: i32, %arg1: i32) -> (i32, i32) {
    %c0_i32 = arith.constant 0 : i32
    %c0_i32_0 = arith.constant 0 : i32
    %c0_i32_1 = arith.constant 0 : i32
    return %c0_i32, %c0_i32_0 : i32, i32
  }
  func.func @transform_20(%arg0: i32, %arg1: i32) -> (i32, i32) {
    %c0_i32 = arith.constant 0 : i32
    %c0_i32_0 = arith.constant 0 : i32
    %c0_i32_1 = arith.constant 0 : i32
    return %c0_i32, %c0_i32_0 : i32, i32
  }
  func.func @transform_21(%arg0: i32, %arg1: i32) -> (i32, i32) {
    %c0_i32 = arith.constant 0 : i32
    %c0_i32_0 = arith.constant 0 : i32
    %c0_i32_1 = arith.constant 0 : i32
    return %c0_i32, %c0_i32_0 : i32, i32
  }
  func.func @transform_22(%arg0: i32, %arg1: i32) -> (i32, i32) {
    %c0_i32 = arith.constant 0 : i32
    %c0_i32_0 = arith.constant 0 : i32
    %c0_i32_1 = arith.constant 0 : i32
    return %c0_i32, %c0_i32_0 : i32, i32
  }
  func.func @transform_23(%arg0: i32, %arg1: i32) -> (i32, i32) {
    %c0_i32 = arith.constant 0 : i32
    %c0_i32_0 = arith.constant 0 : i32
    %c0_i32_1 = arith.constant 0 : i32
    return %c0_i32, %c0_i32_0 : i32, i32
  }
  func.func @transform_24(%arg0: i32, %arg1: i32) -> (i32, i32) {
    %c0_i32 = arith.constant 0 : i32
    %c0_i32_0 = arith.constant 0 : i32
    %c0_i32_1 = arith.constant 0 : i32
    return %c0_i32, %c0_i32_0 : i32, i32
  }
  func.func @transform_25(%arg0: i32, %arg1: i32) -> (i32, i32, i32) {
    %c0_i32 = arith.constant 0 : i32
    %c0_i32_0 = arith.constant 0 : i32
    return %arg0, %arg1, %c0_i32 : i32, i32, i32
  }
}

</mosaic_0001>

<bundles_post_ra>
// kernel: tpu_custom_call.1
= control target key start
LH: loop header
LB: loop body
LE: loop exit
PB: predicated region body
PF: predicated region fallthrough
CT: control target
= control target key end

     0   :  { %s5327_s0 = inlined_call_operand.hbm [shape: bf16[2,8,32], index: 0, kind: input, shape index: {}]   ;;  %s5328_s1 = inlined_call_operand.hbm [shape: bf16[2,8,32], index: 1, kind: input, shape index: {}]   ;;  %s5329_s2 = inlined_call_operand.vmem [shape: bf16[2,12,32], index: 2, kind: input, shape index: {}]   ;;  %s5330_s3 = inlined_call_operand.hbm [shape: f32[2,1,8], index: 3, kind: input, shape index: {}]   ;;  %s5331_s4 = inlined_call_operand.hbm [shape: f32[2,1,12], index: 4, kind: input, shape index: {}]   ;;  %s5332_s5 = inlined_call_operand.vmem [shape: bf16[32,32], index: 5, kind: input, shape index: {}]   ;;  %s5333_s6 = inlined_call_operand.vmem [shape: bf16[32,32], index: 6, kind: input, shape index: {}]   ;;  %s5334_s7 = inlined_call_operand.vmem [shape: bf16[32,32], index: 7, kind: input, shape index: {}]   ;;  %s5335_s8 = inlined_call_operand.vmem [shape: bf16[32,32], index: 8, kind: input, shape index: {}]   ;;  %s5336_s9 = inlined_call_operand.hbm [shape: f32[1,32], index: 9, kind: input, shape index: {}]   ;;  %s5337_s10 = inlined_call_operand.hbm [shape: f32[1,32], index: 10, kind: input, shape index: {}]   ;;  %s5338_s11 = inlined_call_operand.hbm [shape: f32[1,32], index: 11, kind: input, shape index: {}]   ;;  %s5339_s12 = inlined_call_operand.vmem [shape: bf16[32,32], index: 12, kind: input, shape index: {}]   ;;  %s5340_s13 = inlined_call_operand.vmem [shape: bf16[32,32], index: 13, kind: input, shape index: {}]   ;;  %s5341_s14 = inlined_call_operand.vmem [shape: bf16[32,32], index: 14, kind: input, shape index: {}]   ;;  %s5342_s15 = inlined_call_operand.vmem [shape: bf16[32,32], index: 15, kind: input, shape index: {}]   ;;  %s5343_s16 = inlined_call_operand.hbm [shape: f32[1,32], index: 16, kind: input, shape index: {}]   ;;  %s5344_s17 = inlined_call_operand.hbm [shape: f32[1,32], index: 17, kind: input, shape index: {}]   ;;  %s5345_s18 = inlined_call_operand.hbm [shape: f32[1,32], index: 18, kind: input, shape index: {}]   ;;  %s5346_s19 = inlined_call_operand.vmem [shape: bf16[32,64], index: 19, kind: input, shape index: {}]   ;;  %s5347_s20 = inlined_call_operand.vmem [shape: f32[1,64], index: 20, kind: input, shape index: {}]   ;;  %s5348_s21 = inlined_call_operand.vmem [shape: bf16[64,32], index: 21, kind: input, shape index: {}]   ;;  %s5349_s22 = inlined_call_operand.vmem [shape: f32[1,32], index: 22, kind: input, shape index: {}]   ;;  %s5350_s23 = inlined_call_operand.vmem [shape: f32[1,32], index: 23, kind: input, shape index: {}]   ;;  %s5351_s24 = inlined_call_operand.vmem [shape: f32[1,32], index: 24, kind: input, shape index: {}]   ;;  %s5352_s25 = inlined_call_operand.hbm [shape: bf16[2,8,32], index: 25, kind: output, shape index: {}]  }
   0x1   :  { %5393 = sst [smem:[#allocation39_spill]] %s5327_s0 }
   0x2   :  { %5394 = sst [smem:[#allocation40_spill]] %s5328_s1 }
   0x3   :  { %5395 = sst [smem:[#allocation41_spill]] %s5329_s2 }
   0x4   :  { %5396 = sst [smem:[#allocation42_spill]] %s5330_s3 }
   0x5   :  { %5397 = sst [smem:[#allocation43_spill]] %s5331_s4 }
   0x6   :  { %5398 = sst [smem:[#allocation44_spill]] %s5332_s5 }
   0x7   :  { %5399 = sst [smem:[#allocation45_spill]] %s5333_s6 }
   0x8   :  { %5400 = sst [smem:[#allocation46_spill]] %s5334_s7 }
   0x9   :  { %5401 = sst [smem:[#allocation47_spill]] %s5335_s8 }
   0xa   :  { %5402 = sst [smem:[#allocation48_spill]] %s5336_s9 }
   0xb   :  { %5403 = sst [smem:[#allocation49_spill]] %s5337_s10 }
   0xc   :  { %5404 = sst [smem:[#allocation50_spill]] %s5338_s11 }
   0xd   :  { %5405 = sst [smem:[#allocation51_spill]] %s5339_s12 }
   0xe   :  { %5406 = sst [smem:[#allocation52_spill]] %s5342_s15 }
   0xf   :  { %5407 = sst [smem:[#allocation53_spill]] %s5343_s16 }
  0x10   :  { %5408 = sst [smem:[#allocation54_spill]] %s5344_s17 }
  0x11   :  { %5409 = sst [smem:[#allocation55_spill]] %s5346_s19 }
  0x12   :  { %5410 = sst [smem:[#allocation56_spill]] %s5347_s20 }
  0x13   :  { %5411 = sst [smem:[#allocation57_spill]] %s5348_s21 }
  0x14   :  { %5412 = sst [smem:[#allocation58_spill]] %s5349_s22 }
  0x15   :  { %5413 = sst [smem:[#allocation59_spill]] %s5350_s23 }
  0x16   :  { %5414 = sst [smem:[#allocation60_spill]] %s5351_s24 }
  0x17   :  { %5415 = sst [smem:[#allocation61_spill]] %s5352_s25 }
  0x18   :  { %30 = vsyncpa [#allocation8], 0 }
  0x19   :  { %32 = vsyncpa [#allocation8 + $0x1], 0 }
  0x1a   :  { %33 = vsyncpa [#allocation11], 0 }
  0x1b   :  { %35 = vsyncpa [#allocation11 + $0x1], 0 }
  0x1c   :  { %36 = vsyncpa [#allocation14], 0 }
  0x1d   :  { %38 = vsyncpa [#allocation14 + $0x1], 0 }
  0x1e   :  { %39 = vsyncpa [#allocation17], 0 }
  0x1f   :  { %40 = vsyncpa [#allocation20], 0 }
  0x20   :  { %41 = vsyncpa [#allocation23], 0 }
  0x21   :  { %42 = vsyncpa [#allocation9], 0 }
  0x22   :  { %44 = vsyncpa [#allocation9 + $0x1], 0  ;;  %s4525_s29 = smov 0   ;;  %s4527_s2 = smov 0  }
  0x23   :  { %s4529_s6 = smov 0   ;;  %s4531_s30 = smov 0  }
  0x24   :  { %s4533_s7 = smov 0   ;;  %s4535_s3 = smov 0  }
  0x25 LB: > { %5416 = sst [smem:[#allocation33_spill]] %s4357_s29  ;;  %s4556_s26 = sadd.s32 4294967295, %s4377_s3   ;;  %s4377_s3 = sphi %s4535_s3, %s50_s3   ;;  %s4373_s7 = sphi %s4533_s7, %s5488_s7   ;;  %s4369_s30 = sphi %s4531_s30, %s5487_s30   ;;  %s4365_s6 = sphi %s4529_s6, %s5483_s6   ;;  %s4361_s2 = sphi %s4527_s2, %s5486_s2   ;;  %s4357_s29 = sphi %s4525_s29, %s5485_s29  }
  0x26   : > { %5417 = sst [smem:[#allocation34_spill]] %s4365_s6  ;;  %p3345_p0 = scmp.ge.s32.totalorder %s4377_s3, 1 }
  0x27   : > { %p5364_p1 = scmp.eq.s32.totalorder %s4556_s26, 0  ;;  %p647_p2 = scmp.lt.s32.totalorder %s4377_s3, 3 }
  0x28   : > { %s4379_s8 = smov [#allocation15]   ;;  %s4380_s4 = smov [#allocation16]  }
  0x29   : > { %p4561_p3 = pnand %p3345_p0, %p647_p2  ;;  %s672_s27 = sshll.u32 %s4379_s8, 4  ;;  %s673_s27 = int_to_ptr.vmem [resolvable:$true] %s672_s27 }
  0x2a   : > { %s683_s28 = sshll.u32 %s4380_s4, 4  ;;  %s4381_s5 = smov [#allocation19]   ;;  %s4574_s28 = int_to_ptr.vmem [resolvable:$true] %s683_s28 }
  0x2b   : > { %s5418_s1 = scalar_select %p4561_p3, 1, 0 }
  0x2c   : > { %p3781_p5 = pneg %p4561_p3  ;;  %s717_s0 = sshll.u32 %s4381_s5, 4  ;;  %s4576_s0 = int_to_ptr.vmem [resolvable:$true] %s717_s0 }
  0x2d   : > { %s5420_s24 = sld [smem:[#allocation48_spill]] }
  0x2e   : > { %p4570_p6 = pnand %p3781_p5, %p5364_p1 }
  0x30   : > { %s5419_s9 = scalar_select %p4570_p6, 1, 0 }
  0x31   : > { %p4586_p8 = pneg %p4570_p6 }
  0x33   : > { %s3983_s23 = scalar_lea.hbm %s5420_s24, 16 }
  0x34   : > { %p3984_p7 = scmp.ne.s32.totalorder %s5420_s24, %s3983_s23  ;;  %p3990_p11 = scmp.lt.u32.totalorder %s3983_s23, %s5420_s24 }
  0x35   : > { %s5421_s4 = scalar_select %p4586_p8, 1, 0 }
  0x36   : > { %p3986_p9 = pnand %p4586_p8, %p3984_p7 }
  0x38   : > { %p3987_p10 = pneg %p3986_p9 }
  0x3a   : > { %p3992_p12 = pnand %p3990_p11, %p3987_p10 }
  0x3c   : > { %3995 = shalt.err (!%p3992_p12)
}
  0x3d   : > { %s3996_s25 = scalar_lea.vmem %s673_s27, 16  ;;  %s4003_s20 = scalar_lea.vmem %s673_s27, 32 }
  0x3e   : > { %p3997_p13 = scmp.ne.s32.totalorder %s673_s27, %s3996_s25  ;;  %p4004_p5 = scmp.lt.s32.totalorder %s673_s27, %s673_s27 }
  0x3f   : > { %p4005_p4 = scmp.lt.s32.totalorder %s4003_s20, %s3996_s25 }
  0x40   : > { %p3999_p0 = pnand %p3997_p13, %p4586_p8 }
  0x41   : > { %p4006_p1 = por %p4005_p4, %p4004_p5 }
  0x42   : > { %p4000_p2 = pneg %p3999_p0 }
  0x44   : > { %p4007_p3 = pnand %p4006_p1, %p4000_p2 }
  0x46   : > { %4010 = shalt.err (!%p4007_p3)
}
  0x47   : > { %3784 = dma.hbm_to_vmem [thread:$0]  (!%p4570_p6), %s5420_s24, 16, %s673_s27, [#allocation14]  }
  0x48   : > { %s5422_s10 = sld [smem:[#allocation49_spill]] }
  0x4e   : > { %s4011_s5 = scalar_lea.hbm %s5422_s10, 16 }
  0x4f   : > { %p4012_p7 = scmp.ne.s32.totalorder %s5422_s10, %s4011_s5  ;;  %p4018_p1 = scmp.lt.u32.totalorder %s4011_s5, %s5422_s10 }
  0x51   : > { %p4014_p9 = pnand %p4012_p7, %p4586_p8 }
  0x53   : > { %p4015_p4 = pneg %p4014_p9 }
  0x55   : > { %p4020_p3 = pnand %p4018_p1, %p4015_p4 }
  0x57   : > { %4023 = shalt.err (!%p4020_p3)
}
  0x58   : > { %s4024_s27 = scalar_lea.vmem %s4574_s28, 16  ;;  %s4031_s15 = scalar_lea.vmem %s4574_s28, 32 }
  0x59   : > { %p4025_p10 = scmp.ne.s32.totalorder %s4574_s28, %s4024_s27  ;;  %p4032_p13 = scmp.lt.s32.totalorder %s4574_s28, %s4574_s28 }
  0x5a   : > { %p4033_p0 = scmp.lt.s32.totalorder %s4031_s15, %s4024_s27 }
  0x5b   : > { %p4027_p11 = pnand %p4025_p10, %p4586_p8 }
  0x5c   : > { %p4034_p2 = por %p4033_p0, %p4032_p13 }
  0x5d   : > { %p4028_p12 = pneg %p4027_p11 }
  0x5f   : > { %p4035_p5 = pnand %p4034_p2, %p4028_p12 }
  0x61   : > { %4038 = shalt.err (!%p4035_p5)
}
  0x62   : > { %3787 = dma.hbm_to_vmem [thread:$0]  (!%p4570_p6), %s5422_s10, 16, %s4574_s28, [#allocation17]  }
  0x63   : > { %s5423_s16 = sld [smem:[#allocation53_spill]] }
  0x69   : > { %s4039_s23 = scalar_lea.hbm %s5423_s16, 16 }
  0x6a   : > { %p4040_p7 = scmp.ne.s32.totalorder %s5423_s16, %s4039_s23  ;;  %p4046_p1 = scmp.lt.u32.totalorder %s4039_s23, %s5423_s16 }
  0x6c   : > { %p4042_p9 = pnand %p4040_p7, %p4586_p8 }
  0x6e   : > { %p4043_p4 = pneg %p4042_p9 }
  0x70   : > { %p4048_p3 = pnand %p4046_p1, %p4043_p4 }
  0x72   : > { %4051 = shalt.err (!%p4048_p3)
}
  0x73   : > { %s4052_s28 = scalar_lea.vmem %s4576_s0, 16  ;;  %s4059_s15 = scalar_lea.vmem %s4576_s0, 32 }
  0x74   : > { %p4053_p10 = scmp.ne.s32.totalorder %s4576_s0, %s4052_s28  ;;  %p4060_p13 = scmp.lt.s32.totalorder %s4576_s0, %s4576_s0 }
  0x75   : > { %p4061_p0 = scmp.lt.s32.totalorder %s4059_s15, %s4052_s28 }
  0x76   : > { %p4055_p11 = pnand %p4053_p10, %p4586_p8 }
  0x77   : > { %p4062_p2 = por %p4061_p0, %p4060_p13 }
  0x78   : > { %p4056_p12 = pneg %p4055_p11 }
  0x7a   : > { %p4063_p5 = pnand %p4062_p2, %p4056_p12 }
  0x7c   : > { %4066 = shalt.err (!%p4063_p5)
}
  0x7d   : > { %3793 = dma.hbm_to_vmem [thread:$0]  (!%p4570_p6), %s5423_s16, 16, %s4576_s0, [#allocation20]  }
  0x7e   : > { %s3344_s8 = sadd.s32 4294967294, %s4377_s3   ;;  %s62_s21 = sadd.s32 1, %s4373_s7 }
  0x7f   : > { %s71_s23 = sadd.s32 1, %s4365_s6  ;;  %p64_p7 = scmp.ge.s32.totalorder %s62_s21, 2 }
  0x80   : > { %p78_p9 = scmp.ne.s32.totalorder %s4365_s6, %s4361_s2  ;;  %p79_p4 = scmp.eq.s32.totalorder %s4377_s3, 0 }
  0x81   : > { %p84_p1 = scmp.ne.s32.totalorder %s4361_s2, %s4357_s29  ;;  %s5490_s21 = smov (%p64_p7, %s62_s21), 0 }
  0x82   : > { %5424 = sst [smem:[#allocation35_spill]] %s5490_s21  ;;  %p4660_p3 = por %p79_p4, %p78_p9 }
  0x83   : > { %p5426_p10 = scmp.eq.s32.totalorder %s4556_s26, 0  ;;  %s66_s25 = ssub.s32 %s4373_s7, %s5490_s21 }
  0x84   : > { %p634_p12 = scmp.eq.s32.totalorder %s4556_s26, 1  ;;  %p69_p13 = scmp.eq.s32.totalorder %s66_s25, 0 }
  0x85   : > { %p4666_p11 = por %p5426_p10, %p84_p1  ;;  %p640_p0 = scmp.eq.s32.totalorder %s3344_s8, 1 }
  0x86   : > { %p4673_p2 = por %p634_p12, %p78_p9  ;;  %p3823_p5 = scmp.lt.s32.totalorder %s4377_s3, 2 }
  0x87   : > { %s5427_s0 = scalar_select %p4666_p11, 1, 0 }
  0x88   : > { %s5428_s20 = scalar_select %p4673_p2, 1, 0 }
  0x89   : > { %s4679_s27 = scalar_select %p69_p13, %s4365_s6, %s71_s23  }
  0x8a   : > { %5429 = sst [smem:[#allocation36_spill]] %s5428_s20  ;;  %p4681_p7 = por %p640_p0, %p84_p1 }
  0x8b   : > { %5430 = sst [smem:[#allocation37_spill]] %s4679_s27  ;;  %s4686_s15 = sand.u32 1, %s4365_s6  }
  0x8c   : > { %s5431_s28 = scalar_select %p4681_p7, 1, 0 }
  0x8d   : > { %s5372_s19 = sshll.u32 %s4686_s15, 2  ;;  %s5373_s22 = sshll.u32 %s4373_s7, 6 }
  0x8e   : > { %5432 = sst [smem:[#allocation38_spill]] %s5431_s28  ;;  %p4692_p4 = pnand %p3823_p5, %p4660_p3 }
  0x8f   : > { %s5375_s25 = sand.u32 1, %s4377_s3   ;;  %s5434_s16 = sld [smem:[#allocation40_spill]] }
  0x90   : > { %s5433_s8 = scalar_select %p4692_p4, 1, 0 }
  0x91   : > { %s791_s21 = scalar_lea.vmem [#allocation10], %s5372_s19  ;;  %s4710_s5 = scalar_lea.sflag [#allocation11], %s5375_s25 }
  0x92   : > { %s798_s27 = sshll.u32 %s791_s21, 4  ;;  %p4716_p1 = pneg %p4692_p4  ;;  %s4706_s27 = int_to_ptr.vmem [resolvable:$true] %s798_s27 }
  0x94   : > { %s5435_s28 = scalar_select %p4716_p1, 1, 0 }
  0x95   : > { %s4702_s24 = scalar_lea.hbm %s5434_s16, %s5373_s22  ;;  %s4072_s21 = scalar_lea.hbm %s5434_s16, 128 }
  0x96   : > { %s4067_s6 = scalar_lea.hbm %s4702_s24, 64  ;;  %p4073_p12 = scmp.lt.u32.totalorder %s4702_s24, %s5434_s16 }
  0x97   : > { %p4068_p9 = scmp.ne.s32.totalorder %s4702_s24, %s4067_s6  ;;  %p4074_p13 = scmp.lt.u32.totalorder %s4072_s21, %s4067_s6 }
  0x98   : > { %p4076_p5 = scmp.lt.u32.totalorder %s4067_s6, %s4702_s24 }
  0x99   : > { %p4070_p3 = pnand %p4716_p1, %p4068_p9  ;;  %p4075_p0 = por %p4074_p13, %p4073_p12 }
  0x9b   : > { %p4071_p10 = pneg %p4070_p3  ;;  %p4077_p7 = por %p4076_p5, %p4075_p0 }
  0x9d   : > { %p4078_p2 = pnand %p4077_p7, %p4071_p10 }
  0x9f   : > { %4081 = shalt.err (!%p4078_p2)
}
  0xa0   : > { %s4082_s25 = scalar_lea.vmem %s4706_s27, 64  ;;  %s4382_s10 = smov [#allocation10]  }
  0xa1   : > { %p4083_p9 = scmp.ne.s32.totalorder %s4706_s27, %s4082_s25  ;;  %s4087_s23 = sshll.u32 %s4382_s10, 4  ;;  %s4088_s23 = int_to_ptr.vmem [resolvable:$false] %s4087_s23 }
  0xa2   : > { %s4089_s19 = scalar_lea.vmem %s4088_s23, 128  ;;  %p4090_p6 = scmp.lt.s32.totalorder %s4706_s27, %s4088_s23 }
  0xa3   : > { %p4085_p3 = pnand %p4083_p9, %p4716_p1  ;;  %p4091_p8 = scmp.lt.s32.totalorder %s4089_s19, %s4082_s25 }
  0xa5   : > { %p4086_p11 = pneg %p4085_p3  ;;  %p4092_p12 = por %p4091_p8, %p4090_p6 }
  0xa7   : > { %p4093_p13 = pnand %p4092_p12, %p4086_p11 }
  0xa9   : > { %4096 = shalt.err (!%p4093_p13)
}
  0xaa   : > { %3806 = dma.hbm_to_vmem [thread:$0]  (!%p4692_p4), %s4702_s24, 64, %s4706_s27, %s4710_s5  }
  0xab   : > { %s4383_s6 = smov [#allocation18]   ;;  %s4384_s21 = smov [#allocation21]  }
  0xac   : > { %s694_s22 = sshll.u32 %s4383_s6, 4  ;;  %s728_s16 = sshll.u32 %s4384_s21, 4  ;;  %s695_s22 = int_to_ptr.vmem [resolvable:$true] %s694_s22  ;;  %s729_s16 = int_to_ptr.vmem [resolvable:$true] %s728_s16 }
  0xad   : > { %s5436_s11 = sld [smem:[#allocation50_spill]]  ;;  %p5437_p8 = scmp.ne.s32.totalorder %s5421_s4, 0 }
  0xb3   : > { %s4097_s23 = scalar_lea.hbm %s5436_s11, 16 }
  0xb4   : > { %p4098_p6 = scmp.ne.s32.totalorder %s5436_s11, %s4097_s23  ;;  %p4104_p7 = scmp.lt.u32.totalorder %s4097_s23, %s5436_s11 }
  0xb6   : > { %p4100_p11 = pnand %p4098_p6, %p5437_p8 }
  0xb8   : > { %p4101_p2 = pneg %p4100_p11 }
  0xba   : > { %p4106_p10 = pnand %p4104_p7, %p4101_p2 }
  0xbc   : > { %4109 = shalt.err (!%p4106_p10)
}
  0xbd   : > { %s4110_s24 = scalar_lea.vmem %s695_s22, 16  ;;  %s4117_s29 = scalar_lea.vmem %s695_s22, 32 }
  0xbe   : > { %p4111_p0 = scmp.ne.s32.totalorder %s695_s22, %s4110_s24  ;;  %p4118_p3 = scmp.lt.s32.totalorder %s695_s22, %s695_s22 }
  0xbf   : > { %p4119_p12 = scmp.lt.s32.totalorder %s4117_s29, %s4110_s24 }
  0xc0   : > { %p4113_p5 = pnand %p4111_p0, %p5437_p8 }
  0xc1   : > { %p4120_p13 = por %p4119_p12, %p4118_p3 }
  0xc2   : > { %p4114_p9 = pneg %p4113_p5 }
  0xc4   : > { %p4121_p4 = pnand %p4120_p13, %p4114_p9 }
  0xc6   : > { %4124 = shalt.err (!%p4121_p4)
}
  0xc7   : > { %p5438_p6 = scmp.ne.s32.totalorder %s5419_s9, 0  ;;  %s5439_s17 = sld [smem:[#allocation54_spill]] }
  0xc9   : > { %3790 = dma.hbm_to_vmem [thread:$0]  (!%p5438_p6), %s5436_s11, 16, %s695_s22, [#allocation17]  }
  0xcd   : > { %s4125_s21 = scalar_lea.hbm %s5439_s17, 16 }
  0xce   : > { %p4126_p11 = scmp.ne.s32.totalorder %s5439_s17, %s4125_s21  ;;  %p4132_p4 = scmp.lt.u32.totalorder %s4125_s21, %s5439_s17 }
  0xd0   : > { %p4128_p2 = pnand %p4126_p11, %p5437_p8 }
  0xd2   : > { %p4129_p7 = pneg %p4128_p2 }
  0xd4   : > { %p4134_p10 = pnand %p4132_p4, %p4129_p7 }
  0xd6   : > { %4137 = shalt.err (!%p4134_p10)
}
  0xd7   : > { %s4138_s24 = scalar_lea.vmem %s729_s16, 16  ;;  %s4145_s22 = scalar_lea.vmem %s729_s16, 32 }
  0xd8   : > { %p4139_p0 = scmp.ne.s32.totalorder %s729_s16, %s4138_s24  ;;  %p4146_p3 = scmp.lt.s32.totalorder %s729_s16, %s729_s16 }
  0xd9   : > { %p4147_p12 = scmp.lt.s32.totalorder %s4145_s22, %s4138_s24 }
  0xda   : > { %p4141_p5 = pnand %p4139_p0, %p5437_p8 }
  0xdb   : > { %p4148_p13 = por %p4147_p12, %p4146_p3 }
  0xdc   : > { %p4142_p9 = pneg %p4141_p5 }
  0xde   : > { %p4149_p1 = pnand %p4148_p13, %p4142_p9 }
  0xe0   : > { %4152 = shalt.err (!%p4149_p1)
}
  0xe1   : > { %3796 = dma.hbm_to_vmem [thread:$0]  (!%p5438_p6), %s5439_s17, 16, %s729_s16, [#allocation20]  }
  0xe2   : > { %s4385_s6 = smov [#allocation22]   ;;  %s4153_s10 = scalar_lea.hbm %s5345_s18, 16 }
  0xe3   : > { %s739_s12 = sshll.u32 %s4385_s6, 4  ;;  %p4154_p11 = scmp.ne.s32.totalorder %s5345_s18, %s4153_s10  ;;  %s740_s12 = int_to_ptr.vmem [resolvable:$true] %s739_s12 }
  0xe4   : > { %p4160_p7 = scmp.lt.u32.totalorder %s4153_s10, %s5345_s18 }
  0xe5   : > { %p4156_p1 = pnand %p4154_p11, %p5437_p8 }
  0xe7   : > { %p4157_p2 = pneg %p4156_p1 }
  0xe9   : > { %p4162_p4 = pnand %p4160_p7, %p4157_p2 }
  0xeb   : > { %4165 = shalt.err (!%p4162_p4)
}
  0xec   : > { %s4166_s16 = scalar_lea.vmem %s740_s12, 16  ;;  %s4173_s22 = scalar_lea.vmem %s740_s12, 32 }
  0xed   : > { %p4167_p10 = scmp.ne.s32.totalorder %s740_s12, %s4166_s16  ;;  %p4174_p9 = scmp.lt.s32.totalorder %s740_s12, %s740_s12 }
  0xee   : > { %p4175_p3 = scmp.lt.s32.totalorder %s4173_s22, %s4166_s16 }
  0xef   : > { %p4169_p0 = pnand %p4167_p10, %p5437_p8 }
  0xf0   : > { %p4176_p12 = por %p4175_p3, %p4174_p9 }
  0xf1   : > { %p4170_p5 = pneg %p4169_p0 }
  0xf3   : > { %p4177_p13 = pnand %p4176_p12, %p4170_p5 }
  0xf5   : > { %4180 = shalt.err (!%p4177_p13)
}
  0xf6   : > { %3799 = dma.hbm_to_vmem [thread:$0]  (!%p5438_p6), %s5345_s18, 16, %s740_s12, [#allocation23]  }
  0xf7   : > { %s5440_s6 = sshll.u32 %s4373_s7, 6  ;;  %s5441_s21 = sld [smem:[#allocation39_spill]] }
  0xf8   : > { %s5442_s23 = sshll.u32 %s4686_s15, 2  ;;  %s769_s19 = scalar_lea.sflag [#allocation8], %s4686_s15 }
  0xf9   : > { %s772_s9 = scalar_lea.vmem [#allocation7], %s5442_s23  ;;  %p5443_p11 = scmp.ne.s32.totalorder %s5435_s28, 0 }
  0xfa   : > { %s780_s25 = sshll.u32 %s772_s9, 4  ;;  %s781_s25 = int_to_ptr.vmem [resolvable:$true] %s780_s25 }
  0xfd   : > { %s4799_s10 = scalar_lea.hbm %s5441_s21, %s5440_s6  ;;  %s4186_s22 = scalar_lea.hbm %s5441_s21, 128 }
  0xfe   : > { %s4181_s24 = scalar_lea.hbm %s4799_s10, 64  ;;  %p4187_p2 = scmp.lt.u32.totalorder %s4799_s10, %s5441_s21 }
  0xff   : > { %p4182_p8 = scmp.ne.s32.totalorder %s4799_s10, %s4181_s24  ;;  %p4188_p7 = scmp.lt.u32.totalorder %s4186_s22, %s4181_s24 }
 0x100   : > { %p4190_p10 = scmp.lt.u32.totalorder %s4181_s24, %s4799_s10 }
 0x101   : > { %p4184_p1 = pnand %p4182_p8, %p5443_p11  ;;  %p4189_p4 = por %p4188_p7, %p4187_p2 }
 0x103   : > { %p4185_p6 = pneg %p4184_p1  ;;  %p4191_p0 = por %p4190_p10, %p4189_p4 }
 0x105   : > { %p4192_p5 = pnand %p4191_p0, %p4185_p6 }
 0x107   : > { %4195 = shalt.err (!%p4192_p5)
}
 0x108   : > { %s4196_s6 = scalar_lea.vmem %s781_s25, 64  ;;  %s4386_s4 = smov [#allocation7]  }
 0x109   : > { %p4197_p9 = scmp.ne.s32.totalorder %s781_s25, %s4196_s6  ;;  %s4201_s20 = sshll.u32 %s4386_s4, 4  ;;  %s4202_s20 = int_to_ptr.vmem [resolvable:$false] %s4201_s20 }
 0x10a   : > { %s4203_s23 = scalar_lea.vmem %s4202_s20, 128  ;;  %p4204_p13 = scmp.lt.s32.totalorder %s781_s25, %s4202_s20 }
 0x10b   : > { %p4199_p3 = pnand %p4197_p9, %p5443_p11  ;;  %p4205_p8 = scmp.lt.s32.totalorder %s4203_s23, %s4196_s6 }
 0x10d   : > { %p4200_p12 = pneg %p4199_p3  ;;  %p4206_p1 = por %p4205_p8, %p4204_p13 }
 0x10f   : > { %p4207_p2 = pnand %p4206_p1, %p4200_p12 }
 0x111   : > { %4210 = shalt.err (!%p4207_p2)
}
 0x112   : > { %p5444_p7 = scmp.ne.s32.totalorder %s5433_s8, 0  ;;  %s3357_s9 = sshll.u32 %s4373_s7, 4 }
 0x113   : > { %s816_s24 = scalar_lea.vmem [#allocation12], %s4686_s15  ;;  %s5445_s29 = sld [smem:[#allocation42_spill]] }
 0x114   : > { %3803 = dma.hbm_to_vmem [thread:$0]  (!%p5444_p7), %s4799_s10, 64, %s781_s25, %s769_s19  }
 0x115   : > { %s823_s12 = sshll.u32 %s816_s24, 4  ;;  %s824_s12 = int_to_ptr.vmem [resolvable:$true] %s823_s12 }
 0x119   : > { %s5446_s27 = smov %s5445_s29  ;;  %s821_s4 = scalar_lea.hbm %s5445_s29, %s3357_s9 }
 0x11a   : > { %s4211_s6 = scalar_lea.hbm %s821_s4, 16  ;;  %s4216_s11 = scalar_lea.hbm %s5446_s27, 32 }
 0x11b   : > { %p4212_p6 = scmp.ne.s32.totalorder %s821_s4, %s4211_s6  ;;  %p4217_p0 = scmp.lt.u32.totalorder %s821_s4, %s5446_s27 }
 0x11c   : > { %p4218_p5 = scmp.lt.u32.totalorder %s4216_s11, %s4211_s6  ;;  %p4220_p3 = scmp.lt.u32.totalorder %s4211_s6, %s821_s4 }
 0x11d   : > { %p4214_p4 = pnand %p4212_p6, %p5443_p11 }
 0x11e   : > { %p4219_p9 = por %p4218_p5, %p4217_p0 }
 0x11f   : > { %p4215_p10 = pneg %p4214_p4 }
 0x120   : > { %p4221_p12 = por %p4220_p3, %p4219_p9 }
 0x122   : > { %p4222_p13 = pnand %p4221_p12, %p4215_p10 }
 0x124   : > { %4225 = shalt.err (!%p4222_p13)
}
 0x125   : > { %s4226_s25 = scalar_lea.vmem %s824_s12, 16  ;;  %s4387_s19 = smov [#allocation12]  }
 0x126   : > { %p4227_p8 = scmp.ne.s32.totalorder %s824_s12, %s4226_s25  ;;  %s4231_s24 = sshll.u32 %s4387_s19, 4  ;;  %s4232_s24 = int_to_ptr.vmem [resolvable:$false] %s4231_s24 }
 0x127   : > { %s4233_s16 = scalar_lea.vmem %s4232_s24, 32  ;;  %p4234_p6 = scmp.lt.s32.totalorder %s824_s12, %s4232_s24 }
 0x128   : > { %p4229_p1 = pnand %p4227_p8, %p5443_p11  ;;  %p4235_p4 = scmp.lt.s32.totalorder %s4233_s16, %s4226_s25 }
 0x12a   : > { %p4230_p2 = pneg %p4229_p1  ;;  %p4236_p7 = por %p4235_p4, %p4234_p6 }
 0x12c   : > { %p4237_p0 = pnand %p4236_p7, %p4230_p2 }
 0x12e   : > { %4240 = shalt.err (!%p4237_p0)
}
 0x12f   : > { %p5447_p5 = scmp.ne.s32.totalorder %s5433_s8, 0  ;;  %s5448_s22 = sld [smem:[#allocation43_spill]] }
 0x130   : > { %s833_s6 = scalar_lea.vmem [#allocation13], %s4686_s15  ;;  %s5449_s23 = sand.u32 1, %s4377_s3  }
 0x131   : > { %3809 = dma.hbm_to_vmem [thread:$0]  (!%p5447_p5), %s821_s4, 16, %s824_s12, %s4710_s5  }
 0x132   : > { %s840_s20 = sshll.u32 %s833_s6, 4  ;;  %s831_s10 = scalar_lea.sflag [#allocation14], %s5449_s23  ;;  %s841_s20 = int_to_ptr.vmem [resolvable:$true] %s840_s20 }
 0x135   : > { %s4846_s29 = scalar_lea.hbm %s5448_s22, %s3357_s9  ;;  %s4246_s4 = scalar_lea.hbm %s5448_s22, 32 }
 0x136   : > { %s4241_s25 = scalar_lea.hbm %s4846_s29, 16  ;;  %p4247_p3 = scmp.lt.u32.totalorder %s4846_s29, %s5448_s22 }
 0x137   : > { %p4242_p7 = scmp.ne.s32.totalorder %s4846_s29, %s4241_s25  ;;  %p4248_p12 = scmp.lt.u32.totalorder %s4246_s4, %s4241_s25 }
 0x138   : > { %p4250_p8 = scmp.lt.u32.totalorder %s4241_s25, %s4846_s29 }
 0x139   : > { %p4244_p10 = pnand %p4242_p7, %p5443_p11  ;;  %p4249_p13 = por %p4248_p12, %p4247_p3 }
 0x13b   : > { %p4245_p9 = pneg %p4244_p10  ;;  %p4251_p1 = por %p4250_p8, %p4249_p13 }
 0x13d   : > { %p4252_p2 = pnand %p4251_p1, %p4245_p9 }
 0x13f   : > { %4255 = shalt.err (!%p4252_p2)
}
 0x140   : > { %s4256_s15 = scalar_lea.vmem %s841_s20, 16  ;;  %s4388_s24 = smov [#allocation13]  }
 0x141   : > { %p4257_p6 = scmp.ne.s32.totalorder %s841_s20, %s4256_s15  ;;  %s4261_s16 = sshll.u32 %s4388_s24, 4  ;;  %s4262_s16 = int_to_ptr.vmem [resolvable:$false] %s4261_s16 }
 0x142   : > { %s4263_s11 = scalar_lea.vmem %s4262_s16, 32  ;;  %p4264_p7 = scmp.lt.s32.totalorder %s841_s20, %s4262_s16 }
 0x143   : > { %p4259_p4 = pnand %p4257_p6, %p5443_p11  ;;  %p4265_p10 = scmp.lt.s32.totalorder %s4263_s11, %s4256_s15 }
 0x145   : > { %p4260_p0 = pneg %p4259_p4  ;;  %p4266_p5 = por %p4265_p10, %p4264_p7 }
 0x147   : > { %p4267_p3 = pnand %p4266_p5, %p4260_p0 }
 0x149   : > { %4270 = shalt.err (!%p4267_p3)
}
 0x14a   : > { %p5450_p12 = scmp.ne.s32.totalorder %s5433_s8, 0  ;;  %p5451_p9 = scmp.ne.s32.totalorder %s5418_s1, 0 }
 0x14b   : > { %s4871_s28 = sand.u32 (!%p5451_p9), 1, %s4361_s2   ;;  %p5452_p11 = scmp.ne.s32.totalorder (!%p5451_p9), %s5427_s0, 0 }
 0x14c   : > { %3812 = dma.hbm_to_vmem [thread:$0]  (!%p5450_p12), %s4846_s29, 16, %s841_s20, %s831_s10  }
 0x14d   : > { %849 = sbr.rel (%p5451_p9) target bundleno = 6197 (0x1835), region = 120  ;;  %s4874_s17 = sshll.u32 (!%p5451_p9), %s4871_s28, 2 }
 0x14e   : > { %s852_s6 = scalar_lea.sflag (!%p5451_p9), [#allocation8], %s4871_s28  ;;  %s855_s23 = scalar_lea.vmem (!%p5451_p9), [#allocation7], %s4874_s17 }
 0x154   : > { %4324 = dma.done.wait (%p5452_p11), %s852_s6, 64  }
 0x155   : > { %4326 = vsyncadd (%p5452_p11), %s852_s6, 4294967232  ;;  %s860_s1 = sand.u32 1, %s4556_s26   ;;  %s864_s29 = scalar_lea.vmem [#allocation10], %s4874_s17 }
 0x156   : > { %s861_s8 = scalar_lea.sflag [#allocation11], %s860_s1 }
 0x157   : > { %4328 = dma.done.wait (%p5452_p11), %s861_s8, 80  }
 0x158   : > { %4330 = vsyncadd (%p5452_p11), %s861_s8, 4294967216  ;;  %s872_s20 = scalar_lea.vmem [#allocation12], %s4871_s28  ;;  %s878_s10 = scalar_lea.sflag [#allocation14], %s860_s1 }
 0x159   : > { %s880_s25 = scalar_lea.vmem [#allocation13], %s4871_s28 }
 0x15a   : > { %4332 = dma.done.wait (%p5452_p11), %s878_s10, 16  }
 0x15b   : > { %4334 = vsyncadd (%p5452_p11), %s878_s10, 4294967280  ;;  %p5453_p5 = scmp.eq.s32.totalorder %s4556_s26, 0 }
 0x15d   : > { %4336 = dma.done.wait (%p5453_p5), [#allocation14], 16   ;;  %p5454_p13 = pmov %p5453_p5 }
 0x15e   : > { %p5455_p8 = pmov %p5453_p5 }
 0x15f   : > { %4338 = vsyncadd (%p5454_p13), [#allocation14], 4294967280 }
 0x160   : > { %4340 = dma.done.wait (%p5455_p8), [#allocation17], 32   ;;  %p5456_p1 = pmov %p5453_p5 }
 0x162   : > { %4342 = vsyncadd (%p5456_p1), [#allocation17], 4294967264  ;;  %p5457_p2 = pmov %p5456_p1 }
 0x163   : > { %p5458_p6 = pmov %p5456_p1 }
 0x164   : > { %4344 = dma.done.wait (%p5457_p2), [#allocation20], 32  }
 0x165   : > { %4346 = vsyncadd (%p5458_p6), [#allocation20], 4294967264  ;;  %p5459_p4 = pmov %p5456_p1 }
 0x166   : > { %p5460_p0 = pmov %p5456_p1 }
 0x167   : > { %4348 = dma.done.wait (%p5459_p4), [#allocation23], 16  }
 0x168   : > { %4350 = vsyncadd (%p5460_p0), [#allocation23], 4294967280  ;;  %vm1016_vm0 = vcmask 261120   ;;  %p989_p7 = scmp.lt.s32.totalorder %s4369_s30, 1  ;;  %v4389_v0 = vmov 0.0   ;;  %vm4390_vm1 = vmmov 0   ;;  %v1388_v46 = vlaneseq }
 0x169   : > { %3535 = vmatprep.subr.bf16.mxu0 %v4389_v0  ;;  %3539 = vmatprep.mubr.msk.bf16.mxu0 %vm4390_vm1, %v4389_v0  ;;  %1332 = vst.msk [vmem:[#allocation6] sm:$0xff] %vm1016_vm0, %v4389_v0  ;;  %s5461_s12 = sld [smem:[#allocation45_spill]]  ;;  %s5462_s16 = sld [smem:[#allocation41_spill]]  ;;  %v999_v3 = vld [vmem:[%s864_s29] sm:$0xf]  ;;  %v3892_v4 = vld [vmem:[%s5340_s13] sm:$0xff]  }
 0x16a   : > { %3543 = vmatprep.subr.bf16.mxu1 %v4389_v0  ;;  %3547 = vmatprep.mubr.msk.bf16.mxu1 %vm4390_vm1, %v4389_v0  ;;  %s990_s26 = scalar_select %p989_p7, %s4369_s30, 1  ;;  %v3893_v5 = vld [vmem:[%s5340_s13 + $0x8] sm:$0xff]   ;;  %v4967_v11 = vld [vmem:[%s855_s23] sm:$0xf]  ;;  %vm1061_vm2 = vcmask 257024   ;;  %vm1341_vm3 = vcmask 64512  }
 0x16b   : > { %s5463_s5 = sld [smem:[#allocation46_spill]]  ;;  %s5464_s15 = sld [smem:[#allocation44_spill]]  ;;  %v3899_v12 = vld [vmem:[%s5341_s14] sm:$0xff]   ;;  %v3900_v13 = vld [vmem:[%s5341_s14 + $0x8] sm:$0xff]   ;;  %vm1197_vm4 = vcmask 254976   ;;  %vm1415_vm5 = vcmask 1043456  }
 0x16c   : > { %s3456_s4 = sshll.u32 %s990_s26, 3  ;;  %s4391_s23 = smov 120   ;;  %v1389_v47 = vshrl.u32 %v1388_v46, 7  ;;  %v1393_v48 = vand.u32 127, %v1388_v46  ;;  %v5005_v49 = vld [vmem:[%s872_s20] ss:$0 sm:$0xff] }
 0x16d   : > { %s4392_s20 = smov 112   ;;  %s5465_s0 = sld [smem:[#allocation47_spill]]  ;;  %vm2239_vm9 = vcmask 1045504   ;;  %vm2215_vm10 = vcmask 97280   ;;  %vm3035_vm13 = vcmask 523264  }
 0x16e   : > { %vm1394_vm6 = vcmp.gt.s32.totalorder %v1393_v48, %v1389_v47  ;;  %s5466_s8 = sld [smem:[#allocation51_spill]]  ;;  %s5467_s9 = sld [smem:[#allocation52_spill]] }
 0x16f   : > { %v3890_v1 = vld [vmem:[%s5461_s12] sm:$0xff]   ;;  %v3891_v2 = vld [vmem:[%s5461_s12 + $0x8] sm:$0xff]   ;;  %s993_s11 = scalar_lea.vmem %s5462_s16, %s3456_s4  ;;  %v5008_v51 = vsel %vm1394_vm6, -1e+30, %v4389_v0  ;;  %s4393_s4 = smov 104  }
 0x170   : > { %3536 = vmatpush3.bf16.msra.mxu0 %v3890_v1  ;;  %v3894_v8 = vld [vmem:[%s993_s11] sm:$0x3f]   ;;  %s5468_s1 = sld [smem:[#allocation55_spill]]  ;;  %s5469_s29 = sld [smem:[#allocation57_spill]] }
 0x171   : > { %3537 = vmatprep.subr.bf16.mxu0 %v4389_v0  ;;  %v3897_v6 = vld [vmem:[%s5463_s5] sm:$0xff]   ;;  %v3898_v7 = vld [vmem:[%s5463_s5 + $0x8] sm:$0xff]   ;;  %s5473_s16 = sld [smem:[#allocation59_spill]]  ;;  %s5474_s11 = sld [smem:[#allocation36_spill]] }
 0x172   : > { %3544 = vmatpush3.bf16.msra.mxu1 %v3897_v6  ;;  %v3895_v9 = vld [vmem:[%s5464_s15] sm:$0xff]   ;;  %v3896_v10 = vld [vmem:[%s5464_s15 + $0x8] sm:$0xff]   ;;  %s5475_s26 = sld [smem:[#allocation60_spill]]  ;;  %s3120_s24 = scalar_lea.sflag [#allocation9], %s4871_s28 }
 0x173   : > { %3545 = vmatprep.subr.bf16.mxu1 %v4389_v0  ;;  %v1464_v6 = vld [vmem:[%s5465_s0] sm:$0xf] }
 0x174   : > { %3538 = vmatpush3.bf16.msra.mxu0 %v3891_v2 }
 0x175   : > { %3551 = vmatprep.subr.bf16.mxu0 %v4389_v0 }
 0x176   : > { %3546 = vmatpush3.bf16.msra.mxu1 %v3898_v7  ;;  %v1469_v7 = vsel %vm1415_vm5, %v1464_v6, 0  ;;  %s5470_s19 = smov %s5469_s29 }
 0x177   : > { %3540 = vmatmul.mubr.msk.bf16.vlgmr.msra.gmra.mrb[0].mxu0 %vm1016_vm0, %v999_v3  ;;  %3559 = vmatprep.subr.bf16.mxu1 %v4389_v0  ;;  %p5477_p3 = scmp.ne.s32.totalorder %s5474_s11, 0 }
 0x178   : > { %3552 = vmatpush3.bf16.msra.mxu0 %v3892_v4  ;;  %3555 = vmatprep.mubr.msk.bf16.mxu0 %vm4390_vm1, %v4389_v0 }
 0x179   : > { %3553 = vmatprep.subr.bf16.mxu0 %v4389_v0  ;;  %3548 = vmatmul.mubr.msk.bf16.vlgmr.msra.gmra.mrb[0].mxu1 %vm1016_vm0, %v999_v3 }
 0x17a   : > { %3563 = vmatprep.mubr.msk.bf16.mxu1 %vm4390_vm1, %v4389_v0  ;;  %3560 = vmatpush3.bf16.msra.mxu1 %v3899_v12 }
 0x17b   : > { %3561 = vmatprep.subr.bf16.mxu1 %v4389_v0 }
 0x17c   : > { %3554 = vmatpush3.bf16.msra.mxu0 %v3893_v5 }
 0x17d   : > { %3567 = vmatprep.subr.bf16.mxu0 %v4389_v0 }
 0x17e   : > { %3562 = vmatpush3.bf16.msra.mxu1 %v3900_v13 }
 0x17f   : > { %3556 = vmatmul.mubr.msk.bf16.vlgmr.msra.gmra.mrb[4].mxu0 %vm1016_vm0, %v3894_v8  ;;  %3575 = vmatprep.subr.bf16.mxu1 %v4389_v0 }
 0x180   : > { %3568 = vmatpush3.bf16.msra.mxu0 %v3895_v9  ;;  %3571 = vmatprep.mubr.msk.bf16.mxu0 %vm4390_vm1, %v4389_v0 }
 0x181   : > { %3569 = vmatprep.subr.bf16.mxu0 %v4389_v0  ;;  %3564 = vmatmul.mubr.msk.bf16.vlgmr.msra.gmra.mrb[4].mxu1 %vm1016_vm0, %v3894_v8 }
 0x182   : > { %3577 = vmatprep.mubr.msk.bf16.mxu1 %vm4390_vm1, %v4389_v0 }
 0x184   : > { %3570 = vmatpush3.bf16.msra.mxu0 %v3896_v10 }
 0x185   : > { %3581 = vmatprep.subr.bf16.mxu0 %v4389_v0 }
 0x187   : > { %3572 = vmatmul.mubr.msk.bf16.vlgmr.msra.gmra.mrb[8].mxu0 %vm1016_vm0, %v4967_v11 }
 0x188   : > { %3583 = vmatprep.mubr.msk.bf16.mxu0 %vm4390_vm1, %v4389_v0 }
 0x24a   : > { %v1054_v14 = vpop.f32.mrb[0].mxu0 }
 0x24b   : > { %v1060_v15 = vpack.c.bf16 %v1054_v14, %v1054_v14  ;;  %v3541_v16 = vpop.f32.mrb[1].mxu0 }
 0x24c   : > { %v1057_v17 = vpop.f32.mrb[2].mxu0  ;;  %v1113_v24 = vpop.f32.mrb[0].mxu1 }
 0x24d   : > { %1062 = vst.msk [vmem:[#allocation2] sm:$0xf] %vm1061_vm2, %v1060_v15  ;;  %v3542_v18 = vpop.f32.mrb[3].mxu0  ;;  %v1119_v28 = vpack.c.bf16 %v1113_v24, %v1113_v24  ;;  %v3549_v29 = vpop.f32.mrb[1].mxu1 }
 0x24e   : > { %v1116_v30 = vpop.f32.mrb[2].mxu1 }
 0x24f   : > { %1120 = vst.msk [vmem:[#allocation3] sm:$0xf] %vm1061_vm2, %v1119_v28  ;;  %v3550_v31 = vpop.f32.mrb[3].mxu1 }
 0x252   : > { %v1181_v19 = vpop.f32.mrb[4].mxu0 }
 0x253   : > { %v3457_v20 = vpack.c.bf16 %v1181_v19, %v1181_v19  ;;  %v3557_v21 = vpop.f32.mrb[5].mxu0 }
 0x254   : > { %v1184_v22 = vpop.f32.mrb[6].mxu0  ;;  %v1333_v23 = vld [vmem:[#allocation2] sm:$0xf]  ;;  %v1249_v40 = vpop.f32.mrb[4].mxu1 }
 0x255   : > { %1196 = vst.msk [vmem:[#allocation4] sm:$0xf] %vm1061_vm2, %v3457_v20  ;;  %v3458_v25 = vpack.c.bf16 %v1184_v22, %v1184_v22  ;;  %v3558_v26 = vpop.f32.mrb[7].mxu0  ;;  %v1346_v27 = vsel %vm1341_vm3, %v1333_v23, 0  ;;  %v3459_v41 = vpack.c.bf16 %v1249_v40, %v1249_v40  ;;  %v3565_v42 = vpop.f32.mrb[5].mxu1 }
 0x256   : > { %3576 = vmatpush3.bf16.xpose.msra.mxu1 %v1346_v27  ;;  %v1334_v38 = vld [vmem:[#allocation3] sm:$0xf]  ;;  %v1252_v43 = vpop.f32.mrb[6].mxu1  ;;  %v3901_v58 = vld [vmem:[#allocation2] ss:$0 sps:$4 sm:$0xff]  }
 0x257   : > { %1198 = vst.msk [vmem:[#allocation4 + $0x4] sm:$0x3] %vm1197_vm4, %v3458_v25  ;;  %3587 = vmatprep.subr.bf16.mxu1 %v4389_v0  ;;  %v1417_v39 = vsel %vm1415_vm5, %v1334_v38, 0  ;;  %v3460_v44 = vpack.c.bf16 %v1252_v43, %v1252_v43  ;;  %v3566_v45 = vpop.f32.mrb[7].mxu1  ;;  %v3902_v5 = vld [vmem:[#allocation3] ss:$0 sps:$4 sm:$0xff]  }
 0x258   : > { %3582 = vmatpush3.bf16.msra.mxu0 %v1417_v39  ;;  %1264 = vst.msk [vmem:[#allocation5] sm:$0xf] %vm1061_vm2, %v3459_v41  ;;  %v3904_v43 = vld [vmem:[#allocation3] ss:$0 sps:$4 sm:$0xff]  }
 0x259   : > { %3593 = vmatprep.subr.bf16.mxu0 %v4389_v0  ;;  %1265 = vst.msk [vmem:[#allocation5 + $0x4] sm:$0x3] %vm1197_vm4, %v3460_v44  ;;  %v1462_v44 = vld [vmem:[#allocation6] sm:$0xff] }
 0x25a   : > { %v1324_v32 = vpop.f32.mrb[8].mxu0 }
 0x25b   : > { %v1330_v33 = vmul.f32 0.17677669, %v1324_v32  ;;  %v3573_v34 = vpop.f32.mrb[9].mxu0  ;;  %v3903_v32 = vld [vmem:[#allocation2] ss:$0 sps:$4 sm:$0xff]  }
 0x25c   : > { %v1327_v35 = vpop.f32.mrb[10].mxu0 }
 0x25d   : > { %v4991_v36 = vpack.c.bf16 %v1330_v33, %v1330_v33  ;;  %v3574_v37 = vpop.f32.mrb[11].mxu0 }
 0x25f   : > { %3578 = vmatmul.mubr.msk.bf16.vlgmr.msra.gmra.mrb[8].mxu1 %vm1341_vm3, %v4991_v36  ;;  %1516 = vrot.lane.b32.xlu1 %v4991_v36, %s4391_s23 }
 0x260   : > { %3589 = vmatprep.mubr.msk.bf16.mxu1 %vm4390_vm1, %v4389_v0  ;;  %3588 = vmatpush3.bf16.msra.mxu1 %v1469_v7 }
 0x261   : > { %3599 = vmatprep.subr.bf16.mxu1 %v4389_v0 }
 0x2d1   : > { %v1517_v4 = vpop.permute.xlu1 %1516 }
 0x332   : > { %v1382_v50 = vpop.f32.mrb[8].mxu1 }
 0x333   : > { %v1383_v52 = vadd.f32 %v5005_v49, %v1382_v50  ;;  %v3579_v53 = vpop.f32.mrb[9].mxu1 }
 0x334   : > { %v1385_v54 = vpop.f32.mrb[10].mxu1 }
 0x335   : > { %v3580_v55 = vpop.f32.mrb[11].mxu1  ;;  %v1396_v56 = vadd.f32 %v5008_v51, %v1383_v52  ;;  %v1641_v52 = vld [vmem:[%s5465_s0 + $0x4] sm:$0xf] }
 0x336   : > { %v1646_v53 = vsel %vm1415_vm5, %v1641_v52, 0 }
 0x337   : > { %v1397_v57 = vsel %vm1341_vm3, %v1396_v56, -inf }
 0x338   : > { %1398 = vmax.xlane.f32.xlu0 %v1397_v57 }
 0x34e   : > { %1521 = vrot.lane.b32.xlu0 %v3901_v58, %s4391_s23 }
 0x3c5   : > { %v1399_v59 = vpop.xlane.xlu0 %1398 }
 0x3c6   : > { %v1403_v60 = vsub.f32 %v1396_v56, %v1399_v59  ;;  %v1400_v8 = vsub.f32 -inf, %v1399_v59 }
 0x3c8   : > { %v1404_v61 = vmul.f32 1.442695, %v1403_v60  ;;  %v1401_v9 = vmul.f32 1.442695, %v1400_v8 }
 0x3c9   : > { %v1522_v63 = vpop.permute.xlu0 %1521 }
 0x3ca   : > { %3923 = vpow2.f32 %v1404_v61  ;;  %v1527_v3 = vsel %vm1341_vm3, %v1522_v63, 0 }
 0x3cb   : > { %3925 = vpow2.f32 %v1401_v9 }
 0x3d4   : > { %v3924_v62 = vpop.eup %3923 }
 0x3d5   : > { %v1407_v1 = vsel %vm1341_vm3, %v3924_v62, 0.0  ;;  %v1411_v2 = vpack.c.bf16 %v3924_v62, %v3924_v62  ;;  %v3926_v10 = vpop.eup %3925 }
 0x3d6   : > { %1408 = vadd.xlane.f32.xlu1 %v1407_v1  ;;  %v1406_v13 = vmul.f32 0.0, %v3926_v10 }
 0x3d7   : > { %3584 = vmatmul.mubr.msk.bf16.vlgmr.msra.gmra.mrb[12].mxu0 %vm1341_vm3, %v1411_v2 }
 0x3d8   : > { %3594 = vmatpush3.bf16.xpose.msra.mxu0 %v1527_v3  ;;  %3595 = vmatprep.mubr.msk.bf16.mxu0 %vm4390_vm1, %v4389_v0 }
 0x3d9   : > { %3605 = vmatprep.subr.bf16.mxu0 %v4389_v0 }
 0x3df   : > { %3596 = vmatmul.mubr.msk.bf16.vlgmr.msra.gmra.mrb[16].mxu0 %vm1341_vm3, %v1517_v4 }
 0x3e0   : > { %3607 = vmatprep.mubr.msk.bf16.mxu0 %vm4390_vm1, %v4389_v0  ;;  %3606 = vmatpush3.bf16.msra.mxu0 %v1646_v53 }
 0x3e1   : > { %3617 = vmatprep.subr.bf16.mxu0 %v4389_v0 }
 0x3e7   : > { %1588 = vrot.lane.b32.xlu1 %v3902_v5, %s4391_s23 }
 0x3eb   : > { %1692 = vrot.lane.b32.xlu1 %v4991_v36, %s4392_s20 }
 0x463   : > { %v1409_v12 = vpop.xlane.xlu1 %1408 }
 0x464   : > { %v1410_v14 = vadd.f32 %v1409_v12, %v1406_v13 }
 0x466   : > { %3927 = vrcp.f32 %v1410_v14  ;;  %v3905_v14 = vld [vmem:[#allocation2] ss:$0 sps:$4 sm:$0xff]  }
 0x467   : > { %v1589_v22 = vpop.permute.xlu1 %1588 }
 0x468   : > { %v1594_v24 = vsel %vm1415_vm5, %v1589_v22, 0 }
 0x46b   : > { %v1693_v42 = vpop.permute.xlu1 %1692 }
 0x470   : > { %v3928_v18 = vpop.eup %3927 }
 0x4aa   : > { %v1453_v15 = vpop.f32.mrb[12].mxu0 }
 0x4ab   : > { %v1459_v16 = vadd.f32 %v1453_v15, %v1406_v13  ;;  %v3585_v17 = vpop.f32.mrb[13].mxu0 }
 0x4ac   : > { %v1456_v19 = vpop.f32.mrb[14].mxu0 }
 0x4ad   : > { %v1461_v20 = vmul.f32 %v3928_v18, %v1459_v16  ;;  %v3586_v21 = vpop.f32.mrb[15].mxu0 }
 0x4af   : > { %v1463_v23 = vpack.c.bf16 %v1461_v20, %v1461_v20 }
 0x4b1   : > { %3590 = vmatmul.mubr.msk.bf16.vlgmr.msra.gmra.mrb[12].mxu1 %vm1341_vm3, %v1463_v23 }
 0x4b2   : > { %3600 = vmatpush3.bf16.msra.mxu1 %v1594_v24  ;;  %v1563_v25 = vpop.f32.mrb[16].mxu0  ;;  %3601 = vmatprep.mubr.msk.bf16.mxu1 %vm4390_vm1, %v4389_v0  ;;  %v3906_v24 = vld [vmem:[#allocation3] ss:$0 sps:$4 sm:$0xff]  }
 0x4b3   : > { %v1564_v26 = vadd.f32 %v5005_v49, %v1563_v25  ;;  %v3597_v27 = vpop.f32.mrb[17].mxu0  ;;  %3611 = vmatprep.subr.bf16.mxu1 %v4389_v0 }
 0x4b4   : > { %v1566_v28 = vpop.f32.mrb[18].mxu0 }
 0x4b5   : > { %v3598_v29 = vpop.f32.mrb[19].mxu0  ;;  %v1569_v30 = vadd.f32 %v1564_v26, %v5008_v51 }
 0x4b7   : > { %v1570_v31 = vsel %vm1341_vm3, %v1569_v30, -inf }
 0x4b8   : > { %1571 = vmax.xlane.f32.xlu0 %v1570_v31  ;;  %v1817_v31 = vld [vmem:[%s5465_s0 + $0x8] sm:$0xf] }
 0x4ce   : > { %1697 = vrot.lane.b32.xlu0 %v3903_v32, %s4392_s20  ;;  %v1822_v32 = vsel %vm1415_vm5, %v1817_v31, 0  ;;  %v1267_v31 = vunpack.c.l.bf16 %v4967_v11  ;;  %v3909_v11 = vld [vmem:[%s5466_s8] sm:$0xff]  }
 0x545   : > { %v1572_v33 = vpop.xlane.xlu0 %1571 }
 0x546   : > { %v1576_v34 = vsub.f32 %v1569_v30, %v1572_v33  ;;  %v1573_v54 = vsub.f32 -inf, %v1572_v33 }
 0x548   : > { %v1577_v35 = vmul.f32 1.442695, %v1576_v34  ;;  %v1574_v55 = vmul.f32 1.442695, %v1573_v54 }
 0x549   : > { %v1698_v38 = vpop.permute.xlu0 %1697 }
 0x54a   : > { %3929 = vpow2.f32 %v1577_v35  ;;  %v1703_v41 = vsel %vm1341_vm3, %v1698_v38, 0 }
 0x54b   : > { %3931 = vpow2.f32 %v1574_v55 }
 0x554   : > { %v3930_v37 = vpop.eup %3929 }
 0x555   : > { %v1580_v39 = vsel %vm1341_vm3, %v3930_v37, 0.0  ;;  %v1584_v40 = vpack.c.bf16 %v3930_v37, %v3930_v37 }
 0x556   : > { %1581 = vadd.xlane.f32.xlu1 %v1580_v39 }
 0x557   : > { %3602 = vmatmul.mubr.msk.bf16.vlgmr.msra.gmra.mrb[16].mxu1 %vm1341_vm3, %v1584_v40 }
 0x558   : > { %3612 = vmatpush3.bf16.xpose.msra.mxu1 %v1703_v41  ;;  %3613 = vmatprep.mubr.msk.bf16.mxu1 %vm4390_vm1, %v4389_v0 }
 0x559   : > { %3623 = vmatprep.subr.bf16.mxu1 %v4389_v0 }
 0x55f   : > { %3614 = vmatmul.mubr.msk.bf16.vlgmr.msra.gmra.mrb[20].mxu1 %vm1341_vm3, %v1693_v42 }
 0x560   : > { %3625 = vmatprep.mubr.msk.bf16.mxu1 %vm4390_vm1, %v4389_v0  ;;  %3624 = vmatpush3.bf16.msra.mxu1 %v1822_v32 }
 0x561   : > { %3635 = vmatprep.subr.bf16.mxu1 %v4389_v0 }
 0x567   : > { %1764 = vrot.lane.b32.xlu1 %v3904_v43, %s4392_s20 }
 0x56b   : > { %1868 = vrot.lane.b32.xlu1 %v4991_v36, %s4393_s4  ;;  %v3932_v36 = vpop.eup %3931 }
 0x56c   : > { %v1579_v57 = vmul.f32 0.0, %v3932_v36 }
 0x584   : > { %v1505_v45 = vpop.f32.mrb[12].mxu1 }
 0x585   : > { %v1511_v46 = vadd.f32 %v1505_v45, %v1462_v44  ;;  %v3591_v47 = vpop.f32.mrb[13].mxu1 }
 0x586   : > { %v1508_v48 = vpop.f32.mrb[14].mxu1 }
 0x587   : > { %1512 = vst.msk [vmem:[#allocation6] sm:$0xff] %vm1016_vm0, %v1511_v46  ;;  %v3592_v50 = vpop.f32.mrb[15].mxu1 }
 0x58e   : > { %v1639_v25 = vld [vmem:[#allocation6] sm:$0xff] }
 0x5e3   : > { %v1582_v56 = vpop.xlane.xlu1 %1581 }
 0x5e4   : > { %v1583_v58 = vadd.f32 %v1582_v56, %v1579_v57 }
 0x5e6   : > { %3933 = vrcp.f32 %v1583_v58 }
 0x5e7   : > { %v1765_v3 = vpop.permute.xlu1 %1764 }
 0x5e8   : > { %v1770_v5 = vsel %vm1415_vm5, %v1765_v3, 0 }
 0x5eb   : > { %v1869_v23 = vpop.permute.xlu1 %1868 }
 0x5f0   : > { %v3934_v62 = vpop.eup %3933 }
 0x62a   : > { %v1630_v59 = vpop.f32.mrb[16].mxu1 }
 0x62b   : > { %v1636_v60 = vadd.f32 %v1630_v59, %v1579_v57  ;;  %v3603_v61 = vpop.f32.mrb[17].mxu1 }
 0x62c   : > { %v1633_v63 = vpop.f32.mrb[18].mxu1 }
 0x62d   : > { %v1638_v1 = vmul.f32 %v3934_v62, %v1636_v60  ;;  %v3604_v2 = vpop.f32.mrb[19].mxu1 }
 0x62f   : > { %v1640_v4 = vpack.c.bf16 %v1638_v1, %v1638_v1 }
 0x631   : > { %3608 = vmatmul.mubr.msk.bf16.vlgmr.msra.gmra.mrb[20].mxu0 %vm1341_vm3, %v1640_v4 }
 0x632   : > { %3618 = vmatpush3.bf16.msra.mxu0 %v1770_v5  ;;  %v1739_v6 = vpop.f32.mrb[20].mxu1  ;;  %3619 = vmatprep.mubr.msk.bf16.mxu0 %vm4390_vm1, %v4389_v0 }
 0x633   : > { %v1740_v7 = vadd.f32 %v5005_v49, %v1739_v6  ;;  %v3615_v8 = vpop.f32.mrb[21].mxu1  ;;  %3629 = vmatprep.subr.bf16.mxu0 %v4389_v0 }
 0x634   : > { %v1742_v9 = vpop.f32.mrb[22].mxu1 }
 0x635   : > { %v3616_v10 = vpop.f32.mrb[23].mxu1  ;;  %v1745_v12 = vadd.f32 %v1740_v7, %v5008_v51 }
 0x637   : > { %v1746_v13 = vsel %vm1341_vm3, %v1745_v12, -inf }
 0x638   : > { %1747 = vmax.xlane.f32.xlu0 %v1746_v13 }
 0x64e   : > { %1873 = vrot.lane.b32.xlu0 %v3905_v14, %s4393_s4 }
 0x6c5   : > { %v1748_v15 = vpop.xlane.xlu0 %1747 }
 0x6c6   : > { %v1752_v16 = vsub.f32 %v1745_v12, %v1748_v15  ;;  %v1749_v33 = vsub.f32 -inf, %v1748_v15 }
 0x6c8   : > { %v1753_v17 = vmul.f32 1.442695, %v1752_v16  ;;  %v1750_v34 = vmul.f32 1.442695, %v1749_v33 }
 0x6c9   : > { %v1874_v19 = vpop.permute.xlu0 %1873 }
 0x6ca   : > { %3935 = vpow2.f32 %v1753_v17  ;;  %v1879_v22 = vsel %vm1341_vm3, %v1874_v19, 0 }
 0x6cb   : > { %3937 = vpow2.f32 %v1750_v34 }
 0x6d4   : > { %v3936_v18 = vpop.eup %3935 }
 0x6d5   : > { %v1756_v20 = vsel %vm1341_vm3, %v3936_v18, 0.0  ;;  %v1760_v21 = vpack.c.bf16 %v3936_v18, %v3936_v18  ;;  %v3938_v35 = vpop.eup %3937 }
 0x6d6   : > { %1757 = vadd.xlane.f32.xlu1 %v1756_v20  ;;  %v1755_v38 = vmul.f32 0.0, %v3938_v35 }
 0x6d7   : > { %3620 = vmatmul.mubr.msk.bf16.vlgmr.msra.gmra.mrb[24].mxu0 %vm1341_vm3, %v1760_v21  ;;  %v3907_v21 = vld [vmem:[#allocation4] sm:$0x3f]  }
 0x6d8   : > { %3630 = vmatpush3.bf16.xpose.msra.mxu0 %v1879_v22  ;;  %3631 = vmatprep.mubr.msk.bf16.mxu0 %vm4390_vm1, %v4389_v0 }
 0x6d9   : > { %3641 = vmatprep.subr.bf16.mxu0 %v4389_v0 }
 0x6df   : > { %3632 = vmatmul.mubr.msk.bf16.vlgmr.msra.gmra.mrb[28].mxu0 %vm1341_vm3, %v1869_v23  ;;  %v2173_v23 = vsel %vm1341_vm3, %v3907_v21, 0  ;;  %v2288_v21 = vld [vmem:[%s5467_s9] sm:$0xf] }
 0x6e0   : > { %3643 = vmatprep.mubr.msk.bf16.mxu0 %vm4390_vm1, %v4389_v0 }
 0x6e7   : > { %1940 = vrot.lane.b32.xlu1 %v3906_v24, %s4393_s4 }
 0x704   : > { %v1682_v26 = vpop.f32.mrb[20].mxu0 }
 0x705   : > { %v1688_v27 = vadd.f32 %v1682_v26, %v1639_v25  ;;  %v3609_v28 = vpop.f32.mrb[21].mxu0 }
 0x706   : > { %v1685_v29 = vpop.f32.mrb[22].mxu0 }
 0x707   : > { %1689 = vst.msk [vmem:[#allocation6] sm:$0xff] %vm1016_vm0, %v1688_v27  ;;  %v3610_v30 = vpop.f32.mrb[23].mxu0 }
 0x708   : > { %v3410_v30 = vld [vmem:[#allocation15] ss:$0 sm:$0xff] }
 0x70e   : > { %v1815_v1 = vld [vmem:[#allocation6] sm:$0xff] }
 0x763   : > { %v1758_v37 = vpop.xlane.xlu1 %1757 }
 0x764   : > { %v1759_v39 = vadd.f32 %v1758_v37, %v1755_v38 }
 0x766   : > { %3939 = vrcp.f32 %v1759_v39 }
 0x767   : > { %v1941_v47 = vpop.permute.xlu1 %1940 }
 0x768   : > { %v1946_v50 = vsel %vm1415_vm5, %v1941_v47, 0 }
 0x770   : > { %v3940_v43 = vpop.eup %3939 }
 0x7aa   : > { %v1806_v40 = vpop.f32.mrb[24].mxu0 }
 0x7ab   : > { %v1812_v41 = vadd.f32 %v1806_v40, %v1755_v38  ;;  %v3621_v42 = vpop.f32.mrb[25].mxu0 }
 0x7ac   : > { %v1809_v44 = vpop.f32.mrb[26].mxu0  ;;  %v3908_v42 = vld [vmem:[#allocation4] sm:$0x3f]  }
 0x7ad   : > { %v1814_v45 = vmul.f32 %v3940_v43, %v1812_v41  ;;  %v3622_v46 = vpop.f32.mrb[27].mxu0  ;;  %v3910_v43 = vld [vmem:[%s5466_s8 + $0x8] sm:$0xff]  }
 0x7af   : > { %v1816_v48 = vpack.c.bf16 %v1814_v45, %v1814_v45 }
 0x7b1   : > { %3626 = vmatmul.mubr.msk.bf16.vlgmr.msra.gmra.mrb[24].mxu1 %vm1341_vm3, %v1816_v48 }
 0x7b2   : > { %3636 = vmatpush3.bf16.msra.mxu1 %v1946_v50  ;;  %v1915_v52 = vpop.f32.mrb[28].mxu0  ;;  %3637 = vmatprep.mubr.msk.bf16.mxu1 %vm4390_vm1, %v4389_v0 }
 0x7b3   : > { %v1916_v53 = vadd.f32 %v5005_v49, %v1915_v52  ;;  %v3633_v54 = vpop.f32.mrb[29].mxu0  ;;  %3647 = vmatprep.subr.bf16.mxu1 %v4389_v0  ;;  %v1993_v49 = vld [vmem:[%s5465_s0 + $0xc] sm:$0xf] }
 0x7b4   : > { %v1918_v55 = vpop.f32.mrb[30].mxu0 }
 0x7b5   : > { %v3634_v36 = vpop.f32.mrb[31].mxu0  ;;  %v1921_v56 = vadd.f32 %v1916_v53, %v5008_v51  ;;  %v1998_v51 = vsel %vm1415_vm5, %v1993_v49, 0  ;;  %v3411_v55 = vld [vmem:[#allocation16] ss:$0 sm:$0xff] }
 0x7b6   : > { %3642 = vmatpush3.bf16.msra.mxu0 %v1998_v51 }
 0x7b7   : > { %v1922_v57 = vsel %vm1341_vm3, %v1921_v56, -inf  ;;  %3655 = vmatprep.subr.bf16.mxu0 %v4389_v0 }
 0x7b8   : > { %1923 = vmax.xlane.f32.xlu0 %v1922_v57 }
 0x845   : > { %v1924_v58 = vpop.xlane.xlu0 %1923 }
 0x846   : > { %v1928_v59 = vsub.f32 %v1921_v56, %v1924_v58  ;;  %v1925_v7 = vsub.f32 -inf, %v1924_v58  ;;  %v3412_v56 = vld [vmem:[#allocation18] ss:$0 sm:$0xff] }
 0x848   : > { %v1929_v60 = vmul.f32 1.442695, %v1928_v59  ;;  %v1926_v8 = vmul.f32 1.442695, %v1925_v7  ;;  %v3911_v59 = vld [vmem:[#allocation5] sm:$0x3f]  }
 0x84a   : > { %3941 = vpow2.f32 %v1929_v60 }
 0x84b   : > { %3943 = vpow2.f32 %v1926_v8 }
 0x854   : > { %v3942_v61 = vpop.eup %3941 }
 0x855   : > { %v1932_v62 = vsel %vm1341_vm3, %v3942_v61, 0.0  ;;  %v1936_v63 = vpack.c.bf16 %v3942_v61, %v3942_v61  ;;  %v3944_v9 = vpop.eup %3943  ;;  %v2241_v61 = vsel %vm2239_vm9, %v3911_v59, 0 }
 0x856   : > { %1933 = vadd.xlane.f32.xlu0 %v1932_v62  ;;  %v1931_v12 = vmul.f32 0.0, %v3944_v9 }
 0x857   : > { %3638 = vmatmul.mubr.msk.bf16.vlgmr.msra.gmra.mrb[28].mxu1 %vm1341_vm3, %v1936_v63 }
 0x858   : > { %3651 = vmatprep.mubr.msk.bf16.mxu1 %vm4390_vm1, %v4389_v0  ;;  %3648 = vmatpush3.bf16.msra.mxu1 %v3909_v11 }
 0x859   : > { %3649 = vmatprep.subr.bf16.mxu1 %v4389_v0 }
 0x85c   : > { %3650 = vmatpush3.bf16.msra.mxu1 %v3910_v43 }
 0x85d   : > { %3661 = vmatprep.subr.bf16.mxu1 %v4389_v0 }
 0x884   : > { %v1858_v2 = vpop.f32.mrb[24].mxu1 }
 0x885   : > { %v1864_v3 = vadd.f32 %v1858_v2, %v1815_v1  ;;  %v3627_v4 = vpop.f32.mrb[25].mxu1 }
 0x886   : > { %v1861_v5 = vpop.f32.mrb[26].mxu1 }
 0x887   : > { %1865 = vst.msk [vmem:[#allocation6] sm:$0xff] %vm1016_vm0, %v1864_v3  ;;  %v3628_v6 = vpop.f32.mrb[27].mxu1  ;;  %v5140_v3 = vld [vmem:[%s880_s25] ss:$0 sm:$0xff]  ;;  %s5471_s25 = sld [smem:[#allocation56_spill]] }
 0x88e   : > { %v1991_v24 = vld [vmem:[#allocation6] sm:$0xff] }
 0x8e3   : > { %v1934_v10 = vpop.xlane.xlu0 %1933 }
 0x8e4   : > { %v1935_v13 = vadd.f32 %v1934_v10, %v1931_v12  ;;  %v3912_v10 = vld [vmem:[#allocation5] sm:$0x3f]  }
 0x8e6   : > { %3945 = vrcp.f32 %v1935_v13 }
 0x8f0   : > { %v3946_v17 = vpop.eup %3945 }
 0x92a   : > { %v1982_v14 = vpop.f32.mrb[28].mxu1 }
 0x92b   : > { %v1988_v15 = vadd.f32 %v1982_v14, %v1931_v12  ;;  %v3639_v16 = vpop.f32.mrb[29].mxu1 }
 0x92c   : > { %v1985_v18 = vpop.f32.mrb[30].mxu1 }
 0x92d   : > { %v1990_v19 = vmul.f32 %v3946_v17, %v1988_v15  ;;  %v3640_v20 = vpop.f32.mrb[31].mxu1 }
 0x92f   : > { %v1992_v22 = vpack.c.bf16 %v1990_v19, %v1990_v19 }
 0x931   : > { %3644 = vmatmul.mubr.msk.bf16.vlgmr.msra.gmra.mrb[32].mxu0 %vm1341_vm3, %v1992_v22  ;;  %v2293_v22 = vsel %vm1415_vm5, %v2288_v21, 0 }
 0x932   : > { %3656 = vmatpush3.bf16.xpose.msra.mxu0 %v2173_v23  ;;  %3657 = vmatprep.mubr.msk.bf16.mxu0 %vm4390_vm1, %v4389_v0 }
 0x933   : > { %3667 = vmatprep.subr.bf16.mxu0 %v4389_v0 }
 0xa04   : > { %v2034_v25 = vpop.f32.mrb[32].mxu0 }
 0xa05   : > { %v2040_v26 = vadd.f32 %v2034_v25, %v1991_v24  ;;  %v3645_v27 = vpop.f32.mrb[33].mxu0 }
 0xa06   : > { %v2037_v28 = vpop.f32.mrb[34].mxu0 }
 0xa07   : > { %2041 = vst.msk [vmem:[#allocation6] sm:$0xff] %vm1016_vm0, %v2040_v26  ;;  %v3646_v29 = vpop.f32.mrb[35].mxu0 }
 0xa0e   : > { %v2042_v32 = vld [vmem:[#allocation6] sm:$0xff] }
 0xa0f   : > { %v2050_v33 = vadd.f32 %v3410_v30, %v2042_v32  ;;  %2153 = vst.msk [vmem:[#allocation6] sm:$0xff] %vm1016_vm0, %v4389_v0 }
 0xa11   : > { %v2051_v34 = vadd.f32 %v2050_v33, %v1267_v31 }
 0xa13   : > { %v2054_v35 = vsel %vm1016_vm0, %v2051_v34, 0.0 }
 0xa14   : > { %2055 = vadd.xlane.f32.xlu0 %v2054_v35 }
 0xaa1   : > { %v2056_v37 = vpop.xlane.xlu0 %2055 }
 0xaa2   : > { %v2058_v38 = vmul.f32 0.03125, %v2056_v37 }
 0xaa4   : > { %v2059_v39 = vsub.f32 %v2051_v34, %v2058_v38 }
 0xaa6   : > { %v2060_v40 = vmul.f32 %v2059_v39, %v2059_v39 }
 0xaa8   : > { %v2061_v41 = vsel %vm1016_vm0, %v2060_v40, 0.0 }
 0xaa9   : > { %2062 = vadd.xlane.f32.xlu0 %v2061_v41 }
 0xabf   : > { %2349 = vrot.lane.b32.xlu0 %v3908_v42, %s4391_s23 }
 0xb36   : > { %v2063_v44 = vpop.xlane.xlu0 %2062 }
 0xb37   : > { %v2065_v45 = vmul.f32 0.032258064, %v2063_v44 }
 0xb39   : > { %3947 = vrsqrt.f32 %v2065_v45  ;;  %vm2068_vm7 = vcmp.eq.f32.partialorder %v2065_v45, inf  ;;  %v2071_v48 = vand.u32 2147483648, %v2065_v45  ;;  %vm2070_vm8 = vcmp.eq.f32.partialorder %v2065_v45, 0.0 }
 0xb3a   : > { %v2350_v16 = vpop.permute.xlu0 %2349 }
 0xb3b   : > { %v2355_v19 = vsel %vm1341_vm3, %v2350_v16, 0 }
 0xb43   : > { %v3948_v46 = vpop.eup %3947 }
 0xb44   : > { %v2067_v47 = vmul.f32 %v3948_v46, %v2065_v45 }
 0xb46   : > { %v2069_v50 = vsel %vm2068_vm7, %v2065_v45, %v2067_v47  ;;  %v3913_v45 = vld [vmem:[#allocation4] sm:$0x3f]  }
 0xb47   : > { %v2072_v52 = vsel %vm2070_vm8, %v2071_v48, %v2069_v50 }
 0xb48   : > { %v2073_v53 = vadd.f32 0.001, %v2072_v52 }
 0xb4a   : > { %3949 = vrcp.f32 %v2073_v53 }
 0xb54   : > { %v3950_v54 = vpop.eup %3949 }
 0xb55   : > { %v2075_v36 = vmul.f32 %v3950_v54, %v2059_v39 }
 0xb57   : > { %v2082_v57 = vmul.f32 %v3411_v55, %v2075_v36 }
 0xb59   : > { %v5121_v58 = vadd.f32 %v3412_v56, %v2082_v57  ;;  %v3914_v56 = vld [vmem:[#allocation5] sm:$0x3f]   ;;  %v2286_v57 = vld [vmem:[#allocation6] sm:$0xff] }
 0xb5b   : > { %v2091_v60 = vpack.c.bf16 %v5121_v58, %v5121_v58 }
 0xb5d   : > { %3652 = vmatmul.mubr.msk.bf16.vlgmr.msra.gmra.mrb[32].mxu1 %vm1016_vm0, %v2091_v60 }
 0xb5e   : > { %3662 = vmatpush3.bf16.msra.mxu1 %v2241_v61  ;;  %3663 = vmatprep.mubr.msk.bf16.mxu1 %vm4390_vm1, %v4389_v0 }
 0xb5f   : > { %3673 = vmatprep.subr.bf16.mxu1 %v4389_v0 }
 0xc30   : > { %v2145_v62 = vpop.f32.mrb[32].mxu1 }
 0xc31   : > { %v2151_v63 = vmul.f32 0.17677669, %v2145_v62  ;;  %v3653_v49 = vpop.f32.mrb[33].mxu1 }
 0xc32   : > { %v2148_v51 = vpop.f32.mrb[34].mxu1  ;;  %v2470_v49 = vld [vmem:[%s5467_s9 + $0x4] sm:$0xf] }
 0xc33   : > { %v5130_v1 = vpack.c.bf16 %v2151_v63, %v2151_v63  ;;  %v3654_v2 = vpop.f32.mrb[35].mxu1  ;;  %v2475_v51 = vsel %vm1415_vm5, %v2470_v49, 0 }
 0xc35   : > { %2342 = vrot.lane.b32.xlu0 %v5130_v1, %s4391_s23  ;;  %3658 = vmatmul.mubr.msk.bf16.vlgmr.msra.gmra.mrb[36].mxu0 %vm1341_vm3, %v5130_v1 }
 0xc36   : > { %3669 = vmatprep.mubr.msk.bf16.mxu0 %vm4390_vm1, %v4389_v0  ;;  %3668 = vmatpush3.bf16.msra.mxu0 %v2293_v22 }
 0xc37   : > { %3679 = vmatprep.subr.bf16.mxu0 %v4389_v0 }
 0xca7   : > { %v2343_v20 = vpop.permute.xlu0 %2342 }
 0xd08   : > { %v2209_v4 = vpop.f32.mrb[36].mxu0 }
 0xd09   : > { %v2210_v5 = vadd.f32 %v5140_v3, %v2209_v4  ;;  %v3659_v6 = vpop.f32.mrb[37].mxu0 }
 0xd0a   : > { %v2212_v7 = vpop.f32.mrb[38].mxu0 }
 0xd0b   : > { %v3660_v8 = vpop.f32.mrb[39].mxu0  ;;  %v2216_v9 = vsel %vm2215_vm10, %v2210_v5, -inf }
 0xd0c   : > { %2217 = vmax.xlane.f32.xlu1 %v2216_v9 }
 0xd1d   : > { %2417 = vrot.lane.b32.xlu1 %v3912_v10, %s4391_s23  ;;  %s988_s23 = scalar_lea.vmem [#allocation24], %s4874_s17 }
 0xd99   : > { %v2218_v12 = vpop.xlane.xlu1 %2217 }
 0xd9a   : > { %v2222_v13 = vsub.f32 %v2210_v5, %v2218_v12  ;;  %v2219_v23 = vsub.f32 -inf, %v2218_v12 }
 0xd9c   : > { %v2223_v14 = vmul.f32 1.442695, %v2222_v13  ;;  %v2220_v24 = vmul.f32 1.442695, %v2219_v23 }
 0xd9d   : > { %v2418_v37 = vpop.permute.xlu1 %2417 }
 0xd9e   : > { %3951 = vpow2.f32 %v2223_v14  ;;  %v2423_v39 = vsel %vm2239_vm9, %v2418_v37, 0 }
 0xd9f   : > { %3953 = vpow2.f32 %v2220_v24 }
 0xda8   : > { %v3952_v15 = vpop.eup %3951 }
 0xda9   : > { %v2226_v17 = vsel %vm2215_vm10, %v3952_v15, 0.0  ;;  %v2230_v18 = vpack.c.bf16 %v3952_v15, %v3952_v15  ;;  %v3954_v25 = vpop.eup %3953 }
 0xdaa   : > { %2227 = vadd.xlane.f32.xlu0 %v2226_v17  ;;  %v2225_v27 = vmul.f32 0.0, %v3954_v25  ;;  %v3915_v25 = vld [vmem:[#allocation4] sm:$0x3f]  }
 0xdab   : > { %3664 = vmatmul.mubr.msk.bf16.vlgmr.msra.gmra.mrb[36].mxu1 %vm2215_vm10, %v2230_v18 }
 0xdac   : > { %3674 = vmatpush3.bf16.xpose.msra.mxu1 %v2355_v19  ;;  %3675 = vmatprep.mubr.msk.bf16.mxu1 %vm4390_vm1, %v4389_v0 }
 0xdad   : > { %3685 = vmatprep.subr.bf16.mxu1 %v4389_v0 }
 0xdb3   : > { %3676 = vmatmul.mubr.msk.bf16.vlgmr.msra.gmra.mrb[40].mxu1 %vm1341_vm3, %v2343_v20 }
 0xdb4   : > { %3687 = vmatprep.mubr.msk.bf16.mxu1 %vm4390_vm1, %v4389_v0  ;;  %3686 = vmatpush3.bf16.msra.mxu1 %v2475_v51 }
 0xdb5   : > { %3697 = vmatprep.subr.bf16.mxu1 %v4389_v0 }
 0xdc0   : > { %2523 = vrot.lane.b32.xlu0 %v5130_v1, %s4392_s20 }
 0xe37   : > { %v2228_v26 = vpop.xlane.xlu0 %2227 }
 0xe38   : > { %v2229_v28 = vadd.f32 %v2228_v26, %v2225_v27 }
 0xe3a   : > { %3955 = vrcp.f32 %v2229_v28 }
 0xe3b   : > { %v2524_v36 = vpop.permute.xlu0 %2523 }
 0xe44   : > { %v3956_v32 = vpop.eup %3955 }
 0xe7e   : > { %v2277_v29 = vpop.f32.mrb[36].mxu1 }
 0xe7f   : > { %v2283_v30 = vadd.f32 %v2277_v29, %v2225_v27  ;;  %v3665_v31 = vpop.f32.mrb[37].mxu1 }
 0xe80   : > { %v2280_v33 = vpop.f32.mrb[38].mxu1 }
 0xe81   : > { %v2285_v34 = vmul.f32 %v3956_v32, %v2283_v30  ;;  %v3666_v35 = vpop.f32.mrb[39].mxu1 }
 0xe82   : > { %v3916_v35 = vld [vmem:[#allocation5] sm:$0x3f]  }
 0xe83   : > { %v2287_v38 = vpack.c.bf16 %v2285_v34, %v2285_v34 }
 0xe85   : > { %3670 = vmatmul.mubr.msk.bf16.vlgmr.msra.gmra.mrb[40].mxu0 %vm1341_vm3, %v2287_v38 }
 0xe86   : > { %3680 = vmatpush3.bf16.msra.mxu0 %v2423_v39  ;;  %v2391_v40 = vpop.f32.mrb[40].mxu1  ;;  %3681 = vmatprep.mubr.msk.bf16.mxu0 %vm4390_vm1, %v4389_v0 }
 0xe87   : > { %v2392_v41 = vadd.f32 %v5140_v3, %v2391_v40  ;;  %v3677_v42 = vpop.f32.mrb[41].mxu1  ;;  %3691 = vmatprep.subr.bf16.mxu0 %v4389_v0 }
 0xe88   : > { %v2394_v11 = vpop.f32.mrb[42].mxu1 }
 0xe89   : > { %v3678_v43 = vpop.f32.mrb[43].mxu1  ;;  %v2397_v44 = vsel %vm2215_vm10, %v2392_v41, -inf  ;;  %v2651_v11 = vld [vmem:[%s5467_s9 + $0x8] sm:$0xf] }
 0xe8a   : > { %2398 = vmax.xlane.f32.xlu1 %v2397_v44  ;;  %v2656_v43 = vsel %vm1415_vm5, %v2651_v11, 0 }
 0xe9b   : > { %2530 = vrot.lane.b32.xlu1 %v3913_v45, %s4392_s20 }
 0xf17   : > { %v2399_v46 = vpop.xlane.xlu1 %2398 }
 0xf18   : > { %v2403_v47 = vsub.f32 %v2392_v41, %v2399_v46  ;;  %v2400_v2 = vsub.f32 -inf, %v2399_v46 }
 0xf1a   : > { %v2404_v48 = vmul.f32 1.442695, %v2403_v47  ;;  %v2401_v4 = vmul.f32 1.442695, %v2400_v2 }
 0xf1b   : > { %v2531_v52 = vpop.permute.xlu1 %2530 }
 0xf1c   : > { %3957 = vpow2.f32 %v2404_v48  ;;  %v2536_v55 = vsel %vm1341_vm3, %v2531_v52, 0 }
 0xf1d   : > { %3959 = vpow2.f32 %v2401_v4 }
 0xf26   : > { %v3958_v50 = vpop.eup %3957 }
 0xf27   : > { %v2407_v53 = vsel %vm2215_vm10, %v3958_v50, 0.0  ;;  %v2411_v54 = vpack.c.bf16 %v3958_v50, %v3958_v50 }
 0xf28   : > { %2408 = vadd.xlane.f32.xlu1 %v2407_v53 }
 0xf29   : > { %3682 = vmatmul.mubr.msk.bf16.vlgmr.msra.gmra.mrb[44].mxu0 %vm2215_vm10, %v2411_v54 }
 0xf2a   : > { %3692 = vmatpush3.bf16.xpose.msra.mxu0 %v2536_v55  ;;  %3693 = vmatprep.mubr.msk.bf16.mxu0 %vm4390_vm1, %v4389_v0 }
 0xf2b   : > { %3703 = vmatprep.subr.bf16.mxu0 %v4389_v0 }
 0xf31   : > { %3694 = vmatmul.mubr.msk.bf16.vlgmr.msra.gmra.mrb[48].mxu0 %vm1341_vm3, %v2524_v36 }
 0xf32   : > { %3705 = vmatprep.mubr.msk.bf16.mxu0 %vm4390_vm1, %v4389_v0  ;;  %3704 = vmatpush3.bf16.msra.mxu0 %v2656_v43 }
 0xf33   : > { %3715 = vmatprep.subr.bf16.mxu0 %v4389_v0 }
 0xf39   : > { %2598 = vrot.lane.b32.xlu1 %v3914_v56, %s4392_s20  ;;  %s5472_s20 = sld [smem:[#allocation58_spill]] }
 0xf3d   : > { %2704 = vrot.lane.b32.xlu1 %v5130_v1, %s4393_s4  ;;  %v3960_v1 = vpop.eup %3959 }
 0xf3e   : > { %v2406_v6 = vmul.f32 0.0, %v3960_v1 }
 0xf58   : > { %v2329_v59 = vpop.f32.mrb[40].mxu0 }
 0xf59   : > { %v2335_v60 = vadd.f32 %v2329_v59, %v2286_v57  ;;  %v3671_v61 = vpop.f32.mrb[41].mxu0 }
 0xf5a   : > { %v2332_v62 = vpop.f32.mrb[42].mxu0 }
 0xf5b   : > { %2336 = vst.msk [vmem:[#allocation6] sm:$0xff] %vm1016_vm0, %v2335_v60  ;;  %v3672_v63 = vpop.f32.mrb[43].mxu0 }
 0xf62   : > { %v2468_v37 = vld [vmem:[#allocation6] sm:$0xff] }
 0xfb5   : > { %v2409_v5 = vpop.xlane.xlu1 %2408 }
 0xfb6   : > { %v2410_v7 = vadd.f32 %v2409_v5, %v2406_v6 }
 0xfb8   : > { %3961 = vrcp.f32 %v2410_v7 }
 0xfb9   : > { %v2599_v16 = vpop.permute.xlu1 %2598 }
 0xfba   : > { %v2604_v18 = vsel %vm2239_vm9, %v2599_v16, 0  ;;  %v2832_v16 = vld [vmem:[%s5467_s9 + $0xc] sm:$0xf] }
 0xfbd   : > { %v2705_v34 = vpop.permute.xlu1 %2704 }
 0xfc2   : > { %v3962_v12 = vpop.eup %3961 }
 0xffc   : > { %v2459_v8 = vpop.f32.mrb[44].mxu0 }
 0xffd   : > { %v2465_v9 = vadd.f32 %v2459_v8, %v2406_v6  ;;  %v3683_v10 = vpop.f32.mrb[45].mxu0 }
 0xffe   : > { %v2462_v13 = vpop.f32.mrb[46].mxu0 }
 0xfff   : > { %v2467_v14 = vmul.f32 %v3962_v12, %v2465_v9  ;;  %v3684_v15 = vpop.f32.mrb[47].mxu0 }
0x1001   : > { %v2469_v17 = vpack.c.bf16 %v2467_v14, %v2467_v14 }
0x1003   : > { %3688 = vmatmul.mubr.msk.bf16.vlgmr.msra.gmra.mrb[44].mxu1 %vm1341_vm3, %v2469_v17  ;;  %v2837_v17 = vsel %vm1415_vm5, %v2832_v16, 0 }
0x1004   : > { %3698 = vmatpush3.bf16.msra.mxu1 %v2604_v18  ;;  %v2572_v19 = vpop.f32.mrb[48].mxu0  ;;  %3699 = vmatprep.mubr.msk.bf16.mxu1 %vm4390_vm1, %v4389_v0 }
0x1005   : > { %v2573_v20 = vadd.f32 %v5140_v3, %v2572_v19  ;;  %v3695_v21 = vpop.f32.mrb[49].mxu0  ;;  %3709 = vmatprep.subr.bf16.mxu1 %v4389_v0 }
0x1006   : > { %v2575_v22 = vpop.f32.mrb[50].mxu0 }
0x1007   : > { %v3696_v23 = vpop.f32.mrb[51].mxu0  ;;  %v2578_v24 = vsel %vm2215_vm10, %v2573_v20, -inf }
0x1008   : > { %2579 = vmax.xlane.f32.xlu0 %v2578_v24 }
0x101e   : > { %2711 = vrot.lane.b32.xlu0 %v3915_v25, %s4393_s4 }
0x1095   : > { %v2580_v26 = vpop.xlane.xlu0 %2579 }
0x1096   : > { %v2584_v27 = vsub.f32 %v2573_v20, %v2580_v26  ;;  %v2581_v44 = vsub.f32 -inf, %v2580_v26 }
0x1098   : > { %v2585_v28 = vmul.f32 1.442695, %v2584_v27  ;;  %v2582_v45 = vmul.f32 1.442695, %v2581_v44 }
0x1099   : > { %v2712_v30 = vpop.permute.xlu0 %2711 }
0x109a   : > { %3963 = vpow2.f32 %v2585_v28  ;;  %v2717_v33 = vsel %vm1341_vm3, %v2712_v30, 0 }
0x109b   : > { %3965 = vpow2.f32 %v2582_v45 }
0x10a4   : > { %v3964_v29 = vpop.eup %3963 }
0x10a5   : > { %v2588_v31 = vsel %vm2215_vm10, %v3964_v29, 0.0  ;;  %v2592_v32 = vpack.c.bf16 %v3964_v29, %v3964_v29  ;;  %v3966_v46 = vpop.eup %3965 }
0x10a6   : > { %2589 = vadd.xlane.f32.xlu1 %v2588_v31  ;;  %v2587_v48 = vmul.f32 0.0, %v3966_v46 }
0x10a7   : > { %3700 = vmatmul.mubr.msk.bf16.vlgmr.msra.gmra.mrb[48].mxu1 %vm2215_vm10, %v2592_v32 }
0x10a8   : > { %3710 = vmatpush3.bf16.xpose.msra.mxu1 %v2717_v33  ;;  %3711 = vmatprep.mubr.msk.bf16.mxu1 %vm4390_vm1, %v4389_v0 }
0x10a9   : > { %3721 = vmatprep.subr.bf16.mxu1 %v4389_v0 }
0x10af   : > { %3712 = vmatmul.mubr.msk.bf16.vlgmr.msra.gmra.mrb[52].mxu1 %vm1341_vm3, %v2705_v34 }
0x10b0   : > { %3723 = vmatprep.mubr.msk.bf16.mxu1 %vm4390_vm1, %v4389_v0  ;;  %3722 = vmatpush3.bf16.msra.mxu1 %v2837_v17 }
0x10b1   : > { %3735 = vmatprep.subr.bf16.mxu1 %v4389_v0 }
0x10b7   : > { %2779 = vrot.lane.b32.xlu1 %v3916_v35, %s4393_s4 }
0x10d6   : > { %v2511_v38 = vpop.f32.mrb[44].mxu1 }
0x10d7   : > { %v2517_v39 = vadd.f32 %v2511_v38, %v2468_v37  ;;  %v3689_v40 = vpop.f32.mrb[45].mxu1 }
0x10d8   : > { %v2514_v41 = vpop.f32.mrb[46].mxu1 }
0x10d9   : > { %2518 = vst.msk [vmem:[#allocation6] sm:$0xff] %vm1016_vm0, %v2517_v39  ;;  %v3690_v42 = vpop.f32.mrb[47].mxu1  ;;  %v3437_v39 = vld [vmem:[#allocation19] ss:$0 sm:$0xff] }
0x1133   : > { %v2590_v47 = vpop.xlane.xlu1 %2589 }
0x1134   : > { %v2591_v50 = vadd.f32 %v2590_v47, %v2587_v48 }
0x1136   : > { %3967 = vrcp.f32 %v2591_v50  ;;  %v3918_v50 = vld [vmem:[%s5468_s1 + $0x8] sm:$0xff]  }
0x1137   : > { %v2780_v59 = vpop.permute.xlu1 %2779 }
0x1138   : > { %v2785_v61 = vsel %vm2239_vm9, %v2780_v59, 0 }
0x1140   : > { %v3968_v55 = vpop.eup %3967 }
0x117a   : > { %v2640_v52 = vpop.f32.mrb[48].mxu1 }
0x117b   : > { %v2646_v53 = vadd.f32 %v2640_v52, %v2587_v48  ;;  %v3701_v54 = vpop.f32.mrb[49].mxu1  ;;  %v3917_v48 = vld [vmem:[%s5468_s1] sm:$0xff]   ;;  %v3920_v52 = vld [vmem:[%s5470_s19 + $0x8] sm:$0xff]   ;;  %s5476_s1 = sld [smem:[#allocation61_spill]] }
0x117c   : > { %v2643_v36 = vpop.f32.mrb[50].mxu1 }
0x117d   : > { %v2648_v56 = vmul.f32 %v3968_v55, %v2646_v53  ;;  %v3702_v57 = vpop.f32.mrb[51].mxu1 }
0x117f   : > { %v2650_v60 = vpack.c.bf16 %v2648_v56, %v2648_v56 }
0x1181   : > { %3706 = vmatmul.mubr.msk.bf16.vlgmr.msra.gmra.mrb[52].mxu0 %vm1341_vm3, %v2650_v60 }
0x1182   : > { %3716 = vmatpush3.bf16.msra.mxu0 %v2785_v61  ;;  %v2753_v62 = vpop.f32.mrb[52].mxu1  ;;  %3717 = vmatprep.mubr.msk.bf16.mxu0 %vm4390_vm1, %v4389_v0 }
0x1183   : > { %v2754_v63 = vadd.f32 %v5140_v3, %v2753_v62  ;;  %v3713_v49 = vpop.f32.mrb[53].mxu1  ;;  %3727 = vmatprep.subr.bf16.mxu0 %v4389_v0  ;;  %v2649_v3 = vld [vmem:[#allocation6] sm:$0xff] }
0x1184   : > { %v2756_v51 = vpop.f32.mrb[54].mxu1  ;;  %v3438_v62 = vld [vmem:[#allocation21] ss:$0 sm:$0xff]  ;;  %v3439_v49 = vld [vmem:[#allocation22] ss:$0 sm:$0xff] }
0x1185   : > { %v3714_v2 = vpop.f32.mrb[55].mxu1  ;;  %v2759_v4 = vsel %vm2215_vm10, %v2754_v63, -inf }
0x1186   : > { %2760 = vmax.xlane.f32.xlu0 %v2759_v4 }
0x1213   : > { %v2761_v1 = vpop.xlane.xlu0 %2760 }
0x1214   : > { %v2765_v5 = vsub.f32 %v2754_v63, %v2761_v1  ;;  %v2762_v18 = vsub.f32 -inf, %v2761_v1  ;;  %v3921_v1 = vld [vmem:[%s5470_s19 + $0x10] sm:$0xff]  }
0x1216   : > { %v2766_v6 = vmul.f32 1.442695, %v2765_v5  ;;  %v2763_v19 = vmul.f32 1.442695, %v2762_v18  ;;  %v3922_v5 = vld [vmem:[%s5470_s19 + $0x18] sm:$0xff]  }
0x1218   : > { %3969 = vpow2.f32 %v2766_v6  ;;  %v3440_v6 = vld [vmem:[%s5471_s25] ss:$0 sm:$0xff]  ;;  %s3453_s25 = sshll.u32 %s4369_s30, 6  ;;  %s4394_s30 = smov [#allocation24]  }
0x1219   : > { %3971 = vpow2.f32 %v2763_v19  ;;  %s5277_s5 = scalar_lea.hbm %s5476_s1, %s3453_s25  ;;  %s4275_s17 = sshll.u32 %s4394_s30, 4  ;;  %s4276_s17 = int_to_ptr.vmem [resolvable:$false] %s4275_s17 }
0x1222   : > { %v3970_v7 = vpop.eup %3969 }
0x1223   : > { %v2769_v8 = vsel %vm2215_vm10, %v3970_v7, 0.0  ;;  %v2773_v9 = vpack.c.bf16 %v3970_v7, %v3970_v7  ;;  %v3972_v20 = vpop.eup %3971 }
0x1224   : > { %2770 = vadd.xlane.f32.xlu0 %v2769_v8  ;;  %v2768_v22 = vmul.f32 0.0, %v3972_v20 }
0x1225   : > { %3718 = vmatmul.mubr.msk.bf16.vlgmr.msra.gmra.mrb[56].mxu0 %vm2215_vm10, %v2773_v9 }
0x1226   : > { %3731 = vmatprep.mubr.msk.bf16.mxu0 %vm4390_vm1, %v4389_v0  ;;  %3728 = vmatpush3.bf16.msra.mxu0 %v3917_v48 }
0x1227   : > { %3729 = vmatprep.subr.bf16.mxu0 %v4389_v0 }
0x122a   : > { %3730 = vmatpush3.bf16.msra.mxu0 %v3918_v50 }
0x1254   : > { %v2692_v10 = vpop.f32.mrb[52].mxu0 }
0x1255   : > { %v2698_v12 = vadd.f32 %v2692_v10, %v2649_v3  ;;  %v3707_v13 = vpop.f32.mrb[53].mxu0 }
0x1256   : > { %v2695_v14 = vpop.f32.mrb[54].mxu0 }
0x1257   : > { %2699 = vst.msk [vmem:[#allocation6] sm:$0xff] %vm1016_vm0, %v2698_v12  ;;  %v3708_v15 = vpop.f32.mrb[55].mxu0 }
0x125e   : > { %v2830_v32 = vld [vmem:[#allocation6] sm:$0xff] }
0x12b1   : > { %v2771_v21 = vpop.xlane.xlu0 %2770 }
0x12b2   : > { %v2772_v23 = vadd.f32 %v2771_v21, %v2768_v22 }
0x12b4   : > { %3973 = vrcp.f32 %v2772_v23 }
0x12be   : > { %v3974_v27 = vpop.eup %3973 }
0x12f8   : > { %v2821_v24 = vpop.f32.mrb[56].mxu0 }
0x12f9   : > { %v2827_v25 = vadd.f32 %v2821_v24, %v2768_v22  ;;  %v3719_v26 = vpop.f32.mrb[57].mxu0 }
0x12fa   : > { %v2824_v28 = vpop.f32.mrb[58].mxu0 }
0x12fb   : > { %v2829_v29 = vmul.f32 %v3974_v27, %v2827_v25  ;;  %v3720_v30 = vpop.f32.mrb[59].mxu0 }
0x12fd   : > { %v2831_v31 = vpack.c.bf16 %v2829_v29, %v2829_v29 }
0x12ff   : > { %3724 = vmatmul.mubr.msk.bf16.vlgmr.msra.gmra.mrb[56].mxu1 %vm1341_vm3, %v2831_v31 }
0x1300   : > { %3743 = vmatprep.mubr.msk.bf16.mxu1 %vm4390_vm1, %v4389_v0 }
0x13d2   : > { %v2873_v33 = vpop.f32.mrb[56].mxu1 }
0x13d3   : > { %v2879_v34 = vadd.f32 %v2873_v33, %v2830_v32  ;;  %v3725_v35 = vpop.f32.mrb[57].mxu1 }
0x13d4   : > { %v2876_v37 = vpop.f32.mrb[58].mxu1  ;;  %v3450_v35 = vld [vmem:[%s5473_s16] ss:$0 sm:$0xff]  ;;  %s4277_s16 = scalar_lea.vmem %s4276_s17, 128 }
0x13d5   : > { %2880 = vst.msk [vmem:[#allocation6] sm:$0xff] %vm1016_vm0, %v2879_v34  ;;  %v3726_v38 = vpop.f32.mrb[59].mxu1 }
0x13d6   : > { %v3451_v38 = vld [vmem:[%s5475_s26] ss:$0 sm:$0xff] }
0x13dc   : > { %v2881_v40 = vld [vmem:[#allocation6] sm:$0xff] }
0x13dd   : > { %v2889_v41 = vadd.f32 %v3437_v39, %v2881_v40 }
0x13df   : > { %v2890_v42 = vadd.f32 %v2889_v41, %v5121_v58  ;;  %v3919_v58 = vld [vmem:[%s5469_s29] sm:$0xff]   ;;  %s3134_s29 = sshll.u32 %s988_s23, 4  ;;  %s5279_s29 = int_to_ptr.vmem [resolvable:$true] %s3134_s29 }
0x13e0   : > { %3736 = vmatpush3.bf16.msra.mxu1 %v3919_v58  ;;  %s4271_s4 = scalar_lea.vmem %s5279_s29, 64  ;;  %p4278_p11 = scmp.lt.s32.totalorder %s5279_s29, %s4276_s17 }
0x13e1   : > { %v2893_v11 = vsel %vm1016_vm0, %v2890_v42, 0.0  ;;  %3737 = vmatprep.subr.bf16.mxu1 %v4389_v0  ;;  %p4272_p10 = scmp.ne.s32.totalorder %s5279_s29, %s4271_s4  ;;  %p4279_p5 = scmp.lt.s32.totalorder %s4277_s16, %s4271_s4 }
0x13e2   : > { %2894 = vadd.xlane.f32.xlu0 %v2893_v11 }
0x13e3   : > { %p4273_p12 = pnand %p4272_p10, %p5477_p3  ;;  %p4280_p13 = por %p4279_p5, %p4278_p11 }
0x13e4   : > { %3738 = vmatpush3.bf16.msra.mxu1 %v3920_v52 }
0x13e5   : > { %3739 = vmatprep.subr.bf16.mxu1 %v4389_v0  ;;  %p4274_p9 = pneg %p4273_p12 }
0x13e7   : > { %p4281_p8 = pnand %p4280_p13, %p4274_p9 }
0x13e8   : > { %3740 = vmatpush3.bf16.msra.mxu1 %v3921_v1 }
0x13e9   : > { %3741 = vmatprep.subr.bf16.mxu1 %v4389_v0  ;;  %v3444_v0 = vld [vmem:[%s5472_s20] ss:$0 sm:$0xff] }
0x13ec   : > { %3742 = vmatpush3.bf16.msra.mxu1 %v3922_v5 }
0x146f   : > { %v2895_v43 = vpop.xlane.xlu0 %2894 }
0x1470   : > { %v2896_v44 = vmul.f32 0.03125, %v2895_v43 }
0x1472   : > { %v2897_v45 = vsub.f32 %v2890_v42, %v2896_v44 }
0x1474   : > { %v2898_v46 = vmul.f32 %v2897_v45, %v2897_v45 }
0x1476   : > { %v2899_v47 = vsel %vm1016_vm0, %v2898_v46, 0.0 }
0x1477   : > { %2900 = vadd.xlane.f32.xlu1 %v2899_v47 }
0x1504   : > { %v2901_v53 = vpop.xlane.xlu1 %2900 }
0x1505   : > { %v2902_v54 = vmul.f32 0.032258064, %v2901_v53 }
0x1507   : > { %3975 = vrsqrt.f32 %v2902_v54  ;;  %vm2905_vm11 = vcmp.eq.f32.partialorder %v2902_v54, inf  ;;  %v2908_v56 = vand.u32 2147483648, %v2902_v54  ;;  %vm2907_vm12 = vcmp.eq.f32.partialorder %v2902_v54, 0.0 }
0x1511   : > { %v3976_v55 = vpop.eup %3975 }
0x1512   : > { %v2904_v36 = vmul.f32 %v3976_v55, %v2902_v54 }
0x1514   : > { %v2906_v57 = vsel %vm2905_vm11, %v2902_v54, %v2904_v36 }
0x1515   : > { %v2909_v59 = vsel %vm2907_vm12, %v2908_v56, %v2906_v57 }
0x1516   : > { %v2910_v60 = vadd.f32 0.001, %v2909_v59 }
0x1518   : > { %3977 = vrcp.f32 %v2910_v60 }
0x1522   : > { %v3978_v61 = vpop.eup %3977 }
0x1523   : > { %v2912_v63 = vmul.f32 %v3978_v61, %v2897_v45 }
0x1525   : > { %v2919_v51 = vmul.f32 %v3438_v62, %v2912_v63 }
0x1527   : > { %v2926_v2 = vadd.f32 %v3439_v49, %v2919_v51 }
0x1529   : > { %v2927_v4 = vpack.c.bf16 %v2926_v2, %v2926_v2 }
0x152b   : > { %3732 = vmatmul.mubr.msk.bf16.vlgmr.msra.gmra.mrb[60].mxu0 %vm1016_vm0, %v2927_v4 }
0x15fe   : > { %v2988_v7 = vpop.f32.mrb[60].mxu0 }
0x15ff   : > { %v2989_v8 = vadd.f32 %v3440_v6, %v2988_v7  ;;  %v3733_v9 = vpop.f32.mrb[61].mxu0 }
0x1600   : > { %v2991_v3 = vpop.f32.mrb[62].mxu0 }
0x1601   : > { %v2994_v10 = vmax.f32 %v2989_v8, 0.0  ;;  %v3734_v12 = vpop.f32.mrb[63].mxu0 }
0x1603   : > { %v2995_v13 = vpack.c.bf16 %v2994_v10, %v2994_v10 }
0x1605   : > { %3744 = vmatmul.mubr.msk.bf16.vlgmr.msra.gmra.mrb[60].mxu1 %vm3035_vm13, %v2995_v13 }
0x16d8   : > { %v3073_v14 = vpop.f32.mrb[60].mxu1 }
0x16d9   : > { %v3074_v15 = vadd.f32 %v3444_v0, %v3073_v14  ;;  %v3745_v16 = vpop.f32.mrb[61].mxu1 }
0x16da   : > { %v3076_v17 = vpop.f32.mrb[62].mxu1 }
0x16db   : > { %v3746_v18 = vpop.f32.mrb[63].mxu1  ;;  %v3079_v19 = vadd.f32 %v3074_v15, %v2926_v2 }
0x16dd   : > { %v3082_v20 = vsel %vm1016_vm0, %v3079_v19, 0.0 }
0x16de   : > { %3083 = vadd.xlane.f32.xlu0 %v3082_v20 }
0x176b   : > { %v3084_v21 = vpop.xlane.xlu0 %3083 }
0x176c   : > { %v3085_v22 = vmul.f32 0.03125, %v3084_v21 }
0x176e   : > { %v3086_v23 = vsub.f32 %v3079_v19, %v3085_v22 }
0x1770   : > { %v3087_v24 = vmul.f32 %v3086_v23, %v3086_v23 }
0x1772   : > { %v3088_v25 = vsel %vm1016_vm0, %v3087_v24, 0.0 }
0x1773   : > { %3089 = vadd.xlane.f32.xlu0 %v3088_v25 }
0x1800   : > { %v3090_v26 = vpop.xlane.xlu0 %3089 }
0x1801   : > { %v3091_v27 = vmul.f32 0.032258064, %v3090_v26 }
0x1803   : > { %3979 = vrsqrt.f32 %v3091_v27  ;;  %vm3094_vm14 = vcmp.eq.f32.partialorder %v3091_v27, inf  ;;  %v3097_v30 = vand.u32 2147483648, %v3091_v27  ;;  %vm3096_vm15 = vcmp.eq.f32.partialorder %v3091_v27, 0.0 }
0x180d   : > { %v3980_v28 = vpop.eup %3979 }
0x180e   : > { %v3093_v29 = vmul.f32 %v3980_v28, %v3091_v27 }
0x1810   : > { %v3095_v31 = vsel %vm3094_vm14, %v3091_v27, %v3093_v29 }
0x1811   : > { %v3098_v32 = vsel %vm3096_vm15, %v3097_v30, %v3095_v31 }
0x1812   : > { %v3099_v33 = vadd.f32 0.001, %v3098_v32 }
0x1814   : > { %3981 = vrcp.f32 %v3099_v33 }
0x181e   : > { %v3982_v34 = vpop.eup %3981 }
0x181f   : > { %v3101_v37 = vmul.f32 %v3982_v34, %v3086_v23 }
0x1821   : > { %v3108_v39 = vmul.f32 %v3450_v35, %v3101_v37 }
0x1823   : > { %v3115_v40 = vadd.f32 %v3451_v38, %v3108_v39 }
0x1825   : > { %v3116_v41 = vpack.c.bf16 %v3115_v40, %v3115_v40 }
0x1827   : > { %3118 = vst.msk [vmem:[%s988_s23] sm:$0xf] %vm1061_vm2, %v3116_v41 }
0x1828   : > { %4284 = shalt.err (!%p4281_p8)
}
0x1829   : > { %s4285_s28 = scalar_lea.hbm %s5277_s5, 64  ;;  %s4289_s10 = scalar_lea.hbm %s5476_s1, 128 }
0x182a   : > { %p4286_p1 = scmp.ne.s32.totalorder %s5277_s5, %s4285_s28  ;;  %p4290_p4 = scmp.lt.u32.totalorder %s5277_s5, %s5476_s1 }
0x182b   : > { %p4291_p0 = scmp.lt.u32.totalorder %s4289_s10, %s4285_s28  ;;  %p4293_p10 = scmp.lt.u32.totalorder %s4285_s28, %s5277_s5 }
0x182c   : > { %p4287_p2 = pnand %p4286_p1, %p5477_p3 }
0x182d   : > { %p4292_p7 = por %p4291_p0, %p4290_p4 }
0x182e   : > { %p4288_p6 = pneg %p4287_p2 }
0x182f   : > { %p4294_p12 = por %p4293_p10, %p4292_p7 }
0x1831   : > { %p4295_p9 = pnand %p4294_p12, %p4288_p6 }
0x1833   : > { %4298 = shalt.err (!%p4295_p9)
}
0x1834   : > { %3779 = dma.vmem_to_hbm [thread:$0]  (%p5477_p3), %s5279_s29, 64, %s5277_s5, %s3120_s24  }
0x1835 PF: > { %s5478_s23 = sld [smem:[#allocation33_spill]]  ;;  %s5479_s20 = sld [smem:[#allocation38_spill]] }
0x1836   : > { %p5481_p5 = scmp.ge.s32.totalorder %s4377_s3, 2 }
0x183b   : > { %s3146_s4 = sand.u32 1, %s5478_s23   ;;  %p5480_p11 = scmp.ne.s32.totalorder %s5479_s20, 0 }
0x183c   : > { %s3147_s30 = scalar_lea.sflag [#allocation9], %s3146_s4 }
0x183d   : > { %p3814_p13 = pnand %p5481_p5, %p5480_p11 }
0x183f   : > { %4352 = dma.done.wait (!%p3814_p13), %s3147_s30, 64  }
0x1840   : > { %4354 = vsyncadd (!%p3814_p13), %s3147_s30, 4294967232  ;;  %s50_s3 = sadd.s32 1, %s4377_s3   ;;  %s5482_s17 = sld [smem:[#allocation34_spill]] }
0x1841   : > { %p47_p8 = scmp.ge.s32.totalorder %s50_s3, 4   ;;  %s5483_s6 = sld [smem:[#allocation37_spill]] }
0x1842   : > { %s5484_s11 = sld [smem:[#allocation35_spill]]  ;;  %s5485_s29 = smov %s4361_s2 }
0x1843   : > { %s5487_s30 = smov %s4373_s7  ;;  %49 = sbr.rel (!%p47_p8) target bundleno = 37 (0x25), region = 233 }
0x1846   : > { %s5486_s2 = smov %s5482_s17 }
0x1848   : > { %s5488_s7 = smov %s5484_s11 }
0x184a   :  { %3152 = vsyncpa [#allocation8], 1 }
0x184b   :  { %3154 = vsyncpa [#allocation8 + $0x1], 1 }
0x184c   :  { %3155 = vsyncpa [#allocation11], 1 }
0x184d   :  { %3157 = vsyncpa [#allocation11 + $0x1], 1 }
0x184e   :  { %3158 = vsyncpa [#allocation14], 1 }
0x184f   :  { %3160 = vsyncpa [#allocation14 + $0x1], 1 }
0x1850   :  { %3161 = vsyncpa [#allocation17], 1 }
0x1851   :  { %3162 = vsyncpa [#allocation20], 1 }
0x1852   :  { %3163 = vsyncpa [#allocation23], 1 }
0x1853   :  { %3164 = vsyncpa [#allocation9], 1 }
0x1854   :  { %3166 = vsyncpa [#allocation9 + $0x1], 1 }

// kernel: tpu_custom_call.1
= control target key start
LH: loop header
LB: loop body
LE: loop exit
PB: predicated region body
PF: predicated region fallthrough
CT: control target
= control target key end

     0   :  { %s5327_s0 = inlined_call_operand.hbm [shape: bf16[2,8,32], index: 0, kind: input, shape index: {}]   ;;  %s5328_s1 = inlined_call_operand.hbm [shape: bf16[2,8,32], index: 1, kind: input, shape index: {}]   ;;  %s5329_s2 = inlined_call_operand.vmem [shape: bf16[2,12,32], index: 2, kind: input, shape index: {}]   ;;  %s5330_s3 = inlined_call_operand.hbm [shape: f32[2,1,8], index: 3, kind: input, shape index: {}]   ;;  %s5331_s4 = inlined_call_operand.hbm [shape: f32[2,1,12], index: 4, kind: input, shape index: {}]   ;;  %s5332_s5 = inlined_call_operand.vmem [shape: bf16[32,32], index: 5, kind: input, shape index: {}]   ;;  %s5333_s6 = inlined_call_operand.vmem [shape: bf16[32,32], index: 6, kind: input, shape index: {}]   ;;  %s5334_s7 = inlined_call_operand.vmem [shape: bf16[32,32], index: 7, kind: input, shape index: {}]   ;;  %s5335_s8 = inlined_call_operand.vmem [shape: bf16[32,32], index: 8, kind: input, shape index: {}]   ;;  %s5336_s9 = inlined_call_operand.hbm [shape: f32[1,32], index: 9, kind: input, shape index: {}]   ;;  %s5337_s10 = inlined_call_operand.hbm [shape: f32[1,32], index: 10, kind: input, shape index: {}]   ;;  %s5338_s11 = inlined_call_operand.hbm [shape: f32[1,32], index: 11, kind: input, shape index: {}]   ;;  %s5339_s12 = inlined_call_operand.vmem [shape: bf16[32,32], index: 12, kind: input, shape index: {}]   ;;  %s5340_s13 = inlined_call_operand.vmem [shape: bf16[32,32], index: 13, kind: input, shape index: {}]   ;;  %s5341_s14 = inlined_call_operand.vmem [shape: bf16[32,32], index: 14, kind: input, shape index: {}]   ;;  %s5342_s15 = inlined_call_operand.vmem [shape: bf16[32,32], index: 15, kind: input, shape index: {}]   ;;  %s5343_s16 = inlined_call_operand.hbm [shape: f32[1,32], index: 16, kind: input, shape index: {}]   ;;  %s5344_s17 = inlined_call_operand.hbm [shape: f32[1,32], index: 17, kind: input, shape index: {}]   ;;  %s5345_s18 = inlined_call_operand.hbm [shape: f32[1,32], index: 18, kind: input, shape index: {}]   ;;  %s5346_s19 = inlined_call_operand.vmem [shape: bf16[32,64], index: 19, kind: input, shape index: {}]   ;;  %s5347_s20 = inlined_call_operand.vmem [shape: f32[1,64], index: 20, kind: input, shape index: {}]   ;;  %s5348_s21 = inlined_call_operand.vmem [shape: bf16[64,32], index: 21, kind: input, shape index: {}]   ;;  %s5349_s22 = inlined_call_operand.vmem [shape: f32[1,32], index: 22, kind: input, shape index: {}]   ;;  %s5350_s23 = inlined_call_operand.vmem [shape: f32[1,32], index: 23, kind: input, shape index: {}]   ;;  %s5351_s24 = inlined_call_operand.vmem [shape: f32[1,32], index: 24, kind: input, shape index: {}]   ;;  %s5352_s25 = inlined_call_operand.hbm [shape: bf16[2,8,32], index: 25, kind: output, shape index: {}]  }
   0x1   :  { %5393 = sst [smem:[#allocation39_spill]] %s5327_s0 }
   0x2   :  { %5394 = sst [smem:[#allocation40_spill]] %s5328_s1 }
   0x3   :  { %5395 = sst [smem:[#allocation41_spill]] %s5329_s2 }
   0x4   :  { %5396 = sst [smem:[#allocation42_spill]] %s5330_s3 }
   0x5   :  { %5397 = sst [smem:[#allocation43_spill]] %s5331_s4 }
   0x6   :  { %5398 = sst [smem:[#allocation44_spill]] %s5332_s5 }
   0x7   :  { %5399 = sst [smem:[#allocation45_spill]] %s5333_s6 }
   0x8   :  { %5400 = sst [smem:[#allocation46_spill]] %s5334_s7 }
   0x9   :  { %5401 = sst [smem:[#allocation47_spill]] %s5335_s8 }
   0xa   :  { %5402 = sst [smem:[#allocation48_spill]] %s5336_s9 }
   0xb   :  { %5403 = sst [smem:[#allocation49_spill]] %s5337_s10 }
   0xc   :  { %5404 = sst [smem:[#allocation50_spill]] %s5338_s11 }
   0xd   :  { %5405 = sst [smem:[#allocation51_spill]] %s5339_s12 }
   0xe   :  { %5406 = sst [smem:[#allocation52_spill]] %s5342_s15 }
   0xf   :  { %5407 = sst [smem:[#allocation53_spill]] %s5343_s16 }
  0x10   :  { %5408 = sst [smem:[#allocation54_spill]] %s5344_s17 }
  0x11   :  { %5409 = sst [smem:[#allocation55_spill]] %s5346_s19 }
  0x12   :  { %5410 = sst [smem:[#allocation56_spill]] %s5347_s20 }
  0x13   :  { %5411 = sst [smem:[#allocation57_spill]] %s5348_s21 }
  0x14   :  { %5412 = sst [smem:[#allocation58_spill]] %s5349_s22 }
  0x15   :  { %5413 = sst [smem:[#allocation59_spill]] %s5350_s23 }
  0x16   :  { %5414 = sst [smem:[#allocation60_spill]] %s5351_s24 }
  0x17   :  { %5415 = sst [smem:[#allocation61_spill]] %s5352_s25 }
  0x18   :  { %30 = vsyncpa [#allocation8], 0 }
  0x19   :  { %32 = vsyncpa [#allocation8 + $0x1], 0 }
  0x1a   :  { %33 = vsyncpa [#allocation11], 0 }
  0x1b   :  { %35 = vsyncpa [#allocation11 + $0x1], 0 }
  0x1c   :  { %36 = vsyncpa [#allocation14], 0 }
  0x1d   :  { %38 = vsyncpa [#allocation14 + $0x1], 0 }
  0x1e   :  { %39 = vsyncpa [#allocation17], 0 }
  0x1f   :  { %40 = vsyncpa [#allocation20], 0 }
  0x20   :  { %41 = vsyncpa [#allocation23], 0 }
  0x21   :  { %42 = vsyncpa [#allocation9], 0 }
  0x22   :  { %44 = vsyncpa [#allocation9 + $0x1], 0  ;;  %s4525_s29 = smov 0   ;;  %s4527_s2 = smov 0  }
  0x23   :  { %s4529_s6 = smov 0   ;;  %s4531_s30 = smov 0  }
  0x24   :  { %s4533_s7 = smov 0   ;;  %s4535_s3 = smov 0  }
  0x25 LB: > { %5416 = sst [smem:[#allocation33_spill]] %s4357_s29  ;;  %s4556_s26 = sadd.s32 4294967295, %s4377_s3   ;;  %s4377_s3 = sphi %s4535_s3, %s50_s3   ;;  %s4373_s7 = sphi %s4533_s7, %s5488_s7   ;;  %s4369_s30 = sphi %s4531_s30, %s5487_s30   ;;  %s4365_s6 = sphi %s4529_s6, %s5483_s6   ;;  %s4361_s2 = sphi %s4527_s2, %s5486_s2   ;;  %s4357_s29 = sphi %s4525_s29, %s5485_s29  }
  0x26   : > { %5417 = sst [smem:[#allocation34_spill]] %s4365_s6  ;;  %p3345_p0 = scmp.ge.s32.totalorder %s4377_s3, 1 }
  0x27   : > { %p5364_p1 = scmp.eq.s32.totalorder %s4556_s26, 0  ;;  %p647_p2 = scmp.lt.s32.totalorder %s4377_s3, 3 }
  0x28   : > { %s4379_s8 = smov [#allocation15]   ;;  %s4380_s4 = smov [#allocation16]  }
  0x29   : > { %p4561_p3 = pnand %p3345_p0, %p647_p2  ;;  %s672_s27 = sshll.u32 %s4379_s8, 4  ;;  %s673_s27 = int_to_ptr.vmem [resolvable:$true] %s672_s27 }
  0x2a   : > { %s683_s28 = sshll.u32 %s4380_s4, 4  ;;  %s4381_s5 = smov [#allocation19]   ;;  %s4574_s28 = int_to_ptr.vmem [resolvable:$true] %s683_s28 }
  0x2b   : > { %s5418_s1 = scalar_select %p4561_p3, 1, 0 }
  0x2c   : > { %p3781_p5 = pneg %p4561_p3  ;;  %s717_s0 = sshll.u32 %s4381_s5, 4  ;;  %s4576_s0 = int_to_ptr.vmem [resolvable:$true] %s717_s0 }
  0x2d   : > { %s5420_s24 = sld [smem:[#allocation48_spill]] }
  0x2e   : > { %p4570_p6 = pnand %p3781_p5, %p5364_p1 }
  0x30   : > { %s5419_s9 = scalar_select %p4570_p6, 1, 0 }
  0x31   : > { %p4586_p8 = pneg %p4570_p6 }
  0x33   : > { %s3983_s23 = scalar_lea.hbm %s5420_s24, 16 }
  0x34   : > { %p3984_p7 = scmp.ne.s32.totalorder %s5420_s24, %s3983_s23  ;;  %p3990_p11 = scmp.lt.u32.totalorder %s3983_s23, %s5420_s24 }
  0x35   : > { %s5421_s4 = scalar_select %p4586_p8, 1, 0 }
  0x36   : > { %p3986_p9 = pnand %p4586_p8, %p3984_p7 }
  0x38   : > { %p3987_p10 = pneg %p3986_p9 }
  0x3a   : > { %p3992_p12 = pnand %p3990_p11, %p3987_p10 }
  0x3c   : > { %3995 = shalt.err (!%p3992_p12)
}
  0x3d   : > { %s3996_s25 = scalar_lea.vmem %s673_s27, 16  ;;  %s4003_s20 = scalar_lea.vmem %s673_s27, 32 }
  0x3e   : > { %p3997_p13 = scmp.ne.s32.totalorder %s673_s27, %s3996_s25  ;;  %p4004_p5 = scmp.lt.s32.totalorder %s673_s27, %s673_s27 }
  0x3f   : > { %p4005_p4 = scmp.lt.s32.totalorder %s4003_s20, %s3996_s25 }
  0x40   : > { %p3999_p0 = pnand %p3997_p13, %p4586_p8 }
  0x41   : > { %p4006_p1 = por %p4005_p4, %p4004_p5 }
  0x42   : > { %p4000_p2 = pneg %p3999_p0 }
  0x44   : > { %p4007_p3 = pnand %p4006_p1, %p4000_p2 }
  0x46   : > { %4010 = shalt.err (!%p4007_p3)
}
  0x47   : > { %3784 = dma.hbm_to_vmem [thread:$0]  (!%p4570_p6), %s5420_s24, 16, %s673_s27, [#allocation14]  }
  0x48   : > { %s5422_s10 = sld [smem:[#allocation49_spill]] }
  0x4e   : > { %s4011_s5 = scalar_lea.hbm %s5422_s10, 16 }
  0x4f   : > { %p4012_p7 = scmp.ne.s32.totalorder %s5422_s10, %s4011_s5  ;;  %p4018_p1 = scmp.lt.u32.totalorder %s4011_s5, %s5422_s10 }
  0x51   : > { %p4014_p9 = pnand %p4012_p7, %p4586_p8 }
  0x53   : > { %p4015_p4 = pneg %p4014_p9 }
  0x55   : > { %p4020_p3 = pnand %p4018_p1, %p4015_p4 }
  0x57   : > { %4023 = shalt.err (!%p4020_p3)
}
  0x58   : > { %s4024_s27 = scalar_lea.vmem %s4574_s28, 16  ;;  %s4031_s15 = scalar_lea.vmem %s4574_s28, 32 }
  0x59   : > { %p4025_p10 = scmp.ne.s32.totalorder %s4574_s28, %s4024_s27  ;;  %p4032_p13 = scmp.lt.s32.totalorder %s4574_s28, %s4574_s28 }
  0x5a   : > { %p4033_p0 = scmp.lt.s32.totalorder %s4031_s15, %s4024_s27 }
  0x5b   : > { %p4027_p11 = pnand %p4025_p10, %p4586_p8 }
  0x5c   : > { %p4034_p2 = por %p4033_p0, %p4032_p13 }
  0x5d   : > { %p4028_p12 = pneg %p4027_p11 }
  0x5f   : > { %p4035_p5 = pnand %p4034_p2, %p4028_p12 }
  0x61   : > { %4038 = shalt.err (!%p4035_p5)
}
  0x62   : > { %3787 = dma.hbm_to_vmem [thread:$0]  (!%p4570_p6), %s5422_s10, 16, %s4574_s28, [#allocation17]  }
  0x63   : > { %s5423_s16 = sld [smem:[#allocation53_spill]] }
  0x69   : > { %s4039_s23 = scalar_lea.hbm %s5423_s16, 16 }
  0x6a   : > { %p4040_p7 = scmp.ne.s32.totalorder %s5423_s16, %s4039_s23  ;;  %p4046_p1 = scmp.lt.u32.totalorder %s4039_s23, %s5423_s16 }
  0x6c   : > { %p4042_p9 = pnand %p4040_p7, %p4586_p8 }
  0x6e   : > { %p4043_p4 = pneg %p4042_p9 }
  0x70   : > { %p4048_p3 = pnand %p4046_p1, %p4043_p4 }
  0x72   : > { %4051 = shalt.err (!%p4048_p3)
}
  0x73   : > { %s4052_s28 = scalar_lea.vmem %s4576_s0, 16  ;;  %s4059_s15 = scalar_lea.vmem %s4576_s0, 32 }
  0x74   : > { %p4053_p10 = scmp.ne.s32.totalorder %s4576_s0, %s4052_s28  ;;  %p4060_p13 = scmp.lt.s32.totalorder %s4576_s0, %s4576_s0 }
  0x75   : > { %p4061_p0 = scmp.lt.s32.totalorder %s4059_s15, %s4052_s28 }
  0x76   : > { %p4055_p11 = pnand %p4053_p10, %p4586_p8 }
  0x77   : > { %p4062_p2 = por %p4061_p0, %p4060_p13 }
  0x78   : > { %p4056_p12 = pneg %p4055_p11 }
  0x7a   : > { %p4063_p5 = pnand %p4062_p2, %p4056_p12 }
  0x7c   : > { %4066 = shalt.err (!%p4063_p5)
}
  0x7d   : > { %3793 = dma.hbm_to_vmem [thread:$0]  (!%p4570_p6), %s5423_s16, 16, %s4576_s0, [#allocation20]  }
  0x7e   : > { %s3344_s8 = sadd.s32 4294967294, %s4377_s3   ;;  %s62_s21 = sadd.s32 1, %s4373_s7 }
  0x7f   : > { %s71_s23 = sadd.s32 1, %s4365_s6  ;;  %p64_p7 = scmp.ge.s32.totalorder %s62_s21, 2 }
  0x80   : > { %p78_p9 = scmp.ne.s32.totalorder %s4365_s6, %s4361_s2  ;;  %p79_p4 = scmp.eq.s32.totalorder %s4377_s3, 0 }
  0x81   : > { %p84_p1 = scmp.ne.s32.totalorder %s4361_s2, %s4357_s29  ;;  %s5490_s21 = smov (%p64_p7, %s62_s21), 0 }
  0x82   : > { %5424 = sst [smem:[#allocation35_spill]] %s5490_s21  ;;  %p4660_p3 = por %p79_p4, %p78_p9 }
  0x83   : > { %p5426_p10 = scmp.eq.s32.totalorder %s4556_s26, 0  ;;  %s66_s25 = ssub.s32 %s4373_s7, %s5490_s21 }
  0x84   : > { %p634_p12 = scmp.eq.s32.totalorder %s4556_s26, 1  ;;  %p69_p13 = scmp.eq.s32.totalorder %s66_s25, 0 }
  0x85   : > { %p4666_p11 = por %p5426_p10, %p84_p1  ;;  %p640_p0 = scmp.eq.s32.totalorder %s3344_s8, 1 }
  0x86   : > { %p4673_p2 = por %p634_p12, %p78_p9  ;;  %p3823_p5 = scmp.lt.s32.totalorder %s4377_s3, 2 }
  0x87   : > { %s5427_s0 = scalar_select %p4666_p11, 1, 0 }
  0x88   : > { %s5428_s20 = scalar_select %p4673_p2, 1, 0 }
  0x89   : > { %s4679_s27 = scalar_select %p69_p13, %s4365_s6, %s71_s23  }
  0x8a   : > { %5429 = sst [smem:[#allocation36_spill]] %s5428_s20  ;;  %p4681_p7 = por %p640_p0, %p84_p1 }
  0x8b   : > { %5430 = sst [smem:[#allocation37_spill]] %s4679_s27  ;;  %s4686_s15 = sand.u32 1, %s4365_s6  }
  0x8c   : > { %s5431_s28 = scalar_select %p4681_p7, 1, 0 }
  0x8d   : > { %s5372_s19 = sshll.u32 %s4686_s15, 2  ;;  %s5373_s22 = sshll.u32 %s4373_s7, 6 }
  0x8e   : > { %5432 = sst [smem:[#allocation38_spill]] %s5431_s28  ;;  %p4692_p4 = pnand %p3823_p5, %p4660_p3 }
  0x8f   : > { %s5375_s25 = sand.u32 1, %s4377_s3   ;;  %s5434_s16 = sld [smem:[#allocation40_spill]] }
  0x90   : > { %s5433_s8 = scalar_select %p4692_p4, 1, 0 }
  0x91   : > { %s791_s21 = scalar_lea.vmem [#allocation10], %s5372_s19  ;;  %s4710_s5 = scalar_lea.sflag [#allocation11], %s5375_s25 }
  0x92   : > { %s798_s27 = sshll.u32 %s791_s21, 4  ;;  %p4716_p1 = pneg %p4692_p4  ;;  %s4706_s27 = int_to_ptr.vmem [resolvable:$true] %s798_s27 }
  0x94   : > { %s5435_s28 = scalar_select %p4716_p1, 1, 0 }
  0x95   : > { %s4702_s24 = scalar_lea.hbm %s5434_s16, %s5373_s22  ;;  %s4072_s21 = scalar_lea.hbm %s5434_s16, 128 }
  0x96   : > { %s4067_s6 = scalar_lea.hbm %s4702_s24, 64  ;;  %p4073_p12 = scmp.lt.u32.totalorder %s4702_s24, %s5434_s16 }
  0x97   : > { %p4068_p9 = scmp.ne.s32.totalorder %s4702_s24, %s4067_s6  ;;  %p4074_p13 = scmp.lt.u32.totalorder %s4072_s21, %s4067_s6 }
  0x98   : > { %p4076_p5 = scmp.lt.u32.totalorder %s4067_s6, %s4702_s24 }
  0x99   : > { %p4070_p3 = pnand %p4716_p1, %p4068_p9  ;;  %p4075_p0 = por %p4074_p13, %p4073_p12 }
  0x9b   : > { %p4071_p10 = pneg %p4070_p3  ;;  %p4077_p7 = por %p4076_p5, %p4075_p0 }
  0x9d   : > { %p4078_p2 = pnand %p4077_p7, %p4071_p10 }
  0x9f   : > { %4081 = shalt.err (!%p4078_p2)
}
  0xa0   : > { %s4082_s25 = scalar_lea.vmem %s4706_s27, 64  ;;  %s4382_s10 = smov [#allocation10]  }
  0xa1   : > { %p4083_p9 = scmp.ne.s32.totalorder %s4706_s27, %s4082_s25  ;;  %s4087_s23 = sshll.u32 %s4382_s10, 4  ;;  %s4088_s23 = int_to_ptr.vmem [resolvable:$false] %s4087_s23 }
  0xa2   : > { %s4089_s19 = scalar_lea.vmem %s4088_s23, 128  ;;  %p4090_p6 = scmp.lt.s32.totalorder %s4706_s27, %s4088_s23 }
  0xa3   : > { %p4085_p3 = pnand %p4083_p9, %p4716_p1  ;;  %p4091_p8 = scmp.lt.s32.totalorder %s4089_s19, %s4082_s25 }
  0xa5   : > { %p4086_p11 = pneg %p4085_p3  ;;  %p4092_p12 = por %p4091_p8, %p4090_p6 }
  0xa7   : > { %p4093_p13 = pnand %p4092_p12, %p4086_p11 }
  0xa9   : > { %4096 = shalt.err (!%p4093_p13)
}
  0xaa   : > { %3806 = dma.hbm_to_vmem [thread:$0]  (!%p4692_p4), %s4702_s24, 64, %s4706_s27, %s4710_s5  }
  0xab   : > { %s4383_s6 = smov [#allocation18]   ;;  %s4384_s21 = smov [#allocation21]  }
  0xac   : > { %s694_s22 = sshll.u32 %s4383_s6, 4  ;;  %s728_s16 = sshll.u32 %s4384_s21, 4  ;;  %s695_s22 = int_to_ptr.vmem [resolvable:$true] %s694_s22  ;;  %s729_s16 = int_to_ptr.vmem [resolvable:$true] %s728_s16 }
  0xad   : > { %s5436_s11 = sld [smem:[#allocation50_spill]]  ;;  %p5437_p8 = scmp.ne.s32.totalorder %s5421_s4, 0 }
  0xb3   : > { %s4097_s23 = scalar_lea.hbm %s5436_s11, 16 }
  0xb4   : > { %p4098_p6 = scmp.ne.s32.totalorder %s5436_s11, %s4097_s23  ;;  %p4104_p7 = scmp.lt.u32.totalorder %s4097_s23, %s5436_s11 }
  0xb6   : > { %p4100_p11 = pnand %p4098_p6, %p5437_p8 }
  0xb8   : > { %p4101_p2 = pneg %p4100_p11 }
  0xba   : > { %p4106_p10 = pnand %p4104_p7, %p4101_p2 }
  0xbc   : > { %4109 = shalt.err (!%p4106_p10)
}
  0xbd   : > { %s4110_s24 = scalar_lea.vmem %s695_s22, 16  ;;  %s4117_s29 = scalar_lea.vmem %s695_s22, 32 }
  0xbe   : > { %p4111_p0 = scmp.ne.s32.totalorder %s695_s22, %s4110_s24  ;;  %p4118_p3 = scmp.lt.s32.totalorder %s695_s22, %s695_s22 }
  0xbf   : > { %p4119_p12 = scmp.lt.s32.totalorder %s4117_s29, %s4110_s24 }
  0xc0   : > { %p4113_p5 = pnand %p4111_p0, %p5437_p8 }
  0xc1   : > { %p4120_p13 = por %p4119_p12, %p4118_p3 }
  0xc2   : > { %p4114_p9 = pneg %p4113_p5 }
  0xc4   : > { %p4121_p4 = pnand %p4120_p13, %p4114_p9 }
  0xc6   : > { %4124 = shalt.err (!%p4121_p4)
}
  0xc7   : > { %p5438_p6 = scmp.ne.s32.totalorder %s5419_s9, 0  ;;  %s5439_s17 = sld [smem:[#allocation54_spill]] }
  0xc9   : > { %3790 = dma.hbm_to_vmem [thread:$0]  (!%p5438_p6), %s5436_s11, 16, %s695_s22, [#allocation17]  }
  0xcd   : > { %s4125_s21 = scalar_lea.hbm %s5439_s17, 16 }
  0xce   : > { %p4126_p11 = scmp.ne.s32.totalorder %s5439_s17, %s4125_s21  ;;  %p4132_p4 = scmp.lt.u32.totalorder %s4125_s21, %s5439_s17 }
  0xd0   : > { %p4128_p2 = pnand %p4126_p11, %p5437_p8 }
  0xd2   : > { %p4129_p7 = pneg %p4128_p2 }
  0xd4   : > { %p4134_p10 = pnand %p4132_p4, %p4129_p7 }
  0xd6   : > { %4137 = shalt.err (!%p4134_p10)
}
  0xd7   : > { %s4138_s24 = scalar_lea.vmem %s729_s16, 16  ;;  %s4145_s22 = scalar_lea.vmem %s729_s16, 32 }
  0xd8   : > { %p4139_p0 = scmp.ne.s32.totalorder %s729_s16, %s4138_s24  ;;  %p4146_p3 = scmp.lt.s32.totalorder %s729_s16, %s729_s16 }
  0xd9   : > { %p4147_p12 = scmp.lt.s32.totalorder %s4145_s22, %s4138_s24 }
  0xda   : > { %p4141_p5 = pnand %p4139_p0, %p5437_p8 }
  0xdb   : > { %p4148_p13 = por %p4147_p12, %p4146_p3 }
  0xdc   : > { %p4142_p9 = pneg %p4141_p5 }
  0xde   : > { %p4149_p1 = pnand %p4148_p13, %p4142_p9 }
  0xe0   : > { %4152 = shalt.err (!%p4149_p1)
}
  0xe1   : > { %3796 = dma.hbm_to_vmem [thread:$0]  (!%p5438_p6), %s5439_s17, 16, %s729_s16, [#allocation20]  }
  0xe2   : > { %s4385_s6 = smov [#allocation22]   ;;  %s4153_s10 = scalar_lea.hbm %s5345_s18, 16 }
  0xe3   : > { %s739_s12 = sshll.u32 %s4385_s6, 4  ;;  %p4154_p11 = scmp.ne.s32.totalorder %s5345_s18, %s4153_s10  ;;  %s740_s12 = int_to_ptr.vmem [resolvable:$true] %s739_s12 }
  0xe4   : > { %p4160_p7 = scmp.lt.u32.totalorder %s4153_s10, %s5345_s18 }
  0xe5   : > { %p4156_p1 = pnand %p4154_p11, %p5437_p8 }
  0xe7   : > { %p4157_p2 = pneg %p4156_p1 }
  0xe9   : > { %p4162_p4 = pnand %p4160_p7, %p4157_p2 }
  0xeb   : > { %4165 = shalt.err (!%p4162_p4)
}
  0xec   : > { %s4166_s16 = scalar_lea.vmem %s740_s12, 16  ;;  %s4173_s22 = scalar_lea.vmem %s740_s12, 32 }
  0xed   : > { %p4167_p10 = scmp.ne.s32.totalorder %s740_s12, %s4166_s16  ;;  %p4174_p9 = scmp.lt.s32.totalorder %s740_s12, %s740_s12 }
  0xee   : > { %p4175_p3 = scmp.lt.s32.totalorder %s4173_s22, %s4166_s16 }
  0xef   : > { %p4169_p0 = pnand %p4167_p10, %p5437_p8 }
  0xf0   : > { %p4176_p12 = por %p4175_p3, %p4174_p9 }
  0xf1   : > { %p4170_p5 = pneg %p4169_p0 }
  0xf3   : > { %p4177_p13 = pnand %p4176_p12, %p4170_p5 }
  0xf5   : > { %4180 = shalt.err (!%p4177_p13)
}
  0xf6   : > { %3799 = dma.hbm_to_vmem [thread:$0]  (!%p5438_p6), %s5345_s18, 16, %s740_s12, [#allocation23]  }
  0xf7   : > { %s5440_s6 = sshll.u32 %s4373_s7, 6  ;;  %s5441_s21 = sld [smem:[#allocation39_spill]] }
  0xf8   : > { %s5442_s23 = sshll.u32 %s4686_s15, 2  ;;  %s769_s19 = scalar_lea.sflag [#allocation8], %s4686_s15 }
  0xf9   : > { %s772_s9 = scalar_lea.vmem [#allocation7], %s5442_s23  ;;  %p5443_p11 = scmp.ne.s32.totalorder %s5435_s28, 0 }
  0xfa   : > { %s780_s25 = sshll.u32 %s772_s9, 4  ;;  %s781_s25 = int_to_ptr.vmem [resolvable:$true] %s780_s25 }
  0xfd   : > { %s4799_s10 = scalar_lea.hbm %s5441_s21, %s5440_s6  ;;  %s4186_s22 = scalar_lea.hbm %s5441_s21, 128 }
  0xfe   : > { %s4181_s24 = scalar_lea.hbm %s4799_s10, 64  ;;  %p4187_p2 = scmp.lt.u32.totalorder %s4799_s10, %s5441_s21 }
  0xff   : > { %p4182_p8 = scmp.ne.s32.totalorder %s4799_s10, %s4181_s24  ;;  %p4188_p7 = scmp.lt.u32.totalorder %s4186_s22, %s4181_s24 }
 0x100   : > { %p4190_p10 = scmp.lt.u32.totalorder %s4181_s24, %s4799_s10 }
 0x101   : > { %p4184_p1 = pnand %p4182_p8, %p5443_p11  ;;  %p4189_p4 = por %p4188_p7, %p4187_p2 }
 0x103   : > { %p4185_p6 = pneg %p4184_p1  ;;  %p4191_p0 = por %p4190_p10, %p4189_p4 }
 0x105   : > { %p4192_p5 = pnand %p4191_p0, %p4185_p6 }
 0x107   : > { %4195 = shalt.err (!%p4192_p5)
}
 0x108   : > { %s4196_s6 = scalar_lea.vmem %s781_s25, 64  ;;  %s4386_s4 = smov [#allocation7]  }
 0x109   : > { %p4197_p9 = scmp.ne.s32.totalorder %s781_s25, %s4196_s6  ;;  %s4201_s20 = sshll.u32 %s4386_s4, 4  ;;  %s4202_s20 = int_to_ptr.vmem [resolvable:$false] %s4201_s20 }
 0x10a   : > { %s4203_s23 = scalar_lea.vmem %s4202_s20, 128  ;;  %p4204_p13 = scmp.lt.s32.totalorder %s781_s25, %s4202_s20 }
 0x10b   : > { %p4199_p3 = pnand %p4197_p9, %p5443_p11  ;;  %p4205_p8 = scmp.lt.s32.totalorder %s4203_s23, %s4196_s6 }
 0x10d   : > { %p4200_p12 = pneg %p4199_p3  ;;  %p4206_p1 = por %p4205_p8, %p4204_p13 }
 0x10f   : > { %p4207_p2 = pnand %p4206_p1, %p4200_p12 }
 0x111   : > { %4210 = shalt.err (!%p4207_p2)
}
 0x112   : > { %p5444_p7 = scmp.ne.s32.totalorder %s5433_s8, 0  ;;  %s3357_s9 = sshll.u32 %s4373_s7, 4 }
 0x113   : > { %s816_s24 = scalar_lea.vmem [#allocation12], %s4686_s15  ;;  %s5445_s29 = sld [smem:[#allocation42_spill]] }
 0x114   : > { %3803 = dma.hbm_to_vmem [thread:$0]  (!%p5444_p7), %s4799_s10, 64, %s781_s25, %s769_s19  }
 0x115   : > { %s823_s12 = sshll.u32 %s816_s24, 4  ;;  %s824_s12 = int_to_ptr.vmem [resolvable:$true] %s823_s12 }
 0x119   : > { %s5446_s27 = smov %s5445_s29  ;;  %s821_s4 = scalar_lea.hbm %s5445_s29, %s3357_s9 }
 0x11a   : > { %s4211_s6 = scalar_lea.hbm %s821_s4, 16  ;;  %s4216_s11 = scalar_lea.hbm %s5446_s27, 32 }
 0x11b   : > { %p4212_p6 = scmp.ne.s32.totalorder %s821_s4, %s4211_s6  ;;  %p4217_p0 = scmp.lt.u32.totalorder %s821_s4, %s5446_s27 }
 0x11c   : > { %p4218_p5 = scmp.lt.u32.totalorder %s4216_s11, %s4211_s6  ;;  %p4220_p3 = scmp.lt.u32.totalorder %s4211_s6, %s821_s4 }
 0x11d   : > { %p4214_p4 = pnand %p4212_p6, %p5443_p11 }
 0x11e   : > { %p4219_p9 = por %p4218_p5, %p4217_p0 }
 0x11f   : > { %p4215_p10 = pneg %p4214_p4 }
 0x120   : > { %p4221_p12 = por %p4220_p3, %p4219_p9 }
 0x122   : > { %p4222_p13 = pnand %p4221_p12, %p4215_p10 }
 0x124   : > { %4225 = shalt.err (!%p4222_p13)
}
 0x125   : > { %s4226_s25 = scalar_lea.vmem %s824_s12, 16  ;;  %s4387_s19 = smov [#allocation12]  }
 0x126   : > { %p4227_p8 = scmp.ne.s32.totalorder %s824_s12, %s4226_s25  ;;  %s4231_s24 = sshll.u32 %s4387_s19, 4  ;;  %s4232_s24 = int_to_ptr.vmem [resolvable:$false] %s4231_s24 }
 0x127   : > { %s4233_s16 = scalar_lea.vmem %s4232_s24, 32  ;;  %p4234_p6 = scmp.lt.s32.totalorder %s824_s12, %s4232_s24 }
 0x128   : > { %p4229_p1 = pnand %p4227_p8, %p5443_p11  ;;  %p4235_p4 = scmp.lt.s32.totalorder %s4233_s16, %s4226_s25 }
 0x12a   : > { %p4230_p2 = pneg %p4229_p1  ;;  %p4236_p7 = por %p4235_p4, %p4234_p6 }
 0x12c   : > { %p4237_p0 = pnand %p4236_p7, %p4230_p2 }
 0x12e   : > { %4240 = shalt.err (!%p4237_p0)
}
 0x12f   : > { %p5447_p5 = scmp.ne.s32.totalorder %s5433_s8, 0  ;;  %s5448_s22 = sld [smem:[#allocation43_spill]] }
 0x130   : > { %s833_s6 = scalar_lea.vmem [#allocation13], %s4686_s15  ;;  %s5449_s23 = sand.u32 1, %s4377_s3  }
 0x131   : > { %3809 = dma.hbm_to_vmem [thread:$0]  (!%p5447_p5), %s821_s4, 16, %s824_s12, %s4710_s5  }
 0x132   : > { %s840_s20 = sshll.u32 %s833_s6, 4  ;;  %s831_s10 = scalar_lea.sflag [#allocation14], %s5449_s23  ;;  %s841_s20 = int_to_ptr.vmem [resolvable:$true] %s840_s20 }
 0x135   : > { %s4846_s29 = scalar_lea.hbm %s5448_s22, %s3357_s9  ;;  %s4246_s4 = scalar_lea.hbm %s5448_s22, 32 }
 0x136   : > { %s4241_s25 = scalar_lea.hbm %s4846_s29, 16  ;;  %p4247_p3 = scmp.lt.u32.totalorder %s4846_s29, %s5448_s22 }
 0x137   : > { %p4242_p7 = scmp.ne.s32.totalorder %s4846_s29, %s4241_s25  ;;  %p4248_p12 = scmp.lt.u32.totalorder %s4246_s4, %s4241_s25 }
 0x138   : > { %p4250_p8 = scmp.lt.u32.totalorder %s4241_s25, %s4846_s29 }
 0x139   : > { %p4244_p10 = pnand %p4242_p7, %p5443_p11  ;;  %p4249_p13 = por %p4248_p12, %p4247_p3 }
 0x13b   : > { %p4245_p9 = pneg %p4244_p10  ;;  %p4251_p1 = por %p4250_p8, %p4249_p13 }
 0x13d   : > { %p4252_p2 = pnand %p4251_p1, %p4245_p9 }
 0x13f   : > { %4255 = shalt.err (!%p4252_p2)
}
 0x140   : > { %s4256_s15 = scalar_lea.vmem %s841_s20, 16  ;;  %s4388_s24 = smov [#allocation13]  }
 0x141   : > { %p4257_p6 = scmp.ne.s32.totalorder %s841_s20, %s4256_s15  ;;  %s4261_s16 = sshll.u32 %s4388_s24, 4  ;;  %s4262_s16 = int_to_ptr.vmem [resolvable:$false] %s4261_s16 }
 0x142   : > { %s4263_s11 = scalar_lea.vmem %s4262_s16, 32  ;;  %p4264_p7 = scmp.lt.s32.totalorder %s841_s20, %s4262_s16 }
 0x143   : > { %p4259_p4 = pnand %p4257_p6, %p5443_p11  ;;  %p4265_p10 = scmp.lt.s32.totalorder %s4263_s11, %s4256_s15 }
 0x145   : > { %p4260_p0 = pneg %p4259_p4  ;;  %p4266_p5 = por %p4265_p10, %p4264_p7 }
 0x147   : > { %p4267_p3 = pnand %p4266_p5, %p4260_p0 }
 0x149   : > { %4270 = shalt.err (!%p4267_p3)
}
 0x14a   : > { %p5450_p12 = scmp.ne.s32.totalorder %s5433_s8, 0  ;;  %p5451_p9 = scmp.ne.s32.totalorder %s5418_s1, 0 }
 0x14b   : > { %s4871_s28 = sand.u32 (!%p5451_p9), 1, %s4361_s2   ;;  %p5452_p11 = scmp.ne.s32.totalorder (!%p5451_p9), %s5427_s0, 0 }
 0x14c   : > { %3812 = dma.hbm_to_vmem [thread:$0]  (!%p5450_p12), %s4846_s29, 16, %s841_s20, %s831_s10  }
 0x14d   : > { %849 = sbr.rel (%p5451_p9) target bundleno = 6197 (0x1835), region = 120  ;;  %s4874_s17 = sshll.u32 (!%p5451_p9), %s4871_s28, 2 }
 0x14e   : > { %s852_s6 = scalar_lea.sflag (!%p5451_p9), [#allocation8], %s4871_s28  ;;  %s855_s23 = scalar_lea.vmem (!%p5451_p9), [#allocation7], %s4874_s17 }
 0x154   : > { %4324 = dma.done.wait (%p5452_p11), %s852_s6, 64  }
 0x155   : > { %4326 = vsyncadd (%p5452_p11), %s852_s6, 4294967232  ;;  %s860_s1 = sand.u32 1, %s4556_s26   ;;  %s864_s29 = scalar_lea.vmem [#allocation10], %s4874_s17 }
 0x156   : > { %s861_s8 = scalar_lea.sflag [#allocation11], %s860_s1 }
 0x157   : > { %4328 = dma.done.wait (%p5452_p11), %s861_s8, 80  }
 0x158   : > { %4330 = vsyncadd (%p5452_p11), %s861_s8, 4294967216  ;;  %s872_s20 = scalar_lea.vmem [#allocation12], %s4871_s28  ;;  %s878_s10 = scalar_lea.sflag [#allocation14], %s860_s1 }
 0x159   : > { %s880_s25 = scalar_lea.vmem [#allocation13], %s4871_s28 }
 0x15a   : > { %4332 = dma.done.wait (%p5452_p11), %s878_s10, 16  }
 0x15b   : > { %4334 = vsyncadd (%p5452_p11), %s878_s10, 4294967280  ;;  %p5453_p5 = scmp.eq.s32.totalorder %s4556_s26, 0 }
 0x15d   : > { %4336 = dma.done.wait (%p5453_p5), [#allocation14], 16   ;;  %p5454_p13 = pmov %p5453_p5 }
 0x15e   : > { %p5455_p8 = pmov %p5453_p5 }
 0x15f   : > { %4338 = vsyncadd (%p5454_p13), [#allocation14], 4294967280 }
 0x160   : > { %4340 = dma.done.wait (%p5455_p8), [#allocation17], 32   ;;  %p5456_p1 = pmov %p5453_p5 }
 0x162   : > { %4342 = vsyncadd (%p5456_p1), [#allocation17], 4294967264  ;;  %p5457_p2 = pmov %p5456_p1 }
 0x163   : > { %p5458_p6 = pmov %p5456_p1 }
 0x164   : > { %4344 = dma.done.wait (%p5457_p2), [#allocation20], 32  }
 0x165   : > { %4346 = vsyncadd (%p5458_p6), [#allocation20], 4294967264  ;;  %p5459_p4 = pmov %p5456_p1 }
 0x166   : > { %p5460_p0 = pmov %p5456_p1 }
 0x167   : > { %4348 = dma.done.wait (%p5459_p4), [#allocation23], 16  }
 0x168   : > { %4350 = vsyncadd (%p5460_p0), [#allocation23], 4294967280  ;;  %vm1016_vm0 = vcmask 261120   ;;  %p989_p7 = scmp.lt.s32.totalorder %s4369_s30, 1  ;;  %v4389_v0 = vmov 0.0   ;;  %vm4390_vm1 = vmmov 0   ;;  %v1388_v46 = vlaneseq }
 0x169   : > { %3535 = vmatprep.subr.bf16.mxu0 %v4389_v0  ;;  %3539 = vmatprep.mubr.msk.bf16.mxu0 %vm4390_vm1, %v4389_v0  ;;  %1332 = vst.msk [vmem:[#allocation6] sm:$0xff] %vm1016_vm0, %v4389_v0  ;;  %s5461_s12 = sld [smem:[#allocation45_spill]]  ;;  %s5462_s16 = sld [smem:[#allocation41_spill]]  ;;  %v999_v3 = vld [vmem:[%s864_s29] sm:$0xf]  ;;  %v3892_v4 = vld [vmem:[%s5340_s13] sm:$0xff]  }
 0x16a   : > { %3543 = vmatprep.subr.bf16.mxu1 %v4389_v0  ;;  %3547 = vmatprep.mubr.msk.bf16.mxu1 %vm4390_vm1, %v4389_v0  ;;  %s990_s26 = scalar_select %p989_p7, %s4369_s30, 1  ;;  %v3893_v5 = vld [vmem:[%s5340_s13 + $0x8] sm:$0xff]   ;;  %v4967_v11 = vld [vmem:[%s855_s23] sm:$0xf]  ;;  %vm1061_vm2 = vcmask 257024   ;;  %vm1341_vm3 = vcmask 64512  }
 0x16b   : > { %s5463_s5 = sld [smem:[#allocation46_spill]]  ;;  %s5464_s15 = sld [smem:[#allocation44_spill]]  ;;  %v3899_v12 = vld [vmem:[%s5341_s14] sm:$0xff]   ;;  %v3900_v13 = vld [vmem:[%s5341_s14 + $0x8] sm:$0xff]   ;;  %vm1197_vm4 = vcmask 254976   ;;  %vm1415_vm5 = vcmask 1043456  }
 0x16c   : > { %s3456_s4 = sshll.u32 %s990_s26, 3  ;;  %s4391_s23 = smov 120   ;;  %v1389_v47 = vshrl.u32 %v1388_v46, 7  ;;  %v1393_v48 = vand.u32 127, %v1388_v46  ;;  %v5005_v49 = vld [vmem:[%s872_s20] ss:$0 sm:$0xff] }
 0x16d   : > { %s4392_s20 = smov 112   ;;  %s5465_s0 = sld [smem:[#allocation47_spill]]  ;;  %vm2239_vm9 = vcmask 1045504   ;;  %vm2215_vm10 = vcmask 97280   ;;  %vm3035_vm13 = vcmask 523264  }
 0x16e   : > { %vm1394_vm6 = vcmp.gt.s32.totalorder %v1393_v48, %v1389_v47  ;;  %s5466_s8 = sld [smem:[#allocation51_spill]]  ;;  %s5467_s9 = sld [smem:[#allocation52_spill]] }
 0x16f   : > { %v3890_v1 = vld [vmem:[%s5461_s12] sm:$0xff]   ;;  %v3891_v2 = vld [vmem:[%s5461_s12 + $0x8] sm:$0xff]   ;;  %s993_s11 = scalar_lea.vmem %s5462_s16, %s3456_s4  ;;  %v5008_v51 = vsel %vm1394_vm6, -1e+30, %v4389_v0  ;;  %s4393_s4 = smov 104  }
 0x170   : > { %3536 = vmatpush3.bf16.msra.mxu0 %v3890_v1  ;;  %v3894_v8 = vld [vmem:[%s993_s11] sm:$0x3f]   ;;  %s5468_s1 = sld [smem:[#allocation55_spill]]  ;;  %s5469_s29 = sld [smem:[#allocation57_spill]] }
 0x171   : > { %3537 = vmatprep.subr.bf16.mxu0 %v4389_v0  ;;  %v3897_v6 = vld [vmem:[%s5463_s5] sm:$0xff]   ;;  %v3898_v7 = vld [vmem:[%s5463_s5 + $0x8] sm:$0xff]   ;;  %s5473_s16 = sld [smem:[#allocation59_spill]]  ;;  %s5474_s11 = sld [smem:[#allocation36_spill]] }
 0x172   : > { %3544 = vmatpush3.bf16.msra.mxu1 %v3897_v6  ;;  %v3895_v9 = vld [vmem:[%s5464_s15] sm:$0xff]   ;;  %v3896_v10 = vld [vmem:[%s5464_s15 + $0x8] sm:$0xff]   ;;  %s5475_s26 = sld [smem:[#allocation60_spill]]  ;;  %s3120_s24 = scalar_lea.sflag [#allocation9], %s4871_s28 }
 0x173   : > { %3545 = vmatprep.subr.bf16.mxu1 %v4389_v0  ;;  %v1464_v6 = vld [vmem:[%s5465_s0] sm:$0xf] }
 0x174   : > { %3538 = vmatpush3.bf16.msra.mxu0 %v3891_v2 }
 0x175   : > { %3551 = vmatprep.subr.bf16.mxu0 %v4389_v0 }
 0x176   : > { %3546 = vmatpush3.bf16.msra.mxu1 %v3898_v7  ;;  %v1469_v7 = vsel %vm1415_vm5, %v1464_v6, 0  ;;  %s5470_s19 = smov %s5469_s29 }
 0x177   : > { %3540 = vmatmul.mubr.msk.bf16.vlgmr.msra.gmra.mrb[0].mxu0 %vm1016_vm0, %v999_v3  ;;  %3559 = vmatprep.subr.bf16.mxu1 %v4389_v0  ;;  %p5477_p3 = scmp.ne.s32.totalorder %s5474_s11, 0 }
 0x178   : > { %3552 = vmatpush3.bf16.msra.mxu0 %v3892_v4  ;;  %3555 = vmatprep.mubr.msk.bf16.mxu0 %vm4390_vm1, %v4389_v0 }
 0x179   : > { %3553 = vmatprep.subr.bf16.mxu0 %v4389_v0  ;;  %3548 = vmatmul.mubr.msk.bf16.vlgmr.msra.gmra.mrb[0].mxu1 %vm1016_vm0, %v999_v3 }
 0x17a   : > { %3563 = vmatprep.mubr.msk.bf16.mxu1 %vm4390_vm1, %v4389_v0  ;;  %3560 = vmatpush3.bf16.msra.mxu1 %v3899_v12 }
 0x17b   : > { %3561 = vmatprep.subr.bf16.mxu1 %v4389_v0 }
 0x17c   : > { %3554 = vmatpush3.bf16.msra.mxu0 %v3893_v5 }
 0x17d   : > { %3567 = vmatprep.subr.bf16.mxu0 %v4389_v0 }
 0x17e   : > { %3562 = vmatpush3.bf16.msra.mxu1 %v3900_v13 }
 0x17f   : > { %3556 = vmatmul.mubr.msk.bf16.vlgmr.msra.gmra.mrb[4].mxu0 %vm1016_vm0, %v3894_v8  ;;  %3575 = vmatprep.subr.bf16.mxu1 %v4389_v0 }
 0x180   : > { %3568 = vmatpush3.bf16.msra.mxu0 %v3895_v9  ;;  %3571 = vmatprep.mubr.msk.bf16.mxu0 %vm4390_vm1, %v4389_v0 }
 0x181   : > { %3569 = vmatprep.subr.bf16.mxu0 %v4389_v0  ;;  %3564 = vmatmul.mubr.msk.bf16.vlgmr.msra.gmra.mrb[4].mxu1 %vm1016_vm0, %v3894_v8 }
 0x182   : > { %3577 = vmatprep.mubr.msk.bf16.mxu1 %vm4390_vm1, %v4389_v0 }
 0x184   : > { %3570 = vmatpush3.bf16.msra.mxu0 %v3896_v10 }
 0x185   : > { %3581 = vmatprep.subr.bf16.mxu0 %v4389_v0 }
 0x187   : > { %3572 = vmatmul.mubr.msk.bf16.vlgmr.msra.gmra.mrb[8].mxu0 %vm1016_vm0, %v4967_v11 }
 0x188   : > { %3583 = vmatprep.mubr.msk.bf16.mxu0 %vm4390_vm1, %v4389_v0 }
 0x24a   : > { %v1054_v14 = vpop.f32.mrb[0].mxu0 }
 0x24b   : > { %v1060_v15 = vpack.c.bf16 %v1054_v14, %v1054_v14  ;;  %v3541_v16 = vpop.f32.mrb[1].mxu0 }
 0x24c   : > { %v1057_v17 = vpop.f32.mrb[2].mxu0  ;;  %v1113_v24 = vpop.f32.mrb[0].mxu1 }
 0x24d   : > { %1062 = vst.msk [vmem:[#allocation2] sm:$0xf] %vm1061_vm2, %v1060_v15  ;;  %v3542_v18 = vpop.f32.mrb[3].mxu0  ;;  %v1119_v28 = vpack.c.bf16 %v1113_v24, %v1113_v24  ;;  %v3549_v29 = vpop.f32.mrb[1].mxu1 }
 0x24e   : > { %v1116_v30 = vpop.f32.mrb[2].mxu1 }
 0x24f   : > { %1120 = vst.msk [vmem:[#allocation3] sm:$0xf] %vm1061_vm2, %v1119_v28  ;;  %v3550_v31 = vpop.f32.mrb[3].mxu1 }
 0x252   : > { %v1181_v19 = vpop.f32.mrb[4].mxu0 }
 0x253   : > { %v3457_v20 = vpack.c.bf16 %v1181_v19, %v1181_v19  ;;  %v3557_v21 = vpop.f32.mrb[5].mxu0 }
 0x254   : > { %v1184_v22 = vpop.f32.mrb[6].mxu0  ;;  %v1333_v23 = vld [vmem:[#allocation2] sm:$0xf]  ;;  %v1249_v40 = vpop.f32.mrb[4].mxu1 }
 0x255   : > { %1196 = vst.msk [vmem:[#allocation4] sm:$0xf] %vm1061_vm2, %v3457_v20  ;;  %v3458_v25 = vpack.c.bf16 %v1184_v22, %v1184_v22  ;;  %v3558_v26 = vpop.f32.mrb[7].mxu0  ;;  %v1346_v27 = vsel %vm1341_vm3, %v1333_v23, 0  ;;  %v3459_v41 = vpack.c.bf16 %v1249_v40, %v1249_v40  ;;  %v3565_v42 = vpop.f32.mrb[5].mxu1 }
 0x256   : > { %3576 = vmatpush3.bf16.xpose.msra.mxu1 %v1346_v27  ;;  %v1334_v38 = vld [vmem:[#allocation3] sm:$0xf]  ;;  %v1252_v43 = vpop.f32.mrb[6].mxu1  ;;  %v3901_v58 = vld [vmem:[#allocation2] ss:$0 sps:$4 sm:$0xff]  }
 0x257   : > { %1198 = vst.msk [vmem:[#allocation4 + $0x4] sm:$0x3] %vm1197_vm4, %v3458_v25  ;;  %3587 = vmatprep.subr.bf16.mxu1 %v4389_v0  ;;  %v1417_v39 = vsel %vm1415_vm5, %v1334_v38, 0  ;;  %v3460_v44 = vpack.c.bf16 %v1252_v43, %v1252_v43  ;;  %v3566_v45 = vpop.f32.mrb[7].mxu1  ;;  %v3902_v5 = vld [vmem:[#allocation3] ss:$0 sps:$4 sm:$0xff]  }
 0x258   : > { %3582 = vmatpush3.bf16.msra.mxu0 %v1417_v39  ;;  %1264 = vst.msk [vmem:[#allocation5] sm:$0xf] %vm1061_vm2, %v3459_v41  ;;  %v3904_v43 = vld [vmem:[#allocation3] ss:$0 sps:$4 sm:$0xff]  }
 0x259   : > { %3593 = vmatprep.subr.bf16.mxu0 %v4389_v0  ;;  %1265 = vst.msk [vmem:[#allocation5 + $0x4] sm:$0x3] %vm1197_vm4, %v3460_v44  ;;  %v1462_v44 = vld [vmem:[#allocation6] sm:$0xff] }
 0x25a   : > { %v1324_v32 = vpop.f32.mrb[8].mxu0 }
 0x25b   : > { %v1330_v33 = vmul.f32 0.17677669, %v1324_v32  ;;  %v3573_v34 = vpop.f32.mrb[9].mxu0  ;;  %v3903_v32 = vld [vmem:[#allocation2] ss:$0 sps:$4 sm:$0xff]  }
 0x25c   : > { %v1327_v35 = vpop.f32.mrb[10].mxu0 }
 0x25d   : > { %v4991_v36 = vpack.c.bf16 %v1330_v33, %v1330_v33  ;;  %v3574_v37 = vpop.f32.mrb[11].mxu0 }
 0x25f   : > { %3578 = vmatmul.mubr.msk.bf16.vlgmr.msra.gmra.mrb[8].mxu1 %vm1341_vm3, %v4991_v36  ;;  %1516 = vrot.lane.b32.xlu1 %v4991_v36, %s4391_s23 }
 0x260   : > { %3589 = vmatprep.mubr.msk.bf16.mxu1 %vm4390_vm1, %v4389_v0  ;;  %3588 = vmatpush3.bf16.msra.mxu1 %v1469_v7 }
 0x261   : > { %3599 = vmatprep.subr.bf16.mxu1 %v4389_v0 }
 0x2d1   : > { %v1517_v4 = vpop.permute.xlu1 %1516 }
 0x332   : > { %v1382_v50 = vpop.f32.mrb[8].mxu1 }
 0x333   : > { %v1383_v52 = vadd.f32 %v5005_v49, %v1382_v50  ;;  %v3579_v53 = vpop.f32.mrb[9].mxu1 }
 0x334   : > { %v1385_v54 = vpop.f32.mrb[10].mxu1 }
 0x335   : > { %v3580_v55 = vpop.f32.mrb[11].mxu1  ;;  %v1396_v56 = vadd.f32 %v5008_v51, %v1383_v52  ;;  %v1641_v52 = vld [vmem:[%s5465_s0 + $0x4] sm:$0xf] }
 0x336   : > { %v1646_v53 = vsel %vm1415_vm5, %v1641_v52, 0 }
 0x337   : > { %v1397_v57 = vsel %vm1341_vm3, %v1396_v56, -inf }
 0x338   : > { %1398 = vmax.xlane.f32.xlu0 %v1397_v57 }
 0x34e   : > { %1521 = vrot.lane.b32.xlu0 %v3901_v58, %s4391_s23 }
 0x3c5   : > { %v1399_v59 = vpop.xlane.xlu0 %1398 }
 0x3c6   : > { %v1403_v60 = vsub.f32 %v1396_v56, %v1399_v59  ;;  %v1400_v8 = vsub.f32 -inf, %v1399_v59 }
 0x3c8   : > { %v1404_v61 = vmul.f32 1.442695, %v1403_v60  ;;  %v1401_v9 = vmul.f32 1.442695, %v1400_v8 }
 0x3c9   : > { %v1522_v63 = vpop.permute.xlu0 %1521 }
 0x3ca   : > { %3923 = vpow2.f32 %v1404_v61  ;;  %v1527_v3 = vsel %vm1341_vm3, %v1522_v63, 0 }
 0x3cb   : > { %3925 = vpow2.f32 %v1401_v9 }
 0x3d4   : > { %v3924_v62 = vpop.eup %3923 }
 0x3d5   : > { %v1407_v1 = vsel %vm1341_vm3, %v3924_v62, 0.0  ;;  %v1411_v2 = vpack.c.bf16 %v3924_v62, %v3924_v62  ;;  %v3926_v10 = vpop.eup %3925 }
 0x3d6   : > { %1408 = vadd.xlane.f32.xlu1 %v1407_v1  ;;  %v1406_v13 = vmul.f32 0.0, %v3926_v10 }
 0x3d7   : > { %3584 = vmatmul.mubr.msk.bf16.vlgmr.msra.gmra.mrb[12].mxu0 %vm1341_vm3, %v1411_v2 }
 0x3d8   : > { %3594 = vmatpush3.bf16.xpose.msra.mxu0 %v1527_v3  ;;  %3595 = vmatprep.mubr.msk.bf16.mxu0 %vm4390_vm1, %v4389_v0 }
 0x3d9   : > { %3605 = vmatprep.subr.bf16.mxu0 %v4389_v0 }
 0x3df   : > { %3596 = vmatmul.mubr.msk.bf16.vlgmr.msra.gmra.mrb[16].mxu0 %vm1341_vm3, %v1517_v4 }
 0x3e0   : > { %3607 = vmatprep.mubr.msk.bf16.mxu0 %vm4390_vm1, %v4389_v0  ;;  %3606 = vmatpush3.bf16.msra.mxu0 %v1646_v53 }
 0x3e1   : > { %3617 = vmatprep.subr.bf16.mxu0 %v4389_v0 }
 0x3e7   : > { %1588 = vrot.lane.b32.xlu1 %v3902_v5, %s4391_s23 }
 0x3eb   : > { %1692 = vrot.lane.b32.xlu1 %v4991_v36, %s4392_s20 }
 0x463   : > { %v1409_v12 = vpop.xlane.xlu1 %1408 }
 0x464   : > { %v1410_v14 = vadd.f32 %v1409_v12, %v1406_v13 }
 0x466   : > { %3927 = vrcp.f32 %v1410_v14  ;;  %v3905_v14 = vld [vmem:[#allocation2] ss:$0 sps:$4 sm:$0xff]  }
 0x467   : > { %v1589_v22 = vpop.permute.xlu1 %1588 }
 0x468   : > { %v1594_v24 = vsel %vm1415_vm5, %v1589_v22, 0 }
 0x46b   : > { %v1693_v42 = vpop.permute.xlu1 %1692 }
 0x470   : > { %v3928_v18 = vpop.eup %3927 }
 0x4aa   : > { %v1453_v15 = vpop.f32.mrb[12].mxu0 }
 0x4ab   : > { %v1459_v16 = vadd.f32 %v1453_v15, %v1406_v13  ;;  %v3585_v17 = vpop.f32.mrb[13].mxu0 }
 0x4ac   : > { %v1456_v19 = vpop.f32.mrb[14].mxu0 }
 0x4ad   : > { %v1461_v20 = vmul.f32 %v3928_v18, %v1459_v16  ;;  %v3586_v21 = vpop.f32.mrb[15].mxu0 }
 0x4af   : > { %v1463_v23 = vpack.c.bf16 %v1461_v20, %v1461_v20 }
 0x4b1   : > { %3590 = vmatmul.mubr.msk.bf16.vlgmr.msra.gmra.mrb[12].mxu1 %vm1341_vm3, %v1463_v23 }
 0x4b2   : > { %3600 = vmatpush3.bf16.msra.mxu1 %v1594_v24  ;;  %v1563_v25 = vpop.f32.mrb[16].mxu0  ;;  %3601 = vmatprep.mubr.msk.bf16.mxu1 %vm4390_vm1, %v4389_v0  ;;  %v3906_v24 = vld [vmem:[#allocation3] ss:$0 sps:$4 sm:$0xff]  }
 0x4b3   : > { %v1564_v26 = vadd.f32 %v5005_v49, %v1563_v25  ;;  %v3597_v27 = vpop.f32.mrb[17].mxu0  ;;  %3611 = vmatprep.subr.bf16.mxu1 %v4389_v0 }
 0x4b4   : > { %v1566_v28 = vpop.f32.mrb[18].mxu0 }
 0x4b5   : > { %v3598_v29 = vpop.f32.mrb[19].mxu0  ;;  %v1569_v30 = vadd.f32 %v1564_v26, %v5008_v51 }
 0x4b7   : > { %v1570_v31 = vsel %vm1341_vm3, %v1569_v30, -inf }
 0x4b8   : > { %1571 = vmax.xlane.f32.xlu0 %v1570_v31  ;;  %v1817_v31 = vld [vmem:[%s5465_s0 + $0x8] sm:$0xf] }
 0x4ce   : > { %1697 = vrot.lane.b32.xlu0 %v3903_v32, %s4392_s20  ;;  %v1822_v32 = vsel %vm1415_vm5, %v1817_v31, 0  ;;  %v1267_v31 = vunpack.c.l.bf16 %v4967_v11  ;;  %v3909_v11 = vld [vmem:[%s5466_s8] sm:$0xff]  }
 0x545   : > { %v1572_v33 = vpop.xlane.xlu0 %1571 }
 0x546   : > { %v1576_v34 = vsub.f32 %v1569_v30, %v1572_v33  ;;  %v1573_v54 = vsub.f32 -inf, %v1572_v33 }
 0x548   : > { %v1577_v35 = vmul.f32 1.442695, %v1576_v34  ;;  %v1574_v55 = vmul.f32 1.442695, %v1573_v54 }
 0x549   : > { %v1698_v38 = vpop.permute.xlu0 %1697 }
 0x54a   : > { %3929 = vpow2.f32 %v1577_v35  ;;  %v1703_v41 = vsel %vm1341_vm3, %v1698_v38, 0 }
 0x54b   : > { %3931 = vpow2.f32 %v1574_v55 }
 0x554   : > { %v3930_v37 = vpop.eup %3929 }
 0x555   : > { %v1580_v39 = vsel %vm1341_vm3, %v3930_v37, 0.0  ;;  %v1584_v40 = vpack.c.bf16 %v3930_v37, %v3930_v37 }
 0x556   : > { %1581 = vadd.xlane.f32.xlu1 %v1580_v39 }
 0x557   : > { %3602 = vmatmul.mubr.msk.bf16.vlgmr.msra.gmra.mrb[16].mxu1 %vm1341_vm3, %v1584_v40 }
 0x558   : > { %3612 = vmatpush3.bf16.xpose.msra.mxu1 %v1703_v41  ;;  %3613 = vmatprep.mubr.msk.bf16.mxu1 %vm4390_vm1, %v4389_v0 }
 0x559   : > { %3623 = vmatprep.subr.bf16.mxu1 %v4389_v0 }
 0x55f   : > { %3614 = vmatmul.mubr.msk.bf16.vlgmr.msra.gmra.mrb[20].mxu1 %vm1341_vm3, %v1693_v42 }
 0x560   : > { %3625 = vmatprep.mubr.msk.bf16.mxu1 %vm4390_vm1, %v4389_v0  ;;  %3624 = vmatpush3.bf16.msra.mxu1 %v1822_v32 }
 0x561   : > { %3635 = vmatprep.subr.bf16.mxu1 %v4389_v0 }
 0x567   : > { %1764 = vrot.lane.b32.xlu1 %v3904_v43, %s4392_s20 }
 0x56b   : > { %1868 = vrot.lane.b32.xlu1 %v4991_v36, %s4393_s4  ;;  %v3932_v36 = vpop.eup %3931 }
 0x56c   : > { %v1579_v57 = vmul.f32 0.0, %v3932_v36 }
 0x584   : > { %v1505_v45 = vpop.f32.mrb[12].mxu1 }
 0x585   : > { %v1511_v46 = vadd.f32 %v1505_v45, %v1462_v44  ;;  %v3591_v47 = vpop.f32.mrb[13].mxu1 }
 0x586   : > { %v1508_v48 = vpop.f32.mrb[14].mxu1 }
 0x587   : > { %1512 = vst.msk [vmem:[#allocation6] sm:$0xff] %vm1016_vm0, %v1511_v46  ;;  %v3592_v50 = vpop.f32.mrb[15].mxu1 }
 0x58e   : > { %v1639_v25 = vld [vmem:[#allocation6] sm:$0xff] }
 0x5e3   : > { %v1582_v56 = vpop.xlane.xlu1 %1581 }
 0x5e4   : > { %v1583_v58 = vadd.f32 %v1582_v56, %v1579_v57 }
 0x5e6   : > { %3933 = vrcp.f32 %v1583_v58 }
 0x5e7   : > { %v1765_v3 = vpop.permute.xlu1 %1764 }
 0x5e8   : > { %v1770_v5 = vsel %vm1415_vm5, %v1765_v3, 0 }
 0x5eb   : > { %v1869_v23 = vpop.permute.xlu1 %1868 }
 0x5f0   : > { %v3934_v62 = vpop.eup %3933 }
 0x62a   : > { %v1630_v59 = vpop.f32.mrb[16].mxu1 }
 0x62b   : > { %v1636_v60 = vadd.f32 %v1630_v59, %v1579_v57  ;;  %v3603_v61 = vpop.f32.mrb[17].mxu1 }
 0x62c   : > { %v1633_v63 = vpop.f32.mrb[18].mxu1 }
 0x62d   : > { %v1638_v1 = vmul.f32 %v3934_v62, %v1636_v60  ;;  %v3604_v2 = vpop.f32.mrb[19].mxu1 }
 0x62f   : > { %v1640_v4 = vpack.c.bf16 %v1638_v1, %v1638_v1 }
 0x631   : > { %3608 = vmatmul.mubr.msk.bf16.vlgmr.msra.gmra.mrb[20].mxu0 %vm1341_vm3, %v1640_v4 }
 0x632   : > { %3618 = vmatpush3.bf16.msra.mxu0 %v1770_v5  ;;  %v1739_v6 = vpop.f32.mrb[20].mxu1  ;;  %3619 = vmatprep.mubr.msk.bf16.mxu0 %vm4390_vm1, %v4389_v0 }
 0x633   : > { %v1740_v7 = vadd.f32 %v5005_v49, %v1739_v6  ;;  %v3615_v8 = vpop.f32.mrb[21].mxu1  ;;  %3629 = vmatprep.subr.bf16.mxu0 %v4389_v0 }
 0x634   : > { %v1742_v9 = vpop.f32.mrb[22].mxu1 }
 0x635   : > { %v3616_v10 = vpop.f32.mrb[23].mxu1  ;;  %v1745_v12 = vadd.f32 %v1740_v7, %v5008_v51 }
 0x637   : > { %v1746_v13 = vsel %vm1341_vm3, %v1745_v12, -inf }
 0x638   : > { %1747 = vmax.xlane.f32.xlu0 %v1746_v13 }
 0x64e   : > { %1873 = vrot.lane.b32.xlu0 %v3905_v14, %s4393_s4 }
 0x6c5   : > { %v1748_v15 = vpop.xlane.xlu0 %1747 }
 0x6c6   : > { %v1752_v16 = vsub.f32 %v1745_v12, %v1748_v15  ;;  %v1749_v33 = vsub.f32 -inf, %v1748_v15 }
 0x6c8   : > { %v1753_v17 = vmul.f32 1.442695, %v1752_v16  ;;  %v1750_v34 = vmul.f32 1.442695, %v1749_v33 }
 0x6c9   : > { %v1874_v19 = vpop.permute.xlu0 %1873 }
 0x6ca   : > { %3935 = vpow2.f32 %v1753_v17  ;;  %v1879_v22 = vsel %vm1341_vm3, %v1874_v19, 0 }
 0x6cb   : > { %3937 = vpow2.f32 %v1750_v34 }
 0x6d4   : > { %v3936_v18 = vpop.eup %3935 }
 0x6d5   : > { %v1756_v20 = vsel %vm1341_vm3, %v3936_v18, 0.0  ;;  %v1760_v21 = vpack.c.bf16 %v3936_v18, %v3936_v18  ;;  %v3938_v35 = vpop.eup %3937 }
 0x6d6   : > { %1757 = vadd.xlane.f32.xlu1 %v1756_v20  ;;  %v1755_v38 = vmul.f32 0.0, %v3938_v35 }
 0x6d7   : > { %3620 = vmatmul.mubr.msk.bf16.vlgmr.msra.gmra.mrb[24].mxu0 %vm1341_vm3, %v1760_v21  ;;  %v3907_v21 = vld [vmem:[#allocation4] sm:$0x3f]  }
 0x6d8   : > { %3630 = vmatpush3.bf16.xpose.msra.mxu0 %v1879_v22  ;;  %3631 = vmatprep.mubr.msk.bf16.mxu0 %vm4390_vm1, %v4389_v0 }
 0x6d9   : > { %3641 = vmatprep.subr.bf16.mxu0 %v4389_v0 }
 0x6df   : > { %3632 = vmatmul.mubr.msk.bf16.vlgmr.msra.gmra.mrb[28].mxu0 %vm1341_vm3, %v1869_v23  ;;  %v2173_v23 = vsel %vm1341_vm3, %v3907_v21, 0  ;;  %v2288_v21 = vld [vmem:[%s5467_s9] sm:$0xf] }
 0x6e0   : > { %3643 = vmatprep.mubr.msk.bf16.mxu0 %vm4390_vm1, %v4389_v0 }
 0x6e7   : > { %1940 = vrot.lane.b32.xlu1 %v3906_v24, %s4393_s4 }
 0x704   : > { %v1682_v26 = vpop.f32.mrb[20].mxu0 }
 0x705   : > { %v1688_v27 = vadd.f32 %v1682_v26, %v1639_v25  ;;  %v3609_v28 = vpop.f32.mrb[21].mxu0 }
 0x706   : > { %v1685_v29 = vpop.f32.mrb[22].mxu0 }
 0x707   : > { %1689 = vst.msk [vmem:[#allocation6] sm:$0xff] %vm1016_vm0, %v1688_v27  ;;  %v3610_v30 = vpop.f32.mrb[23].mxu0 }
 0x708   : > { %v3410_v30 = vld [vmem:[#allocation15] ss:$0 sm:$0xff] }
 0x70e   : > { %v1815_v1 = vld [vmem:[#allocation6] sm:$0xff] }
 0x763   : > { %v1758_v37 = vpop.xlane.xlu1 %1757 }
 0x764   : > { %v1759_v39 = vadd.f32 %v1758_v37, %v1755_v38 }
 0x766   : > { %3939 = vrcp.f32 %v1759_v39 }
 0x767   : > { %v1941_v47 = vpop.permute.xlu1 %1940 }
 0x768   : > { %v1946_v50 = vsel %vm1415_vm5, %v1941_v47, 0 }
 0x770   : > { %v3940_v43 = vpop.eup %3939 }
 0x7aa   : > { %v1806_v40 = vpop.f32.mrb[24].mxu0 }
 0x7ab   : > { %v1812_v41 = vadd.f32 %v1806_v40, %v1755_v38  ;;  %v3621_v42 = vpop.f32.mrb[25].mxu0 }
 0x7ac   : > { %v1809_v44 = vpop.f32.mrb[26].mxu0  ;;  %v3908_v42 = vld [vmem:[#allocation4] sm:$0x3f]  }
 0x7ad   : > { %v1814_v45 = vmul.f32 %v3940_v43, %v1812_v41  ;;  %v3622_v46 = vpop.f32.mrb[27].mxu0  ;;  %v3910_v43 = vld [vmem:[%s5466_s8 + $0x8] sm:$0xff]  }
 0x7af   : > { %v1816_v48 = vpack.c.bf16 %v1814_v45, %v1814_v45 }
 0x7b1   : > { %3626 = vmatmul.mubr.msk.bf16.vlgmr.msra.gmra.mrb[24].mxu1 %vm1341_vm3, %v1816_v48 }
 0x7b2   : > { %3636 = vmatpush3.bf16.msra.mxu1 %v1946_v50  ;;  %v1915_v52 = vpop.f32.mrb[28].mxu0  ;;  %3637 = vmatprep.mubr.msk.bf16.mxu1 %vm4390_vm1, %v4389_v0 }
 0x7b3   : > { %v1916_v53 = vadd.f32 %v5005_v49, %v1915_v52  ;;  %v3633_v54 = vpop.f32.mrb[29].mxu0  ;;  %3647 = vmatprep.subr.bf16.mxu1 %v4389_v0  ;;  %v1993_v49 = vld [vmem:[%s5465_s0 + $0xc] sm:$0xf] }
 0x7b4   : > { %v1918_v55 = vpop.f32.mrb[30].mxu0 }
 0x7b5   : > { %v3634_v36 = vpop.f32.mrb[31].mxu0  ;;  %v1921_v56 = vadd.f32 %v1916_v53, %v5008_v51  ;;  %v1998_v51 = vsel %vm1415_vm5, %v1993_v49, 0  ;;  %v3411_v55 = vld [vmem:[#allocation16] ss:$0 sm:$0xff] }
 0x7b6   : > { %3642 = vmatpush3.bf16.msra.mxu0 %v1998_v51 }
 0x7b7   : > { %v1922_v57 = vsel %vm1341_vm3, %v1921_v56, -inf  ;;  %3655 = vmatprep.subr.bf16.mxu0 %v4389_v0 }
 0x7b8   : > { %1923 = vmax.xlane.f32.xlu0 %v1922_v57 }
 0x845   : > { %v1924_v58 = vpop.xlane.xlu0 %1923 }
 0x846   : > { %v1928_v59 = vsub.f32 %v1921_v56, %v1924_v58  ;;  %v1925_v7 = vsub.f32 -inf, %v1924_v58  ;;  %v3412_v56 = vld [vmem:[#allocation18] ss:$0 sm:$0xff] }
 0x848   : > { %v1929_v60 = vmul.f32 1.442695, %v1928_v59  ;;  %v1926_v8 = vmul.f32 1.442695, %v1925_v7  ;;  %v3911_v59 = vld [vmem:[#allocation5] sm:$0x3f]  }
 0x84a   : > { %3941 = vpow2.f32 %v1929_v60 }
 0x84b   : > { %3943 = vpow2.f32 %v1926_v8 }
 0x854   : > { %v3942_v61 = vpop.eup %3941 }
 0x855   : > { %v1932_v62 = vsel %vm1341_vm3, %v3942_v61, 0.0  ;;  %v1936_v63 = vpack.c.bf16 %v3942_v61, %v3942_v61  ;;  %v3944_v9 = vpop.eup %3943  ;;  %v2241_v61 = vsel %vm2239_vm9, %v3911_v59, 0 }
 0x856   : > { %1933 = vadd.xlane.f32.xlu0 %v1932_v62  ;;  %v1931_v12 = vmul.f32 0.0, %v3944_v9 }
 0x857   : > { %3638 = vmatmul.mubr.msk.bf16.vlgmr.msra.gmra.mrb[28].mxu1 %vm1341_vm3, %v1936_v63 }
 0x858   : > { %3651 = vmatprep.mubr.msk.bf16.mxu1 %vm4390_vm1, %v4389_v0  ;;  %3648 = vmatpush3.bf16.msra.mxu1 %v3909_v11 }
 0x859   : > { %3649 = vmatprep.subr.bf16.mxu1 %v4389_v0 }
 0x85c   : > { %3650 = vmatpush3.bf16.msra.mxu1 %v3910_v43 }
 0x85d   : > { %3661 = vmatprep.subr.bf16.mxu1 %v4389_v0 }
 0x884   : > { %v1858_v2 = vpop.f32.mrb[24].mxu1 }
 0x885   : > { %v1864_v3 = vadd.f32 %v1858_v2, %v1815_v1  ;;  %v3627_v4 = vpop.f32.mrb[25].mxu1 }
 0x886   : > { %v1861_v5 = vpop.f32.mrb[26].mxu1 }
 0x887   : > { %1865 = vst.msk [vmem:[#allocation6] sm:$0xff] %vm1016_vm0, %v1864_v3  ;;  %v3628_v6 = vpop.f32.mrb[27].mxu1  ;;  %v5140_v3 = vld [vmem:[%s880_s25] ss:$0 sm:$0xff]  ;;  %s5471_s25 = sld [smem:[#allocation56_spill]] }
 0x88e   : > { %v1991_v24 = vld [vmem:[#allocation6] sm:$0xff] }
 0x8e3   : > { %v1934_v10 = vpop.xlane.xlu0 %1933 }
 0x8e4   : > { %v1935_v13 = vadd.f32 %v1934_v10, %v1931_v12  ;;  %v3912_v10 = vld [vmem:[#allocation5] sm:$0x3f]  }
 0x8e6   : > { %3945 = vrcp.f32 %v1935_v13 }
 0x8f0   : > { %v3946_v17 = vpop.eup %3945 }
 0x92a   : > { %v1982_v14 = vpop.f32.mrb[28].mxu1 }
 0x92b   : > { %v1988_v15 = vadd.f32 %v1982_v14, %v1931_v12  ;;  %v3639_v16 = vpop.f32.mrb[29].mxu1 }
 0x92c   : > { %v1985_v18 = vpop.f32.mrb[30].mxu1 }
 0x92d   : > { %v1990_v19 = vmul.f32 %v3946_v17, %v1988_v15  ;;  %v3640_v20 = vpop.f32.mrb[31].mxu1 }
 0x92f   : > { %v1992_v22 = vpack.c.bf16 %v1990_v19, %v1990_v19 }
 0x931   : > { %3644 = vmatmul.mubr.msk.bf16.vlgmr.msra.gmra.mrb[32].mxu0 %vm1341_vm3, %v1992_v22  ;;  %v2293_v22 = vsel %vm1415_vm5, %v2288_v21, 0 }
 0x932   : > { %3656 = vmatpush3.bf16.xpose.msra.mxu0 %v2173_v23  ;;  %3657 = vmatprep.mubr.msk.bf16.mxu0 %vm4390_vm1, %v4389_v0 }
 0x933   : > { %3667 = vmatprep.subr.bf16.mxu0 %v4389_v0 }
 0xa04   : > { %v2034_v25 = vpop.f32.mrb[32].mxu0 }
 0xa05   : > { %v2040_v26 = vadd.f32 %v2034_v25, %v1991_v24  ;;  %v3645_v27 = vpop.f32.mrb[33].mxu0 }
 0xa06   : > { %v2037_v28 = vpop.f32.mrb[34].mxu0 }
 0xa07   : > { %2041 = vst.msk [vmem:[#allocation6] sm:$0xff] %vm1016_vm0, %v2040_v26  ;;  %v3646_v29 = vpop.f32.mrb[35].mxu0 }
 0xa0e   : > { %v2042_v32 = vld [vmem:[#allocation6] sm:$0xff] }
 0xa0f   : > { %v2050_v33 = vadd.f32 %v3410_v30, %v2042_v32  ;;  %2153 = vst.msk [vmem:[#allocation6] sm:$0xff] %vm1016_vm0, %v4389_v0 }
 0xa11   : > { %v2051_v34 = vadd.f32 %v2050_v33, %v1267_v31 }
 0xa13   : > { %v2054_v35 = vsel %vm1016_vm0, %v2051_v34, 0.0 }
 0xa14   : > { %2055 = vadd.xlane.f32.xlu0 %v2054_v35 }
 0xaa1   : > { %v2056_v37 = vpop.xlane.xlu0 %2055 }
 0xaa2   : > { %v2058_v38 = vmul.f32 0.03125, %v2056_v37 }
 0xaa4   : > { %v2059_v39 = vsub.f32 %v2051_v34, %v2058_v38 }
 0xaa6   : > { %v2060_v40 = vmul.f32 %v2059_v39, %v2059_v39 }
 0xaa8   : > { %v2061_v41 = vsel %vm1016_vm0, %v2060_v40, 0.0 }
 0xaa9   : > { %2062 = vadd.xlane.f32.xlu0 %v2061_v41 }
 0xabf   : > { %2349 = vrot.lane.b32.xlu0 %v3908_v42, %s4391_s23 }
 0xb36   : > { %v2063_v44 = vpop.xlane.xlu0 %2062 }
 0xb37   : > { %v2065_v45 = vmul.f32 0.032258064, %v2063_v44 }
 0xb39   : > { %3947 = vrsqrt.f32 %v2065_v45  ;;  %vm2068_vm7 = vcmp.eq.f32.partialorder %v2065_v45, inf  ;;  %v2071_v48 = vand.u32 2147483648, %v2065_v45  ;;  %vm2070_vm8 = vcmp.eq.f32.partialorder %v2065_v45, 0.0 }
 0xb3a   : > { %v2350_v16 = vpop.permute.xlu0 %2349 }
 0xb3b   : > { %v2355_v19 = vsel %vm1341_vm3, %v2350_v16, 0 }
 0xb43   : > { %v3948_v46 = vpop.eup %3947 }
 0xb44   : > { %v2067_v47 = vmul.f32 %v3948_v46, %v2065_v45 }
 0xb46   : > { %v2069_v50 = vsel %vm2068_vm7, %v2065_v45, %v2067_v47  ;;  %v3913_v45 = vld [vmem:[#allocation4] sm:$0x3f]  }
 0xb47   : > { %v2072_v52 = vsel %vm2070_vm8, %v2071_v48, %v2069_v50 }
 0xb48   : > { %v2073_v53 = vadd.f32 0.001, %v2072_v52 }
 0xb4a   : > { %3949 = vrcp.f32 %v2073_v53 }
 0xb54   : > { %v3950_v54 = vpop.eup %3949 }
 0xb55   : > { %v2075_v36 = vmul.f32 %v3950_v54, %v2059_v39 }
 0xb57   : > { %v2082_v57 = vmul.f32 %v3411_v55, %v2075_v36 }
 0xb59   : > { %v5121_v58 = vadd.f32 %v3412_v56, %v2082_v57  ;;  %v3914_v56 = vld [vmem:[#allocation5] sm:$0x3f]   ;;  %v2286_v57 = vld [vmem:[#allocation6] sm:$0xff] }
 0xb5b   : > { %v2091_v60 = vpack.c.bf16 %v5121_v58, %v5121_v58 }
 0xb5d   : > { %3652 = vmatmul.mubr.msk.bf16.vlgmr.msra.gmra.mrb[32].mxu1 %vm1016_vm0, %v2091_v60 }
 0xb5e   : > { %3662 = vmatpush3.bf16.msra.mxu1 %v2241_v61  ;;  %3663 = vmatprep.mubr.msk.bf16.mxu1 %vm4390_vm1, %v4389_v0 }
 0xb5f   : > { %3673 = vmatprep.subr.bf16.mxu1 %v4389_v0 }
 0xc30   : > { %v2145_v62 = vpop.f32.mrb[32].mxu1 }
 0xc31   : > { %v2151_v63 = vmul.f32 0.17677669, %v2145_v62  ;;  %v3653_v49 = vpop.f32.mrb[33].mxu1 }
 0xc32   : > { %v2148_v51 = vpop.f32.mrb[34].mxu1  ;;  %v2470_v49 = vld [vmem:[%s5467_s9 + $0x4] sm:$0xf] }
 0xc33   : > { %v5130_v1 = vpack.c.bf16 %v2151_v63, %v2151_v63  ;;  %v3654_v2 = vpop.f32.mrb[35].mxu1  ;;  %v2475_v51 = vsel %vm1415_vm5, %v2470_v49, 0 }
 0xc35   : > { %2342 = vrot.lane.b32.xlu0 %v5130_v1, %s4391_s23  ;;  %3658 = vmatmul.mubr.msk.bf16.vlgmr.msra.gmra.mrb[36].mxu0 %vm1341_vm3, %v5130_v1 }
 0xc36   : > { %3669 = vmatprep.mubr.msk.bf16.mxu0 %vm4390_vm1, %v4389_v0  ;;  %3668 = vmatpush3.bf16.msra.mxu0 %v2293_v22 }
 0xc37   : > { %3679 = vmatprep.subr.bf16.mxu0 %v4389_v0 }
 0xca7   : > { %v2343_v20 = vpop.permute.xlu0 %2342 }
 0xd08   : > { %v2209_v4 = vpop.f32.mrb[36].mxu0 }
 0xd09   : > { %v2210_v5 = vadd.f32 %v5140_v3, %v2209_v4  ;;  %v3659_v6 = vpop.f32.mrb[37].mxu0 }
 0xd0a   : > { %v2212_v7 = vpop.f32.mrb[38].mxu0 }
 0xd0b   : > { %v3660_v8 = vpop.f32.mrb[39].mxu0  ;;  %v2216_v9 = vsel %vm2215_vm10, %v2210_v5, -inf }
 0xd0c   : > { %2217 = vmax.xlane.f32.xlu1 %v2216_v9 }
 0xd1d   : > { %2417 = vrot.lane.b32.xlu1 %v3912_v10, %s4391_s23  ;;  %s988_s23 = scalar_lea.vmem [#allocation24], %s4874_s17 }
 0xd99   : > { %v2218_v12 = vpop.xlane.xlu1 %2217 }
 0xd9a   : > { %v2222_v13 = vsub.f32 %v2210_v5, %v2218_v12  ;;  %v2219_v23 = vsub.f32 -inf, %v2218_v12 }
 0xd9c   : > { %v2223_v14 = vmul.f32 1.442695, %v2222_v13  ;;  %v2220_v24 = vmul.f32 1.442695, %v2219_v23 }
 0xd9d   : > { %v2418_v37 = vpop.permute.xlu1 %2417 }
 0xd9e   : > { %3951 = vpow2.f32 %v2223_v14  ;;  %v2423_v39 = vsel %vm2239_vm9, %v2418_v37, 0 }
 0xd9f   : > { %3953 = vpow2.f32 %v2220_v24 }
 0xda8   : > { %v3952_v15 = vpop.eup %3951 }
 0xda9   : > { %v2226_v17 = vsel %vm2215_vm10, %v3952_v15, 0.0  ;;  %v2230_v18 = vpack.c.bf16 %v3952_v15, %v3952_v15  ;;  %v3954_v25 = vpop.eup %3953 }
 0xdaa   : > { %2227 = vadd.xlane.f32.xlu0 %v2226_v17  ;;  %v2225_v27 = vmul.f32 0.0, %v3954_v25  ;;  %v3915_v25 = vld [vmem:[#allocation4] sm:$0x3f]  }
 0xdab   : > { %3664 = vmatmul.mubr.msk.bf16.vlgmr.msra.gmra.mrb[36].mxu1 %vm2215_vm10, %v2230_v18 }
 0xdac   : > { %3674 = vmatpush3.bf16.xpose.msra.mxu1 %v2355_v19  ;;  %3675 = vmatprep.mubr.msk.bf16.mxu1 %vm4390_vm1, %v4389_v0 }
 0xdad   : > { %3685 = vmatprep.subr.bf16.mxu1 %v4389_v0 }
 0xdb3   : > { %3676 = vmatmul.mubr.msk.bf16.vlgmr.msra.gmra.mrb[40].mxu1 %vm1341_vm3, %v2343_v20 }
 0xdb4   : > { %3687 = vmatprep.mubr.msk.bf16.mxu1 %vm4390_vm1, %v4389_v0  ;;  %3686 = vmatpush3.bf16.msra.mxu1 %v2475_v51 }
 0xdb5   : > { %3697 = vmatprep.subr.bf16.mxu1 %v4389_v0 }
 0xdc0   : > { %2523 = vrot.lane.b32.xlu0 %v5130_v1, %s4392_s20 }
 0xe37   : > { %v2228_v26 = vpop.xlane.xlu0 %2227 }
 0xe38   : > { %v2229_v28 = vadd.f32 %v2228_v26, %v2225_v27 }
 0xe3a   : > { %3955 = vrcp.f32 %v2229_v28 }
 0xe3b   : > { %v2524_v36 = vpop.permute.xlu0 %2523 }
 0xe44   : > { %v3956_v32 = vpop.eup %3955 }
 0xe7e   : > { %v2277_v29 = vpop.f32.mrb[36].mxu1 }
 0xe7f   : > { %v2283_v30 = vadd.f32 %v2277_v29, %v2225_v27  ;;  %v3665_v31 = vpop.f32.mrb[37].mxu1 }
 0xe80   : > { %v2280_v33 = vpop.f32.mrb[38].mxu1 }
 0xe81   : > { %v2285_v34 = vmul.f32 %v3956_v32, %v2283_v30  ;;  %v3666_v35 = vpop.f32.mrb[39].mxu1 }
 0xe82   : > { %v3916_v35 = vld [vmem:[#allocation5] sm:$0x3f]  }
 0xe83   : > { %v2287_v38 = vpack.c.bf16 %v2285_v34, %v2285_v34 }
 0xe85   : > { %3670 = vmatmul.mubr.msk.bf16.vlgmr.msra.gmra.mrb[40].mxu0 %vm1341_vm3, %v2287_v38 }
 0xe86   : > { %3680 = vmatpush3.bf16.msra.mxu0 %v2423_v39  ;;  %v2391_v40 = vpop.f32.mrb[40].mxu1  ;;  %3681 = vmatprep.mubr.msk.bf16.mxu0 %vm4390_vm1, %v4389_v0 }
 0xe87   : > { %v2392_v41 = vadd.f32 %v5140_v3, %v2391_v40  ;;  %v3677_v42 = vpop.f32.mrb[41].mxu1  ;;  %3691 = vmatprep.subr.bf16.mxu0 %v4389_v0 }
 0xe88   : > { %v2394_v11 = vpop.f32.mrb[42].mxu1 }
 0xe89   : > { %v3678_v43 = vpop.f32.mrb[43].mxu1  ;;  %v2397_v44 = vsel %vm2215_vm10, %v2392_v41, -inf  ;;  %v2651_v11 = vld [vmem:[%s5467_s9 + $0x8] sm:$0xf] }
 0xe8a   : > { %2398 = vmax.xlane.f32.xlu1 %v2397_v44  ;;  %v2656_v43 = vsel %vm1415_vm5, %v2651_v11, 0 }
 0xe9b   : > { %2530 = vrot.lane.b32.xlu1 %v3913_v45, %s4392_s20 }
 0xf17   : > { %v2399_v46 = vpop.xlane.xlu1 %2398 }
 0xf18   : > { %v2403_v47 = vsub.f32 %v2392_v41, %v2399_v46  ;;  %v2400_v2 = vsub.f32 -inf, %v2399_v46 }
 0xf1a   : > { %v2404_v48 = vmul.f32 1.442695, %v2403_v47  ;;  %v2401_v4 = vmul.f32 1.442695, %v2400_v2 }
 0xf1b   : > { %v2531_v52 = vpop.permute.xlu1 %2530 }
 0xf1c   : > { %3957 = vpow2.f32 %v2404_v48  ;;  %v2536_v55 = vsel %vm1341_vm3, %v2531_v52, 0 }
 0xf1d   : > { %3959 = vpow2.f32 %v2401_v4 }
 0xf26   : > { %v3958_v50 = vpop.eup %3957 }
 0xf27   : > { %v2407_v53 = vsel %vm2215_vm10, %v3958_v50, 0.0  ;;  %v2411_v54 = vpack.c.bf16 %v3958_v50, %v3958_v50 }
 0xf28   : > { %2408 = vadd.xlane.f32.xlu1 %v2407_v53 }
 0xf29   : > { %3682 = vmatmul.mubr.msk.bf16.vlgmr.msra.gmra.mrb[44].mxu0 %vm2215_vm10, %v2411_v54 }
 0xf2a   : > { %3692 = vmatpush3.bf16.xpose.msra.mxu0 %v2536_v55  ;;  %3693 = vmatprep.mubr.msk.bf16.mxu0 %vm4390_vm1, %v4389_v0 }
 0xf2b   : > { %3703 = vmatprep.subr.bf16.mxu0 %v4389_v0 }
 0xf31   : > { %3694 = vmatmul.mubr.msk.bf16.vlgmr.msra.gmra.mrb[48].mxu0 %vm1341_vm3, %v2524_v36 }
 0xf32   : > { %3705 = vmatprep.mubr.msk.bf16.mxu0 %vm4390_vm1, %v4389_v0  ;;  %3704 = vmatpush3.bf16.msra.mxu0 %v2656_v43 }
 0xf33   : > { %3715 = vmatprep.subr.bf16.mxu0 %v4389_v0 }
 0xf39   : > { %2598 = vrot.lane.b32.xlu1 %v3914_v56, %s4392_s20  ;;  %s5472_s20 = sld [smem:[#allocation58_spill]] }
 0xf3d   : > { %2704 = vrot.lane.b32.xlu1 %v5130_v1, %s4393_s4  ;;  %v3960_v1 = vpop.eup %3959 }
 0xf3e   : > { %v2406_v6 = vmul.f32 0.0, %v3960_v1 }
 0xf58   : > { %v2329_v59 = vpop.f32.mrb[40].mxu0 }
 0xf59   : > { %v2335_v60 = vadd.f32 %v2329_v59, %v2286_v57  ;;  %v3671_v61 = vpop.f32.mrb[41].mxu0 }
 0xf5a   : > { %v2332_v62 = vpop.f32.mrb[42].mxu0 }
 0xf5b   : > { %2336 = vst.msk [vmem:[#allocation6] sm:$0xff] %vm1016_vm0, %v2335_v60  ;;  %v3672_v63 = vpop.f32.mrb[43].mxu0 }
 0xf62   : > { %v2468_v37 = vld [vmem:[#allocation6] sm:$0xff] }
 0xfb5   : > { %v2409_v5 = vpop.xlane.xlu1 %2408 }
 0xfb6   : > { %v2410_v7 = vadd.f32 %v2409_v5, %v2406_v6 }
 0xfb8   : > { %3961 = vrcp.f32 %v2410_v7 }
 0xfb9   : > { %v2599_v16 = vpop.permute.xlu1 %2598 }
 0xfba   : > { %v2604_v18 = vsel %vm2239_vm9, %v2599_v16, 0  ;;  %v2832_v16 = vld [vmem:[%s5467_s9 + $0xc] sm:$0xf] }
 0xfbd   : > { %v2705_v34 = vpop.permute.xlu1 %2704 }
 0xfc2   : > { %v3962_v12 = vpop.eup %3961 }
 0xffc   : > { %v2459_v8 = vpop.f32.mrb[44].mxu0 }
 0xffd   : > { %v2465_v9 = vadd.f32 %v2459_v8, %v2406_v6  ;;  %v3683_v10 = vpop.f32.mrb[45].mxu0 }
 0xffe   : > { %v2462_v13 = vpop.f32.mrb[46].mxu0 }
 0xfff   : > { %v2467_v14 = vmul.f32 %v3962_v12, %v2465_v9  ;;  %v3684_v15 = vpop.f32.mrb[47].mxu0 }
0x1001   : > { %v2469_v17 = vpack.c.bf16 %v2467_v14, %v2467_v14 }
0x1003   : > { %3688 = vmatmul.mubr.msk.bf16.vlgmr.msra.gmra.mrb[44].mxu1 %vm1341_vm3, %v2469_v17  ;;  %v2837_v17 = vsel %vm1415_vm5, %v2832_v16, 0 }
0x1004   : > { %3698 = vmatpush3.bf16.msra.mxu1 %v2604_v18  ;;  %v2572_v19 = vpop.f32.mrb[48].mxu0  ;;  %3699 = vmatprep.mubr.msk.bf16.mxu1 %vm4390_vm1, %v4389_v0 }
0x1005   : > { %v2573_v20 = vadd.f32 %v5140_v3, %v2572_v19  ;;  %v3695_v21 = vpop.f32.mrb[49].mxu0  ;;  %3709 = vmatprep.subr.bf16.mxu1 %v4389_v0 }
0x1006   : > { %v2575_v22 = vpop.f32.mrb[50].mxu0 }
0x1007   : > { %v3696_v23 = vpop.f32.mrb[51].mxu0  ;;  %v2578_v24 = vsel %vm2215_vm10, %v2573_v20, -inf }
0x1008   : > { %2579 = vmax.xlane.f32.xlu0 %v2578_v24 }
0x101e   : > { %2711 = vrot.lane.b32.xlu0 %v3915_v25, %s4393_s4 }
0x1095   : > { %v2580_v26 = vpop.xlane.xlu0 %2579 }
0x1096   : > { %v2584_v27 = vsub.f32 %v2573_v20, %v2580_v26  ;;  %v2581_v44 = vsub.f32 -inf, %v2580_v26 }
0x1098   : > { %v2585_v28 = vmul.f32 1.442695, %v2584_v27  ;;  %v2582_v45 = vmul.f32 1.442695, %v2581_v44 }
0x1099   : > { %v2712_v30 = vpop.permute.xlu0 %2711 }
0x109a   : > { %3963 = vpow2.f32 %v2585_v28  ;;  %v2717_v33 = vsel %vm1341_vm3, %v2712_v30, 0 }
0x109b   : > { %3965 = vpow2.f32 %v2582_v45 }
0x10a4   : > { %v3964_v29 = vpop.eup %3963 }
0x10a5   : > { %v2588_v31 = vsel %vm2215_vm10, %v3964_v29, 0.0  ;;  %v2592_v32 = vpack.c.bf16 %v3964_v29, %v3964_v29  ;;  %v3966_v46 = vpop.eup %3965 }
0x10a6   : > { %2589 = vadd.xlane.f32.xlu1 %v2588_v31  ;;  %v2587_v48 = vmul.f32 0.0, %v3966_v46 }
0x10a7   : > { %3700 = vmatmul.mubr.msk.bf16.vlgmr.msra.gmra.mrb[48].mxu1 %vm2215_vm10, %v2592_v32 }
0x10a8   : > { %3710 = vmatpush3.bf16.xpose.msra.mxu1 %v2717_v33  ;;  %3711 = vmatprep.mubr.msk.bf16.mxu1 %vm4390_vm1, %v4389_v0 }
0x10a9   : > { %3721 = vmatprep.subr.bf16.mxu1 %v4389_v0 }
0x10af   : > { %3712 = vmatmul.mubr.msk.bf16.vlgmr.msra.gmra.mrb[52].mxu1 %vm1341_vm3, %v2705_v34 }
0x10b0   : > { %3723 = vmatprep.mubr.msk.bf16.mxu1 %vm4390_vm1, %v4389_v0  ;;  %3722 = vmatpush3.bf16.msra.mxu1 %v2837_v17 }
0x10b1   : > { %3735 = vmatprep.subr.bf16.mxu1 %v4389_v0 }
0x10b7   : > { %2779 = vrot.lane.b32.xlu1 %v3916_v35, %s4393_s4 }
0x10d6   : > { %v2511_v38 = vpop.f32.mrb[44].mxu1 }
0x10d7   : > { %v2517_v39 = vadd.f32 %v2511_v38, %v2468_v37  ;;  %v3689_v40 = vpop.f32.mrb[45].mxu1 }
0x10d8   : > { %v2514_v41 = vpop.f32.mrb[46].mxu1 }
0x10d9   : > { %2518 = vst.msk [vmem:[#allocation6] sm:$0xff] %vm1016_vm0, %v2517_v39  ;;  %v3690_v42 = vpop.f32.mrb[47].mxu1  ;;  %v3437_v39 = vld [vmem:[#allocation19] ss:$0 sm:$0xff] }
0x1133   : > { %v2590_v47 = vpop.xlane.xlu1 %2589 }
0x1134   : > { %v2591_v50 = vadd.f32 %v2590_v47, %v2587_v48 }
0x1136   : > { %3967 = vrcp.f32 %v2591_v50  ;;  %v3918_v50 = vld [vmem:[%s5468_s1 + $0x8] sm:$0xff]  }
0x1137   : > { %v2780_v59 = vpop.permute.xlu1 %2779 }
0x1138   : > { %v2785_v61 = vsel %vm2239_vm9, %v2780_v59, 0 }
0x1140   : > { %v3968_v55 = vpop.eup %3967 }
0x117a   : > { %v2640_v52 = vpop.f32.mrb[48].mxu1 }
0x117b   : > { %v2646_v53 = vadd.f32 %v2640_v52, %v2587_v48  ;;  %v3701_v54 = vpop.f32.mrb[49].mxu1  ;;  %v3917_v48 = vld [vmem:[%s5468_s1] sm:$0xff]   ;;  %v3920_v52 = vld [vmem:[%s5470_s19 + $0x8] sm:$0xff]   ;;  %s5476_s1 = sld [smem:[#allocation61_spill]] }
0x117c   : > { %v2643_v36 = vpop.f32.mrb[50].mxu1 }
0x117d   : > { %v2648_v56 = vmul.f32 %v3968_v55, %v2646_v53  ;;  %v3702_v57 = vpop.f32.mrb[51].mxu1 }
0x117f   : > { %v2650_v60 = vpack.c.bf16 %v2648_v56, %v2648_v56 }
0x1181   : > { %3706 = vmatmul.mubr.msk.bf16.vlgmr.msra.gmra.mrb[52].mxu0 %vm1341_vm3, %v2650_v60 }
0x1182   : > { %3716 = vmatpush3.bf16.msra.mxu0 %v2785_v61  ;;  %v2753_v62 = vpop.f32.mrb[52].mxu1  ;;  %3717 = vmatprep.mubr.msk.bf16.mxu0 %vm4390_vm1, %v4389_v0 }
0x1183   : > { %v2754_v63 = vadd.f32 %v5140_v3, %v2753_v62  ;;  %v3713_v49 = vpop.f32.mrb[53].mxu1  ;;  %3727 = vmatprep.subr.bf16.mxu0 %v4389_v0  ;;  %v2649_v3 = vld [vmem:[#allocation6] sm:$0xff] }
0x1184   : > { %v2756_v51 = vpop.f32.mrb[54].mxu1  ;;  %v3438_v62 = vld [vmem:[#allocation21] ss:$0 sm:$0xff]  ;;  %v3439_v49 = vld [vmem:[#allocation22] ss:$0 sm:$0xff] }
0x1185   : > { %v3714_v2 = vpop.f32.mrb[55].mxu1  ;;  %v2759_v4 = vsel %vm2215_vm10, %v2754_v63, -inf }
0x1186   : > { %2760 = vmax.xlane.f32.xlu0 %v2759_v4 }
0x1213   : > { %v2761_v1 = vpop.xlane.xlu0 %2760 }
0x1214   : > { %v2765_v5 = vsub.f32 %v2754_v63, %v2761_v1  ;;  %v2762_v18 = vsub.f32 -inf, %v2761_v1  ;;  %v3921_v1 = vld [vmem:[%s5470_s19 + $0x10] sm:$0xff]  }
0x1216   : > { %v2766_v6 = vmul.f32 1.442695, %v2765_v5  ;;  %v2763_v19 = vmul.f32 1.442695, %v2762_v18  ;;  %v3922_v5 = vld [vmem:[%s5470_s19 + $0x18] sm:$0xff]  }
0x1218   : > { %3969 = vpow2.f32 %v2766_v6  ;;  %v3440_v6 = vld [vmem:[%s5471_s25] ss:$0 sm:$0xff]  ;;  %s3453_s25 = sshll.u32 %s4369_s30, 6  ;;  %s4394_s30 = smov [#allocation24]  }
0x1219   : > { %3971 = vpow2.f32 %v2763_v19  ;;  %s5277_s5 = scalar_lea.hbm %s5476_s1, %s3453_s25  ;;  %s4275_s17 = sshll.u32 %s4394_s30, 4  ;;  %s4276_s17 = int_to_ptr.vmem [resolvable:$false] %s4275_s17 }
0x1222   : > { %v3970_v7 = vpop.eup %3969 }
0x1223   : > { %v2769_v8 = vsel %vm2215_vm10, %v3970_v7, 0.0  ;;  %v2773_v9 = vpack.c.bf16 %v3970_v7, %v3970_v7  ;;  %v3972_v20 = vpop.eup %3971 }
0x1224   : > { %2770 = vadd.xlane.f32.xlu0 %v2769_v8  ;;  %v2768_v22 = vmul.f32 0.0, %v3972_v20 }
0x1225   : > { %3718 = vmatmul.mubr.msk.bf16.vlgmr.msra.gmra.mrb[56].mxu0 %vm2215_vm10, %v2773_v9 }
0x1226   : > { %3731 = vmatprep.mubr.msk.bf16.mxu0 %vm4390_vm1, %v4389_v0  ;;  %3728 = vmatpush3.bf16.msra.mxu0 %v3917_v48 }
0x1227   : > { %3729 = vmatprep.subr.bf16.mxu0 %v4389_v0 }
0x122a   : > { %3730 = vmatpush3.bf16.msra.mxu0 %v3918_v50 }
0x1254   : > { %v2692_v10 = vpop.f32.mrb[52].mxu0 }
0x1255   : > { %v2698_v12 = vadd.f32 %v2692_v10, %v2649_v3  ;;  %v3707_v13 = vpop.f32.mrb[53].mxu0 }
0x1256   : > { %v2695_v14 = vpop.f32.mrb[54].mxu0 }
0x1257   : > { %2699 = vst.msk [vmem:[#allocation6] sm:$0xff] %vm1016_vm0, %v2698_v12  ;;  %v3708_v15 = vpop.f32.mrb[55].mxu0 }
0x125e   : > { %v2830_v32 = vld [vmem:[#allocation6] sm:$0xff] }
0x12b1   : > { %v2771_v21 = vpop.xlane.xlu0 %2770 }
0x12b2   : > { %v2772_v23 = vadd.f32 %v2771_v21, %v2768_v22 }
0x12b4   : > { %3973 = vrcp.f32 %v2772_v23 }
0x12be   : > { %v3974_v27 = vpop.eup %3973 }
0x12f8   : > { %v2821_v24 = vpop.f32.mrb[56].mxu0 }
0x12f9   : > { %v2827_v25 = vadd.f32 %v2821_v24, %v2768_v22  ;;  %v3719_v26 = vpop.f32.mrb[57].mxu0 }
0x12fa   : > { %v2824_v28 = vpop.f32.mrb[58].mxu0 }
0x12fb   : > { %v2829_v29 = vmul.f32 %v3974_v27, %v2827_v25  ;;  %v3720_v30 = vpop.f32.mrb[59].mxu0 }
0x12fd   : > { %v2831_v31 = vpack.c.bf16 %v2829_v29, %v2829_v29 }
0x12ff   : > { %3724 = vmatmul.mubr.msk.bf16.vlgmr.msra.gmra.mrb[56].mxu1 %vm1341_vm3, %v2831_v31 }
0x1300   : > { %3743 = vmatprep.mubr.msk.bf16.mxu1 %vm4390_vm1, %v4389_v0 }
0x13d2   : > { %v2873_v33 = vpop.f32.mrb[56].mxu1 }
0x13d3   : > { %v2879_v34 = vadd.f32 %v2873_v33, %v2830_v32  ;;  %v3725_v35 = vpop.f32.mrb[57].mxu1 }
0x13d4   : > { %v2876_v37 = vpop.f32.mrb[58].mxu1  ;;  %v3450_v35 = vld [vmem:[%s5473_s16] ss:$0 sm:$0xff]  ;;  %s4277_s16 = scalar_lea.vmem %s4276_s17, 128 }
0x13d5   : > { %2880 = vst.msk [vmem:[#allocation6] sm:$0xff] %vm1016_vm0, %v2879_v34  ;;  %v3726_v38 = vpop.f32.mrb[59].mxu1 }
0x13d6   : > { %v3451_v38 = vld [vmem:[%s5475_s26] ss:$0 sm:$0xff] }
0x13dc   : > { %v2881_v40 = vld [vmem:[#allocation6] sm:$0xff] }
0x13dd   : > { %v2889_v41 = vadd.f32 %v3437_v39, %v2881_v40 }
0x13df   : > { %v2890_v42 = vadd.f32 %v2889_v41, %v5121_v58  ;;  %v3919_v58 = vld [vmem:[%s5469_s29] sm:$0xff]   ;;  %s3134_s29 = sshll.u32 %s988_s23, 4  ;;  %s5279_s29 = int_to_ptr.vmem [resolvable:$true] %s3134_s29 }
0x13e0   : > { %3736 = vmatpush3.bf16.msra.mxu1 %v3919_v58  ;;  %s4271_s4 = scalar_lea.vmem %s5279_s29, 64  ;;  %p4278_p11 = scmp.lt.s32.totalorder %s5279_s29, %s4276_s17 }
0x13e1   : > { %v2893_v11 = vsel %vm1016_vm0, %v2890_v42, 0.0  ;;  %3737 = vmatprep.subr.bf16.mxu1 %v4389_v0  ;;  %p4272_p10 = scmp.ne.s32.totalorder %s5279_s29, %s4271_s4  ;;  %p4279_p5 = scmp.lt.s32.totalorder %s4277_s16, %s4271_s4 }
0x13e2   : > { %2894 = vadd.xlane.f32.xlu0 %v2893_v11 }
0x13e3   : > { %p4273_p12 = pnand %p4272_p10, %p5477_p3  ;;  %p4280_p13 = por %p4279_p5, %p4278_p11 }
0x13e4   : > { %3738 = vmatpush3.bf16.msra.mxu1 %v3920_v52 }
0x13e5   : > { %3739 = vmatprep.subr.bf16.mxu1 %v4389_v0  ;;  %p4274_p9 = pneg %p4273_p12 }
0x13e7   : > { %p4281_p8 = pnand %p4280_p13, %p4274_p9 }
0x13e8   : > { %3740 = vmatpush3.bf16.msra.mxu1 %v3921_v1 }
0x13e9   : > { %3741 = vmatprep.subr.bf16.mxu1 %v4389_v0  ;;  %v3444_v0 = vld [vmem:[%s5472_s20] ss:$0 sm:$0xff] }
0x13ec   : > { %3742 = vmatpush3.bf16.msra.mxu1 %v3922_v5 }
0x146f   : > { %v2895_v43 = vpop.xlane.xlu0 %2894 }
0x1470   : > { %v2896_v44 = vmul.f32 0.03125, %v2895_v43 }
0x1472   : > { %v2897_v45 = vsub.f32 %v2890_v42, %v2896_v44 }
0x1474   : > { %v2898_v46 = vmul.f32 %v2897_v45, %v2897_v45 }
0x1476   : > { %v2899_v47 = vsel %vm1016_vm0, %v2898_v46, 0.0 }
0x1477   : > { %2900 = vadd.xlane.f32.xlu1 %v2899_v47 }
0x1504   : > { %v2901_v53 = vpop.xlane.xlu1 %2900 }
0x1505   : > { %v2902_v54 = vmul.f32 0.032258064, %v2901_v53 }
0x1507   : > { %3975 = vrsqrt.f32 %v2902_v54  ;;  %vm2905_vm11 = vcmp.eq.f32.partialorder %v2902_v54, inf  ;;  %v2908_v56 = vand.u32 2147483648, %v2902_v54  ;;  %vm2907_vm12 = vcmp.eq.f32.partialorder %v2902_v54, 0.0 }
0x1511   : > { %v3976_v55 = vpop.eup %3975 }
0x1512   : > { %v2904_v36 = vmul.f32 %v3976_v55, %v2902_v54 }
0x1514   : > { %v2906_v57 = vsel %vm2905_vm11, %v2902_v54, %v2904_v36 }
0x1515   : > { %v2909_v59 = vsel %vm2907_vm12, %v2908_v56, %v2906_v57 }
0x1516   : > { %v2910_v60 = vadd.f32 0.001, %v2909_v59 }
0x1518   : > { %3977 = vrcp.f32 %v2910_v60 }
0x1522   : > { %v3978_v61 = vpop.eup %3977 }
0x1523   : > { %v2912_v63 = vmul.f32 %v3978_v61, %v2897_v45 }
0x1525   : > { %v2919_v51 = vmul.f32 %v3438_v62, %v2912_v63 }
0x1527   : > { %v2926_v2 = vadd.f32 %v3439_v49, %v2919_v51 }
0x1529   : > { %v2927_v4 = vpack.c.bf16 %v2926_v2, %v2926_v2 }
0x152b   : > { %3732 = vmatmul.mubr.msk.bf16.vlgmr.msra.gmra.mrb[60].mxu0 %vm1016_vm0, %v2927_v4 }
0x15fe   : > { %v2988_v7 = vpop.f32.mrb[60].mxu0 }
0x15ff   : > { %v2989_v8 = vadd.f32 %v3440_v6, %v2988_v7  ;;  %v3733_v9 = vpop.f32.mrb[61].mxu0 }
0x1600   : > { %v2991_v3 = vpop.f32.mrb[62].mxu0 }
0x1601   : > { %v2994_v10 = vmax.f32 %v2989_v8, 0.0  ;;  %v3734_v12 = vpop.f32.mrb[63].mxu0 }
0x1603   : > { %v2995_v13 = vpack.c.bf16 %v2994_v10, %v2994_v10 }
0x1605   : > { %3744 = vmatmul.mubr.msk.bf16.vlgmr.msra.gmra.mrb[60].mxu1 %vm3035_vm13, %v2995_v13 }
0x16d8   : > { %v3073_v14 = vpop.f32.mrb[60].mxu1 }
0x16d9   : > { %v3074_v15 = vadd.f32 %v3444_v0, %v3073_v14  ;;  %v3745_v16 = vpop.f32.mrb[61].mxu1 }
0x16da   : > { %v3076_v17 = vpop.f32.mrb[62].mxu1 }
0x16db   : > { %v3746_v18 = vpop.f32.mrb[63].mxu1  ;;  %v3079_v19 = vadd.f32 %v3074_v15, %v2926_v2 }
0x16dd   : > { %v3082_v20 = vsel %vm1016_vm0, %v3079_v19, 0.0 }
0x16de   : > { %3083 = vadd.xlane.f32.xlu0 %v3082_v20 }
0x176b   : > { %v3084_v21 = vpop.xlane.xlu0 %3083 }
0x176c   : > { %v3085_v22 = vmul.f32 0.03125, %v3084_v21 }
0x176e   : > { %v3086_v23 = vsub.f32 %v3079_v19, %v3085_v22 }
0x1770   : > { %v3087_v24 = vmul.f32 %v3086_v23, %v3086_v23 }
0x1772   : > { %v3088_v25 = vsel %vm1016_vm0, %v3087_v24, 0.0 }
0x1773   : > { %3089 = vadd.xlane.f32.xlu0 %v3088_v25 }
0x1800   : > { %v3090_v26 = vpop.xlane.xlu0 %3089 }
0x1801   : > { %v3091_v27 = vmul.f32 0.032258064, %v3090_v26 }
0x1803   : > { %3979 = vrsqrt.f32 %v3091_v27  ;;  %vm3094_vm14 = vcmp.eq.f32.partialorder %v3091_v27, inf  ;;  %v3097_v30 = vand.u32 2147483648, %v3091_v27  ;;  %vm3096_vm15 = vcmp.eq.f32.partialorder %v3091_v27, 0.0 }
0x180d   : > { %v3980_v28 = vpop.eup %3979 }
0x180e   : > { %v3093_v29 = vmul.f32 %v3980_v28, %v3091_v27 }
0x1810   : > { %v3095_v31 = vsel %vm3094_vm14, %v3091_v27, %v3093_v29 }
0x1811   : > { %v3098_v32 = vsel %vm3096_vm15, %v3097_v30, %v3095_v31 }
0x1812   : > { %v3099_v33 = vadd.f32 0.001, %v3098_v32 }
0x1814   : > { %3981 = vrcp.f32 %v3099_v33 }
0x181e   : > { %v3982_v34 = vpop.eup %3981 }
0x181f   : > { %v3101_v37 = vmul.f32 %v3982_v34, %v3086_v23 }
0x1821   : > { %v3108_v39 = vmul.f32 %v3450_v35, %v3101_v37 }
0x1823   : > { %v3115_v40 = vadd.f32 %v3451_v38, %v3108_v39 }
0x1825   : > { %v3116_v41 = vpack.c.bf16 %v3115_v40, %v3115_v40 }
0x1827   : > { %3118 = vst.msk [vmem:[%s988_s23] sm:$0xf] %vm1061_vm2, %v3116_v41 }
0x1828   : > { %4284 = shalt.err (!%p4281_p8)
}
0x1829   : > { %s4285_s28 = scalar_lea.hbm %s5277_s5, 64  ;;  %s4289_s10 = scalar_lea.hbm %s5476_s1, 128 }
0x182a   : > { %p4286_p1 = scmp.ne.s32.totalorder %s5277_s5, %s4285_s28  ;;  %p4290_p4 = scmp.lt.u32.totalorder %s5277_s5, %s5476_s1 }
0x182b   : > { %p4291_p0 = scmp.lt.u32.totalorder %s4289_s10, %s4285_s28  ;;  %p4293_p10 = scmp.lt.u32.totalorder %s4285_s28, %s5277_s5 }
0x182c   : > { %p4287_p2 = pnand %p4286_p1, %p5477_p3 }
0x182d   : > { %p4292_p7 = por %p4291_p0, %p4290_p4 }
0x182e   : > { %p4288_p6 = pneg %p4287_p2 }
0x182f   : > { %p4294_p12 = por %p4293_p10, %p4292_p7 }
0x1831   : > { %p4295_p9 = pnand %p4294_p12, %p4288_p6 }
0x1833   : > { %4298 = shalt.err (!%p4295_p9)
}
0x1834   : > { %3779 = dma.vmem_to_hbm [thread:$0]  (%p5477_p3), %s5279_s29, 64, %s5277_s5, %s3120_s24  }
0x1835 PF: > { %s5478_s23 = sld [smem:[#allocation33_spill]]  ;;  %s5479_s20 = sld [smem:[#allocation38_spill]] }
0x1836   : > { %p5481_p5 = scmp.ge.s32.totalorder %s4377_s3, 2 }
0x183b   : > { %s3146_s4 = sand.u32 1, %s5478_s23   ;;  %p5480_p11 = scmp.ne.s32.totalorder %s5479_s20, 0 }
0x183c   : > { %s3147_s30 = scalar_lea.sflag [#allocation9], %s3146_s4 }
0x183d   : > { %p3814_p13 = pnand %p5481_p5, %p5480_p11 }
0x183f   : > { %4352 = dma.done.wait (!%p3814_p13), %s3147_s30, 64  }
0x1840   : > { %4354 = vsyncadd (!%p3814_p13), %s3147_s30, 4294967232  ;;  %s50_s3 = sadd.s32 1, %s4377_s3   ;;  %s5482_s17 = sld [smem:[#allocation34_spill]] }
0x1841   : > { %p47_p8 = scmp.ge.s32.totalorder %s50_s3, 4   ;;  %s5483_s6 = sld [smem:[#allocation37_spill]] }
0x1842   : > { %s5484_s11 = sld [smem:[#allocation35_spill]]  ;;  %s5485_s29 = smov %s4361_s2 }
0x1843   : > { %s5487_s30 = smov %s4373_s7  ;;  %49 = sbr.rel (!%p47_p8) target bundleno = 37 (0x25), region = 233 }
0x1846   : > { %s5486_s2 = smov %s5482_s17 }
0x1848   : > { %s5488_s7 = smov %s5484_s11 }
0x184a   :  { %3152 = vsyncpa [#allocation8], 1 }
0x184b   :  { %3154 = vsyncpa [#allocation8 + $0x1], 1 }
0x184c   :  { %3155 = vsyncpa [#allocation11], 1 }
0x184d   :  { %3157 = vsyncpa [#allocation11 + $0x1], 1 }
0x184e   :  { %3158 = vsyncpa [#allocation14], 1 }
0x184f   :  { %3160 = vsyncpa [#allocation14 + $0x1], 1 }
0x1850   :  { %3161 = vsyncpa [#allocation17], 1 }
0x1851   :  { %3162 = vsyncpa [#allocation20], 1 }
0x1852   :  { %3163 = vsyncpa [#allocation23], 1 }
0x1853   :  { %3164 = vsyncpa [#allocation9], 1 }
0x1854   :  { %3166 = vsyncpa [#allocation9 + $0x1], 1 }

</bundles_post_ra>
